<compile_context>
chip_gen: v6e
topology: v6e:2x2x1
jax: 0.10.0
libtpu: 0.0.40
codegen_flags: <defaults>
</compile_context>

<pallas_src>
import functools

import jax
import jax.numpy as jnp
from jax.experimental import pallas as pl
from jax.experimental.pallas import tpu as pltpu

EPS = 1e-5  # nn.InstanceNorm2d default eps (affine=False, biased variance)


def _conv3x3_instnorm(pf_ref, w_ref, b_ref, mask, inv_count, H, W):
    """3x3 valid conv over the flat reflection-padded scratch + masked instance norm.

    pf_ref: (>= (H+2)*(W+2)+2, C) bf16 scratch: padded image, row-major, row stride Wp.
    w_ref:  (9, Cin, Cout) bf16 taps in ky*3+kx order.
    b_ref:  (1, Cout) f32 bias.
    mask:   (H*Wp, 1) f32; 1.0 where the flat row is a real output pixel.
    Returns (H*Wp, Cout) f32, instance-normalized; rows with flat col >= W are garbage
    (they are masked out of the statistics and discarded downstream).
    """
    Wp = W + 2
    rows = H * Wp
    cout = w_ref.shape[2]
    acc = jnp.zeros((rows, cout), jnp.float32)
    for ky in range(3):
        for kx in range(3):
            d = ky * Wp + kx
            lhs = pf_ref[pl.ds(d, rows), :]              # shifted window, no im2col copy
            acc = acc + jnp.dot(lhs, w_ref[ky * 3 + kx],
                                preferred_element_type=jnp.float32)
    acc = acc + b_ref[...]
    s = jnp.sum(acc * mask, axis=0, keepdims=True)       # one-pass masked stats
    ss = jnp.sum(acc * acc * mask, axis=0, keepdims=True)
    mean = s * inv_count
    var = ss * inv_count - mean * mean
    return (acc - mean) * jax.lax.rsqrt(var + EPS)


def resblock_kernel(x_ref, w1_ref, b1_ref, w2_ref, b2_ref, mask_ref,
                    out_ref, pf_ref, *, H, W):
    C = x_ref.shape[2]
    Hp, Wp = H + 2, W + 2
    rows = H * Wp
    pad_rows = Hp * Wp
    inv_count = 1.0 / float(H * W)
    mask = mask_ref[...]                                  # (rows, 1) f32

    # Zero the few trailing scratch rows read by the boundary tap windows.
    tail = pf_ref.shape[0] - pad_rows
    pf_ref[pl.ds(pad_rows, tail), :] = jnp.zeros((tail, C), pf_ref.dtype)

    # ---------------- stage 1: reflection-pad x into the flat scratch ----------------
    xb = x_ref[0]                                         # (H*W, C) f32, single load
    xbf = xb.astype(pf_ref.dtype)
    for i in range(H):
        row = xbf[i * W:(i + 1) * W, :]                   # (W, C)
        base = (i + 1) * Wp
        pf_ref[pl.ds(base + 1, W), :] = row               # interior
        pf_ref[pl.ds(base, 1), :] = row[1:2, :]           # left reflect  (col -1 -> 1)
        pf_ref[pl.ds(base + W + 1, 1), :] = row[W - 2:W - 1, :]   # right reflect
    pf_ref[pl.ds(0, Wp), :] = pf_ref[pl.ds(2 * Wp, Wp), :]                     # top reflect
    pf_ref[pl.ds((Hp - 1) * Wp, Wp), :] = pf_ref[pl.ds((Hp - 3) * Wp, Wp), :]  # bottom reflect

    # conv1 + InstanceNorm + ReLU (intermediate stays in VMEM, never hits HBM)
    y = _conv3x3_instnorm(pf_ref, w1_ref, b1_ref, mask, inv_count, H, W)
    y = jnp.maximum(y, 0.0).astype(pf_ref.dtype)          # (rows, C) bf16

    # ---------------- stage 2: reflection-pad y (flat, stride Wp) in place ----------------
    pf_ref[pl.ds(Wp + 1, rows), :] = y                    # bulk interior (pads fixed below)
    for i in range(H):
        base = (i + 1) * Wp
        pf_ref[pl.ds(base, 1), :] = y[i * Wp + 1:i * Wp + 2, :]
        pf_ref[pl.ds(base + W + 1, 1), :] = y[i * Wp + W - 2:i * Wp + W - 1, :]
    pf_ref[pl.ds(0, Wp), :] = pf_ref[pl.ds(2 * Wp, Wp), :]
    pf_ref[pl.ds((Hp - 1) * Wp, Wp), :] = pf_ref[pl.ds((Hp - 3) * Wp, Wp), :]

    # conv2 + InstanceNorm, residual add, single lane-dense (C=256) output store.
    z = _conv3x3_instnorm(pf_ref, w2_ref, b2_ref, mask, inv_count, H, W)
    z_valid = jnp.concatenate([z[i * Wp:i * Wp + W, :] for i in range(H)], axis=0)
    out_ref[0] = xb + z_valid


def residual_block(x_nchw, w1_oihw, b1, w2_oihw, b2):
    """PyTorch-layout interface: x (N,C,H,W), weights (O,I,3,3). Returns (N,C,H,W)."""
    N, C, H, W = x_nchw.shape
    Hp, Wp = H + 2, W + 2
    rows = H * Wp
    pad_rows = Hp * Wp
    pf_rows = ((pad_rows + 2 + 7) // 8) * 8               # scratch rows (>= pad_rows + 2)

    # Layout plumbing (XLA): NCHW -> flat NHWC activations, OIHW -> (9, Cin, Cout) bf16.
    x_flat = jnp.transpose(x_nchw, (0, 2, 3, 1)).reshape(N, H * W, C).astype(jnp.float32)

    def prep_w(w):
        return jnp.transpose(w, (2, 3, 1, 0)).reshape(9, C, C).astype(jnp.bfloat16)

    w1f, w2f = prep_w(w1_oihw), prep_w(w2_oihw)
    b1r = b1.reshape(1, C).astype(jnp.float32)
    b2r = b2.reshape(1, C).astype(jnp.float32)
    mask = (jnp.arange(rows) % Wp < W).astype(jnp.float32).reshape(rows, 1)

    kernel = functools.partial(resblock_kernel, H=H, W=W)
    flops = 2 * (2 * H * W * C * C * 9) * N
    bytes_accessed = (2 * N * H * W * C * 4              # x in + out
                      + 2 * 9 * C * C * 2                # bf16 weights
                      + 2 * C * 4 + rows * 4)

    out_flat = pl.pallas_call(
        kernel,
        out_shape=jax.ShapeDtypeStruct((N, H * W, C), jnp.float32),
        grid=(N,),
        in_specs=[
            pl.BlockSpec((1, H * W, C), lambda b: (b, 0, 0)),   # x (flat NHWC)
            pl.BlockSpec((9, C, C), lambda b: (0, 0, 0)),       # w1 (bf16)
            pl.BlockSpec((1, C), lambda b: (0, 0)),             # b1
            pl.BlockSpec((9, C, C), lambda b: (0, 0, 0)),       # w2 (bf16)
            pl.BlockSpec((1, C), lambda b: (0, 0)),             # b2
            pl.BlockSpec((rows, 1), lambda b: (0, 0)),          # valid-pixel mask
        ],
        out_specs=pl.BlockSpec((1, H * W, C), lambda b: (b, 0, 0)),
        scratch_shapes=[pltpu.VMEM((pf_rows, C), jnp.bfloat16)],
        compiler_params=pltpu.CompilerParams(
            dimension_semantics=("parallel",)),
        cost_estimate=pl.CostEstimate(
            flops=flops, transcendentals=0, bytes_accessed=bytes_accessed),
    )(x_flat, w1f, b1r, w2f, b2r, mask)

    return jnp.transpose(out_flat.reshape(N, H, W, C), (0, 3, 1, 2))


# ----------------------------- pure-JAX reference -----------------------------
def residual_block_ref(x_nchw, w1_oihw, b1, w2_oihw, b2):
    def conv_in(x, w, b):
        xp = jnp.pad(x, ((0, 0), (0, 0), (1, 1), (1, 1)), mode="reflect")
        y = jax.lax.conv_general_dilated(
            xp, w, window_strides=(1, 1), padding="VALID",
            dimension_numbers=("NCHW", "OIHW", "NCHW")) + b.reshape(1, -1, 1, 1)
        mean = y.mean(axis=(2, 3), keepdims=True)
        var = ((y - mean) ** 2).mean(axis=(2, 3), keepdims=True)
        return (y - mean) * jax.lax.rsqrt(var + EPS)

    y = jnp.maximum(conv_in(x_nchw, w1_oihw, b1), 0.0)
    return x_nchw + conv_in(y, w2_oihw, b2)


if __name__ == "__main__":
    N, C, H, W = 2, 256, 8, 8   # channels fixed at 256 by the module; small spatial dims

    key = jax.random.PRNGKey(0)
    kx, kw1, kb1, kw2, kb2 = jax.random.split(key, 5)

    x = jax.random.normal(kx, (N, C, H, W), jnp.float32)

    fan_in = C * 3 * 3
    bound = 1.0 / jnp.sqrt(jnp.float32(fan_in))
    w1 = jax.random.uniform(kw1, (C, C, 3, 3), jnp.float32, -bound, bound)
    b1 = jax.random.uniform(kb1, (C,), jnp.float32, -bound, bound)
    w2 = jax.random.uniform(kw2, (C, C, 3, 3), jnp.float32, -bound, bound)
    b2 = jax.random.uniform(kb2, (C,), jnp.float32, -bound, bound)

    out = jax.block_until_ready(jax.jit(residual_block)(x, w1, b1, w2, b2))
    ref = jax.block_until_ready(jax.jit(residual_block_ref)(x, w1, b1, w2, b2))

    assert out.shape == (N, C, H, W)
    max_err = float(jnp.max(jnp.abs(out - ref)))
    # bf16 matmul operands with f32 accumulation -> small numerical difference vs f32 ref.
    assert jnp.allclose(out, ref, rtol=1e-2, atol=3e-2), f"max abs err = {max_err}"

    print("KERNEL_OK")
</pallas_src>

<mosaic_0001>
module attributes {stable_mosaic.version = 11 : i64} {
  func.func @resblock_kernel(%arg0: i32, %arg1: memref<1x64x256xf32, #tpu.memory_space<vmem>>, %arg2: memref<9x256x256xbf16, #tpu.memory_space<vmem>>, %arg3: memref<1x256xf32, #tpu.memory_space<vmem>>, %arg4: memref<9x256x256xbf16, #tpu.memory_space<vmem>>, %arg5: memref<1x256xf32, #tpu.memory_space<vmem>>, %arg6: memref<80x1xf32, #tpu.memory_space<vmem>>, %arg7: memref<1x64x256xf32, #tpu.memory_space<vmem>>, %arg8: memref<104x256xbf16, #tpu.memory_space<vmem>>) attributes {dimension_semantics = [#tpu.dimension_semantics<parallel>], iteration_bounds = array<i64: 2>, scalar_prefetch = 0 : i64, scratch_operands = 1 : i64, tpu.core_type = #tpu.core_type<tc>, window_params = [{transform_indices = @transform_0, window_bounds = array<i64: 1, 64, 256>}, {pipeline_mode = #tpu.pipeline_mode<synchronous>, transform_indices = @transform_1, window_bounds = array<i64: 9, 256, 256>}, {pipeline_mode = #tpu.pipeline_mode<synchronous>, transform_indices = @transform_2, window_bounds = array<i64: 1, 256>}, {pipeline_mode = #tpu.pipeline_mode<synchronous>, transform_indices = @transform_3, window_bounds = array<i64: 9, 256, 256>}, {pipeline_mode = #tpu.pipeline_mode<synchronous>, transform_indices = @transform_4, window_bounds = array<i64: 1, 256>}, {pipeline_mode = #tpu.pipeline_mode<synchronous>, transform_indices = @transform_5, window_bounds = array<i64: 80, 1>}, {transform_indices = @transform_6, window_bounds = array<i64: 1, 64, 256>}]} {
    %c0 = arith.constant 0 : index
    %c0_0 = arith.constant 0 : index
    %0 = vector.load %arg6[%c0, %c0_0] : memref<80x1xf32, #tpu.memory_space<vmem>>, vector<80x1xf32>
    %cst = arith.constant 0.000000e+00 : bf16
    %1 = vector.broadcast %cst : bf16 to vector<4x256xbf16>
    %c100 = arith.constant 100 : index
    %c0_1 = arith.constant 0 : index
    %2 = vector.load %arg8[%c100, %c0_1] : memref<104x256xbf16, #tpu.memory_space<vmem>>, vector<4x256xbf16>
    tpu.vector_store %arg8[%c100, %c0_1], %1 {strides = array<i32>} : memref<104x256xbf16, #tpu.memory_space<vmem>>, vector<4x256xbf16>,
    %c0_2 = arith.constant 0 : index
    %c0_3 = arith.constant 0 : index
    %c0_4 = arith.constant 0 : index
    %3 = vector.load %arg1[%c0_2, %c0_3, %c0_4] : memref<1x64x256xf32, #tpu.memory_space<vmem>>, vector<1x64x256xf32>
    %4 = vector.shape_cast %3 : vector<1x64x256xf32> to vector<64x256xf32>
    %5 = arith.truncf %4 : vector<64x256xf32> to vector<64x256xbf16>
    %6 = vector.extract_strided_slice %5 {offsets = [0, 0], sizes = [8, 256], strides = [1, 1]} : vector<64x256xbf16> to vector<8x256xbf16>
    %c11 = arith.constant 11 : index
    %c0_5 = arith.constant 0 : index
    %7 = vector.load %arg8[%c11, %c0_5] : memref<104x256xbf16, #tpu.memory_space<vmem>>, vector<8x256xbf16>
    tpu.vector_store %arg8[%c11, %c0_5], %6 {strides = array<i32>} : memref<104x256xbf16, #tpu.memory_space<vmem>>, vector<8x256xbf16>,
    %8 = vector.extract_strided_slice %6 {offsets = [1, 0], sizes = [1, 256], strides = [1, 1]} : vector<8x256xbf16> to vector<1x256xbf16>
    %c10 = arith.constant 10 : index
    %c0_6 = arith.constant 0 : index
    %9 = vector.load %arg8[%c10, %c0_6] : memref<104x256xbf16, #tpu.memory_space<vmem>>, vector<1x256xbf16>
    tpu.vector_store %arg8[%c10, %c0_6], %8 {strides = array<i32>} : memref<104x256xbf16, #tpu.memory_space<vmem>>, vector<1x256xbf16>,
    %10 = vector.extract_strided_slice %6 {offsets = [6, 0], sizes = [1, 256], strides = [1, 1]} : vector<8x256xbf16> to vector<1x256xbf16>
    %c19 = arith.constant 19 : index
    %c0_7 = arith.constant 0 : index
    %11 = vector.load %arg8[%c19, %c0_7] : memref<104x256xbf16, #tpu.memory_space<vmem>>, vector<1x256xbf16>
    tpu.vector_store %arg8[%c19, %c0_7], %10 {strides = array<i32>} : memref<104x256xbf16, #tpu.memory_space<vmem>>, vector<1x256xbf16>,
    %12 = vector.extract_strided_slice %5 {offsets = [8, 0], sizes = [8, 256], strides = [1, 1]} : vector<64x256xbf16> to vector<8x256xbf16>
    %c21 = arith.constant 21 : index
    %c0_8 = arith.constant 0 : index
    %13 = vector.load %arg8[%c21, %c0_8] : memref<104x256xbf16, #tpu.memory_space<vmem>>, vector<8x256xbf16>
    tpu.vector_store %arg8[%c21, %c0_8], %12 {strides = array<i32>} : memref<104x256xbf16, #tpu.memory_space<vmem>>, vector<8x256xbf16>,
    %14 = vector.extract_strided_slice %12 {offsets = [1, 0], sizes = [1, 256], strides = [1, 1]} : vector<8x256xbf16> to vector<1x256xbf16>
    %c20 = arith.constant 20 : index
    %c0_9 = arith.constant 0 : index
    %15 = vector.load %arg8[%c20, %c0_9] : memref<104x256xbf16, #tpu.memory_space<vmem>>, vector<1x256xbf16>
    tpu.vector_store %arg8[%c20, %c0_9], %14 {strides = array<i32>} : memref<104x256xbf16, #tpu.memory_space<vmem>>, vector<1x256xbf16>,
    %16 = vector.extract_strided_slice %12 {offsets = [6, 0], sizes = [1, 256], strides = [1, 1]} : vector<8x256xbf16> to vector<1x256xbf16>
    %c29 = arith.constant 29 : index
    %c0_10 = arith.constant 0 : index
    %17 = vector.load %arg8[%c29, %c0_10] : memref<104x256xbf16, #tpu.memory_space<vmem>>, vector<1x256xbf16>
    tpu.vector_store %arg8[%c29, %c0_10], %16 {strides = array<i32>} : memref<104x256xbf16, #tpu.memory_space<vmem>>, vector<1x256xbf16>,
    %18 = vector.extract_strided_slice %5 {offsets = [16, 0], sizes = [8, 256], strides = [1, 1]} : vector<64x256xbf16> to vector<8x256xbf16>
    %c31 = arith.constant 31 : index
    %c0_11 = arith.constant 0 : index
    %19 = vector.load %arg8[%c31, %c0_11] : memref<104x256xbf16, #tpu.memory_space<vmem>>, vector<8x256xbf16>
    tpu.vector_store %arg8[%c31, %c0_11], %18 {strides = array<i32>} : memref<104x256xbf16, #tpu.memory_space<vmem>>, vector<8x256xbf16>,
    %20 = vector.extract_strided_slice %18 {offsets = [1, 0], sizes = [1, 256], strides = [1, 1]} : vector<8x256xbf16> to vector<1x256xbf16>
    %c30 = arith.constant 30 : index
    %c0_12 = arith.constant 0 : index
    %21 = vector.load %arg8[%c30, %c0_12] : memref<104x256xbf16, #tpu.memory_space<vmem>>, vector<1x256xbf16>
    tpu.vector_store %arg8[%c30, %c0_12], %20 {strides = array<i32>} : memref<104x256xbf16, #tpu.memory_space<vmem>>, vector<1x256xbf16>,
    %22 = vector.extract_strided_slice %18 {offsets = [6, 0], sizes = [1, 256], strides = [1, 1]} : vector<8x256xbf16> to vector<1x256xbf16>
    %c39 = arith.constant 39 : index
    %c0_13 = arith.constant 0 : index
    %23 = vector.load %arg8[%c39, %c0_13] : memref<104x256xbf16, #tpu.memory_space<vmem>>, vector<1x256xbf16>
    tpu.vector_store %arg8[%c39, %c0_13], %22 {strides = array<i32>} : memref<104x256xbf16, #tpu.memory_space<vmem>>, vector<1x256xbf16>,
    %24 = vector.extract_strided_slice %5 {offsets = [24, 0], sizes = [8, 256], strides = [1, 1]} : vector<64x256xbf16> to vector<8x256xbf16>
    %c41 = arith.constant 41 : index
    %c0_14 = arith.constant 0 : index
    %25 = vector.load %arg8[%c41, %c0_14] : memref<104x256xbf16, #tpu.memory_space<vmem>>, vector<8x256xbf16>
    tpu.vector_store %arg8[%c41, %c0_14], %24 {strides = array<i32>} : memref<104x256xbf16, #tpu.memory_space<vmem>>, vector<8x256xbf16>,
    %26 = vector.extract_strided_slice %24 {offsets = [1, 0], sizes = [1, 256], strides = [1, 1]} : vector<8x256xbf16> to vector<1x256xbf16>
    %c40 = arith.constant 40 : index
    %c0_15 = arith.constant 0 : index
    %27 = vector.load %arg8[%c40, %c0_15] : memref<104x256xbf16, #tpu.memory_space<vmem>>, vector<1x256xbf16>
    tpu.vector_store %arg8[%c40, %c0_15], %26 {strides = array<i32>} : memref<104x256xbf16, #tpu.memory_space<vmem>>, vector<1x256xbf16>,
    %28 = vector.extract_strided_slice %24 {offsets = [6, 0], sizes = [1, 256], strides = [1, 1]} : vector<8x256xbf16> to vector<1x256xbf16>
    %c49 = arith.constant 49 : index
    %c0_16 = arith.constant 0 : index
    %29 = vector.load %arg8[%c49, %c0_16] : memref<104x256xbf16, #tpu.memory_space<vmem>>, vector<1x256xbf16>
    tpu.vector_store %arg8[%c49, %c0_16], %28 {strides = array<i32>} : memref<104x256xbf16, #tpu.memory_space<vmem>>, vector<1x256xbf16>,
    %30 = vector.extract_strided_slice %5 {offsets = [32, 0], sizes = [8, 256], strides = [1, 1]} : vector<64x256xbf16> to vector<8x256xbf16>
    %c51 = arith.constant 51 : index
    %c0_17 = arith.constant 0 : index
    %31 = vector.load %arg8[%c51, %c0_17] : memref<104x256xbf16, #tpu.memory_space<vmem>>, vector<8x256xbf16>
    tpu.vector_store %arg8[%c51, %c0_17], %30 {strides = array<i32>} : memref<104x256xbf16, #tpu.memory_space<vmem>>, vector<8x256xbf16>,
    %32 = vector.extract_strided_slice %30 {offsets = [1, 0], sizes = [1, 256], strides = [1, 1]} : vector<8x256xbf16> to vector<1x256xbf16>
    %c50 = arith.constant 50 : index
    %c0_18 = arith.constant 0 : index
    %33 = vector.load %arg8[%c50, %c0_18] : memref<104x256xbf16, #tpu.memory_space<vmem>>, vector<1x256xbf16>
    tpu.vector_store %arg8[%c50, %c0_18], %32 {strides = array<i32>} : memref<104x256xbf16, #tpu.memory_space<vmem>>, vector<1x256xbf16>,
    %34 = vector.extract_strided_slice %30 {offsets = [6, 0], sizes = [1, 256], strides = [1, 1]} : vector<8x256xbf16> to vector<1x256xbf16>
    %c59 = arith.constant 59 : index
    %c0_19 = arith.constant 0 : index
    %35 = vector.load %arg8[%c59, %c0_19] : memref<104x256xbf16, #tpu.memory_space<vmem>>, vector<1x256xbf16>
    tpu.vector_store %arg8[%c59, %c0_19], %34 {strides = array<i32>} : memref<104x256xbf16, #tpu.memory_space<vmem>>, vector<1x256xbf16>,
    %36 = vector.extract_strided_slice %5 {offsets = [40, 0], sizes = [8, 256], strides = [1, 1]} : vector<64x256xbf16> to vector<8x256xbf16>
    %c61 = arith.constant 61 : index
    %c0_20 = arith.constant 0 : index
    %37 = vector.load %arg8[%c61, %c0_20] : memref<104x256xbf16, #tpu.memory_space<vmem>>, vector<8x256xbf16>
    tpu.vector_store %arg8[%c61, %c0_20], %36 {strides = array<i32>} : memref<104x256xbf16, #tpu.memory_space<vmem>>, vector<8x256xbf16>,
    %38 = vector.extract_strided_slice %36 {offsets = [1, 0], sizes = [1, 256], strides = [1, 1]} : vector<8x256xbf16> to vector<1x256xbf16>
    %c60 = arith.constant 60 : index
    %c0_21 = arith.constant 0 : index
    %39 = vector.load %arg8[%c60, %c0_21] : memref<104x256xbf16, #tpu.memory_space<vmem>>, vector<1x256xbf16>
    tpu.vector_store %arg8[%c60, %c0_21], %38 {strides = array<i32>} : memref<104x256xbf16, #tpu.memory_space<vmem>>, vector<1x256xbf16>,
    %40 = vector.extract_strided_slice %36 {offsets = [6, 0], sizes = [1, 256], strides = [1, 1]} : vector<8x256xbf16> to vector<1x256xbf16>
    %c69 = arith.constant 69 : index
    %c0_22 = arith.constant 0 : index
    %41 = vector.load %arg8[%c69, %c0_22] : memref<104x256xbf16, #tpu.memory_space<vmem>>, vector<1x256xbf16>
    tpu.vector_store %arg8[%c69, %c0_22], %40 {strides = array<i32>} : memref<104x256xbf16, #tpu.memory_space<vmem>>, vector<1x256xbf16>,
    %42 = vector.extract_strided_slice %5 {offsets = [48, 0], sizes = [8, 256], strides = [1, 1]} : vector<64x256xbf16> to vector<8x256xbf16>
    %c71 = arith.constant 71 : index
    %c0_23 = arith.constant 0 : index
    %43 = vector.load %arg8[%c71, %c0_23] : memref<104x256xbf16, #tpu.memory_space<vmem>>, vector<8x256xbf16>
    tpu.vector_store %arg8[%c71, %c0_23], %42 {strides = array<i32>} : memref<104x256xbf16, #tpu.memory_space<vmem>>, vector<8x256xbf16>,
    %44 = vector.extract_strided_slice %42 {offsets = [1, 0], sizes = [1, 256], strides = [1, 1]} : vector<8x256xbf16> to vector<1x256xbf16>
    %c70 = arith.constant 70 : index
    %c0_24 = arith.constant 0 : index
    %45 = vector.load %arg8[%c70, %c0_24] : memref<104x256xbf16, #tpu.memory_space<vmem>>, vector<1x256xbf16>
    tpu.vector_store %arg8[%c70, %c0_24], %44 {strides = array<i32>} : memref<104x256xbf16, #tpu.memory_space<vmem>>, vector<1x256xbf16>,
    %46 = vector.extract_strided_slice %42 {offsets = [6, 0], sizes = [1, 256], strides = [1, 1]} : vector<8x256xbf16> to vector<1x256xbf16>
    %c79 = arith.constant 79 : index
    %c0_25 = arith.constant 0 : index
    %47 = vector.load %arg8[%c79, %c0_25] : memref<104x256xbf16, #tpu.memory_space<vmem>>, vector<1x256xbf16>
    tpu.vector_store %arg8[%c79, %c0_25], %46 {strides = array<i32>} : memref<104x256xbf16, #tpu.memory_space<vmem>>, vector<1x256xbf16>,
    %48 = vector.extract_strided_slice %5 {offsets = [56, 0], sizes = [8, 256], strides = [1, 1]} : vector<64x256xbf16> to vector<8x256xbf16>
    %c81 = arith.constant 81 : index
    %c0_26 = arith.constant 0 : index
    %49 = vector.load %arg8[%c81, %c0_26] : memref<104x256xbf16, #tpu.memory_space<vmem>>, vector<8x256xbf16>
    tpu.vector_store %arg8[%c81, %c0_26], %48 {strides = array<i32>} : memref<104x256xbf16, #tpu.memory_space<vmem>>, vector<8x256xbf16>,
    %50 = vector.extract_strided_slice %48 {offsets = [1, 0], sizes = [1, 256], strides = [1, 1]} : vector<8x256xbf16> to vector<1x256xbf16>
    %c80 = arith.constant 80 : index
    %c0_27 = arith.constant 0 : index
    %51 = vector.load %arg8[%c80, %c0_27] : memref<104x256xbf16, #tpu.memory_space<vmem>>, vector<1x256xbf16>
    tpu.vector_store %arg8[%c80, %c0_27], %50 {strides = array<i32>} : memref<104x256xbf16, #tpu.memory_space<vmem>>, vector<1x256xbf16>,
    %52 = vector.extract_strided_slice %48 {offsets = [6, 0], sizes = [1, 256], strides = [1, 1]} : vector<8x256xbf16> to vector<1x256xbf16>
    %c89 = arith.constant 89 : index
    %c0_28 = arith.constant 0 : index
    %53 = vector.load %arg8[%c89, %c0_28] : memref<104x256xbf16, #tpu.memory_space<vmem>>, vector<1x256xbf16>
    tpu.vector_store %arg8[%c89, %c0_28], %52 {strides = array<i32>} : memref<104x256xbf16, #tpu.memory_space<vmem>>, vector<1x256xbf16>,
    %c20_29 = arith.constant 20 : index
    %c0_30 = arith.constant 0 : index
    %54 = vector.load %arg8[%c20_29, %c0_30] : memref<104x256xbf16, #tpu.memory_space<vmem>>, vector<10x256xbf16>
    %c0_31 = arith.constant 0 : index
    %c0_32 = arith.constant 0 : index
    %55 = vector.load %arg8[%c0_31, %c0_32] : memref<104x256xbf16, #tpu.memory_space<vmem>>, vector<10x256xbf16>
    tpu.vector_store %arg8[%c0_31, %c0_32], %54 {strides = array<i32>} : memref<104x256xbf16, #tpu.memory_space<vmem>>, vector<10x256xbf16>,
    %c70_33 = arith.constant 70 : index
    %c0_34 = arith.constant 0 : index
    %56 = vector.load %arg8[%c70_33, %c0_34] : memref<104x256xbf16, #tpu.memory_space<vmem>>, vector<10x256xbf16>
    %c90 = arith.constant 90 : index
    %c0_35 = arith.constant 0 : index
    %57 = vector.load %arg8[%c90, %c0_35] : memref<104x256xbf16, #tpu.memory_space<vmem>>, vector<10x256xbf16>
    tpu.vector_store %arg8[%c90, %c0_35], %56 {strides = array<i32>} : memref<104x256xbf16, #tpu.memory_space<vmem>>, vector<10x256xbf16>,
    %cst_36 = arith.constant 0.000000e+00 : f32
    %58 = vector.broadcast %cst_36 : f32 to vector<80x256xf32>
    %c0_37 = arith.constant 0 : index
    %c0_38 = arith.constant 0 : index
    %59 = vector.load %arg8[%c0_37, %c0_38] : memref<104x256xbf16, #tpu.memory_space<vmem>>, vector<80x256xbf16>
    %c0_39 = arith.constant 0 : index
    %c0_40 = arith.constant 0 : index
    %c0_41 = arith.constant 0 : index
    %60 = vector.load %arg2[%c0_39, %c0_40, %c0_41] : memref<9x256x256xbf16, #tpu.memory_space<vmem>>, vector<1x256x256xbf16>
    %61 = vector.shape_cast %60 : vector<1x256x256xbf16> to vector<256x256xbf16>
    %cst_42 = arith.constant dense<0.000000e+00> : vector<80x256xf32>
    %62 = tpu.matmul %59, %61, %cst_42 {dimension_numbers = #tpu.dot_dimension_numbers<[1], [0], [0], [1], [0, 0, 1, 1], [], []>} : vector<80x256xbf16>, vector<256x256xbf16>, vector<80x256xf32> -> vector<80x256xf32>
    %63 = arith.addf %58, %62 : vector<80x256xf32>
    %c1 = arith.constant 1 : index
    %c0_43 = arith.constant 0 : index
    %64 = vector.load %arg8[%c1, %c0_43] : memref<104x256xbf16, #tpu.memory_space<vmem>>, vector<80x256xbf16>
    %c1_44 = arith.constant 1 : index
    %c0_45 = arith.constant 0 : index
    %c0_46 = arith.constant 0 : index
    %65 = vector.load %arg2[%c1_44, %c0_45, %c0_46] : memref<9x256x256xbf16, #tpu.memory_space<vmem>>, vector<1x256x256xbf16>
    %66 = vector.shape_cast %65 : vector<1x256x256xbf16> to vector<256x256xbf16>
    %cst_47 = arith.constant dense<0.000000e+00> : vector<80x256xf32>
    %67 = tpu.matmul %64, %66, %cst_47 {dimension_numbers = #tpu.dot_dimension_numbers<[1], [0], [0], [1], [0, 0, 1, 1], [], []>} : vector<80x256xbf16>, vector<256x256xbf16>, vector<80x256xf32> -> vector<80x256xf32>
    %68 = arith.addf %63, %67 : vector<80x256xf32>
    %c2 = arith.constant 2 : index
    %c0_48 = arith.constant 0 : index
    %69 = vector.load %arg8[%c2, %c0_48] : memref<104x256xbf16, #tpu.memory_space<vmem>>, vector<80x256xbf16>
    %c2_49 = arith.constant 2 : index
    %c0_50 = arith.constant 0 : index
    %c0_51 = arith.constant 0 : index
    %70 = vector.load %arg2[%c2_49, %c0_50, %c0_51] : memref<9x256x256xbf16, #tpu.memory_space<vmem>>, vector<1x256x256xbf16>
    %71 = vector.shape_cast %70 : vector<1x256x256xbf16> to vector<256x256xbf16>
    %cst_52 = arith.constant dense<0.000000e+00> : vector<80x256xf32>
    %72 = tpu.matmul %69, %71, %cst_52 {dimension_numbers = #tpu.dot_dimension_numbers<[1], [0], [0], [1], [0, 0, 1, 1], [], []>} : vector<80x256xbf16>, vector<256x256xbf16>, vector<80x256xf32> -> vector<80x256xf32>
    %73 = arith.addf %68, %72 : vector<80x256xf32>
    %c10_53 = arith.constant 10 : index
    %c0_54 = arith.constant 0 : index
    %74 = vector.load %arg8[%c10_53, %c0_54] : memref<104x256xbf16, #tpu.memory_space<vmem>>, vector<80x256xbf16>
    %c3 = arith.constant 3 : index
    %c0_55 = arith.constant 0 : index
    %c0_56 = arith.constant 0 : index
    %75 = vector.load %arg2[%c3, %c0_55, %c0_56] : memref<9x256x256xbf16, #tpu.memory_space<vmem>>, vector<1x256x256xbf16>
    %76 = vector.shape_cast %75 : vector<1x256x256xbf16> to vector<256x256xbf16>
    %cst_57 = arith.constant dense<0.000000e+00> : vector<80x256xf32>
    %77 = tpu.matmul %74, %76, %cst_57 {dimension_numbers = #tpu.dot_dimension_numbers<[1], [0], [0], [1], [0, 0, 1, 1], [], []>} : vector<80x256xbf16>, vector<256x256xbf16>, vector<80x256xf32> -> vector<80x256xf32>
    %78 = arith.addf %73, %77 : vector<80x256xf32>
    %c11_58 = arith.constant 11 : index
    %c0_59 = arith.constant 0 : index
    %79 = vector.load %arg8[%c11_58, %c0_59] : memref<104x256xbf16, #tpu.memory_space<vmem>>, vector<80x256xbf16>
    %c4 = arith.constant 4 : index
    %c0_60 = arith.constant 0 : index
    %c0_61 = arith.constant 0 : index
    %80 = vector.load %arg2[%c4, %c0_60, %c0_61] : memref<9x256x256xbf16, #tpu.memory_space<vmem>>, vector<1x256x256xbf16>
    %81 = vector.shape_cast %80 : vector<1x256x256xbf16> to vector<256x256xbf16>
    %cst_62 = arith.constant dense<0.000000e+00> : vector<80x256xf32>
    %82 = tpu.matmul %79, %81, %cst_62 {dimension_numbers = #tpu.dot_dimension_numbers<[1], [0], [0], [1], [0, 0, 1, 1], [], []>} : vector<80x256xbf16>, vector<256x256xbf16>, vector<80x256xf32> -> vector<80x256xf32>
    %83 = arith.addf %78, %82 : vector<80x256xf32>
    %c12 = arith.constant 12 : index
    %c0_63 = arith.constant 0 : index
    %84 = vector.load %arg8[%c12, %c0_63] : memref<104x256xbf16, #tpu.memory_space<vmem>>, vector<80x256xbf16>
    %c5 = arith.constant 5 : index
    %c0_64 = arith.constant 0 : index
    %c0_65 = arith.constant 0 : index
    %85 = vector.load %arg2[%c5, %c0_64, %c0_65] : memref<9x256x256xbf16, #tpu.memory_space<vmem>>, vector<1x256x256xbf16>
    %86 = vector.shape_cast %85 : vector<1x256x256xbf16> to vector<256x256xbf16>
    %cst_66 = arith.constant dense<0.000000e+00> : vector<80x256xf32>
    %87 = tpu.matmul %84, %86, %cst_66 {dimension_numbers = #tpu.dot_dimension_numbers<[1], [0], [0], [1], [0, 0, 1, 1], [], []>} : vector<80x256xbf16>, vector<256x256xbf16>, vector<80x256xf32> -> vector<80x256xf32>
    %88 = arith.addf %83, %87 : vector<80x256xf32>
    %c20_67 = arith.constant 20 : index
    %c0_68 = arith.constant 0 : index
    %89 = vector.load %arg8[%c20_67, %c0_68] : memref<104x256xbf16, #tpu.memory_space<vmem>>, vector<80x256xbf16>
    %c6 = arith.constant 6 : index
    %c0_69 = arith.constant 0 : index
    %c0_70 = arith.constant 0 : index
    %90 = vector.load %arg2[%c6, %c0_69, %c0_70] : memref<9x256x256xbf16, #tpu.memory_space<vmem>>, vector<1x256x256xbf16>
    %91 = vector.shape_cast %90 : vector<1x256x256xbf16> to vector<256x256xbf16>
    %cst_71 = arith.constant dense<0.000000e+00> : vector<80x256xf32>
    %92 = tpu.matmul %89, %91, %cst_71 {dimension_numbers = #tpu.dot_dimension_numbers<[1], [0], [0], [1], [0, 0, 1, 1], [], []>} : vector<80x256xbf16>, vector<256x256xbf16>, vector<80x256xf32> -> vector<80x256xf32>
    %93 = arith.addf %88, %92 : vector<80x256xf32>
    %c21_72 = arith.constant 21 : index
    %c0_73 = arith.constant 0 : index
    %94 = vector.load %arg8[%c21_72, %c0_73] : memref<104x256xbf16, #tpu.memory_space<vmem>>, vector<80x256xbf16>
    %c7 = arith.constant 7 : index
    %c0_74 = arith.constant 0 : index
    %c0_75 = arith.constant 0 : index
    %95 = vector.load %arg2[%c7, %c0_74, %c0_75] : memref<9x256x256xbf16, #tpu.memory_space<vmem>>, vector<1x256x256xbf16>
    %96 = vector.shape_cast %95 : vector<1x256x256xbf16> to vector<256x256xbf16>
    %cst_76 = arith.constant dense<0.000000e+00> : vector<80x256xf32>
    %97 = tpu.matmul %94, %96, %cst_76 {dimension_numbers = #tpu.dot_dimension_numbers<[1], [0], [0], [1], [0, 0, 1, 1], [], []>} : vector<80x256xbf16>, vector<256x256xbf16>, vector<80x256xf32> -> vector<80x256xf32>
    %98 = arith.addf %93, %97 : vector<80x256xf32>
    %c22 = arith.constant 22 : index
    %c0_77 = arith.constant 0 : index
    %99 = vector.load %arg8[%c22, %c0_77] : memref<104x256xbf16, #tpu.memory_space<vmem>>, vector<80x256xbf16>
    %c8 = arith.constant 8 : index
    %c0_78 = arith.constant 0 : index
    %c0_79 = arith.constant 0 : index
    %100 = vector.load %arg2[%c8, %c0_78, %c0_79] : memref<9x256x256xbf16, #tpu.memory_space<vmem>>, vector<1x256x256xbf16>
    %101 = vector.shape_cast %100 : vector<1x256x256xbf16> to vector<256x256xbf16>
    %cst_80 = arith.constant dense<0.000000e+00> : vector<80x256xf32>
    %102 = tpu.matmul %99, %101, %cst_80 {dimension_numbers = #tpu.dot_dimension_numbers<[1], [0], [0], [1], [0, 0, 1, 1], [], []>} : vector<80x256xbf16>, vector<256x256xbf16>, vector<80x256xf32> -> vector<80x256xf32>
    %103 = arith.addf %98, %102 : vector<80x256xf32>
    %c0_81 = arith.constant 0 : index
    %c0_82 = arith.constant 0 : index
    %104 = vector.load %arg3[%c0_81, %c0_82] : memref<1x256xf32, #tpu.memory_space<vmem>>, vector<1x256xf32>
    %105 = vector.broadcast %104 : vector<1x256xf32> to vector<80x256xf32>
    %106 = arith.addf %103, %105 : vector<80x256xf32>
    %107 = vector.broadcast %0 : vector<80x1xf32> to vector<80x256xf32>
    %108 = arith.mulf %106, %107 : vector<80x256xf32>
    %cst_83 = arith.constant dense<0.000000e+00> : vector<256xf32>
    %109 = vector.multi_reduction <add>, %108, %cst_83 [0] : vector<80x256xf32> to vector<256xf32>
    %110 = vector.shape_cast %109 : vector<256xf32> to vector<1x256xf32>
    %111 = arith.mulf %106, %106 : vector<80x256xf32>
    %112 = vector.broadcast %0 : vector<80x1xf32> to vector<80x256xf32>
    %113 = arith.mulf %111, %112 : vector<80x256xf32>
    %cst_84 = arith.constant dense<0.000000e+00> : vector<256xf32>
    %114 = vector.multi_reduction <add>, %113, %cst_84 [0] : vector<80x256xf32> to vector<256xf32>
    %115 = vector.shape_cast %114 : vector<256xf32> to vector<1x256xf32>
    %cst_85 = arith.constant 1.562500e-02 : f32
    %116 = vector.broadcast %cst_85 : f32 to vector<1x256xf32>
    %117 = arith.mulf %110, %116 : vector<1x256xf32>
    %cst_86 = arith.constant 1.562500e-02 : f32
    %118 = vector.broadcast %cst_86 : f32 to vector<1x256xf32>
    %119 = arith.mulf %115, %118 : vector<1x256xf32>
    %120 = arith.mulf %117, %117 : vector<1x256xf32>
    %121 = arith.subf %119, %120 : vector<1x256xf32>
    %122 = vector.broadcast %117 : vector<1x256xf32> to vector<80x256xf32>
    %123 = arith.subf %106, %122 : vector<80x256xf32>
    %cst_87 = arith.constant 9.99999974E-6 : f32
    %124 = vector.broadcast %cst_87 : f32 to vector<1x256xf32>
    %125 = arith.addf %121, %124 : vector<1x256xf32>
    %126 = math.rsqrt %125 : vector<1x256xf32>
    %127 = vector.broadcast %126 : vector<1x256xf32> to vector<80x256xf32>
    %128 = arith.mulf %123, %127 : vector<80x256xf32>
    %cst_88 = arith.constant 0.000000e+00 : f32
    %129 = vector.broadcast %cst_88 : f32 to vector<80x256xf32>
    %130 = arith.maximumf %128, %129 : vector<80x256xf32>
    %131 = arith.truncf %130 : vector<80x256xf32> to vector<80x256xbf16>
    %c11_89 = arith.constant 11 : index
    %c0_90 = arith.constant 0 : index
    %132 = vector.load %arg8[%c11_89, %c0_90] : memref<104x256xbf16, #tpu.memory_space<vmem>>, vector<80x256xbf16>
    tpu.vector_store %arg8[%c11_89, %c0_90], %131 {strides = array<i32>} : memref<104x256xbf16, #tpu.memory_space<vmem>>, vector<80x256xbf16>,
    %133 = vector.extract_strided_slice %131 {offsets = [1, 0], sizes = [1, 256], strides = [1, 1]} : vector<80x256xbf16> to vector<1x256xbf16>
    %c10_91 = arith.constant 10 : index
    %c0_92 = arith.constant 0 : index
    %134 = vector.load %arg8[%c10_91, %c0_92] : memref<104x256xbf16, #tpu.memory_space<vmem>>, vector<1x256xbf16>
    tpu.vector_store %arg8[%c10_91, %c0_92], %133 {strides = array<i32>} : memref<104x256xbf16, #tpu.memory_space<vmem>>, vector<1x256xbf16>,
    %135 = vector.extract_strided_slice %131 {offsets = [6, 0], sizes = [1, 256], strides = [1, 1]} : vector<80x256xbf16> to vector<1x256xbf16>
    %c19_93 = arith.constant 19 : index
    %c0_94 = arith.constant 0 : index
    %136 = vector.load %arg8[%c19_93, %c0_94] : memref<104x256xbf16, #tpu.memory_space<vmem>>, vector<1x256xbf16>
    tpu.vector_store %arg8[%c19_93, %c0_94], %135 {strides = array<i32>} : memref<104x256xbf16, #tpu.memory_space<vmem>>, vector<1x256xbf16>,
    %137 = vector.extract_strided_slice %131 {offsets = [11, 0], sizes = [1, 256], strides = [1, 1]} : vector<80x256xbf16> to vector<1x256xbf16>
    %c20_95 = arith.constant 20 : index
    %c0_96 = arith.constant 0 : index
    %138 = vector.load %arg8[%c20_95, %c0_96] : memref<104x256xbf16, #tpu.memory_space<vmem>>, vector<1x256xbf16>
    tpu.vector_store %arg8[%c20_95, %c0_96], %137 {strides = array<i32>} : memref<104x256xbf16, #tpu.memory_space<vmem>>, vector<1x256xbf16>,
    %139 = vector.extract_strided_slice %131 {offsets = [16, 0], sizes = [1, 256], strides = [1, 1]} : vector<80x256xbf16> to vector<1x256xbf16>
    %c29_97 = arith.constant 29 : index
    %c0_98 = arith.constant 0 : index
    %140 = vector.load %arg8[%c29_97, %c0_98] : memref<104x256xbf16, #tpu.memory_space<vmem>>, vector<1x256xbf16>
    tpu.vector_store %arg8[%c29_97, %c0_98], %139 {strides = array<i32>} : memref<104x256xbf16, #tpu.memory_space<vmem>>, vector<1x256xbf16>,
    %141 = vector.extract_strided_slice %131 {offsets = [21, 0], sizes = [1, 256], strides = [1, 1]} : vector<80x256xbf16> to vector<1x256xbf16>
    %c30_99 = arith.constant 30 : index
    %c0_100 = arith.constant 0 : index
    %142 = vector.load %arg8[%c30_99, %c0_100] : memref<104x256xbf16, #tpu.memory_space<vmem>>, vector<1x256xbf16>
    tpu.vector_store %arg8[%c30_99, %c0_100], %141 {strides = array<i32>} : memref<104x256xbf16, #tpu.memory_space<vmem>>, vector<1x256xbf16>,
    %143 = vector.extract_strided_slice %131 {offsets = [26, 0], sizes = [1, 256], strides = [1, 1]} : vector<80x256xbf16> to vector<1x256xbf16>
    %c39_101 = arith.constant 39 : index
    %c0_102 = arith.constant 0 : index
    %144 = vector.load %arg8[%c39_101, %c0_102] : memref<104x256xbf16, #tpu.memory_space<vmem>>, vector<1x256xbf16>
    tpu.vector_store %arg8[%c39_101, %c0_102], %143 {strides = array<i32>} : memref<104x256xbf16, #tpu.memory_space<vmem>>, vector<1x256xbf16>,
    %145 = vector.extract_strided_slice %131 {offsets = [31, 0], sizes = [1, 256], strides = [1, 1]} : vector<80x256xbf16> to vector<1x256xbf16>
    %c40_103 = arith.constant 40 : index
    %c0_104 = arith.constant 0 : index
    %146 = vector.load %arg8[%c40_103, %c0_104] : memref<104x256xbf16, #tpu.memory_space<vmem>>, vector<1x256xbf16>
    tpu.vector_store %arg8[%c40_103, %c0_104], %145 {strides = array<i32>} : memref<104x256xbf16, #tpu.memory_space<vmem>>, vector<1x256xbf16>,
    %147 = vector.extract_strided_slice %131 {offsets = [36, 0], sizes = [1, 256], strides = [1, 1]} : vector<80x256xbf16> to vector<1x256xbf16>
    %c49_105 = arith.constant 49 : index
    %c0_106 = arith.constant 0 : index
    %148 = vector.load %arg8[%c49_105, %c0_106] : memref<104x256xbf16, #tpu.memory_space<vmem>>, vector<1x256xbf16>
    tpu.vector_store %arg8[%c49_105, %c0_106], %147 {strides = array<i32>} : memref<104x256xbf16, #tpu.memory_space<vmem>>, vector<1x256xbf16>,
    %149 = vector.extract_strided_slice %131 {offsets = [41, 0], sizes = [1, 256], strides = [1, 1]} : vector<80x256xbf16> to vector<1x256xbf16>
    %c50_107 = arith.constant 50 : index
    %c0_108 = arith.constant 0 : index
    %150 = vector.load %arg8[%c50_107, %c0_108] : memref<104x256xbf16, #tpu.memory_space<vmem>>, vector<1x256xbf16>
    tpu.vector_store %arg8[%c50_107, %c0_108], %149 {strides = array<i32>} : memref<104x256xbf16, #tpu.memory_space<vmem>>, vector<1x256xbf16>,
    %151 = vector.extract_strided_slice %131 {offsets = [46, 0], sizes = [1, 256], strides = [1, 1]} : vector<80x256xbf16> to vector<1x256xbf16>
    %c59_109 = arith.constant 59 : index
    %c0_110 = arith.constant 0 : index
    %152 = vector.load %arg8[%c59_109, %c0_110] : memref<104x256xbf16, #tpu.memory_space<vmem>>, vector<1x256xbf16>
    tpu.vector_store %arg8[%c59_109, %c0_110], %151 {strides = array<i32>} : memref<104x256xbf16, #tpu.memory_space<vmem>>, vector<1x256xbf16>,
    %153 = vector.extract_strided_slice %131 {offsets = [51, 0], sizes = [1, 256], strides = [1, 1]} : vector<80x256xbf16> to vector<1x256xbf16>
    %c60_111 = arith.constant 60 : index
    %c0_112 = arith.constant 0 : index
    %154 = vector.load %arg8[%c60_111, %c0_112] : memref<104x256xbf16, #tpu.memory_space<vmem>>, vector<1x256xbf16>
    tpu.vector_store %arg8[%c60_111, %c0_112], %153 {strides = array<i32>} : memref<104x256xbf16, #tpu.memory_space<vmem>>, vector<1x256xbf16>,
    %155 = vector.extract_strided_slice %131 {offsets = [56, 0], sizes = [1, 256], strides = [1, 1]} : vector<80x256xbf16> to vector<1x256xbf16>
    %c69_113 = arith.constant 69 : index
    %c0_114 = arith.constant 0 : index
    %156 = vector.load %arg8[%c69_113, %c0_114] : memref<104x256xbf16, #tpu.memory_space<vmem>>, vector<1x256xbf16>
    tpu.vector_store %arg8[%c69_113, %c0_114], %155 {strides = array<i32>} : memref<104x256xbf16, #tpu.memory_space<vmem>>, vector<1x256xbf16>,
    %157 = vector.extract_strided_slice %131 {offsets = [61, 0], sizes = [1, 256], strides = [1, 1]} : vector<80x256xbf16> to vector<1x256xbf16>
    %c70_115 = arith.constant 70 : index
    %c0_116 = arith.constant 0 : index
    %158 = vector.load %arg8[%c70_115, %c0_116] : memref<104x256xbf16, #tpu.memory_space<vmem>>, vector<1x256xbf16>
    tpu.vector_store %arg8[%c70_115, %c0_116], %157 {strides = array<i32>} : memref<104x256xbf16, #tpu.memory_space<vmem>>, vector<1x256xbf16>,
    %159 = vector.extract_strided_slice %131 {offsets = [66, 0], sizes = [1, 256], strides = [1, 1]} : vector<80x256xbf16> to vector<1x256xbf16>
    %c79_117 = arith.constant 79 : index
    %c0_118 = arith.constant 0 : index
    %160 = vector.load %arg8[%c79_117, %c0_118] : memref<104x256xbf16, #tpu.memory_space<vmem>>, vector<1x256xbf16>
    tpu.vector_store %arg8[%c79_117, %c0_118], %159 {strides = array<i32>} : memref<104x256xbf16, #tpu.memory_space<vmem>>, vector<1x256xbf16>,
    %161 = vector.extract_strided_slice %131 {offsets = [71, 0], sizes = [1, 256], strides = [1, 1]} : vector<80x256xbf16> to vector<1x256xbf16>
    %c80_119 = arith.constant 80 : index
    %c0_120 = arith.constant 0 : index
    %162 = vector.load %arg8[%c80_119, %c0_120] : memref<104x256xbf16, #tpu.memory_space<vmem>>, vector<1x256xbf16>
    tpu.vector_store %arg8[%c80_119, %c0_120], %161 {strides = array<i32>} : memref<104x256xbf16, #tpu.memory_space<vmem>>, vector<1x256xbf16>,
    %163 = vector.extract_strided_slice %131 {offsets = [76, 0], sizes = [1, 256], strides = [1, 1]} : vector<80x256xbf16> to vector<1x256xbf16>
    %c89_121 = arith.constant 89 : index
    %c0_122 = arith.constant 0 : index
    %164 = vector.load %arg8[%c89_121, %c0_122] : memref<104x256xbf16, #tpu.memory_space<vmem>>, vector<1x256xbf16>
    tpu.vector_store %arg8[%c89_121, %c0_122], %163 {strides = array<i32>} : memref<104x256xbf16, #tpu.memory_space<vmem>>, vector<1x256xbf16>,
    %c20_123 = arith.constant 20 : index
    %c0_124 = arith.constant 0 : index
    %165 = vector.load %arg8[%c20_123, %c0_124] : memref<104x256xbf16, #tpu.memory_space<vmem>>, vector<10x256xbf16>
    %c0_125 = arith.constant 0 : index
    %c0_126 = arith.constant 0 : index
    %166 = vector.load %arg8[%c0_125, %c0_126] : memref<104x256xbf16, #tpu.memory_space<vmem>>, vector<10x256xbf16>
    tpu.vector_store %arg8[%c0_125, %c0_126], %165 {strides = array<i32>} : memref<104x256xbf16, #tpu.memory_space<vmem>>, vector<10x256xbf16>,
    %c70_127 = arith.constant 70 : index
    %c0_128 = arith.constant 0 : index
    %167 = vector.load %arg8[%c70_127, %c0_128] : memref<104x256xbf16, #tpu.memory_space<vmem>>, vector<10x256xbf16>
    %c90_129 = arith.constant 90 : index
    %c0_130 = arith.constant 0 : index
    %168 = vector.load %arg8[%c90_129, %c0_130] : memref<104x256xbf16, #tpu.memory_space<vmem>>, vector<10x256xbf16>
    tpu.vector_store %arg8[%c90_129, %c0_130], %167 {strides = array<i32>} : memref<104x256xbf16, #tpu.memory_space<vmem>>, vector<10x256xbf16>,
    %cst_131 = arith.constant 0.000000e+00 : f32
    %169 = vector.broadcast %cst_131 : f32 to vector<80x256xf32>
    %c0_132 = arith.constant 0 : index
    %c0_133 = arith.constant 0 : index
    %170 = vector.load %arg8[%c0_132, %c0_133] : memref<104x256xbf16, #tpu.memory_space<vmem>>, vector<80x256xbf16>
    %c0_134 = arith.constant 0 : index
    %c0_135 = arith.constant 0 : index
    %c0_136 = arith.constant 0 : index
    %171 = vector.load %arg4[%c0_134, %c0_135, %c0_136] : memref<9x256x256xbf16, #tpu.memory_space<vmem>>, vector<1x256x256xbf16>
    %172 = vector.shape_cast %171 : vector<1x256x256xbf16> to vector<256x256xbf16>
    %cst_137 = arith.constant dense<0.000000e+00> : vector<80x256xf32>
    %173 = tpu.matmul %170, %172, %cst_137 {dimension_numbers = #tpu.dot_dimension_numbers<[1], [0], [0], [1], [0, 0, 1, 1], [], []>} : vector<80x256xbf16>, vector<256x256xbf16>, vector<80x256xf32> -> vector<80x256xf32>
    %174 = arith.addf %169, %173 : vector<80x256xf32>
    %c1_138 = arith.constant 1 : index
    %c0_139 = arith.constant 0 : index
    %175 = vector.load %arg8[%c1_138, %c0_139] : memref<104x256xbf16, #tpu.memory_space<vmem>>, vector<80x256xbf16>
    %c1_140 = arith.constant 1 : index
    %c0_141 = arith.constant 0 : index
    %c0_142 = arith.constant 0 : index
    %176 = vector.load %arg4[%c1_140, %c0_141, %c0_142] : memref<9x256x256xbf16, #tpu.memory_space<vmem>>, vector<1x256x256xbf16>
    %177 = vector.shape_cast %176 : vector<1x256x256xbf16> to vector<256x256xbf16>
    %cst_143 = arith.constant dense<0.000000e+00> : vector<80x256xf32>
    %178 = tpu.matmul %175, %177, %cst_143 {dimension_numbers = #tpu.dot_dimension_numbers<[1], [0], [0], [1], [0, 0, 1, 1], [], []>} : vector<80x256xbf16>, vector<256x256xbf16>, vector<80x256xf32> -> vector<80x256xf32>
    %179 = arith.addf %174, %178 : vector<80x256xf32>
    %c2_144 = arith.constant 2 : index
    %c0_145 = arith.constant 0 : index
    %180 = vector.load %arg8[%c2_144, %c0_145] : memref<104x256xbf16, #tpu.memory_space<vmem>>, vector<80x256xbf16>
    %c2_146 = arith.constant 2 : index
    %c0_147 = arith.constant 0 : index
    %c0_148 = arith.constant 0 : index
    %181 = vector.load %arg4[%c2_146, %c0_147, %c0_148] : memref<9x256x256xbf16, #tpu.memory_space<vmem>>, vector<1x256x256xbf16>
    %182 = vector.shape_cast %181 : vector<1x256x256xbf16> to vector<256x256xbf16>
    %cst_149 = arith.constant dense<0.000000e+00> : vector<80x256xf32>
    %183 = tpu.matmul %180, %182, %cst_149 {dimension_numbers = #tpu.dot_dimension_numbers<[1], [0], [0], [1], [0, 0, 1, 1], [], []>} : vector<80x256xbf16>, vector<256x256xbf16>, vector<80x256xf32> -> vector<80x256xf32>
    %184 = arith.addf %179, %183 : vector<80x256xf32>
    %c10_150 = arith.constant 10 : index
    %c0_151 = arith.constant 0 : index
    %185 = vector.load %arg8[%c10_150, %c0_151] : memref<104x256xbf16, #tpu.memory_space<vmem>>, vector<80x256xbf16>
    %c3_152 = arith.constant 3 : index
    %c0_153 = arith.constant 0 : index
    %c0_154 = arith.constant 0 : index
    %186 = vector.load %arg4[%c3_152, %c0_153, %c0_154] : memref<9x256x256xbf16, #tpu.memory_space<vmem>>, vector<1x256x256xbf16>
    %187 = vector.shape_cast %186 : vector<1x256x256xbf16> to vector<256x256xbf16>
    %cst_155 = arith.constant dense<0.000000e+00> : vector<80x256xf32>
    %188 = tpu.matmul %185, %187, %cst_155 {dimension_numbers = #tpu.dot_dimension_numbers<[1], [0], [0], [1], [0, 0, 1, 1], [], []>} : vector<80x256xbf16>, vector<256x256xbf16>, vector<80x256xf32> -> vector<80x256xf32>
    %189 = arith.addf %184, %188 : vector<80x256xf32>
    %c11_156 = arith.constant 11 : index
    %c0_157 = arith.constant 0 : index
    %190 = vector.load %arg8[%c11_156, %c0_157] : memref<104x256xbf16, #tpu.memory_space<vmem>>, vector<80x256xbf16>
    %c4_158 = arith.constant 4 : index
    %c0_159 = arith.constant 0 : index
    %c0_160 = arith.constant 0 : index
    %191 = vector.load %arg4[%c4_158, %c0_159, %c0_160] : memref<9x256x256xbf16, #tpu.memory_space<vmem>>, vector<1x256x256xbf16>
    %192 = vector.shape_cast %191 : vector<1x256x256xbf16> to vector<256x256xbf16>
    %cst_161 = arith.constant dense<0.000000e+00> : vector<80x256xf32>
    %193 = tpu.matmul %190, %192, %cst_161 {dimension_numbers = #tpu.dot_dimension_numbers<[1], [0], [0], [1], [0, 0, 1, 1], [], []>} : vector<80x256xbf16>, vector<256x256xbf16>, vector<80x256xf32> -> vector<80x256xf32>
    %194 = arith.addf %189, %193 : vector<80x256xf32>
    %c12_162 = arith.constant 12 : index
    %c0_163 = arith.constant 0 : index
    %195 = vector.load %arg8[%c12_162, %c0_163] : memref<104x256xbf16, #tpu.memory_space<vmem>>, vector<80x256xbf16>
    %c5_164 = arith.constant 5 : index
    %c0_165 = arith.constant 0 : index
    %c0_166 = arith.constant 0 : index
    %196 = vector.load %arg4[%c5_164, %c0_165, %c0_166] : memref<9x256x256xbf16, #tpu.memory_space<vmem>>, vector<1x256x256xbf16>
    %197 = vector.shape_cast %196 : vector<1x256x256xbf16> to vector<256x256xbf16>
    %cst_167 = arith.constant dense<0.000000e+00> : vector<80x256xf32>
    %198 = tpu.matmul %195, %197, %cst_167 {dimension_numbers = #tpu.dot_dimension_numbers<[1], [0], [0], [1], [0, 0, 1, 1], [], []>} : vector<80x256xbf16>, vector<256x256xbf16>, vector<80x256xf32> -> vector<80x256xf32>
    %199 = arith.addf %194, %198 : vector<80x256xf32>
    %c20_168 = arith.constant 20 : index
    %c0_169 = arith.constant 0 : index
    %200 = vector.load %arg8[%c20_168, %c0_169] : memref<104x256xbf16, #tpu.memory_space<vmem>>, vector<80x256xbf16>
    %c6_170 = arith.constant 6 : index
    %c0_171 = arith.constant 0 : index
    %c0_172 = arith.constant 0 : index
    %201 = vector.load %arg4[%c6_170, %c0_171, %c0_172] : memref<9x256x256xbf16, #tpu.memory_space<vmem>>, vector<1x256x256xbf16>
    %202 = vector.shape_cast %201 : vector<1x256x256xbf16> to vector<256x256xbf16>
    %cst_173 = arith.constant dense<0.000000e+00> : vector<80x256xf32>
    %203 = tpu.matmul %200, %202, %cst_173 {dimension_numbers = #tpu.dot_dimension_numbers<[1], [0], [0], [1], [0, 0, 1, 1], [], []>} : vector<80x256xbf16>, vector<256x256xbf16>, vector<80x256xf32> -> vector<80x256xf32>
    %204 = arith.addf %199, %203 : vector<80x256xf32>
    %c21_174 = arith.constant 21 : index
    %c0_175 = arith.constant 0 : index
    %205 = vector.load %arg8[%c21_174, %c0_175] : memref<104x256xbf16, #tpu.memory_space<vmem>>, vector<80x256xbf16>
    %c7_176 = arith.constant 7 : index
    %c0_177 = arith.constant 0 : index
    %c0_178 = arith.constant 0 : index
    %206 = vector.load %arg4[%c7_176, %c0_177, %c0_178] : memref<9x256x256xbf16, #tpu.memory_space<vmem>>, vector<1x256x256xbf16>
    %207 = vector.shape_cast %206 : vector<1x256x256xbf16> to vector<256x256xbf16>
    %cst_179 = arith.constant dense<0.000000e+00> : vector<80x256xf32>
    %208 = tpu.matmul %205, %207, %cst_179 {dimension_numbers = #tpu.dot_dimension_numbers<[1], [0], [0], [1], [0, 0, 1, 1], [], []>} : vector<80x256xbf16>, vector<256x256xbf16>, vector<80x256xf32> -> vector<80x256xf32>
    %209 = arith.addf %204, %208 : vector<80x256xf32>
    %c22_180 = arith.constant 22 : index
    %c0_181 = arith.constant 0 : index
    %210 = vector.load %arg8[%c22_180, %c0_181] : memref<104x256xbf16, #tpu.memory_space<vmem>>, vector<80x256xbf16>
    %c8_182 = arith.constant 8 : index
    %c0_183 = arith.constant 0 : index
    %c0_184 = arith.constant 0 : index
    %211 = vector.load %arg4[%c8_182, %c0_183, %c0_184] : memref<9x256x256xbf16, #tpu.memory_space<vmem>>, vector<1x256x256xbf16>
    %212 = vector.shape_cast %211 : vector<1x256x256xbf16> to vector<256x256xbf16>
    %cst_185 = arith.constant dense<0.000000e+00> : vector<80x256xf32>
    %213 = tpu.matmul %210, %212, %cst_185 {dimension_numbers = #tpu.dot_dimension_numbers<[1], [0], [0], [1], [0, 0, 1, 1], [], []>} : vector<80x256xbf16>, vector<256x256xbf16>, vector<80x256xf32> -> vector<80x256xf32>
    %214 = arith.addf %209, %213 : vector<80x256xf32>
    %c0_186 = arith.constant 0 : index
    %c0_187 = arith.constant 0 : index
    %215 = vector.load %arg5[%c0_186, %c0_187] : memref<1x256xf32, #tpu.memory_space<vmem>>, vector<1x256xf32>
    %216 = vector.broadcast %215 : vector<1x256xf32> to vector<80x256xf32>
    %217 = arith.addf %214, %216 : vector<80x256xf32>
    %218 = vector.broadcast %0 : vector<80x1xf32> to vector<80x256xf32>
    %219 = arith.mulf %217, %218 : vector<80x256xf32>
    %cst_188 = arith.constant dense<0.000000e+00> : vector<256xf32>
    %220 = vector.multi_reduction <add>, %219, %cst_188 [0] : vector<80x256xf32> to vector<256xf32>
    %221 = vector.shape_cast %220 : vector<256xf32> to vector<1x256xf32>
    %222 = arith.mulf %217, %217 : vector<80x256xf32>
    %223 = vector.broadcast %0 : vector<80x1xf32> to vector<80x256xf32>
    %224 = arith.mulf %222, %223 : vector<80x256xf32>
    %cst_189 = arith.constant dense<0.000000e+00> : vector<256xf32>
    %225 = vector.multi_reduction <add>, %224, %cst_189 [0] : vector<80x256xf32> to vector<256xf32>
    %226 = vector.shape_cast %225 : vector<256xf32> to vector<1x256xf32>
    %cst_190 = arith.constant 1.562500e-02 : f32
    %227 = vector.broadcast %cst_190 : f32 to vector<1x256xf32>
    %228 = arith.mulf %221, %227 : vector<1x256xf32>
    %cst_191 = arith.constant 1.562500e-02 : f32
    %229 = vector.broadcast %cst_191 : f32 to vector<1x256xf32>
    %230 = arith.mulf %226, %229 : vector<1x256xf32>
    %231 = arith.mulf %228, %228 : vector<1x256xf32>
    %232 = arith.subf %230, %231 : vector<1x256xf32>
    %233 = vector.broadcast %228 : vector<1x256xf32> to vector<80x256xf32>
    %234 = arith.subf %217, %233 : vector<80x256xf32>
    %cst_192 = arith.constant 9.99999974E-6 : f32
    %235 = vector.broadcast %cst_192 : f32 to vector<1x256xf32>
    %236 = arith.addf %232, %235 : vector<1x256xf32>
    %237 = math.rsqrt %236 : vector<1x256xf32>
    %238 = vector.broadcast %237 : vector<1x256xf32> to vector<80x256xf32>
    %239 = arith.mulf %234, %238 : vector<80x256xf32>
    %240 = vector.extract_strided_slice %239 {offsets = [0, 0], sizes = [8, 256], strides = [1, 1]} : vector<80x256xf32> to vector<8x256xf32>
    %241 = vector.extract_strided_slice %239 {offsets = [10, 0], sizes = [8, 256], strides = [1, 1]} : vector<80x256xf32> to vector<8x256xf32>
    %242 = vector.extract_strided_slice %239 {offsets = [20, 0], sizes = [8, 256], strides = [1, 1]} : vector<80x256xf32> to vector<8x256xf32>
    %243 = vector.extract_strided_slice %239 {offsets = [30, 0], sizes = [8, 256], strides = [1, 1]} : vector<80x256xf32> to vector<8x256xf32>
    %244 = vector.extract_strided_slice %239 {offsets = [40, 0], sizes = [8, 256], strides = [1, 1]} : vector<80x256xf32> to vector<8x256xf32>
    %245 = vector.extract_strided_slice %239 {offsets = [50, 0], sizes = [8, 256], strides = [1, 1]} : vector<80x256xf32> to vector<8x256xf32>
    %246 = vector.extract_strided_slice %239 {offsets = [60, 0], sizes = [8, 256], strides = [1, 1]} : vector<80x256xf32> to vector<8x256xf32>
    %247 = vector.extract_strided_slice %239 {offsets = [70, 0], sizes = [8, 256], strides = [1, 1]} : vector<80x256xf32> to vector<8x256xf32>
    %248 = tpu.concatenate %240, %241, %242, %243, %244, %245, %246, %247 in 0 : vector<8x256xf32>, vector<8x256xf32>, vector<8x256xf32>, vector<8x256xf32>, vector<8x256xf32>, vector<8x256xf32>, vector<8x256xf32>, vector<8x256xf32> -> vector<64x256xf32>
    %249 = arith.addf %4, %248 : vector<64x256xf32>
    %c0_193 = arith.constant 0 : index
    %c0_194 = arith.constant 0 : index
    %c0_195 = arith.constant 0 : index
    %250 = vector.load %arg7[%c0_193, %c0_194, %c0_195] : memref<1x64x256xf32, #tpu.memory_space<vmem>>, vector<1x64x256xf32>
    %251 = vector.shape_cast %250 : vector<1x64x256xf32> to vector<64x256xf32>
    %252 = vector.shape_cast %249 : vector<64x256xf32> to vector<1x64x256xf32>
    tpu.vector_store %arg7[%c0_193, %c0_194, %c0_195], %252 {strides = array<i32>} : memref<1x64x256xf32, #tpu.memory_space<vmem>>, vector<1x64x256xf32>,
    return
  }
  func.func @transform_0(%arg0: i32) -> (i32, i32, i32) {
    %c0_i32 = arith.constant 0 : i32
    %c0_i32_0 = arith.constant 0 : i32
    %c0_i32_1 = arith.constant 0 : i32
    return %arg0, %c0_i32, %c0_i32_0 : i32, i32, i32
  }
  func.func @transform_1(%arg0: i32) -> (i32, i32, i32) {
    %c0_i32 = arith.constant 0 : i32
    %c0_i32_0 = arith.constant 0 : i32
    %c0_i32_1 = arith.constant 0 : i32
    %c0_i32_2 = arith.constant 0 : i32
    return %c0_i32, %c0_i32_0, %c0_i32_1 : i32, i32, i32
  }
  func.func @transform_2(%arg0: i32) -> (i32, i32) {
    %c0_i32 = arith.constant 0 : i32
    %c0_i32_0 = arith.constant 0 : i32
    %c0_i32_1 = arith.constant 0 : i32
    return %c0_i32, %c0_i32_0 : i32, i32
  }
  func.func @transform_3(%arg0: i32) -> (i32, i32, i32) {
    %c0_i32 = arith.constant 0 : i32
    %c0_i32_0 = arith.constant 0 : i32
    %c0_i32_1 = arith.constant 0 : i32
    %c0_i32_2 = arith.constant 0 : i32
    return %c0_i32, %c0_i32_0, %c0_i32_1 : i32, i32, i32
  }
  func.func @transform_4(%arg0: i32) -> (i32, i32) {
    %c0_i32 = arith.constant 0 : i32
    %c0_i32_0 = arith.constant 0 : i32
    %c0_i32_1 = arith.constant 0 : i32
    return %c0_i32, %c0_i32_0 : i32, i32
  }
  func.func @transform_5(%arg0: i32) -> (i32, i32) {
    %c0_i32 = arith.constant 0 : i32
    %c0_i32_0 = arith.constant 0 : i32
    %c0_i32_1 = arith.constant 0 : i32
    return %c0_i32, %c0_i32_0 : i32, i32
  }
  func.func @transform_6(%arg0: i32) -> (i32, i32, i32) {
    %c0_i32 = arith.constant 0 : i32
    %c0_i32_0 = arith.constant 0 : i32
    %c0_i32_1 = arith.constant 0 : i32
    return %arg0, %c0_i32, %c0_i32_0 : i32, i32, i32
  }
}

</mosaic_0001>

<bundles_post_ra>
// kernel: residual_block.1
= control target key start
LH: loop header
LB: loop body
LE: loop exit
PB: predicated region body
PF: predicated region fallthrough
CT: control target
= control target key end

     0   :  { %11 = vsyncpa [#allocation4], 0  ;;  %s15120_s0 = inlined_call_operand.vmem [shape: f32[2,64,256], index: 0, kind: input, shape index: {}]   ;;  %s15121_s1 = inlined_call_operand.vmem [shape: bf16[9,256,256], index: 1, kind: input, shape index: {}]   ;;  %s15122_s2 = inlined_call_operand.vmem [shape: f32[1,256], index: 2, kind: input, shape index: {}]   ;;  %s15123_s3 = inlined_call_operand.vmem [shape: bf16[9,256,256], index: 3, kind: input, shape index: {}]   ;;  %s15124_s4 = inlined_call_operand.vmem [shape: f32[1,256], index: 4, kind: input, shape index: {}]   ;;  %s15125_s5 = inlined_call_operand.vmem [shape: f32[80,1], index: 5, kind: input, shape index: {}]   ;;  %s15126_s6 = inlined_call_operand.hbm [shape: f32[2,64,256], index: 6, kind: output, shape index: {}]  }
   0x1   :  { %13 = vsyncpa [#allocation4 + $0x1], 0  ;;  %s10573_s21 = smov 0   ;;  %s10575_s22 = smov 0  }
   0x2   :  { %s10577_s23 = smov 0   ;;  %s10579_s24 = smov 0  }
   0x3 LB: > { %s10594_s25 = sadd.s32 4294967295, %s10532_s24   ;;  %s8227_s26 = sadd.s32 4294967294, %s10532_s24   ;;  %s10532_s24 = sphi %s10579_s24, %s15510_s24   ;;  %s10528_s23 = sphi %s10577_s23, %s15509_s23   ;;  %s10524_s22 = sphi %s10575_s22, %s15508_s22   ;;  %s10520_s21 = sphi %s10573_s21, %s15507_s21  }
   0x4   : > { %s10598_s27 = sadd.s32 1, %s10532_s24   ;;  %s157_s28 = sadd.s32 1, %s10528_s23 }
   0x5   : > { %s154_s29 = ssub.s32 %s10532_s24, %s10598_s27  ;;  %p167_p0 = scmp.ne.s32.totalorder %s10528_s23, %s10524_s22 }
   0x6   : > { %p155_p1 = scmp.eq.s32.totalorder %s154_s29, 0  ;;  %p168_p2 = scmp.eq.s32.totalorder %s10594_s25, 1 }
   0x7   : > { %p173_p3 = scmp.ne.s32.totalorder %s10524_s22, %s10520_s21  ;;  %p174_p4 = scmp.eq.s32.totalorder %s8227_s26, 1 }
   0x8   : > { %s10609_s30 = scalar_select %p155_p1, %s10528_s23, %s157_s28  }
   0x9   : > { %p10611_p5 = por %p168_p2, %p167_p0  ;;  %p10615_p6 = por %p174_p4, %p173_p3 }
   0xa   : > { %p8230_p7 = scmp.ge.s32.totalorder %s10532_s24, 1  ;;  %p215_p8 = scmp.lt.s32.totalorder %s10532_s24, 3 }
   0xc   : > { %p216_p9 = pnand %p8230_p7, %p215_p8 }
   0xe   : > { %219 = sbr.rel (%p216_p9) target bundleno = 1264 (0x4f0), region = 44 }
  0x13   : > { %v9519_v0 = vld [vmem:[%s15121_s1 + $0x174] ss:$8 sps:$4 sm:$0xff]   ;;  %v9523_v2 = vld [vmem:[%s15121_s1 + $0x170] ss:$8 sps:$4 sm:$0xff]   ;;  %v9525_v4 = vld [vmem:[%s15121_s1 + $0x164] ss:$8 sps:$4 sm:$0xff]  }
  0x14   : > { %v9521_v1 = vld [vmem:[%s15121_s1 + $0x74] ss:$8 sps:$4 sm:$0xff]   ;;  %1020 = vmatprep.subr.bf16.mxu0 %v9519_v0  ;;  %v9524_v3 = vld [vmem:[%s15121_s1 + $0x70] ss:$8 sps:$4 sm:$0xff]   ;;  %v9527_v5 = vld [vmem:[%s15121_s1 + $0x64] ss:$8 sps:$4 sm:$0xff]  }
  0x15   : > { %1273 = vmatprep.subr.bf16.mxu1 %v9521_v1  ;;  %1021 = vmatpush1.bf16.msra.mxu0 %v9523_v2  ;;  %v9529_v6 = vld [vmem:[%s15121_s1 + $0x160] ss:$8 sps:$4 sm:$0xff]   ;;  %v9531_v8 = vld [vmem:[%s15121_s1 + $0x154] ss:$8 sps:$4 sm:$0xff]   ;;  %v9535_v10 = vld [vmem:[%s15121_s1 + $0x150] ss:$8 sps:$4 sm:$0xff]  }
  0x16   : > { %1274 = vmatpush1.bf16.msra.mxu1 %v9524_v3  ;;  %1022 = vmatprep.subr.bf16.mxu0 %v9525_v4  ;;  %v9530_v7 = vld [vmem:[%s15121_s1 + $0x60] ss:$8 sps:$4 sm:$0xff]   ;;  %v9533_v9 = vld [vmem:[%s15121_s1 + $0x54] ss:$8 sps:$4 sm:$0xff]   ;;  %v9536_v11 = vld [vmem:[%s15121_s1 + $0x50] ss:$8 sps:$4 sm:$0xff]  }
  0x17   : > { %1275 = vmatprep.subr.bf16.mxu1 %v9527_v5  ;;  %v9537_v12 = vld [vmem:[%s15121_s1 + $0x144] ss:$8 sps:$4 sm:$0xff]   ;;  %v9541_v14 = vld [vmem:[%s15121_s1 + $0x140] ss:$8 sps:$4 sm:$0xff]   ;;  %v9543_v16 = vld [vmem:[%s15121_s1 + $0x134] ss:$8 sps:$4 sm:$0xff]  }
  0x18   : > { %v9539_v13 = vld [vmem:[%s15121_s1 + $0x44] ss:$8 sps:$4 sm:$0xff]   ;;  %v9542_v15 = vld [vmem:[%s15121_s1 + $0x40] ss:$8 sps:$4 sm:$0xff]   ;;  %v9545_v17 = vld [vmem:[%s15121_s1 + $0x34] ss:$8 sps:$4 sm:$0xff]  }
  0x19   : > { %1023 = vmatpush1.bf16.msra.mxu0 %v9529_v6  ;;  %v9547_v18 = vld [vmem:[%s15121_s1 + $0x130] ss:$8 sps:$4 sm:$0xff]   ;;  %v9549_v20 = vld [vmem:[%s15121_s1 + $0x124] ss:$8 sps:$4 sm:$0xff]   ;;  %v9553_v22 = vld [vmem:[%s15121_s1 + $0x120] ss:$8 sps:$4 sm:$0xff]  }
  0x1a   : > { %1276 = vmatpush1.bf16.msra.mxu1 %v9530_v7  ;;  %1024 = vmatprep.subr.bf16.mxu0 %v9531_v8  ;;  %v9548_v19 = vld [vmem:[%s15121_s1 + $0x30] ss:$8 sps:$4 sm:$0xff]   ;;  %v9551_v21 = vld [vmem:[%s15121_s1 + $0x24] ss:$8 sps:$4 sm:$0xff]   ;;  %v9554_v23 = vld [vmem:[%s15121_s1 + $0x20] ss:$8 sps:$4 sm:$0xff]  }
  0x1b   : > { %1277 = vmatprep.subr.bf16.mxu1 %v9533_v9  ;;  %v9555_v24 = vld [vmem:[%s15121_s1 + $0x114] ss:$8 sps:$4 sm:$0xff]   ;;  %v9559_v26 = vld [vmem:[%s15121_s1 + $0x110] ss:$8 sps:$4 sm:$0xff]   ;;  %v9561_v28 = vld [vmem:[%s15121_s1 + $0x104] ss:$8 sps:$4 sm:$0xff]  }
  0x1c   : > { %v9557_v25 = vld [vmem:[%s15121_s1 + $0x14] ss:$8 sps:$4 sm:$0xff]   ;;  %v9560_v27 = vld [vmem:[%s15121_s1 + $0x10] ss:$8 sps:$4 sm:$0xff]   ;;  %v9563_v29 = vld [vmem:[%s15121_s1 + $0x4] ss:$8 sps:$4 sm:$0xff]  }
  0x1d   : > { %1025 = vmatpush1.bf16.msra.mxu0 %v9535_v10  ;;  %v9565_v30 = vld [vmem:[%s15121_s1 + $0x100] ss:$8 sps:$4 sm:$0xff]   ;;  %v9567_v32 = vld [vmem:[%s15121_s1 + $0x1f4] ss:$8 sps:$4 sm:$0xff]   ;;  %p245_p10 = scmp.lt.s32.totalorder %s10594_s25, 1  ;;  %vm302_vm0 = vcmask 1043457  }
  0x1e   : > { %1278 = vmatpush1.bf16.msra.mxu1 %v9536_v11  ;;  %1026 = vmatprep.subr.bf16.mxu0 %v9537_v12  ;;  %v9566_v31 = vld [vmem:[%s15121_s1] ss:$8 sps:$4 sm:$0xff]   ;;  %v9569_v33 = vld [vmem:[%s15121_s1 + $0xf4] ss:$8 sps:$4 sm:$0xff]   ;;  %v9571_v34 = vld [vmem:[%s15121_s1 + $0x1f0] ss:$8 sps:$4 sm:$0xff]  }
  0x1f   : > { %1279 = vmatprep.subr.bf16.mxu1 %v9539_v13  ;;  %v9572_v35 = vld [vmem:[%s15121_s1 + $0xf0] ss:$8 sps:$4 sm:$0xff]   ;;  %v9573_v36 = vld [vmem:[%s15121_s1 + $0x1e4] ss:$8 sps:$4 sm:$0xff]   ;;  %s246_s10 = scalar_select %p245_p10, %s10594_s25, 1  ;;  %vm305_vm2 = vcmask 1047557  }
  0x20   : > { %v9575_v37 = vld [vmem:[%s15121_s1 + $0xe4] ss:$8 sps:$4 sm:$0xff]   ;;  %v9577_v38 = vld [vmem:[%s15121_s1 + $0x1e0] ss:$8 sps:$4 sm:$0xff]   ;;  %v9579_v40 = vld [vmem:[%s15121_s1 + $0x1d4] ss:$8 sps:$4 sm:$0xff]  }
  0x21   : > { %1027 = vmatpush1.bf16.msra.mxu0 %v9541_v14  ;;  %v9578_v39 = vld [vmem:[%s15121_s1 + $0xe0] ss:$8 sps:$4 sm:$0xff]   ;;  %v9581_v41 = vld [vmem:[%s15121_s1 + $0xd4] ss:$8 sps:$4 sm:$0xff]   ;;  %s9455_s19 = sshll.u32 %s246_s10, 7  ;;  %vm15129_vm6 = vcmask 1041408  }
  0x22   : > { %1280 = vmatpush1.bf16.msra.mxu1 %v9542_v15  ;;  %1028 = vmatprep.subr.bf16.mxu0 %v9543_v16  ;;  %v9583_v42 = vld [vmem:[%s15121_s1 + $0x1d0] ss:$8 sps:$4 sm:$0xff]   ;;  %v9585_v44 = vld [vmem:[%s15121_s1 + $0x1c4] ss:$8 sps:$4 sm:$0xff]   ;;  %s10761_s14 = scalar_lea.vmem %s15120_s0, %s9455_s19  ;;  %vm303_vm1 = vsmask.f32 7942 }
  0x23   : > { %1281 = vmatprep.subr.bf16.mxu1 %v9545_v17  ;;  %v9584_v43 = vld [vmem:[%s15121_s1 + $0xd0] ss:$8 sps:$4 sm:$0xff]   ;;  %v9587_v45 = vld [vmem:[%s15121_s1 + $0xc4] ss:$8 sps:$4 sm:$0xff]   ;;  %vm306_vm3 = vsmask.f32 7958  ;;  %vm304_vm5 = vmand %vm302_vm0, %vm303_vm1 }
  0x24   : > { %v262_v46 = vld [vmem:[%s10761_s14] sm:$0xff]  ;;  %v263_v47 = vld [vmem:[%s10761_s14 + $0x8] sm:$0xff]  ;;  %v264_v48 = vld [vmem:[%s10761_s14 + $0x10] sm:$0xff]  ;;  %vm15127_vm4 = vsmask.f32 1280  ;;  %vm15131_vm7 = vcmask 1045508  }
  0x25   : > { %1029 = vmatpush1.bf16.msra.mxu0 %v9547_v18  ;;  %v265_v49 = vld [vmem:[%s10761_s14 + $0x18] sm:$0xff]  ;;  %v9589_v50 = vld [vmem:[%s15121_s1 + $0x1c0] ss:$8 sps:$4 sm:$0xff]   ;;  %v10776_v52 = vpack.c.bf16 %v263_v47, %v262_v46  ;;  %vm307_vm8 = vmand %vm305_vm2, %vm306_vm3  ;;  %vm15128_vm9 = vsmask.f32 5376  ;;  %v15219_v59 = vmov 0 }
  0x26   : > { %1282 = vmatpush1.bf16.msra.mxu1 %v9548_v19  ;;  %1030 = vmatprep.subr.bf16.mxu0 %v9549_v20  ;;  %v9590_v51 = vld [vmem:[%s15121_s1 + $0xc0] ss:$8 sps:$4 sm:$0xff]   ;;  %v10780_v53 = vpack.c.bf16 %v265_v49, %v264_v48  ;;  %v9591_v54 = vld [vmem:[%s15121_s1 + $0x1b4] ss:$8 sps:$4 sm:$0xff]   ;;  %v9595_v56 = vld [vmem:[%s15121_s1 + $0x1b0] ss:$8 sps:$4 sm:$0xff]  }
  0x27   : > { %1283 = vmatprep.subr.bf16.mxu1 %v9551_v21  ;;  %v9593_v55 = vld [vmem:[%s15121_s1 + $0xb4] ss:$8 sps:$4 sm:$0xff]   ;;  %v292_v57 = vshrl.u32 %v10776_v52, 16  ;;  %v295_v58 = vshll.u32 %v10776_v52, 16  ;;  %vm10795_vm10 = vmor %vm307_vm8, %vm304_vm5  ;;  %v9596_v62 = vld [vmem:[%s15121_s1 + $0xb0] ss:$8 sps:$4 sm:$0xff]  }
  0x28   : > { %v15220_v59 = vsel %vm10795_vm10, 4294967295, %v15219_v59  ;;  %v345_v60 = vshrl.u32 %v10780_v53, 16  ;;  %v348_v61 = vshll.u32 %v10780_v53, 16  ;;  %v9597_v63 = vld [vmem:[%s15121_s1 + $0x1a4] ss:$8 sps:$4 sm:$0xff]   ;;  %vm314_vm11 = vmand %vm15129_vm6, %vm15127_vm4  ;;  %vm324_vm12 = vcmask 1041409  }
  0x29   : > { %1031 = vmatpush1.bf16.msra.mxu0 %v9553_v22  ;;  %15221 = vst [vmem:[#allocation6_spill] sm:$0xff] %v15220_v59  ;;  %v294_v0 = vrot.slane %v292_v57, 6  ;;  %v297_v1 = vrot.slane %v295_v58, 7  ;;  %vm317_vm13 = vmand %vm15131_vm7, %vm15128_vm9  ;;  %vm326_vm14 = vcmask 1045509   ;;  %v9599_v2 = vld [vmem:[%s15121_s1 + $0xa4] ss:$8 sps:$4 sm:$0xff]  }
  0x2a   : > { %1284 = vmatpush1.bf16.msra.mxu1 %v9554_v23  ;;  %1032 = vmatprep.subr.bf16.mxu0 %v9555_v24  ;;  %v309_v3 = vld [vmem:[#allocation2 + $0x60] sm:$0xee]  ;;  %vm10816_vm15 = vmor %vm317_vm13, %vm314_vm11  ;;  %v15222_v4 = vmov 0  ;;  %v347_v8 = vrot.slane %v345_v60, 5  ;;  %v350_v9 = vrot.slane %v348_v61, 6  ;;  %v15225_v14 = vmov 0 }
  0x2b   : > { %1285 = vmatprep.subr.bf16.mxu1 %v9557_v25  ;;  %v15223_v4 = vsel %vm10816_vm15, 4294967295, %v15222_v4  ;;  %v9601_v5 = vld [vmem:[%s15121_s1 + $0x1a0] ss:$8 sps:$4 sm:$0xff]   ;;  %v298_v7 = vor.u32 %v297_v1, %v294_v0  ;;  %vm325_vm0 = vmand %vm324_vm12, %vm15127_vm4  ;;  %v319_v10 = vld [vmem:[#allocation2 + $0x58] sm:$0x33]  ;;  %vm355_vm11 = vcmask 1043458  }
  0x2c   : > { %15224 = vst [vmem:[#allocation7_spill] sm:$0xff] %v15223_v4  ;;  %v9602_v6 = vld [vmem:[%s15121_s1 + $0xa0] ss:$8 sps:$4 sm:$0xff]   ;;  %vm327_vm2 = vmand %vm326_vm14, %vm15128_vm9  ;;  %v9603_v11 = vld [vmem:[%s15121_s1 + $0x194] ss:$8 sps:$4 sm:$0xff]   ;;  %v351_v20 = vor.u32 %v350_v9, %v347_v8  ;;  %v15228_v23 = vmov 0 }
  0x2d   : > { %1033 = vmatpush1.bf16.msra.mxu0 %v9559_v26  ;;  %v299_v12 = vrot.slane %v298_v7, 4  ;;  %v310_v13 = vsel %vm10795_vm10, %v298_v7, %v309_v3  ;;  %vm10839_vm5 = vmor %vm327_vm2, %vm325_vm0  ;;  %v9605_v15 = vld [vmem:[%s15121_s1 + $0x94] ss:$8 sps:$4 sm:$0xff]   ;;  %vm356_vm13 = vsmask.f32 7946  ;;  %v266_v18 = vld [vmem:[%s10761_s14 + $0x20] sm:$0xff] }
  0x2e   : > { %1286 = vmatpush1.bf16.msra.mxu1 %v9560_v27  ;;  %1034 = vmatprep.subr.bf16.mxu0 %v9561_v28  ;;  %v15226_v14 = vsel %vm10839_vm5, 4294967295, %v15225_v14  ;;  %311 = vst [vmem:[#allocation2 + $0x60] sm:$0xee] %v310_v13  ;;  %vm335_vm8 = vmand %vm324_vm12, %vm303_vm1  ;;  %v9607_v16 = vld [vmem:[%s15121_s1 + $0x190] ss:$8 sps:$4 sm:$0xff]   ;;  %vm358_vm2 = vcmask 1047558  }
  0x2f   : > { %1287 = vmatprep.subr.bf16.mxu1 %v9563_v29  ;;  %15227 = vst [vmem:[#allocation8_spill] sm:$0xff] %v15226_v14  ;;  %v9608_v17 = vld [vmem:[%s15121_s1 + $0x90] ss:$8 sps:$4 sm:$0xff]   ;;  %v320_v19 = vsel %vm10816_vm15, %v299_v12, %v319_v10  ;;  %vm336_vm0 = vmand %vm326_vm14, %vm306_vm3  ;;  %vm15132_vm1 = vsmask.f32 7962  ;;  %v267_v22 = vld [vmem:[%s10761_s14 + $0x28] sm:$0xff] }
  0x30   : > { %v9609_v21 = vld [vmem:[%s15121_s1 + $0x184] ss:$8 sps:$4 sm:$0xff]   ;;  %321 = vst [vmem:[#allocation2 + $0x58] sm:$0x33] %v320_v19  ;;  %vm10863_vm12 = vmor %vm336_vm0, %vm335_vm8  ;;  %vm365_vm4 = vcmask 1042432   ;;  %v15231_v24 = vmov 0 }
  0x31   : > { %1035 = vmatpush1.bf16.msra.mxu0 %v9565_v30  ;;  %v15229_v23 = vsel %vm10863_vm12, 4294967295, %v15228_v23  ;;  %vm10869_vm9 = vmand %vm355_vm11, %vm356_vm13  ;;  %v362_v25 = vld [vmem:[#allocation2 + $0x58] sm:$0xcc]  ;;  %vm366_vm3 = vsmask.f32 2304  ;;  %vm368_vm14 = vcmask 1046532  }
  0x32   : > { %1288 = vmatpush1.bf16.msra.mxu1 %v9566_v31  ;;  %1036 = vmatprep.subr.bf16.mxu0 %v9567_v32  ;;  %15230 = vst [vmem:[#allocation9_spill] sm:$0xff] %v15229_v23  ;;  %v15232_v24 = vsel %vm10869_vm9, 4294967295, %v15231_v24  ;;  %v9611_v26 = vld [vmem:[%s15121_s1 + $0x84] ss:$8 sps:$4 sm:$0xff]   ;;  %v322_v27 = vrot.slane %v292_v57, 7  ;;  %vm10878_vm8 = vmand %vm358_vm2, %vm15132_vm1  ;;  %v352_v31 = vrot.slane %v351_v20, 4 }
  0x33   : > { %1289 = vmatprep.subr.bf16.mxu1 %v9569_v33  ;;  %vm15138_vm11 = vsmask.f32 6400  ;;  %v9613_v29 = vld [vmem:[%s15121_s1 + $0x180] ss:$8 sps:$4 sm:$0xff]   ;;  %vm15130_vm0 = vmor %vm10878_vm8, %vm10869_vm9  ;;  %v372_v32 = vld [vmem:[#allocation2 + $0x18] sm:$0x77] }
  0x34   : > { %v9614_v30 = vld [vmem:[%s15121_s1 + $0x80] ss:$8 sps:$4 sm:$0xff]   ;;  %v8235_v33 = vrot.slane %v295_v58, 10  ;;  %vm10901_vm2 = vmand %vm365_vm4, %vm366_vm3  ;;  %vm379_vm7 = vcmask 1046534   ;;  %v375_v46 = vrot.slane %v345_v60, 6  ;;  %v15239_v47 = vmov 0 }
  0x35   : > { %1037 = vmatpush2.bf16.msra.mxu0 %v9571_v34  ;;  %v363_v34 = vsel %vm15130_vm0, %v351_v20, %v362_v25  ;;  %vm10912_vm6 = vmand %vm368_vm14, %vm15138_vm11  ;;  %vm377_vm0 = vcmask 1042434   ;;  %vm414_vm9 = vsmask.f32 7966  ;;  %v15246_v57 = vmov 0  ;;  %v427_v7 = vld [vmem:[#allocation2 + $0x50] sm:$0xff]  ;;  %s242_s28 = sand.u32 1, %s10524_s22  }
  0x36   : > { %1290 = vmatpush2.bf16.msra.mxu1 %v9572_v35  ;;  %1038 = vmatprep.subr.bf16.mxu0 %v9573_v36  ;;  %v15235_v35 = vmov 0  ;;  %v10905_v36 = vpack.c.bf16 %v267_v22, %v266_v18  ;;  %364 = vst [vmem:[#allocation2 + $0x58] sm:$0xcc] %v363_v34  ;;  %vm15133_vm4 = vmor %vm10912_vm6, %vm10901_vm2  ;;  %v15254_v1 = vmov 0  ;;  %v15265_v34 = vmov 0  ;;  %s14990_s29 = sshll.u32 %s242_s28, 7 }
  0x37   : > { %1291 = vmatprep.subr.bf16.mxu1 %v9575_v37  ;;  %v15236_v35 = vsel %vm10901_vm2, 4294967295, %v15235_v35  ;;  %v9617_v37 = vld [vmem:[%s15121_s1 + $0x274] ss:$8 sps:$4 sm:$0xff]   ;;  %vm378_vm14 = vmand %vm377_vm0, %vm366_vm3  ;;  %v9639_v9 = vld [vmem:[%s15121_s1 + $0x230] ss:$8 sps:$4 sm:$0xff]   ;;  %s15006_s9 = scalar_lea.vmem [#allocation3], %s14990_s29 }
  0x38   : > { %vm380_vm1 = vmand %vm379_vm7, %vm15138_vm11  ;;  %vm15242_vm11 = vsmask.f32 7962  ;;  %v403_v48 = vshrl.u32 %v10905_v36, 16  ;;  %v9671_v18 = vld [vmem:[%s15121_s1 + $0x3f4] ss:$8 sps:$4 sm:$0xff]   ;;  %s9474_s11 = sshll.u32 %s10594_s25, 11 }
  0x39   : > { %1039 = vmatpush2.bf16.msra.mxu0 %v9577_v38  ;;  %v329_v38 = vld [vmem:[#allocation2 + $0x60] sm:$0x22]  ;;  %vm388_vm3 = vmand %vm377_vm0, %vm356_vm13  ;;  %vm421_vm13 = vsmask.f32 3328  ;;  %vm15146_vm0 = vsmask.f32 7424  ;;  %s15067_s10 = scalar_lea.hbm %s15126_s6, %s9474_s11 }
  0x3a   : > { %1292 = vmatpush2.bf16.msra.mxu1 %v9578_v39  ;;  %1040 = vmatprep.subr.bf16.mxu0 %v9579_v40  ;;  %v15237_v39 = vmov 0  ;;  %v9620_v40 = vld [vmem:[%s15121_s1 + $0x374] ss:$8 sps:$4 sm:$0xff]   ;;  %vm389_vm2 = vmand %vm379_vm7, %vm15242_vm11  ;;  %s8165_s12 = sshll.u32 %s15006_s9, 4  ;;  %s15080_s15 = scalar_lea.sflag [#allocation4], %s242_s28  ;;  %s15069_s12 = int_to_ptr.vmem [resolvable:$true] %s8165_s12 }
  0x3b   : > { %1293 = vmatprep.subr.bf16.mxu1 %v9581_v41  ;;  %v15238_v39 = vsel %vm10912_vm6, 4294967295, %v15237_v39  ;;  %v330_v41 = vsel %vm10839_vm5, %v322_v27, %v329_v38  ;;  %vm411_vm5 = vsmask.f32 7950  ;;  %vm413_vm6 = vcmask 1047559   ;;  %s10472_s16 = scalar_lea.vmem %s15069_s12, 2048  ;;  %s10535_s17 = smov [#allocation3]  }
  0x3c   : > { %331 = vst [vmem:[#allocation2 + $0x60] sm:$0x22] %v330_v41  ;;  %vm415_vm11 = vmand %vm413_vm6, %vm414_vm9  ;;  %p10473_p11 = scmp.ne.s32.totalorder %s15069_s12, %s10472_s16  ;;  %s10476_s18 = sshll.u32 %s10535_s17, 4  ;;  %s10477_s18 = int_to_ptr.vmem [resolvable:$false] %s10476_s18 }
  0x3d   : > { %1041 = vmatpush2.bf16.msra.mxu0 %v9583_v42  ;;  %v338_v42 = vld [vmem:[#allocation2 + $0x58] sm:$0x22]  ;;  %v382_v49 = vld [vmem:[#allocation2 + $0x58] sm:$0x44]  ;;  %vm433_vm9 = vmand %vm413_vm6, %vm15146_vm0  ;;  %p10479_p0 = scmp.lt.s32.totalorder %s15069_s12, %s10477_s18 }
  0x3e   : > { %1294 = vmatpush2.bf16.msra.mxu1 %v9584_v43  ;;  %1042 = vmatprep.subr.bf16.mxu0 %v9585_v44  ;;  %v373_v43 = vsel %vm15133_vm4, %v352_v31, %v372_v32  ;;  %v339_v44 = vsel %vm10863_vm12, %v8235_v33, %v338_v42  ;;  %vm10939_vm4 = vmor %vm380_vm1, %vm378_vm14  ;;  %vm410_vm12 = vcmask 1043459   ;;  %vm15150_vm14 = vcmask 1043456   ;;  %v270_v31 = vld [vmem:[%s10761_s14 + $0x40] sm:$0xff]  ;;  %v271_v42 = vld [vmem:[%s10761_s14 + $0x48] sm:$0xff]  ;;  %p10474_p12 = pnand %p10473_p11, %p10611_p5 }
  0x3f   : > { %1295 = vmatprep.subr.bf16.mxu1 %v9587_v45  ;;  %374 = vst [vmem:[#allocation2 + $0x18] sm:$0x77] %v373_v43  ;;  %v400_v45 = vshll.u32 %v10905_v36, 16  ;;  %340 = vst [vmem:[#allocation2 + $0x58] sm:$0x22] %v339_v44  ;;  %v15240_v47 = vsel %vm10939_vm4, 4294967295, %v15239_v47 }
  0x40   : > { %15241 = vst [vmem:[#allocation10_spill] sm:$0xff] %v15240_v47  ;;  %vm10950_vm1 = vmor %vm389_vm2, %vm388_vm3  ;;  %v272_v43 = vld [vmem:[%s10761_s14 + $0x50] sm:$0xff]  ;;  %v273_v44 = vld [vmem:[%s10761_s14 + $0x58] sm:$0xff]  ;;  %p10475_p13 = pneg %p10474_p12 }
  0x41   : > { %1043 = vmatpush2.bf16.msra.mxu0 %v9589_v50  ;;  %v8237_v50 = vrot.slane %v348_v61, 9  ;;  %v402_v52 = vrot.slane %v400_v45, 5  ;;  %vm412_vm7 = vmand %vm410_vm12, %vm411_vm5 }
  0x42   : > { %1296 = vmatpush2.bf16.msra.mxu1 %v9590_v51  ;;  %1044 = vmatprep.subr.bf16.mxu0 %v9591_v54  ;;  %v15243_v51 = vmov 0  ;;  %v417_v54 = vld [vmem:[#allocation2 + $0x18] sm:$0x88]  ;;  %vm10960_vm2 = vmor %vm415_vm11, %vm412_vm7  ;;  %vm423_vm7 = vcmask 1047556   ;;  %vm15252_vm11 = vcmask 1045508  }
  0x43   : > { %1297 = vmatprep.subr.bf16.mxu1 %v9593_v55  ;;  %v15244_v51 = vsel %vm10950_vm1, 4294967295, %v15243_v51  ;;  %v383_v55 = vsel %vm10939_vm4, %v375_v46, %v382_v49  ;;  %v15247_v57 = vsel %vm10960_vm2, 4294967295, %v15246_v57  ;;  %v418_v60 = vsel %vm10960_vm2, %v402_v52, %v417_v54  ;;  %vm432_vm5 = vmand %vm410_vm12, %vm421_vm13  ;;  %v470_v46 = vld [vmem:[#allocation2 + $0x8] sm:$0x11] }
  0x44   : > { %15245 = vst [vmem:[#allocation11_spill] sm:$0xff] %v15244_v51  ;;  %384 = vst [vmem:[#allocation2 + $0x58] sm:$0x44] %v383_v55  ;;  %vm15151_vm12 = vsmask.f32 7938  ;;  %v11064_v49 = vpack.c.bf16 %v273_v44, %v272_v43 }
  0x45   : > { %1045 = vmatpush2.bf16.msra.mxu0 %v9595_v56  ;;  %v405_v56 = vrot.slane %v403_v48, 4  ;;  %15248 = vst [vmem:[#allocation12_spill] sm:$0xff] %v15247_v57  ;;  %419 = vst [vmem:[#allocation2 + $0x18] sm:$0x88] %v418_v60  ;;  %v9630_v43 = vld [vmem:[%s15121_s1 + $0x350] ss:$8 sps:$4 sm:$0xff]  }
  0x46   : > { %1298 = vmatpush2.bf16.msra.mxu1 %v9596_v62  ;;  %1046 = vmatprep.subr.bf16.mxu0 %v9597_v63  ;;  %v391_v53 = vld [vmem:[#allocation2 + $0x18] sm:$0x44]  ;;  %vm10972_vm3 = vmor %vm433_vm9, %vm432_vm5  ;;  %v15249_v62 = vmov 0  ;;  %v430_v63 = vrot.slane %v403_v48, 5  ;;  %v11062_v48 = vpack.c.bf16 %v271_v42, %v270_v31  ;;  %v9623_v42 = vld [vmem:[%s15121_s1 + $0x264] ss:$8 sps:$4 sm:$0xff]  }
  0x47   : > { %1299 = vmatprep.subr.bf16.mxu1 %v9599_v2  ;;  %v392_v58 = vsel %vm10950_vm1, %v8237_v50, %v391_v53  ;;  %v406_v61 = vor.u32 %v405_v56, %v402_v52  ;;  %v15250_v62 = vsel %vm10972_vm3, 4294967295, %v15249_v62  ;;  %vm15253_vm1 = vcmask 1041408   ;;  %v268_v2 = vld [vmem:[%s10761_s14 + $0x30] sm:$0xff]  ;;  %vm10986_vm6 = vmand %vm15150_vm14, %vm421_vm13  ;;  %v507_v44 = vld [vmem:[#allocation2 + $0x38] sm:$0x33] }
  0x48   : > { %393 = vst [vmem:[#allocation2 + $0x18] sm:$0x44] %v392_v58  ;;  %15251 = vst [vmem:[#allocation13_spill] sm:$0xff] %v15250_v62  ;;  %v494_v53 = vshrl.u32 %v11062_v48, 16  ;;  %v9626_v58 = vld [vmem:[%s15121_s1 + $0x364] ss:$8 sps:$4 sm:$0xff]  }
  0x49   : > { %1047 = vmatpush2.bf16.msra.mxu0 %v9601_v5  ;;  %vm10978_vm4 = vmor %vm15253_vm1, %vm15252_vm11  ;;  %v407_v3 = vrot.slane %v406_v61, 4  ;;  %v269_v5 = vld [vmem:[%s10761_s14 + $0x38] sm:$0xff]  ;;  %vm15152_vm1 = vsmask.f32 7954  ;;  %v497_v60 = vshll.u32 %v11062_v48, 16  ;;  %v525_v61 = vshrl.u32 %v11064_v49, 16 }
  0x4a   : > { %1300 = vmatpush2.bf16.msra.mxu1 %v9602_v6  ;;  %1048 = vmatprep.subr.bf16.mxu0 %v9603_v11  ;;  %v15255_v1 = vsel %vm10978_vm4, 4294967295, %v15254_v1  ;;  %vm10992_vm5 = vmand %vm423_vm7, %vm15146_vm0  ;;  %v10996_v10 = vpack.c.bf16 %v269_v5, %v268_v2  ;;  %vm463_vm0 = vcmask 1040384   ;;  %v9624_v5 = vld [vmem:[%s15121_s1 + $0x360] ss:$8 sps:$4 sm:$0xff]  }
  0x4b   : > { %1301 = vmatprep.subr.bf16.mxu1 %v9605_v15  ;;  %v614_v0 = vld [vmem:[#allocation2 + $0x58] sm:$0xcc]  ;;  %15256 = vst [vmem:[#allocation14_spill] sm:$0xff] %v15255_v1  ;;  %vm15147_vm13 = vmor %vm10992_vm5, %vm10986_vm6  ;;  %v527_v31 = vrot.slane %v525_v61, 5  ;;  %v9633_v48 = vld [vmem:[%s15121_s1 + $0x240] ss:$8 sps:$4 sm:$0xff]  }
  0x4c   : > { %v8250_v8 = vrot.slane %v614_v0, 10  ;;  %v435_v11 = vld [vmem:[#allocation2 + $0x18] sm:$0x88]  ;;  %vm11012_vm9 = vmand %vm15150_vm14, %vm15151_vm12  ;;  %v449_v19 = vshll.u32 %v10996_v10, 16  ;;  %vm467_vm14 = vsmask.f32 4352 }
  0x4d   : > { %1049 = vmatpush2.bf16.msra.mxu0 %v9607_v16  ;;  %v436_v13 = vsel %vm10972_vm3, %v430_v63, %v435_v11  ;;  %v428_v16 = vsel %vm15147_vm13, %v407_v3, %v427_v7  ;;  %vm11019_vm11 = vmand %vm423_vm7, %vm15152_vm1  ;;  %vm464_vm13 = vsmask.f32 256  ;;  %vm466_vm3 = vcmask 1044484  }
  0x4e   : > { %1302 = vmatpush2.bf16.msra.mxu1 %v9608_v17  ;;  %1050 = vmatprep.subr.bf16.mxu0 %v9609_v21  ;;  %v446_v17 = vshrl.u32 %v10996_v10, 16  ;;  %437 = vst [vmem:[#allocation2 + $0x18] sm:$0x88] %v436_v13  ;;  %429 = vst [vmem:[#allocation2 + $0x50] sm:$0xff] %v428_v16  ;;  %v15274_v10 = vmov 0 }
  0x4f   : > { %1303 = vmatprep.subr.bf16.mxu1 %v9611_v26  ;;  %v615_v12 = vld [vmem:[#allocation2 + $0x18] sm:$0x77]  ;;  %vm459_vm12 = vmor %vm11019_vm11, %vm11012_vm9  ;;  %v460_v26 = vld [vmem:[#allocation2 + $0x20] sm:$0xff] }
  0x50   : > { %v621_v15 = vrot.slane %v615_v12, 6  ;;  %v448_v25 = vrot.slane %v446_v17, 7  ;;  %vm465_vm7 = vmand %vm463_vm0, %vm464_vm13  ;;  %vm15271_vm13 = vsmask.f32 7954  ;;  %v538_v13 = vld [vmem:[#allocation2 + $0x28] sm:$0x77] }
  0x51   : > { %1051 = vmatpush2.bf16.msra.mxu0 %v9613_v29  ;;  %vm468_vm1 = vmand %vm466_vm3, %vm467_vm14  ;;  %v11033_v29 = vld [vmem:[#allocation2 + $0x58] sm:$0xff]  ;;  %vm15268_vm14 = vsmask.f32 7938 }
  0x52   : > { %1304 = vmatpush2.bf16.msra.mxu1 %v9614_v30  ;;  %1588 = vmatprep.subr.bf16.mxu0 %v9617_v37  ;;  %v622_v21 = vsel %vm10978_vm4, %v8250_v8, %v621_v15  ;;  %v623_v22 = vrot.slane %v621_v15, 4  ;;  %v451_v27 = vor.u32 %v449_v19, %v448_v25  ;;  %vm11043_vm4 = vmor %vm468_vm1, %vm465_vm7  ;;  %v452_v37 = vrot.slane %v448_v25, 4  ;;  %v9632_v25 = vld [vmem:[%s15121_s1 + $0x354] ss:$8 sps:$4 sm:$0xff]  }
  0x53   : > { %1972 = vmatprep.subr.bf16.mxu1 %v9620_v40  ;;  %626 = vst [vmem:[#allocation2 + $0x40] sm:$0xff] %v622_v21  ;;  %v15266_v34 = vsel %vm11043_vm4, 4294967295, %v15265_v34  ;;  %vm11088_vm1 = vmand %vm463_vm0, %vm15268_vm14  ;;  %v496_v15 = vrot.slane %v494_v53, 6 }
  0x54   : > { %627 = vst [vmem:[#allocation2 + $0x60] sm:$0x11] %v623_v22  ;;  %v461_v30 = vsel %vm459_vm12, %v451_v27, %v460_v26  ;;  %15267 = vst [vmem:[#allocation15_spill] sm:$0xff] %v15266_v34  ;;  %v471_v56 = vsel %vm11043_vm4, %v452_v37, %v470_v46  ;;  %v9615_v26 = vld [vmem:[%s15121_s1 + $0x270] ss:$8 sps:$4 sm:$0xff]   ;;  %v8241_v27 = vrot.slane %v449_v19, 11 }
  0x55   : > { %462 = vst [vmem:[#allocation2 + $0x20] sm:$0xff] %v461_v30  ;;  %v11041_v32 = vld [vmem:[#allocation2 + $0x18] sm:$0xff]  ;;  %v439_v33 = vld [vmem:[#allocation2 + $0x50] sm:$0x88]  ;;  %472 = vst [vmem:[#allocation2 + $0x8] sm:$0x11] %v471_v56 }
  0x56   : > { %v11049_v38 = vcombine.high %v11033_v29, %v11041_v32  ;;  %v11053_v40 = vcombine.low %v11033_v29, %v11041_v32  ;;  %v440_v41 = vsel %vm10960_vm2, %v400_v45, %v439_v33  ;;  %v9618_v45 = vld [vmem:[%s15121_s1 + $0x370] ss:$8 sps:$4 sm:$0xff]   ;;  %vm11098_vm7 = vmand %vm466_vm3, %vm15271_vm13  ;;  %v504_v30 = vld [vmem:[#allocation2 + $0x8] sm:$0xee]  ;;  %v528_v33 = vshll.u32 %v11064_v49, 16 }
  0x57   : > { %441 = vst [vmem:[#allocation2 + $0x50] sm:$0x88] %v440_v41  ;;  %vm11130_vm0 = vmor %vm11098_vm7, %vm11088_vm1  ;;  %vm15277_vm3 = vsmask.f32 7424  ;;  %v535_v56 = vld [vmem:[#allocation2 + $0x38] sm:$0xcc]  ;;  %vm15279_vm1 = vnez %v15232_v24  ;;  %vm15282_vm7 = vnez %v15236_v35 }
  0x58   : > { %v782_v52 = vshll.u32 %v11049_v38, 16  ;;  %v770_v54 = vshll.u32 %v11053_v40, 16  ;;  %v15275_v10 = vsel %vm11130_vm0, 4294967295, %v15274_v10  ;;  %v530_v46 = vrot.slane %v528_v33, 6  ;;  %vm15278_vm14 = vmmov %vm15277_vm3  ;;  %v568_v35 = vld [vmem:[#allocation2 + $0x28] sm:$0x88] }
  0x59   : > { %15276 = vst [vmem:[#allocation16_spill] sm:$0xff] %v15275_v10  ;;  %v786_v8 = vshrl.u32 %v11053_v40, 16  ;;  %vm15280_vm13 = vmor %vm10878_vm8, %vm15279_vm1  ;;  %vm15281_vm8 = vnez %v15238_v39  ;;  %vm15285_vm1 = vsmask.f32 7424  ;;  %v9648_v49 = vld [vmem:[%s15121_s1 + $0x320] ss:$8 sps:$4 sm:$0xff]  }
  0x5a   : > { %v11092_v11 = vrot.slane %v782_v52, 1  ;;  %v11104_v22 = vrot.slane %v770_v54, 1 }
  0x5b   : > { %v11066_v50 = vld [vmem:[#allocation2 + $0x60] sm:$0xff] }
  0x5c   : > { %v8285_v36 = vcombine.high %v622_v21, %v11066_v50  ;;  %v8284_v55 = vcombine.low %v622_v21, %v11066_v50  ;;  %v476_v7 = vld [vmem:[#allocation2 + $0x20] sm:$0x11] }
  0x5d   : > { %v477_v12 = vsel %vm11043_vm4, %v446_v17, %v476_v7  ;;  %v499_v17 = vrot.slane %v497_v60, 7  ;;  %v794_v7 = vshrl.u32 %v11049_v38, 16 }
  0x5e   : > { %v775_v63 = vshrl.u32 %v8285_v36, 16  ;;  %v777_v0 = vshll.u32 %v8285_v36, 16  ;;  %1305 = vmatprep.mubr.bf16.mxu1 %v8285_v36  ;;  %v763_v2 = vshrl.u32 %v8284_v55, 16  ;;  %v765_v3 = vshll.u32 %v8284_v55, 16  ;;  %478 = vst [vmem:[#allocation2 + $0x20] sm:$0x11] %v477_v12 }
  0x5f   : > { %1306 = vmatmul.mubr.bf16.vlgmr.msra.gmra.mxu1 %v8284_v55  ;;  %v500_v19 = vor.u32 %v499_v17, %v496_v15  ;;  %v485_v36 = vld [vmem:[#allocation2 + $0x8] sm:$0x11] }
  0x60   : > { %v779_v16 = vrot.slane %v777_v0, 1  ;;  %v767_v21 = vrot.slane %v765_v3, 1  ;;  %1973 = vmatpush1.bf16.msra.mxu1 %v9618_v45  ;;  %1315 = vmatprep.mubr.bf16.mxu1 %v11049_v38  ;;  %v11146_v0 = vld [vmem:[#allocation2 + $0x50] sm:$0xff]  ;;  %v531_v3 = vor.u32 %v530_v46, %v527_v31  ;;  %v796_v46 = vor.u32 %v794_v7, %v11092_v11 }
  0x61   : > { %1974 = vmatprep.subr.bf16.mxu1 %v9626_v58  ;;  %v501_v55 = vrot.slane %v500_v19, 4  ;;  %v505_v45 = vsel %vm10795_vm10, %v500_v19, %v504_v30  ;;  %v274_v58 = vld [vmem:[%s10761_s14 + $0x60] sm:$0xff] }
  0x62   : > { %v780_v37 = vor.u32 %v779_v16, %v775_v63  ;;  %v768_v41 = vor.u32 %v767_v21, %v763_v2  ;;  %v9638_v63 = vld [vmem:[%s15121_s1 + $0x344] ss:$8 sps:$4 sm:$0xff]   ;;  %v486_v2 = vsel %vm11130_vm0, %v8241_v27, %v485_v36  ;;  %506 = vst [vmem:[#allocation2 + $0x8] sm:$0xee] %v505_v45  ;;  %v9621_v16 = vld [vmem:[%s15121_s1 + $0x260] ss:$8 sps:$4 sm:$0xff]   ;;  %v536_v17 = vsel %vm15280_vm13, %v531_v3, %v535_v56  ;;  %vm15286_vm13 = vmmov %vm15285_vm1 }
  0x63   : > { %487 = vst [vmem:[#allocation2 + $0x8] sm:$0x11] %v486_v2  ;;  %v508_v12 = vsel %vm10816_vm15, %v501_v55, %v507_v44  ;;  %v9629_v21 = vld [vmem:[%s15121_s1 + $0x254] ss:$8 sps:$4 sm:$0xff]   ;;  %v9636_v27 = vld [vmem:[%s15121_s1 + $0x340] ss:$8 sps:$4 sm:$0xff]  }
  0x64   : > { %v785_v52 = vsel %vm15277_vm3, %v780_v37, %v11092_v11  ;;  %v773_v54 = vsel %vm15278_vm14, %v768_v41, %v11104_v22  ;;  %1975 = vmatpush1.bf16.msra.mxu1 %v9624_v5  ;;  %v275_v5 = vld [vmem:[%s10761_s14 + $0x68] sm:$0xff]  ;;  %509 = vst [vmem:[#allocation2 + $0x38] sm:$0x33] %v508_v12  ;;  %537 = vst [vmem:[#allocation2 + $0x38] sm:$0xcc] %v536_v17  ;;  %v541_v36 = vrot.slane %v525_v61, 6  ;;  %vm15284_vm14 = vnez %v15226_v14 }
  0x65   : > { %1052 = vmatprep.mubr.bf16.mxu0 %v785_v52  ;;  %1976 = vmatprep.subr.bf16.mxu1 %v9632_v25  ;;  %v11155_v15 = vpack.c.bf16 %v275_v5, %v274_v58  ;;  %v11163_v25 = vld [vmem:[#allocation2 + $0x20] sm:$0xff]  ;;  %v9627_v37 = vld [vmem:[%s15121_s1 + $0x250] ss:$8 sps:$4 sm:$0xff]   ;;  %v9644_v41 = vld [vmem:[%s15121_s1 + $0x334] ss:$8 sps:$4 sm:$0xff]   ;;  %v8245_v12 = vrot.slane %v528_v33, 9 }
  0x66   : > { %1053 = vmatmul.mubr.bf16.vlgmr.msra.gmra.mxu0 %v773_v54  ;;  %v11176_v30 = vcombine.high %v11146_v0, %v11163_v25  ;;  %v11180_v31 = vcombine.low %v11146_v0, %v11163_v25  ;;  %vm15283_vm3 = vmor %vm15281_vm8, %vm15282_vm7  ;;  %v9635_v19 = vld [vmem:[%s15121_s1 + $0x244] ss:$8 sps:$4 sm:$0xff]   ;;  %v9642_v44 = vld [vmem:[%s15121_s1 + $0x330] ss:$8 sps:$4 sm:$0xff]   ;;  %v8243_v54 = vrot.slane %v497_v60, 10  ;;  %vm1395_vm8 = vcmask 1046528  }
  0x67   : > { %1589 = vmatpush1.bf16.msra.mxu0 %v9615_v26  ;;  %1316 = vmatmul.mubr.bf16.gmra.mxu1 %v11053_v40  ;;  %v532_v26 = vrot.slane %v531_v3, 4  ;;  %v558_v24 = vshll.u32 %v11155_v15, 16  ;;  %v561_v28 = vshrl.u32 %v11155_v15, 16  ;;  %v276_v58 = vld [vmem:[%s10761_s14 + $0x70] sm:$0xff]  ;;  %v9650_v60 = vld [vmem:[%s15121_s1 + $0x324] ss:$8 sps:$4 sm:$0xff]   ;;  %vm15287_vm7 = vnez %v15229_v23 }
  0x68   : > { %1590 = vmatprep.subr.bf16.mxu0 %v9623_v42  ;;  %1977 = vmatpush1.bf16.msra.mxu1 %v9630_v43  ;;  %v510_v42 = vrot.slane %v494_v53, 7  ;;  %v798_v52 = vshll.u32 %v11176_v30, 16  ;;  %v788_v53 = vor.u32 %v786_v8, %v11104_v22  ;;  %v790_v39 = vshll.u32 %v11180_v31, 16  ;;  %v277_v3 = vld [vmem:[%s10761_s14 + $0x78] sm:$0xff]  ;;  %v9661_v15 = vld [vmem:[%s15121_s1 + $0x204] ss:$8 sps:$4 sm:$0xff]  }
  0x69   : > { %1978 = vmatprep.subr.bf16.mxu1 %v9638_v63  ;;  %v539_v43 = vsel %vm15283_vm3, %v532_v26, %v538_v13  ;;  %1325 = vmatprep.mubr.bf16.mxu1 %v11176_v30  ;;  %v560_v11 = vrot.slane %v558_v24, 5  ;;  %v563_v22 = vrot.slane %v561_v28, 4  ;;  %v512_v56 = vld [vmem:[#allocation2 + $0x8] sm:$0x22]  ;;  %vm15288_vm3 = vnez %v15240_v47 }
  0x6a   : > { %540 = vst [vmem:[#allocation2 + $0x28] sm:$0x77] %v539_v43  ;;  %v11216_v55 = vrot.slane %v798_v52, 1  ;;  %v11218_v45 = vrot.slane %v790_v39, 1  ;;  %v513_v61 = vsel %vm15284_vm14, %v510_v42, %v512_v56  ;;  %v571_v13 = vld [vmem:[#allocation2 + $0x48] sm:$0xff] }
  0x6b   : > { %1591 = vmatpush1.bf16.msra.mxu0 %v9621_v16  ;;  %v564_v63 = vor.u32 %v563_v22, %v560_v11  ;;  %v569_v2 = vsel %vm10960_vm2, %v560_v11, %v568_v35  ;;  %514 = vst [vmem:[#allocation2 + $0x8] sm:$0x22] %v513_v61  ;;  %v518_v8 = vld [vmem:[#allocation2 + $0x38] sm:$0x22]  ;;  %v543_v17 = vld [vmem:[#allocation2 + $0x38] sm:$0x44] }
  0x6c   : > { %1592 = vmatprep.subr.bf16.mxu0 %v9629_v21  ;;  %1979 = vmatpush1.bf16.msra.mxu1 %v9636_v27  ;;  %v801_v5 = vsel %vm15285_vm1, %v796_v46, %v11216_v55  ;;  %v793_v7 = vsel %vm15286_vm13, %v788_v53, %v11218_v45  ;;  %570 = vst [vmem:[#allocation2 + $0x28] sm:$0x88] %v569_v2  ;;  %v9641_v16 = vld [vmem:[%s15121_s1 + $0x234] ss:$8 sps:$4 sm:$0xff]   ;;  %vm15289_vm1 = vmor %vm10992_vm5, %vm10986_vm6  ;;  %vm15290_vm13 = vnez %v15244_v51  ;;  %v574_v53 = vrot.slane %v561_v28, 5 }
  0x6d   : > { %1980 = vmatprep.subr.bf16.mxu1 %v9644_v41  ;;  %1062 = vmatprep.mubr.bf16.mxu0 %v801_v5  ;;  %v519_v21 = vsel %vm15287_vm7, %v8243_v54, %v518_v8  ;;  %v565_v26 = vrot.slane %v564_v63, 4  ;;  %v11243_v27 = vpack.c.bf16 %v277_v3, %v276_v58  ;;  %v544_v33 = vsel %vm15288_vm3, %v541_v36, %v543_v17  ;;  %v9657_v42 = vld [vmem:[%s15121_s1 + $0x314] ss:$8 sps:$4 sm:$0xff]   ;;  %v9647_v39 = vld [vmem:[%s15121_s1 + $0x224] ss:$8 sps:$4 sm:$0xff]  }
  0x6e   : > { %520 = vst [vmem:[#allocation2 + $0x38] sm:$0x22] %v519_v21  ;;  %v15156_v41 = vrot.slane %v11180_v31, 1  ;;  %1063 = vmatmul.mubr.bf16.gmra.mxu0 %v793_v7  ;;  %545 = vst [vmem:[#allocation2 + $0x38] sm:$0x44] %v544_v33  ;;  %v596_v54 = vld [vmem:[#allocation2 + $0x10] sm:$0xff]  ;;  %vm15291_vm6 = vnez %v15250_v62 }
  0x6f   : > { %1593 = vmatpush1.bf16.msra.mxu0 %v9627_v37  ;;  %v1397_v37 = vrot.slane %v11053_v40, 1  ;;  %v590_v46 = vshll.u32 %v11243_v27, 16  ;;  %1326 = vmatmul.mubr.bf16.gmra.mxu1 %v11180_v31  ;;  %v9655_v35 = vld [vmem:[%s15121_s1 + $0x310] ss:$8 sps:$4 sm:$0xff]   ;;  %v9664_v36 = vld [vmem:[%s15121_s1 + $0x304] ss:$8 sps:$4 sm:$0xff]  }
  0x70   : > { %1594 = vmatprep.subr.bf16.mxu0 %v9635_v19  ;;  %1981 = vmatpush1.bf16.msra.mxu1 %v9642_v44  ;;  %v572_v19 = vsel %vm15289_vm1, %v565_v26, %v571_v13  ;;  %v587_v44 = vshrl.u32 %v11243_v27, 16  ;;  %v9645_v56 = vld [vmem:[%s15121_s1 + $0x220] ss:$8 sps:$4 sm:$0xff]   ;;  %v810_v61 = vshrl.u32 %v11176_v30, 16  ;;  %v802_v63 = vshrl.u32 %v11180_v31, 16 }
  0x71   : > { %1982 = vmatprep.subr.bf16.mxu1 %v9650_v60  ;;  %v549_v43 = vld [vmem:[#allocation2 + $0x28] sm:$0x44]  ;;  %573 = vst [vmem:[#allocation2 + $0x48] sm:$0xff] %v572_v19  ;;  %v11272_v6 = vsel %vm1395_vm8, %v1397_v37, %v15156_v41  ;;  %v9653_v60 = vld [vmem:[%s15121_s1 + $0x214] ss:$8 sps:$4 sm:$0xff]  }
  0x72   : > { %v550_v52 = vsel %vm15290_vm13, %v8245_v12, %v549_v43  ;;  %v11282_v28 = vrot.slane %v587_v44, 7  ;;  %v11296_v58 = vld [vmem:[#allocation2 + $0x8] sm:$0xff]  ;;  %v9651_v13 = vld [vmem:[%s15121_s1 + $0x210] ss:$8 sps:$4 sm:$0xff]   ;;  %v804_v17 = vor.u32 %v802_v63, %v11218_v45 }
  0x73   : > { %1595 = vmatpush1.bf16.msra.mxu0 %v9633_v48  ;;  %551 = vst [vmem:[#allocation2 + $0x28] sm:$0x44] %v550_v52  ;;  %v576_v11 = vld [vmem:[#allocation2 + $0x28] sm:$0x88]  ;;  %v9669_v45 = vld [vmem:[%s15121_s1 + $0x3f0] ss:$8 sps:$4 sm:$0xff]  }
  0x74   : > { %1596 = vmatprep.subr.bf16.mxu0 %v9641_v16  ;;  %1983 = vmatpush1.bf16.msra.mxu1 %v9648_v49  ;;  %v592_v22 = vor.u32 %v590_v46, %v11282_v28  ;;  %v577_v48 = vsel %vm15291_vm6, %v574_v53, %v576_v11  ;;  %v9662_v3 = vld [vmem:[%s15121_s1 + $0x300] ss:$8 sps:$4 sm:$0xff]   ;;  %v812_v16 = vor.u32 %v810_v61, %v11216_v55  ;;  %v9678_v43 = vld [vmem:[%s15121_s1 + $0x3e4] ss:$8 sps:$4 sm:$0xff]   ;;  %v9667_v52 = vld [vmem:[%s15121_s1 + $0x2f4] ss:$8 sps:$4 sm:$0xff]  }
  0x75   : > { %1984 = vmatprep.subr.bf16.mxu1 %v9657_v42  ;;  %578 = vst [vmem:[#allocation2 + $0x28] sm:$0x88] %v577_v48  ;;  %v11313_v5 = vld [vmem:[#allocation2 + $0x38] sm:$0xff]  ;;  %v11345_v55 = vcombine.high %v11041_v32, %v11146_v0  ;;  %v9659_v19 = vld [vmem:[%s15121_s1 + $0x200] ss:$8 sps:$4 sm:$0xff]  }
  0x76   : > { %v597_v2 = vsel %vm459_vm12, %v592_v22, %v596_v54  ;;  %v11317_v7 = vcombine.high %v11296_v58, %v11313_v5  ;;  %v11324_v20 = vcombine.low %v11296_v58, %v11313_v5  ;;  %vm15292_vm12 = vsmask.f32 7424  ;;  %v9676_v22 = vld [vmem:[%s15121_s1 + $0x3e0] ss:$8 sps:$4 sm:$0xff]   ;;  %v9665_v61 = vld [vmem:[%s15121_s1 + $0x2f0] ss:$8 sps:$4 sm:$0xff]  }
  0x77   : > { %1597 = vmatpush1.bf16.msra.mxu0 %v9639_v9  ;;  %598 = vst [vmem:[#allocation2 + $0x10] sm:$0xff] %v597_v2  ;;  %vm15293_vm5 = vmmov %vm15292_vm12  ;;  %v1784_v11 = vrot.slane %v11345_v55, 1  ;;  %v9730_v41 = vld [vmem:[%s15121_s1 + $0x564] ss:$8 sps:$4 sm:$0xff]   ;;  %v9734_v40 = vld [vmem:[%s15121_s1 + $0x550] ss:$8 sps:$4 sm:$0xff]  }
  0x78   : > { %1598 = vmatprep.subr.bf16.mxu0 %v9647_v39  ;;  %1985 = vmatpush1.bf16.msra.mxu1 %v9655_v35  ;;  %v580_v8 = vld [vmem:[#allocation2 + $0x48] sm:$0x88]  ;;  %v814_v21 = vshll.u32 %v11317_v7, 16  ;;  %v806_v26 = vshll.u32 %v11324_v20, 16  ;;  %v818_v48 = vshrl.u32 %v11324_v20, 16  ;;  %vm15294_vm9 = vmmov %vm15293_vm5 }
  0x79   : > { %1986 = vmatprep.subr.bf16.mxu1 %v9664_v36  ;;  %v581_v12 = vsel %vm10960_vm2, %v558_v24, %v580_v8  ;;  %1335 = vmatprep.mubr.bf16.mxu1 %v11317_v7  ;;  %v11341_v24 = vld [vmem:[#allocation2 + $0x60] sm:$0xee]  ;;  %vm15295_vm11 = vmmov %vm15293_vm5 }
  0x7a   : > { %582 = vst [vmem:[#allocation2 + $0x48] sm:$0x88] %v581_v12  ;;  %v816_v49 = vrot.slane %v814_v21, 1  ;;  %v808_v33 = vrot.slane %v806_v26, 1  ;;  %1336 = vmatmul.mubr.bf16.gmra.mxu1 %v11324_v20  ;;  %v11353_v42 = vcombine.high %v11341_v24, %v11033_v29  ;;  %v9673_v8 = vld [vmem:[%s15121_s1 + $0x2e0] ss:$8 sps:$4 sm:$0xff]   ;;  %vm15296_vm1 = vmmov %vm15293_vm5 }
  0x7b   : > { %1599 = vmatpush1.bf16.msra.mxu0 %v9645_v56  ;;  %v826_v56 = vshrl.u32 %v11317_v7, 16  ;;  %v9681_v26 = vld [vmem:[%s15121_s1 + $0x2d4] ss:$8 sps:$4 sm:$0xff]  }
  0x7c   : > { %1600 = vmatprep.subr.bf16.mxu0 %v9653_v60  ;;  %1987 = vmatpush1.bf16.msra.mxu1 %v9662_v3  ;;  %v817_v53 = vsel %vm15292_vm12, %v812_v16, %v816_v49  ;;  %v809_v9 = vsel %vm15293_vm5, %v804_v17, %v808_v33  ;;  %v11366_v35 = vld [vmem:[#allocation2 + $0x28] sm:$0xff]  ;;  %v1783_v36 = vrot.slane %v11353_v42, 1  ;;  %v9682_v16 = vld [vmem:[%s15121_s1 + $0x3d0] ss:$8 sps:$4 sm:$0xff]   ;;  %v820_v21 = vor.u32 %v818_v48, %v808_v33  ;;  %vm15297_vm12 = vmmov %vm15296_vm1 }
  0x7d   : > { %1988 = vmatprep.subr.bf16.mxu1 %v9671_v18  ;;  %1072 = vmatprep.mubr.bf16.mxu0 %v817_v53  ;;  %v9675_v3 = vld [vmem:[%s15121_s1 + $0x2e4] ss:$8 sps:$4 sm:$0xff]   ;;  %v828_v12 = vor.u32 %v826_v56, %v816_v49  ;;  %v9679_v48 = vld [vmem:[%s15121_s1 + $0x2d0] ss:$8 sps:$4 sm:$0xff]   ;;  %vm15298_vm5 = vsmask.f32 6400 }
  0x7e   : > { %v605_v39 = vld [vmem:[#allocation2 + $0x10] sm:$0x11]  ;;  %1073 = vmatmul.mubr.bf16.gmra.mxu0 %v809_v9  ;;  %v1785_v18 = vsel %vm1395_vm8, %v1783_v36, %v1784_v11 }
  0x7f   : > { %1601 = vmatpush1.bf16.msra.mxu0 %v9651_v13  ;;  %v606_v54 = vsel %vm11043_vm4, %v587_v44, %v605_v39  ;;  %v9684_v44 = vld [vmem:[%s15121_s1 + $0x3d4] ss:$8 sps:$4 sm:$0xff]   ;;  %v9688_v39 = vld [vmem:[%s15121_s1 + $0x3c0] ss:$8 sps:$4 sm:$0xff]  }
  0x80   : > { %1602 = vmatprep.subr.bf16.mxu0 %v9661_v15  ;;  %1989 = vmatpush2.bf16.msra.mxu1 %v9669_v45  ;;  %607 = vst [vmem:[#allocation2 + $0x10] sm:$0x11] %v606_v54  ;;  %v9690_v15 = vld [vmem:[%s15121_s1 + $0x3c4] ss:$8 sps:$4 sm:$0xff]  }
  0x81   : > { %1990 = vmatprep.subr.bf16.mxu1 %v9678_v43  ;;  %v11379_v60 = vld [vmem:[#allocation2 + $0x48] sm:$0xff]  ;;  %v11418_v43 = vld [vmem:[#allocation2 + $0x40] sm:$0xee] }
  0x82   : > { %v11389_v63 = vcombine.high %v11366_v35, %v11379_v60  ;;  %v11393_v2 = vcombine.low %v11366_v35, %v11379_v60 }
  0x83   : > { %1603 = vmatpush1.bf16.msra.mxu0 %v9659_v19 }
  0x84   : > { %1604 = vmatprep.subr.bf16.mxu0 %v9667_v52  ;;  %1991 = vmatpush2.bf16.msra.mxu1 %v9676_v22  ;;  %v830_v13 = vshll.u32 %v11389_v63, 16  ;;  %v822_v17 = vshll.u32 %v11393_v2, 16  ;;  %v842_v33 = vshrl.u32 %v11389_v63, 16  ;;  %v11422_v52 = vcombine.low %v11041_v32, %v11146_v0  ;;  %v9697_v32 = vld [vmem:[%s15121_s1 + $0x3b4] ss:$8 sps:$4 sm:$0xff]  }
  0x85   : > { %1345 = vmatprep.mubr.bf16.mxu1 %v11389_v63  ;;  %1992 = vmatprep.subr.bf16.mxu1 %v9684_v44  ;;  %v834_v36 = vshrl.u32 %v11393_v2, 16  ;;  %v8393_v22 = vcombine.high %v11418_v43, %v11066_v50 }
  0x86   : > { %1346 = vmatmul.mubr.bf16.gmra.mxu1 %v11393_v2  ;;  %v832_v49 = vrot.slane %v830_v13, 1  ;;  %v824_v45 = vrot.slane %v822_v17, 1  ;;  %v2123_v56 = vshrl.u32 %v11422_v52, 16  ;;  %v1400_v13 = vrot.slane %v11049_v38, 1 }
  0x87   : > { %1605 = vmatpush2.bf16.msra.mxu0 %v9665_v61  ;;  %2004 = vmatprep.mubr.bf16.mxu1 %v1785_v18  ;;  %v683_v19 = vld [vmem:[#allocation2 + $0x10] sm:$0x11]  ;;  %v9687_v18 = vld [vmem:[%s15121_s1 + $0x2c4] ss:$8 sps:$4 sm:$0xff]   ;;  %v15155_v27 = vrot.slane %v11422_v52, 2 }
  0x88   : > { %1606 = vmatprep.subr.bf16.mxu0 %v9675_v3  ;;  %v833_v53 = vsel %vm15294_vm9, %v828_v12, %v832_v49  ;;  %v825_v9 = vsel %vm15295_vm11, %v820_v21, %v824_v45  ;;  %1993 = vmatpush2.bf16.msra.mxu1 %v9682_v16  ;;  %v11429_v54 = vcombine.high %v683_v19, %v683_v19  ;;  %v2126_v3 = vshll.u32 %v11422_v52, 16  ;;  %v9695_v21 = vld [vmem:[%s15121_s1 + $0x3b0] ss:$8 sps:$4 sm:$0xff]   ;;  %vm15299_vm11 = vmmov %vm15298_vm5 }
  0x89   : > { %1082 = vmatprep.mubr.bf16.mxu0 %v833_v53  ;;  %1994 = vmatprep.subr.bf16.mxu1 %v9690_v15  ;;  %v11435_v0 = vcombine.low %v683_v19, %v683_v19  ;;  %v844_v44 = vor.u32 %v842_v33, %v832_v49  ;;  %v836_v17 = vor.u32 %v834_v36, %v824_v45  ;;  %v9704_v49 = vld [vmem:[%s15121_s1 + $0x3a4] ss:$8 sps:$4 sm:$0xff]   ;;  %v1399_v33 = vrot.slane %v8393_v22, 1  ;;  %v9702_v36 = vld [vmem:[%s15121_s1 + $0x3a0] ss:$8 sps:$4 sm:$0xff]  }
  0x8a   : > { %v846_v61 = vshll.u32 %v11429_v54, 16  ;;  %1083 = vmatmul.mubr.bf16.gmra.mxu0 %v825_v9  ;;  %v2125_v19 = vrot.slane %v2123_v56, 1  ;;  %v2128_v45 = vrot.slane %v2126_v3, 2  ;;  %v9710_v56 = vld [vmem:[%s15121_s1 + $0x394] ss:$8 sps:$4 sm:$0xff]   ;;  %vm2532_vm9 = vcmask 1045504  }
  0x8b   : > { %1607 = vmatpush2.bf16.msra.mxu0 %v9673_v8  ;;  %v838_v12 = vshll.u32 %v11435_v0, 16  ;;  %v9685_v8 = vld [vmem:[%s15121_s1 + $0x2c0] ss:$8 sps:$4 sm:$0xff]  }
  0x8c   : > { %1608 = vmatprep.subr.bf16.mxu0 %v9681_v26  ;;  %1995 = vmatpush2.bf16.msra.mxu1 %v9688_v39  ;;  %v848_v16 = vrot.slane %v846_v61, 1  ;;  %v11458_v26 = vcombine.low %v11341_v24, %v11033_v29  ;;  %v9693_v29 = vld [vmem:[%s15121_s1 + $0x2b4] ss:$8 sps:$4 sm:$0xff]   ;;  %v11485_v61 = vcombine.high %v11163_v25, %v11296_v58 }
  0x8d   : > { %1996 = vmatprep.subr.bf16.mxu1 %v9697_v32  ;;  %v840_v15 = vrot.slane %v838_v12, 1  ;;  %v593_v32 = vrot.slane %v11282_v28, 4  ;;  %v11489_v28 = vcombine.low %v11163_v25, %v11296_v58  ;;  %v9701_v12 = vld [vmem:[%s15121_s1 + $0x2a4] ss:$8 sps:$4 sm:$0xff]   ;;  %v1781_v25 = vrot.slane %v11422_v52, 1 }
  0x8e   : > { %v849_v53 = vsel %vm15296_vm1, %v844_v44, %v848_v16  ;;  %v2115_v9 = vshrl.u32 %v11458_v26, 16  ;;  %v2118_v39 = vshll.u32 %v11458_v26, 16  ;;  %v9691_v44 = vld [vmem:[%s15121_s1 + $0x2b0] ss:$8 sps:$4 sm:$0xff]   ;;  %v9699_v16 = vld [vmem:[%s15121_s1 + $0x2a0] ss:$8 sps:$4 sm:$0xff]   ;;  %vm15300_vm1 = vmmov %vm15298_vm5 }
  0x8f   : > { %1609 = vmatpush2.bf16.msra.mxu0 %v9679_v48  ;;  %1092 = vmatprep.mubr.bf16.mxu0 %v849_v53  ;;  %v841_v24 = vsel %vm15297_vm12, %v836_v17, %v840_v15  ;;  %v1401_v48 = vsel %vm1395_vm8, %v1399_v33, %v1400_v13  ;;  %v2149_v15 = vshrl.u32 %v11489_v28, 16  ;;  %v9716_v33 = vld [vmem:[%s15121_s1 + $0x384] ss:$8 sps:$4 sm:$0xff]   ;;  %v2152_v53 = vshll.u32 %v11489_v28, 16  ;;  %vm15301_vm12 = vmmov %vm15300_vm1 }
  0x90   : > { %1610 = vmatprep.subr.bf16.mxu0 %v9687_v18  ;;  %1997 = vmatpush2.bf16.msra.mxu1 %v9695_v21  ;;  %v2117_v22 = vrot.slane %v2115_v9, 1  ;;  %v2120_v3 = vrot.slane %v2118_v39, 2  ;;  %v2129_v18 = vor.u32 %v2128_v45, %v2125_v19  ;;  %v9708_v21 = vld [vmem:[%s15121_s1 + $0x390] ss:$8 sps:$4 sm:$0xff]   ;;  %v2158_v19 = vshrl.u32 %v11485_v61, 16 }
  0x91   : > { %1998 = vmatprep.subr.bf16.mxu1 %v9704_v49  ;;  %v9707_v49 = vld [vmem:[%s15121_s1 + $0x294] ss:$8 sps:$4 sm:$0xff]   ;;  %v9714_v9 = vld [vmem:[%s15121_s1 + $0x380] ss:$8 sps:$4 sm:$0xff]   ;;  %v15157_v39 = vrot.slane %v11485_v61, 1  ;;  %v8249_v45 = vrot.slane %v590_v46, 11 }
  0x92   : > { %1093 = vmatmul.mubr.bf16.gmra.mxu0 %v841_v24  ;;  %v2121_v17 = vor.u32 %v2120_v3, %v2117_v22  ;;  %v2161_v24 = vshll.u32 %v11485_v61, 16  ;;  %v11529_v22 = vcombine.high %v11313_v5, %v11366_v35  ;;  %v2151_v46 = vrot.slane %v2149_v15, 1  ;;  %v9722_v15 = vld [vmem:[%s15121_s1 + $0x570] ss:$8 sps:$4 sm:$0xff]  }
  0x93   : > { %1611 = vmatpush2.bf16.msra.mxu0 %v9685_v8  ;;  %v599_v8 = vld [vmem:[#allocation2] sm:$0x11]  ;;  %1620 = vmatprep.mubr.bf16.mxu0 %v1401_v48  ;;  %v1780_v48 = vrot.slane %v11458_v26, 1  ;;  %v2160_v3 = vrot.slane %v2158_v19, 1  ;;  %v1700_v26 = vld [vmem:[#allocation2 + $0x10] sm:$0xff]  ;;  %v1786_v19 = vrot.slane %v11489_v28, 1 }
  0x94   : > { %1612 = vmatprep.subr.bf16.mxu0 %v9693_v29  ;;  %1999 = vmatpush2.bf16.msra.mxu1 %v9702_v36  ;;  %v600_v58 = vsel %vm11043_vm4, %v593_v32, %v599_v8  ;;  %v11519_v29 = vsel %vm15298_vm5, %v2121_v17, %v2129_v18  ;;  %v8392_v36 = vcombine.low %v11418_v43, %v11066_v50  ;;  %v9724_v32 = vld [vmem:[%s15121_s1 + $0x574] ss:$8 sps:$4 sm:$0xff]   ;;  %v2154_v43 = vrot.slane %v2152_v53, 2  ;;  %vm15303_vm5 = vmmov %vm15300_vm1 }
  0x95   : > { %2000 = vmatprep.subr.bf16.mxu1 %v9710_v56  ;;  %601 = vst [vmem:[#allocation2] sm:$0x11] %v600_v58  ;;  %v9705_v56 = vld [vmem:[%s15121_s1 + $0x290] ss:$8 sps:$4 sm:$0xff]   ;;  %v11538_v50 = vcombine.low %v11313_v5, %v11366_v35  ;;  %v2179_v8 = vshll.u32 %v11529_v22, 16  ;;  %v2163_v58 = vrot.slane %v2161_v24, 2 }
  0x96   : > { %v2155_v17 = vor.u32 %v2154_v43, %v2151_v46  ;;  %v1396_v24 = vrot.slane %v8392_v36, 1 }
  0x97   : > { %1613 = vmatpush2.bf16.msra.mxu0 %v9691_v44  ;;  %v2539_v44 = vrot.slane %v11489_v28, 2  ;;  %v2167_v35 = vshrl.u32 %v11538_v50, 16  ;;  %v9737_v28 = vld [vmem:[%s15121_s1 + $0x440] ss:$8 sps:$4 sm:$0xff]  }
  0x98   : > { %1614 = vmatprep.subr.bf16.mxu0 %v9701_v12  ;;  %2001 = vmatpush2.bf16.msra.mxu1 %v9708_v21  ;;  %v2176_v12 = vshrl.u32 %v11529_v22, 16  ;;  %v9713_v21 = vld [vmem:[%s15121_s1 + $0x284] ss:$8 sps:$4 sm:$0xff]   ;;  %v11566_v43 = vsel %vm15299_vm11, %v2129_v18, %v2155_v17  ;;  %v9711_v18 = vld [vmem:[%s15121_s1 + $0x280] ss:$8 sps:$4 sm:$0xff]   ;;  %vm15304_vm11 = vmmov %vm15300_vm1 }
  0x99   : > { %2002 = vmatprep.subr.bf16.mxu1 %v9716_v33  ;;  %v11549_v5 = vsel %vm2532_vm9, %v15155_v27, %v2539_v44  ;;  %v1789_v33 = vsel %vm1395_vm8, %v1784_v11, %v15157_v39  ;;  %v2181_v27 = vrot.slane %v2179_v8, 2  ;;  %v11572_v11 = vcombine.high %v11379_v60, %v1700_v26 }
  0x9a   : > { %v2178_v53 = vrot.slane %v2176_v12, 1  ;;  %v2169_v36 = vrot.slane %v2167_v35, 1  ;;  %v2170_v12 = vshll.u32 %v11538_v50, 16  ;;  %v2545_v39 = vrot.slane %v11529_v22, 2 }
  0x9b   : > { %1615 = vmatpush2.bf16.msra.mxu0 %v9699_v16  ;;  %v1404_v16 = vrot.slane %v11176_v30, 1 }
  0x9c   : > { %1616 = vmatprep.subr.bf16.mxu0 %v9707_v49  ;;  %2003 = vmatpush2.bf16.msra.mxu1 %v9714_v9  ;;  %v1782_v49 = vsel %vm1395_vm8, %v1780_v48, %v1781_v25  ;;  %v611_v46 = vld [vmem:[#allocation2] sm:$0x11]  ;;  %v2541_v48 = vrot.slane %v11485_v61, 2  ;;  %v2182_v8 = vor.u32 %v2181_v27, %v2178_v53  ;;  %v2172_v35 = vrot.slane %v2170_v12, 2 }
  0x9d   : > { %2725 = vmatprep.subr.bf16.mxu1 %v9724_v32  ;;  %v612_v9 = vsel %vm11130_vm0, %v8249_v45, %v611_v46  ;;  %v11580_v32 = vor.u32 %v2163_v58, %v2160_v3  ;;  %v9719_v45 = vld [vmem:[%s15121_s1 + $0x474] ss:$8 sps:$4 sm:$0xff]   ;;  %v2543_v46 = vrot.slane %v11538_v50, 2  ;;  %v9728_v3 = vld [vmem:[%s15121_s1 + $0x560] ss:$8 sps:$4 sm:$0xff]  }
  0x9e   : > { %613 = vst [vmem:[#allocation2] sm:$0x11] %v612_v9  ;;  %v9736_v58 = vld [vmem:[%s15121_s1 + $0x554] ss:$8 sps:$4 sm:$0xff]   ;;  %v1398_v9 = vsel %vm1395_vm8, %v1396_v24, %v1397_v37  ;;  %v9727_v12 = vld [vmem:[%s15121_s1 + $0x464] ss:$8 sps:$4 sm:$0xff]  }
  0x9f   : > { %1617 = vmatpush2.bf16.msra.mxu0 %v9705_v56  ;;  %2005 = vmatmul.mubr.bf16.vlgmr.msra.gmra.mxu1 %v1782_v49  ;;  %v11588_v56 = vcombine.low %v11379_v60, %v1700_v26  ;;  %v11596_v27 = vsel %vm15300_vm1, %v11580_v32, %v2182_v8  ;;  %v2194_v60 = vshrl.u32 %v11572_v11, 16  ;;  %v2197_v26 = vshll.u32 %v11572_v11, 16 }
  0xa0   : > { %1618 = vmatprep.subr.bf16.mxu0 %v9713_v21  ;;  %2726 = vmatpush1.bf16.msra.mxu1 %v9722_v15  ;;  %v11601_v21 = vsel %vm2532_vm9, %v2541_v48, %v2545_v39  ;;  %v1792_v15 = vrot.slane %v11529_v22, 1  ;;  %v11610_v53 = vsel %vm2532_vm9, %v2539_v44, %v2543_v46  ;;  %v1405_v44 = vsel %vm1395_vm8, %v1400_v13, %v1404_v16 }
  0xa1   : > { %2014 = vmatprep.mubr.bf16.mxu1 %v1789_v33  ;;  %2727 = vmatprep.subr.bf16.mxu1 %v9730_v41  ;;  %v2173_v33 = vor.u32 %v2172_v35, %v2169_v36  ;;  %v2185_v49 = vshrl.u32 %v11588_v56, 16  ;;  %v9717_v41 = vld [vmem:[%s15121_s1 + $0x470] ss:$8 sps:$4 sm:$0xff]   ;;  %v2196_v22 = vrot.slane %v2194_v60, 1  ;;  %v2199_v24 = vrot.slane %v2197_v26, 2 }
  0xa2   : > { %v1787_v36 = vsel %vm1395_vm8, %v1781_v25, %v1786_v19  ;;  %v2188_v38 = vshll.u32 %v11588_v56, 16  ;;  %v2549_v13 = vrot.slane %v11572_v11, 2  ;;  %v9725_v25 = vld [vmem:[%s15121_s1 + $0x460] ss:$8 sps:$4 sm:$0xff]   ;;  %vm15306_vm1 = vnez %v15255_v1 }
  0xa3   : > { %1619 = vmatpush2.bf16.msra.mxu0 %v9711_v18  ;;  %v11631_v37 = vsel %vm15301_vm12, %v2155_v17, %v2173_v33  ;;  %v2187_v18 = vrot.slane %v2185_v49, 1  ;;  %v9742_v17 = vld [vmem:[%s15121_s1 + $0x544] ss:$8 sps:$4 sm:$0xff]   ;;  %v1408_v49 = vrot.slane %v11317_v7, 1  ;;  %v9748_v7 = vld [vmem:[%s15121_s1 + $0x534] ss:$8 sps:$4 sm:$0xff]   ;;  %vm15307_vm12 = vmmov %vm15303_vm5 }
  0xa4   : > { %2390 = vmatprep.subr.bf16.mxu0 %v9719_v45  ;;  %2728 = vmatpush1.bf16.msra.mxu1 %v9728_v3  ;;  %v15302_v45 = vrot.slane %v11485_v61, 1  ;;  %v11646_v3 = vor.u32 %v2199_v24, %v2196_v22  ;;  %v2190_v60 = vrot.slane %v2188_v38, 2  ;;  %v11654_v26 = vsel %vm2532_vm9, %v2545_v39, %v2549_v13  ;;  %v9740_v39 = vld [vmem:[%s15121_s1 + $0x540] ss:$8 sps:$4 sm:$0xff]   ;;  %v9746_v38 = vld [vmem:[%s15121_s1 + $0x530] ss:$8 sps:$4 sm:$0xff]  }
  0xa5   : > { %2729 = vmatprep.subr.bf16.mxu1 %v9736_v58  ;;  %v9733_v58 = vld [vmem:[%s15121_s1 + $0x454] ss:$8 sps:$4 sm:$0xff]   ;;  %v9828_v61 = vld [vmem:[%s15121_s1 + $0x760] ss:$8 sps:$4 sm:$0xff]  }
  0xa6   : > { %1621 = vmatmul.mubr.bf16.vlgmr.msra.gmra.mxu0 %v1398_v9  ;;  %v1793_v35 = vsel %vm1395_vm8, %v15302_v45, %v1792_v15  ;;  %v11662_v9 = vsel %vm15303_vm5, %v2182_v8, %v11646_v3  ;;  %v11669_v22 = vor.u32 %v2190_v60, %v2187_v18  ;;  %v1796_v8 = vrot.slane %v11572_v11, 1  ;;  %v9864_v11 = vld [vmem:[%s15121_s1 + $0x700] ss:$8 sps:$4 sm:$0xff]  }
  0xa7   : > { %2391 = vmatpush1.bf16.msra.mxu0 %v9717_v41  ;;  %1630 = vmatprep.mubr.bf16.mxu0 %v1405_v44  ;;  %v2547_v41 = vrot.slane %v11588_v56, 2  ;;  %v1794_v45 = vrot.slane %v11588_v56, 1  ;;  %v9878_v56 = vld [vmem:[%s15121_s1 + $0x7e0] ss:$8 sps:$4 sm:$0xff]  }
  0xa8   : > { %2392 = vmatprep.subr.bf16.mxu0 %v9727_v12  ;;  %2015 = vmatmul.mubr.bf16.gmra.mxu1 %v1787_v36  ;;  %v1790_v12 = vrot.slane %v11538_v50, 1  ;;  %v1701_v50 = vld [vmem:[#allocation2] sm:$0x11]  ;;  %v11685_v24 = vsel %vm15304_vm11, %v2173_v33, %v11669_v22  ;;  %v1797_v30 = vsel %vm1395_vm8, %v1792_v15, %v1796_v8  ;;  %vm15178_vm11 = vcmask 1044480  }
  0xa9   : > { %2730 = vmatpush1.bf16.msra.mxu1 %v9734_v40  ;;  %2024 = vmatprep.mubr.bf16.mxu1 %v1793_v35  ;;  %v11678_v44 = vsel %vm2532_vm9, %v2543_v46, %v2547_v41  ;;  %v9731_v40 = vld [vmem:[%s15121_s1 + $0x450] ss:$8 sps:$4 sm:$0xff]   ;;  %v9739_v36 = vld [vmem:[%s15121_s1 + $0x444] ss:$8 sps:$4 sm:$0xff]   ;;  %v1409_v46 = vsel %vm1395_vm8, %v1404_v16, %v1408_v49  ;;  %v1406_v16 = vrot.slane %v11324_v20, 1 }
  0xaa   : > { %2731 = vmatprep.subr.bf16.mxu1 %v9742_v17  ;;  %v1791_v18 = vsel %vm1395_vm8, %v1786_v19, %v1790_v12  ;;  %v9754_v33 = vld [vmem:[%s15121_s1 + $0x524] ss:$8 sps:$4 sm:$0xff]   ;;  %v8469_v17 = vcombine.high %v1701_v50, %v1701_v50  ;;  %v1412_v19 = vrot.slane %v11389_v63, 1  ;;  %v9752_v15 = vld [vmem:[%s15121_s1 + $0x520] ss:$8 sps:$4 sm:$0xff]  }
  0xab   : > { %2393 = vmatpush1.bf16.msra.mxu0 %v9725_v25  ;;  %v9760_v20 = vld [vmem:[%s15121_s1 + $0x514] ss:$8 sps:$4 sm:$0xff]   ;;  %v15305_v25 = vrot.slane %v11180_v31, 1  ;;  %v9743_v63 = vld [vmem:[%s15121_s1 + $0x430] ss:$8 sps:$4 sm:$0xff]  }
  0xac   : > { %2394 = vmatprep.subr.bf16.mxu0 %v9733_v58  ;;  %v1800_v35 = vrot.slane %v8469_v17, 1  ;;  %v11725_v58 = vld [vmem:[#allocation2 + $0x60] sm:$0xcc]  ;;  %v9758_v31 = vld [vmem:[%s15121_s1 + $0x510] ss:$8 sps:$4 sm:$0xff]   ;;  %v2143_v17 = vshll.u32 %v11345_v55, 16 }
  0xad   : > { %2732 = vmatpush1.bf16.msra.mxu1 %v9740_v39  ;;  %v1407_v60 = vsel %vm1395_vm8, %v15305_v25, %v1406_v16  ;;  %v9751_v39 = vld [vmem:[%s15121_s1 + $0x424] ss:$8 sps:$4 sm:$0xff]  }
  0xae   : > { %1631 = vmatmul.mubr.bf16.gmra.mxu0 %v11272_v6  ;;  %2733 = vmatprep.subr.bf16.mxu1 %v9748_v7  ;;  %v9745_v6 = vld [vmem:[%s15121_s1 + $0x434] ss:$8 sps:$4 sm:$0xff]   ;;  %v1413_v7 = vsel %vm1395_vm8, %v1408_v49, %v1412_v19 }
  0xaf   : > { %2395 = vmatpush1.bf16.msra.mxu0 %v9731_v40  ;;  %1640 = vmatprep.mubr.bf16.mxu0 %v1409_v46  ;;  %v1795_v40 = vsel %vm1395_vm8, %v1790_v12, %v1794_v45  ;;  %v9766_v46 = vld [vmem:[%s15121_s1 + $0x504] ss:$8 sps:$4 sm:$0xff]   ;;  %v9749_v12 = vld [vmem:[%s15121_s1 + $0x420] ss:$8 sps:$4 sm:$0xff]  }
  0xb0   : > { %2396 = vmatprep.subr.bf16.mxu0 %v9739_v36  ;;  %2025 = vmatmul.mubr.bf16.gmra.mxu1 %v1791_v18  ;;  %v8468_v36 = vcombine.low %v1701_v50, %v1701_v50  ;;  %v1801_v18 = vsel %vm1395_vm8, %v1796_v8, %v1800_v35  ;;  %v1410_v50 = vrot.slane %v11393_v2, 1  ;;  %v9757_v8 = vld [vmem:[%s15121_s1 + $0x414] ss:$8 sps:$4 sm:$0xff]   ;;  %v9764_v2 = vld [vmem:[%s15121_s1 + $0x500] ss:$8 sps:$4 sm:$0xff]  }
  0xb1   : > { %2734 = vmatpush1.bf16.msra.mxu1 %v9746_v38  ;;  %2034 = vmatprep.mubr.bf16.mxu1 %v1797_v30  ;;  %v11739_v38 = vld [vmem:[#allocation2 + $0x58] sm:$0xff]  ;;  %v2140_v30 = vshrl.u32 %v11345_v55, 16 }
  0xb2   : > { %2735 = vmatprep.subr.bf16.mxu1 %v9754_v33  ;;  %v8601_v49 = vcombine.high %v11725_v58, %v11739_v38  ;;  %v10534_v33 = vmov 0   ;;  %v9774_v35 = vld [vmem:[%s15121_s1 + $0x5f4] ss:$8 sps:$4 sm:$0xff]  }
  0xb3   : > { %2397 = vmatpush1.bf16.msra.mxu0 %v9737_v28  ;;  %261 = vst [vmem:[#allocation2 + $0x30] sm:$0xcc] %v10534_v33  ;;  %v1416_v28 = vrot.slane %v11429_v54, 1  ;;  %9517 = vset.pattern.permute.xlu0 %v10534_v33  ;;  %v1411_v54 = vsel %vm1395_vm8, %v1406_v16, %v1410_v50  ;;  %v9772_v16 = vld [vmem:[%s15121_s1 + $0x5f0] ss:$8 sps:$4 sm:$0xff]  }
  0xb4   : > { %2398 = vmatprep.subr.bf16.mxu0 %v9745_v6  ;;  %v2132_v6 = vshrl.u32 %v11353_v42, 16  ;;  %v2536_v25 = vrot.slane %v8601_v49, 2  ;;  %9518 = vset.pattern.permute.xlu1 %v10534_v33  ;;  %v9780_v49 = vld [vmem:[%s15121_s1 + $0x5e4] ss:$8 sps:$4 sm:$0xff]   ;;  %v9769_v33 = vld [vmem:[%s15121_s1 + $0x4f4] ss:$8 sps:$4 sm:$0xff]  }
  0xb5   : > { %2736 = vmatpush1.bf16.msra.mxu1 %v9752_v15  ;;  %v2135_v15 = vshll.u32 %v11353_v42, 16  ;;  %v9755_v42 = vld [vmem:[%s15121_s1 + $0x410] ss:$8 sps:$4 sm:$0xff]  }
  0xb6   : > { %1641 = vmatmul.mubr.bf16.gmra.mxu0 %v1407_v60  ;;  %2737 = vmatprep.subr.bf16.mxu1 %v9760_v20  ;;  %v1798_v20 = vrot.slane %v8468_v36, 1  ;;  %v2537_v60 = vrot.slane %v11345_v55, 2  ;;  %v2145_v36 = vrot.slane %v2143_v17, 2  ;;  %v11789_v17 = vld [vmem:[#allocation2 + $0x48] sm:$0xff]  ;;  %v9836_v55 = vld [vmem:[%s15121_s1 + $0x754] ss:$8 sps:$4 sm:$0xff]  }
  0xb7   : > { %2399 = vmatpush1.bf16.msra.mxu0 %v9743_v63  ;;  %1650 = vmatprep.mubr.bf16.mxu0 %v1413_v7  ;;  %v2142_v63 = vrot.slane %v2140_v30, 1  ;;  %v1417_v7 = vsel %vm1395_vm8, %v1412_v19, %v1416_v28  ;;  %v9778_v28 = vld [vmem:[%s15121_s1 + $0x5e0] ss:$8 sps:$4 sm:$0xff]  }
  0xb8   : > { %2400 = vmatprep.subr.bf16.mxu0 %v9751_v39  ;;  %2035 = vmatmul.mubr.bf16.gmra.mxu1 %v1795_v40  ;;  %v9763_v39 = vld [vmem:[%s15121_s1 + $0x404] ss:$8 sps:$4 sm:$0xff]   ;;  %v2134_v40 = vrot.slane %v2132_v6, 1  ;;  %v2538_v19 = vsel %vm2532_vm9, %v2536_v25, %v2537_v60  ;;  %v634_v6 = vrot.slane %v11789_v17, 6 }
  0xb9   : > { %2738 = vmatpush1.bf16.msra.mxu1 %v9758_v31  ;;  %2044 = vmatprep.mubr.bf16.mxu1 %v1801_v18  ;;  %v2137_v31 = vrot.slane %v2135_v15, 2  ;;  %v1414_v18 = vrot.slane %v11435_v0, 1  ;;  %v628_v0 = vld [vmem:[#allocation2 + $0x28] sm:$0x88]  ;;  %v11787_v30 = vor.u32 %v2145_v36, %v2142_v63  ;;  %v9786_v15 = vld [vmem:[%s15121_s1 + $0x5d4] ss:$8 sps:$4 sm:$0xff]  }
  0xba   : > { %2739 = vmatprep.subr.bf16.mxu1 %v9766_v46  ;;  %v1799_v46 = vsel %vm1395_vm8, %v1794_v45, %v1798_v20  ;;  %v9761_v45 = vld [vmem:[%s15121_s1 + $0x400] ss:$8 sps:$4 sm:$0xff]   ;;  %v9767_v20 = vld [vmem:[%s15121_s1 + $0x4f0] ss:$8 sps:$4 sm:$0xff]   ;;  %v636_v25 = vrot.slane %v634_v6, 4 }
  0xbb   : > { %2401 = vmatpush1.bf16.msra.mxu0 %v9749_v12  ;;  %v2138_v12 = vor.u32 %v2137_v31, %v2134_v40  ;;  %v9792_v63 = vld [vmem:[%s15121_s1 + $0x5c4] ss:$8 sps:$4 sm:$0xff]   ;;  %v9790_v40 = vld [vmem:[%s15121_s1 + $0x5c0] ss:$8 sps:$4 sm:$0xff]   ;;  %v9798_v31 = vld [vmem:[%s15121_s1 + $0x5b4] ss:$8 sps:$4 sm:$0xff]  }
  0xbc   : > { %2402 = vmatprep.subr.bf16.mxu0 %v9757_v8  ;;  %v8251_v8 = vrot.slane %v628_v0, 10  ;;  %640 = vst [vmem:[#allocation2 + $0x30] sm:$0x33] %v636_v25  ;;  %v9781_v36 = vld [vmem:[%s15121_s1 + $0x4d0] ss:$8 sps:$4 sm:$0xff]  }
  0xbd   : > { %2740 = vmatpush1.bf16.msra.mxu1 %v9764_v2  ;;  %v1415_v2 = vsel %vm1395_vm8, %v1410_v50, %v1414_v18  ;;  %v9784_v50 = vld [vmem:[%s15121_s1 + $0x5d0] ss:$8 sps:$4 sm:$0xff]   ;;  %v9804_v18 = vld [vmem:[%s15121_s1 + $0x5a4] ss:$8 sps:$4 sm:$0xff]  }
  0xbe   : > { %1651 = vmatmul.mubr.bf16.gmra.mxu0 %v1411_v54  ;;  %2741 = vmatprep.subr.bf16.mxu1 %v9774_v35  ;;  %v635_v35 = vsel %vm15306_vm1, %v8251_v8, %v634_v6  ;;  %v9777_v54 = vld [vmem:[%s15121_s1 + $0x4e4] ss:$8 sps:$4 sm:$0xff]   ;;  %v9793_v0 = vld [vmem:[%s15121_s1 + $0x4b0] ss:$8 sps:$4 sm:$0xff]  }
  0xbf   : > { %2403 = vmatpush1.bf16.msra.mxu0 %v9755_v42  ;;  %1660 = vmatprep.mubr.bf16.mxu0 %v1417_v7  ;;  %v2147_v42 = vsel %vm15307_vm12, %v2138_v12, %v11787_v30  ;;  %639 = vst [vmem:[#allocation2] sm:$0xee] %v635_v35  ;;  %v9783_v7 = vld [vmem:[%s15121_s1 + $0x4d4] ss:$8 sps:$4 sm:$0xff]   ;;  %v9801_v12 = vld [vmem:[%s15121_s1 + $0x4a4] ss:$8 sps:$4 sm:$0xff]   ;;  %vm15309_vm12 = vmmov %vm15303_vm5 }
  0xc0   : > { %2404 = vmatprep.subr.bf16.mxu0 %v9763_v39  ;;  %2045 = vmatmul.mubr.bf16.gmra.mxu1 %v1799_v46  ;;  %v9775_v39 = vld [vmem:[%s15121_s1 + $0x4e0] ss:$8 sps:$4 sm:$0xff]   ;;  %v9789_v46 = vld [vmem:[%s15121_s1 + $0x4c4] ss:$8 sps:$4 sm:$0xff]   ;;  %v9808_v8 = vld [vmem:[%s15121_s1 + $0x590] ss:$8 sps:$4 sm:$0xff]  }
  0xc1   : > { %2742 = vmatpush2.bf16.msra.mxu1 %v9772_v16  ;;  %2757 = vmatprep.mubr.bf16.mxu1 %v2538_v19  ;;  %v9796_v16 = vld [vmem:[%s15121_s1 + $0x5b0] ss:$8 sps:$4 sm:$0xff]   ;;  %v9795_v19 = vld [vmem:[%s15121_s1 + $0x4b4] ss:$8 sps:$4 sm:$0xff]   ;;  %v9816_v6 = vld [vmem:[%s15121_s1 + $0x584] ss:$8 sps:$4 sm:$0xff]  }
  0xc2   : > { %2743 = vmatprep.subr.bf16.mxu1 %v9780_v49  ;;  %v9787_v49 = vld [vmem:[%s15121_s1 + $0x4c0] ss:$8 sps:$4 sm:$0xff]   ;;  %v9805_v35 = vld [vmem:[%s15121_s1 + $0x490] ss:$8 sps:$4 sm:$0xff]   ;;  %v9813_v25 = vld [vmem:[%s15121_s1 + $0x484] ss:$8 sps:$4 sm:$0xff]  }
  0xc3   : > { %2405 = vmatpush1.bf16.msra.mxu0 %v9761_v45  ;;  %v9802_v45 = vld [vmem:[%s15121_s1 + $0x5a0] ss:$8 sps:$4 sm:$0xff]  }
  0xc4   : > { %2406 = vmatprep.subr.bf16.mxu0 %v9769_v33  ;;  %v9810_v33 = vld [vmem:[%s15121_s1 + $0x594] ss:$8 sps:$4 sm:$0xff]  }
  0xc5   : > { %2744 = vmatpush2.bf16.msra.mxu1 %v9778_v28  ;;  %v8600_v28 = vcombine.low %v11725_v58, %v11739_v38  ;;  %v9814_v58 = vld [vmem:[%s15121_s1 + $0x580] ss:$8 sps:$4 sm:$0xff]  }
  0xc6   : > { %1661 = vmatmul.mubr.bf16.gmra.mxu0 %v1415_v2  ;;  %2745 = vmatprep.subr.bf16.mxu1 %v9786_v15  ;;  %v9799_v15 = vld [vmem:[%s15121_s1 + $0x4a0] ss:$8 sps:$4 sm:$0xff]   ;;  %v9807_v2 = vld [vmem:[%s15121_s1 + $0x494] ss:$8 sps:$4 sm:$0xff]  }
  0xc7   : > { %2407 = vmatpush2.bf16.msra.mxu0 %v9767_v20  ;;  %2422 = vmatprep.mubr.bf16.mxu0 %v2147_v42  ;;  %v2533_v38 = vrot.slane %v8600_v28, 2  ;;  %v9824_v20 = vld [vmem:[%s15121_s1 + $0x774] ss:$8 sps:$4 sm:$0xff]  }
  0xc8   : > { %2408 = vmatprep.subr.bf16.mxu0 %v9777_v54  ;;  %v15308_v54 = vrot.slane %v11422_v52, 2  ;;  %v9811_v52 = vld [vmem:[%s15121_s1 + $0x480] ss:$8 sps:$4 sm:$0xff]   ;;  %v11964_v28 = vld [vmem:[#allocation2 + $0x54] ss:$-48 sps:$4 sm:$0xff]  }
  0xc9   : > { %2746 = vmatpush2.bf16.msra.mxu1 %v9784_v50  ;;  %v9822_v50 = vld [vmem:[%s15121_s1 + $0x770] ss:$8 sps:$4 sm:$0xff]  }
  0xca   : > { %2747 = vmatprep.subr.bf16.mxu1 %v9792_v63  ;;  %v2535_v42 = vsel %vm2532_vm9, %v2533_v38, %v15308_v54  ;;  %v9830_v63 = vld [vmem:[%s15121_s1 + $0x764] ss:$8 sps:$4 sm:$0xff]  }
  0xcb   : > { %2409 = vmatpush2.bf16.msra.mxu0 %v9775_v39  ;;  %v2542_v39 = vsel %vm2532_vm9, %v2537_v60, %v2541_v48  ;;  %v9817_v48 = vld [vmem:[%s15121_s1 + $0x670] ss:$8 sps:$4 sm:$0xff]   ;;  %v9827_v60 = vld [vmem:[%s15121_s1 + $0x664] ss:$8 sps:$4 sm:$0xff]  }
  0xcc   : > { %2410 = vmatprep.subr.bf16.mxu0 %v9783_v7  ;;  %v9819_v7 = vld [vmem:[%s15121_s1 + $0x674] ss:$8 sps:$4 sm:$0xff]  }
  0xcd   : > { %2748 = vmatpush2.bf16.msra.mxu1 %v9790_v40  ;;  %v2165_v40 = vsel %vm15303_vm5, %v11787_v30, %v11580_v32  ;;  %v9833_v32 = vld [vmem:[%s15121_s1 + $0x654] ss:$8 sps:$4 sm:$0xff]   ;;  %v9840_v30 = vld [vmem:[%s15121_s1 + $0x740] ss:$8 sps:$4 sm:$0xff]   ;;  %vm15310_vm5 = vsmask.f32 5376 }
  0xce   : > { %2749 = vmatprep.subr.bf16.mxu1 %v9798_v31  ;;  %v9834_v31 = vld [vmem:[%s15121_s1 + $0x750] ss:$8 sps:$4 sm:$0xff]  }
  0xcf   : > { %2411 = vmatpush2.bf16.msra.mxu0 %v9781_v36  ;;  %v9842_v36 = vld [vmem:[%s15121_s1 + $0x744] ss:$8 sps:$4 sm:$0xff]  }
  0xd0   : > { %2412 = vmatprep.subr.bf16.mxu0 %v9789_v46  ;;  %v9825_v46 = vld [vmem:[%s15121_s1 + $0x660] ss:$8 sps:$4 sm:$0xff]  }
  0xd1   : > { %2750 = vmatpush2.bf16.msra.mxu1 %v9796_v16  ;;  %v2075_v16 = vld [vmem:[#allocation2] sm:$0x33] }
  0xd2   : > { %2751 = vmatprep.subr.bf16.mxu1 %v9804_v18  ;;  %v9839_v18 = vld [vmem:[%s15121_s1 + $0x644] ss:$8 sps:$4 sm:$0xff]  }
  0xd3   : > { %2413 = vmatpush2.bf16.msra.mxu0 %v9787_v49  ;;  %v11945_v49 = vld [vmem:[#allocation2 + $0x58] sm:$0xcc] }
  0xd4   : > { %2414 = vmatprep.subr.bf16.mxu0 %v9795_v19  ;;  %v11947_v19 = vld [vmem:[#allocation2 + $0x18] sm:$0xff] }
  0xd5   : > { %2752 = vmatpush2.bf16.msra.mxu1 %v9802_v45  ;;  %v11949_v45 = vld [vmem:[#allocation2 + $0x50] ss:$-48 sps:$4 sm:$0xff]  }
  0xd6   : > { %2753 = vmatprep.subr.bf16.mxu1 %v9810_v33  ;;  %v8535_v33 = vcombine.high %v2075_v16, %v2075_v16 }
  0xd7   : > { %2415 = vmatpush2.bf16.msra.mxu0 %v9793_v0  ;;  %v9846_v0 = vld [vmem:[%s15121_s1 + $0x730] ss:$8 sps:$4 sm:$0xff]  }
  0xd8   : > { %2416 = vmatprep.subr.bf16.mxu0 %v9801_v12  ;;  %v9854_v12 = vld [vmem:[%s15121_s1 + $0x724] ss:$8 sps:$4 sm:$0xff]   ;;  %v2212_v38 = vshrl.u32 %v8535_v33, 16 }
  0xd9   : > { %2754 = vmatpush2.bf16.msra.mxu1 %v9808_v8  ;;  %v11962_v8 = vcombine.high %v11945_v49, %v11947_v19 }
  0xda   : > { %2755 = vmatprep.subr.bf16.mxu1 %v9816_v6  ;;  %v3671_v6 = vrot.slane %v11949_v45, 3 }
  0xdb   : > { %2417 = vmatpush2.bf16.msra.mxu0 %v9799_v15  ;;  %v3269_v54 = vshrl.u32 %v11962_v8, 16 }
  0xdc   : > { %2418 = vmatprep.subr.bf16.mxu0 %v9807_v2  ;;  %v9837_v2 = vld [vmem:[%s15121_s1 + $0x640] ss:$8 sps:$4 sm:$0xff]  }
  0xdd   : > { %2756 = vmatpush2.bf16.msra.mxu1 %v9814_v58  ;;  %v9852_v58 = vld [vmem:[%s15121_s1 + $0x720] ss:$8 sps:$4 sm:$0xff]  }
  0xde   : > { %3527 = vmatprep.subr.bf16.mxu1 %v9824_v20  ;;  %v2215_v20 = vshll.u32 %v8535_v33, 16 }
  0xdf   : > { %2419 = vmatpush2.bf16.msra.mxu0 %v9805_v35  ;;  %v11979_v35 = vld [vmem:[#allocation2 + $0x28] sm:$0xff] }
  0xe0   : > { %2420 = vmatprep.subr.bf16.mxu0 %v9813_v25  ;;  %2758 = vmatmul.mubr.bf16.vlgmr.msra.gmra.mxu1 %v2535_v42  ;;  %v2553_v25 = vrot.slane %v8535_v33, 2  ;;  %v3272_v42 = vshll.u32 %v11962_v8, 16  ;;  %v9874_v33 = vld [vmem:[%s15121_s1 + $0x7f4] ss:$8 sps:$4 sm:$0xff]  }
  0xe1   : > { %3528 = vmatpush1.bf16.msra.mxu1 %v9822_v50  ;;  %2767 = vmatprep.mubr.bf16.mxu1 %v2542_v39  ;;  %v3277_v50 = vshrl.u32 %v11964_v28, 16  ;;  %v9843_v39 = vld [vmem:[%s15121_s1 + $0x630] ss:$8 sps:$4 sm:$0xff]  }
  0xe2   : > { %3529 = vmatprep.subr.bf16.mxu1 %v9830_v63  ;;  %v3280_v63 = vshll.u32 %v11964_v28, 16 }
  0xe3   : > { %2421 = vmatpush2.bf16.msra.mxu0 %v9811_v52  ;;  %v8534_v52 = vcombine.low %v2075_v16, %v2075_v16 }
  0xe4   : > { %3109 = vmatprep.subr.bf16.mxu0 %v9819_v7  ;;  %v12002_v7 = vcombine.low %v11979_v35, %v11789_v17  ;;  %v3282_v16 = vrot.slane %v3280_v63, 3 }
  0xe5   : > { %3530 = vmatpush1.bf16.msra.mxu1 %v9828_v61  ;;  %v9858_v61 = vld [vmem:[%s15121_s1 + $0x710] ss:$8 sps:$4 sm:$0xff]  }
  0xe6   : > { %2423 = vmatmul.mubr.bf16.vlgmr.msra.gmra.mxu0 %v11519_v29  ;;  %3531 = vmatprep.subr.bf16.mxu1 %v9836_v55  ;;  %v9831_v29 = vld [vmem:[%s15121_s1 + $0x650] ss:$8 sps:$4 sm:$0xff]   ;;  %v2214_v55 = vrot.slane %v2212_v38, 1 }
  0xe7   : > { %3110 = vmatpush1.bf16.msra.mxu0 %v9817_v48  ;;  %2432 = vmatprep.mubr.bf16.mxu0 %v2165_v40  ;;  %v2217_v48 = vrot.slane %v2215_v20, 2  ;;  %v9866_v40 = vld [vmem:[%s15121_s1 + $0x704] ss:$8 sps:$4 sm:$0xff]   ;;  %v9872_v38 = vld [vmem:[%s15121_s1 + $0x7f0] ss:$8 sps:$4 sm:$0xff]  }
  0xe8   : > { %3111 = vmatprep.subr.bf16.mxu0 %v9827_v60  ;;  %2768 = vmatmul.mubr.bf16.gmra.mxu1 %v11549_v5  ;;  %v9848_v5 = vld [vmem:[%s15121_s1 + $0x734] ss:$8 sps:$4 sm:$0xff]   ;;  %v9849_v60 = vld [vmem:[%s15121_s1 + $0x620] ss:$8 sps:$4 sm:$0xff]  }
  0xe9   : > { %3532 = vmatpush1.bf16.msra.mxu1 %v9834_v31  ;;  %2777 = vmatprep.mubr.bf16.mxu1 %v11601_v21  ;;  %v11951_v21 = vld [vmem:[#allocation2 + $0x8] ss:$48 sps:$4 sm:$0xff]   ;;  %v2554_v31 = vsel %vm2532_vm9, %v2549_v13, %v2553_v25  ;;  %v2203_v13 = vshrl.u32 %v8534_v52, 16  ;;  %v9880_v25 = vld [vmem:[%s15121_s1 + $0x7e4] ss:$8 sps:$4 sm:$0xff]  }
  0xea   : > { %3533 = vmatprep.subr.bf16.mxu1 %v9842_v36  ;;  %v3676_v15 = vrot.slane %v11951_v21, 3  ;;  %v3680_v36 = vrot.slane %v12002_v7, 3 }
  0xeb   : > { %3112 = vmatpush1.bf16.msra.mxu0 %v9825_v46  ;;  %v9857_v46 = vld [vmem:[%s15121_s1 + $0x614] ss:$8 sps:$4 sm:$0xff]  }
  0xec   : > { %3113 = vmatprep.subr.bf16.mxu0 %v9833_v32  ;;  %v3271_v32 = vrot.slane %v3269_v54, 2  ;;  %v12051_v54 = vld [vmem:[#allocation2 + $0x30] sm:$0x77] }
  0xed   : > { %3534 = vmatpush1.bf16.msra.mxu1 %v9840_v30  ;;  %v3279_v30 = vrot.slane %v3277_v50, 2 }
  0xee   : > { %2433 = vmatmul.mubr.bf16.gmra.mxu0 %v11566_v43  ;;  %3535 = vmatprep.subr.bf16.mxu1 %v9848_v5  ;;  %v9845_v43 = vld [vmem:[%s15121_s1 + $0x634] ss:$8 sps:$4 sm:$0xff]   ;;  %v2218_v5 = vor.u32 %v2217_v48, %v2214_v55  ;;  %v12081_v55 = vcombine.low %v12051_v54, %v12051_v54  ;;  %v9877_v48 = vld [vmem:[%s15121_s1 + $0x6e4] ss:$8 sps:$4 sm:$0xff]  }
  0xef   : > { %3114 = vmatpush1.bf16.msra.mxu0 %v9831_v29  ;;  %2442 = vmatprep.mubr.bf16.mxu0 %v11596_v27  ;;  %v11984_v27 = vsel %vm15178_vm11, %v3671_v6, %v3676_v15  ;;  %v3274_v29 = vrot.slane %v3272_v42, 3  ;;  %v9861_v42 = vld [vmem:[%s15121_s1 + $0x600] ss:$8 sps:$4 sm:$0xff]  }
  0xf0   : > { %3115 = vmatprep.subr.bf16.mxu0 %v9839_v18  ;;  %2778 = vmatmul.mubr.bf16.gmra.mxu1 %v11610_v53  ;;  %v9860_v53 = vld [vmem:[%s15121_s1 + $0x714] ss:$8 sps:$4 sm:$0xff]   ;;  %v2206_v18 = vshll.u32 %v8534_v52, 16 }
  0xf1   : > { %3536 = vmatpush1.bf16.msra.mxu1 %v9846_v0  ;;  %2787 = vmatprep.mubr.bf16.mxu1 %v11654_v26  ;;  %v9851_v26 = vld [vmem:[%s15121_s1 + $0x624] ss:$8 sps:$4 sm:$0xff]   ;;  %v12032_v0 = vld [vmem:[#allocation2 + $0x10] ss:$-16 sps:$4 sm:$0xff]  }
  0xf2   : > { %3537 = vmatprep.subr.bf16.mxu1 %v9854_v12  ;;  %v2551_v12 = vrot.slane %v8534_v52, 2  ;;  %v3684_v20 = vrot.slane %v12032_v0, 3  ;;  %v2921_v52 = vrot.slane %v11964_v28, 2 }
  0xf3   : > { %3116 = vmatpush1.bf16.msra.mxu0 %v9837_v2  ;;  %v12040_v2 = vor.u32 %v3282_v16, %v3279_v30  ;;  %v9898_v30 = vld [vmem:[%s15121_s1 + $0x7b4] ss:$8 sps:$4 sm:$0xff]   ;;  %v9881_v16 = vld [vmem:[%s15121_s1 + $0x6d0] ss:$8 sps:$4 sm:$0xff]  }
  0xf4   : > { %3117 = vmatprep.subr.bf16.mxu0 %v9845_v43  ;;  %v2205_v43 = vrot.slane %v2203_v13, 1  ;;  %v2552_v50 = vsel %vm2532_vm9, %v2547_v41, %v2551_v12  ;;  %v12060_v63 = vsel %vm15178_vm11, %v3680_v36, %v3684_v20  ;;  %v9886_v41 = vld [vmem:[%s15121_s1 + $0x7d4] ss:$8 sps:$4 sm:$0xff]   ;;  %v9896_v13 = vld [vmem:[%s15121_s1 + $0x7b0] ss:$8 sps:$4 sm:$0xff]  }
  0xf5   : > { %3538 = vmatpush1.bf16.msra.mxu1 %v9852_v58  ;;  %v2208_v58 = vrot.slane %v2206_v18, 2  ;;  %v9904_v18 = vld [vmem:[%s15121_s1 + $0x7a4] ss:$8 sps:$4 sm:$0xff]   ;;  %v9895_v12 = vld [vmem:[%s15121_s1 + $0x6b4] ss:$8 sps:$4 sm:$0xff]  }
  0xf6   : > { %2443 = vmatmul.mubr.bf16.gmra.mxu0 %v11631_v37  ;;  %3539 = vmatprep.subr.bf16.mxu1 %v9860_v53  ;;  %v12026_v37 = vsel %vm15178_vm11, %v3676_v15, %v3680_v36  ;;  %v9863_v15 = vld [vmem:[%s15121_s1 + $0x604] ss:$8 sps:$4 sm:$0xff]   ;;  %v2219_v53 = vsel %vm15309_vm12, %v11646_v3, %v2218_v5  ;;  %v9871_v3 = vld [vmem:[%s15121_s1 + $0x6f4] ss:$8 sps:$4 sm:$0xff]   ;;  %v12127_v5 = vcombine.low %v11945_v49, %v11947_v19 }
  0xf7   : > { %3118 = vmatpush1.bf16.msra.mxu0 %v9843_v39  ;;  %2452 = vmatprep.mubr.bf16.mxu0 %v11662_v9  ;;  %v9855_v9 = vld [vmem:[%s15121_s1 + $0x610] ss:$8 sps:$4 sm:$0xff]   ;;  %v9910_v49 = vld [vmem:[%s15121_s1 + $0x794] ss:$8 sps:$4 sm:$0xff]  }
  0xf8   : > { %3119 = vmatprep.subr.bf16.mxu0 %v9851_v26  ;;  %2788 = vmatmul.mubr.bf16.gmra.mxu1 %v11678_v44  ;;  %v3275_v44 = vor.u32 %v3274_v29, %v3271_v32  ;;  %v2209_v26 = vor.u32 %v2208_v58, %v2205_v43  ;;  %v9883_v32 = vld [vmem:[%s15121_s1 + $0x6d4] ss:$8 sps:$4 sm:$0xff]   ;;  %v9890_v29 = vld [vmem:[%s15121_s1 + $0x7c0] ss:$8 sps:$4 sm:$0xff]   ;;  %v3252_v19 = vshrl.u32 %v12127_v5, 16  ;;  %v3255_v43 = vshll.u32 %v12127_v5, 16 }
  0xf9   : > { %3540 = vmatpush1.bf16.msra.mxu1 %v9858_v61  ;;  %2797 = vmatprep.mubr.bf16.mxu1 %v2554_v31  ;;  %v9869_v61 = vld [vmem:[%s15121_s1 + $0x6f0] ss:$8 sps:$4 sm:$0xff]   ;;  %v9892_v31 = vld [vmem:[%s15121_s1 + $0x7c4] ss:$8 sps:$4 sm:$0xff]   ;;  %v3260_v58 = vshrl.u32 %v11949_v45, 16 }
  0xfa   : > { %3541 = vmatprep.subr.bf16.mxu1 %v9866_v40  ;;  %v3284_v39 = vsel %vm15310_vm5, %v3275_v44, %v12040_v2  ;;  %v3688_v40 = vrot.slane %v12081_v55, 3  ;;  %v9893_v44 = vld [vmem:[%s15121_s1 + $0x6b0] ss:$8 sps:$4 sm:$0xff]  }
  0xfb   : > { %3120 = vmatpush1.bf16.msra.mxu0 %v9849_v60  ;;  %v9884_v60 = vld [vmem:[%s15121_s1 + $0x7d0] ss:$8 sps:$4 sm:$0xff]  }
  0xfc   : > { %3121 = vmatprep.subr.bf16.mxu0 %v9857_v46  ;;  %v9875_v46 = vld [vmem:[%s15121_s1 + $0x6e0] ss:$8 sps:$4 sm:$0xff]  }
  0xfd   : > { %3542 = vmatpush1.bf16.msra.mxu1 %v9864_v11  ;;  %v9889_v11 = vld [vmem:[%s15121_s1 + $0x6c4] ss:$8 sps:$4 sm:$0xff]  }
  0xfe   : > { %2453 = vmatmul.mubr.bf16.gmra.mxu0 %v11685_v24  ;;  %3543 = vmatprep.subr.bf16.mxu1 %v9874_v33  ;;  %v2920_v24 = vrot.slane %v11962_v8, 2  ;;  %v2210_v8 = vsel %vm15309_vm12, %v11669_v22, %v2209_v26  ;;  %v12102_v22 = vsel %vm15178_vm11, %v3684_v20, %v3688_v40  ;;  %v12129_v33 = vld [vmem:[#allocation2 + $0xc] ss:$48 sps:$4 sm:$0xff]   ;;  %v3257_v26 = vrot.slane %v3255_v43, 3  ;;  %v9905_v40 = vld [vmem:[%s15121_s1 + $0x690] ss:$8 sps:$4 sm:$0xff]   ;;  %vm15311_vm12 = vmmov %vm15310_vm5 }
  0xff   : > { %3122 = vmatpush1.bf16.msra.mxu0 %v9855_v9  ;;  %2462 = vmatprep.mubr.bf16.mxu0 %v2219_v53  ;;  %v9887_v9 = vld [vmem:[%s15121_s1 + $0x6c0] ss:$8 sps:$4 sm:$0xff]   ;;  %v9901_v20 = vld [vmem:[%s15121_s1 + $0x6a4] ss:$8 sps:$4 sm:$0xff]   ;;  %v3295_v53 = vshrl.u32 %v12129_v33, 16  ;;  %v2917_v43 = vrot.slane %v12127_v5, 2 }
 0x100   : > { %3123 = vmatprep.subr.bf16.mxu0 %v9863_v15  ;;  %2798 = vmatmul.mubr.bf16.gmra.mxu1 %v2552_v50  ;;  %v2922_v36 = vsel %vm2532_vm9, %v2920_v24, %v2921_v52  ;;  %v9902_v15 = vld [vmem:[%s15121_s1 + $0x7a0] ss:$8 sps:$4 sm:$0xff]   ;;  %v9916_v50 = vld [vmem:[%s15121_s1 + $0x784] ss:$8 sps:$4 sm:$0xff]   ;;  %v9907_v24 = vld [vmem:[%s15121_s1 + $0x694] ss:$8 sps:$4 sm:$0xff]  }
 0x101   : > { %3544 = vmatpush2.bf16.msra.mxu1 %v9872_v38  ;;  %3559 = vmatprep.mubr.bf16.mxu1 %v3284_v39  ;;  %v3263_v38 = vshll.u32 %v11949_v45, 16  ;;  %v9899_v39 = vld [vmem:[%s15121_s1 + $0x6a0] ss:$8 sps:$4 sm:$0xff]   ;;  %v9925_v5 = vld [vmem:[%s15121_s1 + $0x864] ss:$8 sps:$4 sm:$0xff]  }
 0x102   : > { %3545 = vmatprep.subr.bf16.mxu1 %v9880_v25  ;;  %v3298_v25 = vshll.u32 %v12129_v33, 16 }
 0x103   : > { %3124 = vmatpush1.bf16.msra.mxu0 %v9861_v42  ;;  %v9908_v42 = vld [vmem:[%s15121_s1 + $0x790] ss:$8 sps:$4 sm:$0xff]  }
 0x104   : > { %3125 = vmatprep.subr.bf16.mxu0 %v9871_v3  ;;  %v3254_v3 = vrot.slane %v3252_v19, 2 }
 0x105   : > { %3546 = vmatpush2.bf16.msra.mxu1 %v9878_v56  ;;  %v3262_v56 = vrot.slane %v3260_v58, 2  ;;  %v2918_v58 = vrot.slane %v11949_v45, 2 }
 0x106   : > { %2463 = vmatmul.mubr.bf16.gmra.mxu0 %v2210_v8  ;;  %3547 = vmatprep.subr.bf16.mxu1 %v9886_v41  ;;  %v3265_v41 = vrot.slane %v3263_v38, 3  ;;  %v12169_v8 = vcombine.high %v11979_v35, %v11789_v17  ;;  %v9913_v17 = vld [vmem:[%s15121_s1 + $0x684] ss:$8 sps:$4 sm:$0xff]   ;;  %v2925_v38 = vrot.slane %v12129_v33, 2 }
 0x107   : > { %3126 = vmatpush2.bf16.msra.mxu0 %v9869_v61  ;;  %3141 = vmatprep.mubr.bf16.mxu0 %v2922_v36  ;;  %v3297_v61 = vrot.slane %v3295_v53, 2 }
 0x108   : > { %3127 = vmatprep.subr.bf16.mxu0 %v9877_v48  ;;  %v3300_v48 = vrot.slane %v3298_v25, 3  ;;  %v3266_v36 = vor.u32 %v3265_v41, %v3262_v56  ;;  %v2926_v56 = vsel %vm2532_vm9, %v2921_v52, %v2925_v38  ;;  %v9923_v41 = vld [vmem:[%s15121_s1 + $0x860] ss:$8 sps:$4 sm:$0xff]   ;;  %v3682_v45 = vrot.slane %v12169_v8, 3 }
 0x109   : > { %3548 = vmatpush2.bf16.msra.mxu1 %v9884_v60  ;;  %v9914_v60 = vld [vmem:[%s15121_s1 + $0x780] ss:$8 sps:$4 sm:$0xff]  }
 0x10a   : > { %3549 = vmatprep.subr.bf16.mxu1 %v9892_v31  ;;  %v3258_v31 = vor.u32 %v3257_v26, %v3254_v3  ;;  %v3301_v35 = vor.u32 %v3300_v48, %v3297_v61 }
 0x10b   : > { %3128 = vmatpush2.bf16.msra.mxu0 %v9875_v46  ;;  %v3286_v46 = vshrl.u32 %v11951_v21, 16 }
 0x10c   : > { %3129 = vmatprep.subr.bf16.mxu0 %v9883_v32  ;;  %v3289_v32 = vshll.u32 %v11951_v21, 16 }
 0x10d   : > { %3550 = vmatpush2.bf16.msra.mxu1 %v9890_v29  ;;  %v3313_v29 = vshrl.u32 %v12169_v8, 16 }
 0x10e   : > { %3551 = vmatprep.subr.bf16.mxu1 %v9898_v30  ;;  %v3316_v30 = vshll.u32 %v12169_v8, 16 }
 0x10f   : > { %3130 = vmatpush2.bf16.msra.mxu0 %v9881_v16  ;;  %v12184_v16 = vld [vmem:[#allocation2 + $0x14] ss:$-16 sps:$4 sm:$0xff]  }
 0x110   : > { %3131 = vmatprep.subr.bf16.mxu0 %v9889_v11  ;;  %v9911_v11 = vld [vmem:[%s15121_s1 + $0x680] ss:$8 sps:$4 sm:$0xff]   ;;  %v3318_v19 = vrot.slane %v3316_v30, 3  ;;  %v3331_v3 = vshrl.u32 %v12184_v16, 16  ;;  %v3334_v33 = vshll.u32 %v12184_v16, 16 }
 0x111   : > { %3552 = vmatpush2.bf16.msra.mxu1 %v9896_v13  ;;  %v3267_v13 = vsel %vm15310_vm5, %v3258_v31, %v3266_v36  ;;  %v9931_v31 = vld [vmem:[%s15121_s1 + $0x854] ss:$8 sps:$4 sm:$0xff]  }
 0x112   : > { %3553 = vmatprep.subr.bf16.mxu1 %v9904_v18  ;;  %v3288_v18 = vrot.slane %v3286_v46, 2  ;;  %v3333_v46 = vrot.slane %v3331_v3, 2  ;;  %v3336_v52 = vrot.slane %v3334_v33, 3 }
 0x113   : > { %3132 = vmatpush2.bf16.msra.mxu0 %v9887_v9  ;;  %v3291_v9 = vrot.slane %v3289_v32, 3  ;;  %v12224_v32 = vcombine.high %v12051_v54, %v12051_v54 }
 0x114   : > { %3133 = vmatprep.subr.bf16.mxu0 %v9895_v12  ;;  %v9922_v12 = vld [vmem:[%s15121_s1 + $0x874] ss:$8 sps:$4 sm:$0xff]  }
 0x115   : > { %3554 = vmatpush2.bf16.msra.mxu1 %v9902_v15  ;;  %v3302_v15 = vsel %vm15311_vm12, %v12040_v2, %v3301_v35  ;;  %v3292_v25 = vor.u32 %v3291_v9, %v3288_v18  ;;  %v3304_v2 = vshrl.u32 %v12002_v7, 16  ;;  %vm15312_vm12 = vmmov %vm15310_vm5  ;;  %v3322_v18 = vshrl.u32 %v12032_v0, 16 }
 0x116   : > { %3555 = vmatprep.subr.bf16.mxu1 %v9910_v49  ;;  %v3315_v49 = vrot.slane %v3313_v29, 2  ;;  %v3325_v9 = vshll.u32 %v12032_v0, 16 }
 0x117   : > { %3134 = vmatpush2.bf16.msra.mxu0 %v9893_v44  ;;  %v3293_v61 = vsel %vm15310_vm5, %v3266_v36, %v3292_v25  ;;  %v3306_v48 = vrot.slane %v3304_v2, 2  ;;  %v2923_v36 = vrot.slane %v11951_v21, 2  ;;  %v3324_v3 = vrot.slane %v3322_v18, 2  ;;  %v252_v18 = vld [vmem:[%s15125_s5 + $0x8] sm:$0xff] }
 0x118   : > { %3135 = vmatprep.subr.bf16.mxu0 %v9901_v20  ;;  %v9920_v20 = vld [vmem:[%s15121_s1 + $0x870] ss:$8 sps:$4 sm:$0xff]   ;;  %v3327_v33 = vrot.slane %v3325_v9, 3 }
 0x119   : > { %3556 = vmatpush2.bf16.msra.mxu1 %v9908_v42  ;;  %v3307_v42 = vshll.u32 %v12002_v7, 16 }
 0x11a   : > { %3557 = vmatprep.subr.bf16.mxu1 %v9916_v50  ;;  %v3319_v50 = vor.u32 %v3318_v19, %v3315_v49  ;;  %v3337_v49 = vor.u32 %v3336_v52, %v3333_v46  ;;  %v3349_v19 = vshrl.u32 %v12224_v32, 16  ;;  %v3343_v46 = vshll.u32 %v12081_v55, 16 }
 0x11b   : > { %3136 = vmatpush2.bf16.msra.mxu0 %v9899_v39  ;;  %v2919_v39 = vsel %vm2532_vm9, %v2917_v43, %v2918_v58 }
 0x11c   : > { %3137 = vmatprep.subr.bf16.mxu0 %v9907_v24  ;;  %v3320_v28 = vsel %vm15312_vm12, %v3301_v35, %v3319_v50  ;;  %v9929_v35 = vld [vmem:[%s15121_s1 + $0x850] ss:$8 sps:$4 sm:$0xff]   ;;  %vm15313_vm12 = vmmov %vm15310_vm5 }
 0x11d   : > { %3558 = vmatpush2.bf16.msra.mxu1 %v9914_v60  ;;  %v3309_v60 = vrot.slane %v3307_v42, 3  ;;  %v9932_v42 = vld [vmem:[%s15121_s1 + $0x840] ss:$8 sps:$4 sm:$0xff]  }
 0x11f   : > { %3138 = vmatpush2.bf16.msra.mxu0 %v9905_v40  ;;  %v1307_v44 = vpop.f32.mrf.mxu1  ;;  %v3310_v54 = vor.u32 %v3309_v60, %v3306_v48  ;;  %v12262_v48 = vld [vmem:[#allocation2 + $0x30] sm:$0x33] }
 0x120   : > { %3139 = vmatprep.subr.bf16.mxu0 %v9913_v17  ;;  %3560 = vmatmul.mubr.bf16.vlgmr.msra.gmra.mxu1 %v3267_v13  ;;  %v9935_v60 = vld [vmem:[%s15121_s1 + $0x830] ss:$8 sps:$4 sm:$0xff]  }
 0x121   : > { %v1309_v53 = vpop.f32.mrf.mxu1  ;;  %3569 = vmatprep.mubr.bf16.mxu1 %v3302_v15  ;;  %v9934_v15 = vld [vmem:[%s15121_s1 + $0x844] ss:$8 sps:$4 sm:$0xff]  }
 0x123   : > { %3140 = vmatpush2.bf16.msra.mxu0 %v9911_v11  ;;  %v1311_v26 = vpop.f32.mrf.mxu1  ;;  %v2929_v11 = vrot.slane %v12169_v8, 2 }
 0x124   : > { %3862 = vmatprep.subr.bf16.mxu0 %v9922_v12 }
 0x125   : > { %v12215_v24 = vpop.f32.mrf.mxu1  ;;  %v2930_v2 = vsel %vm2532_vm9, %v2925_v38, %v2929_v11  ;;  %v251_v38 = vld [vmem:[%s15125_s5] sm:$0xff] }
 0x126   : > { %v1054_v40 = vpop.f32.mrf.mxu0  ;;  %3142 = vmatmul.mubr.bf16.vlgmr.msra.gmra.mxu0 %v2919_v39  ;;  %v9937_v39 = vld [vmem:[%s15121_s1 + $0x834] ss:$8 sps:$4 sm:$0xff]   ;;  %3999 = vperm.xlu0 %9517, %v251_v38  }
 0x127   : > { %v12226_v17 = vadd.f32 %v1307_v44, %v1054_v40  ;;  %3863 = vmatpush1.bf16.msra.mxu0 %v9920_v20  ;;  %3151 = vmatprep.mubr.bf16.mxu0 %v2926_v56  ;;  %v1317_v29 = vpop.f32.mrf.mxu1  ;;  %v3352_v44 = vshll.u32 %v12224_v32, 16  ;;  %v2924_v20 = vsel %vm2532_vm9, %v2918_v58, %v2923_v36  ;;  %v3351_v56 = vrot.slane %v3349_v19, 2 }
 0x128   : > { %v1056_v30 = vpop.f32.mrf.mxu0  ;;  %3864 = vmatprep.subr.bf16.mxu0 %v9925_v5  ;;  %3570 = vmatmul.mubr.bf16.gmra.mxu1 %v3293_v61  ;;  %v3311_v5 = vsel %vm15310_vm5, %v3292_v25, %v3310_v54  ;;  %v2927_v25 = vrot.slane %v12002_v7, 2  ;;  %v3328_v40 = vor.u32 %v3327_v33, %v3324_v3  ;;  %v9940_v7 = vld [vmem:[%s15121_s1 + $0x824] ss:$8 sps:$4 sm:$0xff]   ;;  %v2931_v33 = vrot.slane %v12032_v0, 2 }
 0x129   : > { %v12230_v13 = vadd.f32 %v1309_v53, %v1056_v30  ;;  %3579 = vmatprep.mubr.bf16.mxu1 %v3320_v28  ;;  %v1319_v12 = vpop.f32.mrf.mxu1  ;;  %v3340_v28 = vshrl.u32 %v12081_v55, 16 }
 0x12a   : > { %v1058_v21 = vpop.f32.mrf.mxu0  ;;  %v2928_v9 = vsel %vm2532_vm9, %v2923_v36, %v2927_v25  ;;  %v3329_v36 = vsel %vm15310_vm5, %v3310_v54, %v3328_v40  ;;  %4004 = vperm.xlu0 %9517, %v252_v18   ;;  %v2932_v38 = vsel %vm2532_vm9, %v2927_v25, %v2931_v33  ;;  %v257_v25 = vld [vmem:[%s15125_s5 + $0x30] sm:$0xff] }
 0x12b   : > { %v12242_v43 = vadd.f32 %v1311_v26, %v1058_v21  ;;  %3865 = vmatpush1.bf16.msra.mxu0 %v9923_v41  ;;  %v1321_v53 = vpop.f32.mrf.mxu1  ;;  %v3338_v26 = vsel %vm15313_vm12, %v3319_v50, %v3337_v49  ;;  %v3354_v41 = vrot.slane %v3352_v44, 3  ;;  %v2933_v50 = vrot.slane %v12184_v16, 2  ;;  %v253_v44 = vld [vmem:[%s15125_s5 + $0x10] sm:$0xff]  ;;  %vm15314_vm12 = vmmov %vm15310_vm5 }
 0x12c   : > { %3866 = vmatprep.subr.bf16.mxu0 %v9931_v31  ;;  %v12259_v61 = vpop.f32.mrf.mxu0  ;;  %4009 = vperm.xlu1 %9518, %v253_v44   ;;  %v12341_v44 = vld [vmem:[#allocation2 + $0x54] ss:$-48 sps:$4 sm:$0xff]  }
 0x12d   : > { %v12254_v58 = vpop.f32.mrf.mxu1  ;;  %v3355_v30 = vor.u32 %v3354_v41, %v3351_v56  ;;  %v2934_v55 = vsel %vm2532_vm9, %v2929_v11, %v2933_v50  ;;  %v3345_v11 = vrot.slane %v3343_v46, 3  ;;  %v254_v56 = vld [vmem:[%s15125_s5 + $0x18] sm:$0xff]  ;;  %v9949_v41 = vld [vmem:[%s15121_s1 + $0x804] ss:$8 sps:$4 sm:$0xff]  }
 0x12e   : > { %3152 = vmatmul.mubr.bf16.gmra.mxu0 %v2924_v20  ;;  %v1064_v31 = vpop.f32.mrf.mxu0  ;;  %v9938_v20 = vld [vmem:[%s15121_s1 + $0x820] ss:$8 sps:$4 sm:$0xff]   ;;  %v12322_v46 = vld [vmem:[#allocation2 + $0x18] sm:$0xff] }
 0x12f   : > { %3867 = vmatpush1.bf16.msra.mxu0 %v9929_v35  ;;  %3161 = vmatprep.mubr.bf16.mxu0 %v2930_v2  ;;  %v12273_v52 = vadd.f32 %v1317_v29, %v1064_v31  ;;  %v12275_v35 = vpop.f32.mrf.mxu1  ;;  %v8677_v29 = vcombine.high %v12262_v48, %v12262_v48  ;;  %v3356_v3 = vsel %vm15314_vm12, %v3337_v49, %v3355_v30  ;;  %v9944_v49 = vld [vmem:[%s15121_s1 + $0x810] ss:$8 sps:$4 sm:$0xff]   ;;  %v256_v30 = vld [vmem:[%s15125_s5 + $0x28] sm:$0xff]  ;;  %vm4289_vm12 = vsmask.f32 5392 }
 0x130   : > { %3868 = vmatprep.subr.bf16.mxu0 %v9934_v15  ;;  %3580 = vmatmul.mubr.bf16.gmra.mxu1 %v3311_v5  ;;  %v1066_v21 = vpop.f32.mrf.mxu0 }
 0x131   : > { %3589 = vmatprep.mubr.bf16.mxu1 %v3338_v26  ;;  %v12282_v15 = vadd.f32 %v1319_v12, %v1066_v21  ;;  %v12286_v19 = vpop.f32.mrf.mxu1  ;;  %v9946_v12 = vld [vmem:[%s15121_s1 + $0x814] ss:$8 sps:$4 sm:$0xff]   ;;  %v2937_v54 = vrot.slane %v8677_v29, 2  ;;  %4014 = vperm.xlu1 %9518, %v254_v56  }
 0x132   : > { %v1068_v2 = vpop.f32.mrf.mxu0 }
 0x133   : > { %3869 = vmatpush1.bf16.msra.mxu0 %v9932_v42  ;;  %v3342_v42 = vrot.slane %v3340_v28, 2  ;;  %v12298_v5 = vadd.f32 %v1321_v53, %v1068_v2  ;;  %v1331_v26 = vpop.f32.mrf.mxu1  ;;  %v255_v53 = vld [vmem:[%s15125_s5 + $0x20] sm:$0xff]  ;;  %v2938_v31 = vsel %vm2532_vm9, %v2933_v50, %v2937_v54  ;;  %v9952_v2 = vld [vmem:[%s15121_s1 + $0x8f0] ss:$8 sps:$4 sm:$0xff]  }
 0x134   : > { %3870 = vmatprep.subr.bf16.mxu0 %v9937_v39  ;;  %v12302_v39 = vld [vmem:[#allocation2 + $0x58] sm:$0x88]  ;;  %4019 = vperm.xlu0 %9517, %v255_v53   ;;  %v12335_v50 = vpop.f32.mrf.mxu0 }
 0x135   : > { %v3346_v0 = vor.u32 %v3345_v11, %v3342_v42  ;;  %v12320_v28 = vpop.f32.mrf.mxu1  ;;  %4024 = vperm.xlu1 %9518, %v256_v30  }
 0x136   : > { %3162 = vmatmul.mubr.bf16.gmra.mxu0 %v2928_v9  ;;  %v9954_v9 = vld [vmem:[%s15121_s1 + $0x8f4] ss:$8 sps:$4 sm:$0xff]  }
 0x137   : > { %3871 = vmatpush1.bf16.msra.mxu0 %v9935_v60  ;;  %3171 = vmatprep.mubr.bf16.mxu0 %v2934_v55  ;;  %v8676_v60 = vcombine.low %v12262_v48, %v12262_v48  ;;  %v9947_v48 = vld [vmem:[%s15121_s1 + $0x800] ss:$8 sps:$4 sm:$0xff]   ;;  %v3347_v18 = vsel %vm15310_vm5, %v3328_v40, %v3346_v0  ;;  %v258_v40 = vld [vmem:[%s15125_s5 + $0x38] sm:$0xff]  ;;  %vm15384_vm5 = vsmask.f32 1280 }
 0x138   : > { %3872 = vmatprep.subr.bf16.mxu0 %v9940_v7  ;;  %3590 = vmatmul.mubr.bf16.gmra.mxu1 %v3329_v36  ;;  %v8809_v7 = vcombine.high %v12302_v39, %v12322_v46  ;;  %v259_v36 = vld [vmem:[%s15125_s5 + $0x40] sm:$0xff] }
 0x139   : > { %3599 = vmatprep.mubr.bf16.mxu1 %v3356_v3  ;;  %4029 = vperm.xlu0 %9517, %v257_v25   ;;  %v2935_v21 = vrot.slane %v8676_v60, 2  ;;  %v9957_v0 = vld [vmem:[%s15121_s1 + $0x8e0] ss:$8 sps:$4 sm:$0xff]  }
 0x13a   : > { %v1337_v55 = vpop.f32.mrf.mxu1  ;;  %v3673_v29 = vrot.slane %v8809_v7, 3  ;;  %4034 = vperm.xlu1 %9518, %v258_v40   ;;  %v9965_v7 = vld [vmem:[%s15121_s1 + $0x8c4] ss:$8 sps:$4 sm:$0xff]  }
 0x13b   : > { %3873 = vmatpush1.bf16.msra.mxu0 %v9938_v20  ;;  %v3674_v20 = vrot.slane %v12341_v44, 3  ;;  %v2936_v3 = vsel %vm2532_vm9, %v2931_v33, %v2935_v21 }
 0x13c   : > { %3874 = vmatprep.subr.bf16.mxu0 %v9946_v12  ;;  %v9959_v12 = vld [vmem:[%s15121_s1 + $0x8e4] ss:$8 sps:$4 sm:$0xff]   ;;  %v1339_v53 = vpop.f32.mrf.mxu1 }
 0x13d   : > { %4039 = vperm.xlu0 %9517, %v259_v36  }
 0x13e   : > { %3172 = vmatmul.mubr.bf16.gmra.mxu0 %v2932_v38  ;;  %v1074_v42 = vpop.f32.mrf.mxu0  ;;  %v1341_v60 = vpop.f32.mrf.mxu1 }
 0x13f   : > { %3875 = vmatpush1.bf16.msra.mxu0 %v9944_v49  ;;  %3181 = vmatprep.mubr.bf16.mxu0 %v2938_v31  ;;  %v12354_v11 = vadd.f32 %v12275_v35, %v1074_v42  ;;  %v3675_v49 = vsel %vm15178_vm11, %v3673_v29, %v3674_v20  ;;  %v260_v35 = vld [vmem:[%s15125_s5 + $0x48] sm:$0xff]  ;;  %v9960_v31 = vld [vmem:[%s15121_s1 + $0x8d0] ss:$8 sps:$4 sm:$0xff]  }
 0x140   : > { %3876 = vmatprep.subr.bf16.mxu0 %v9949_v41  ;;  %3600 = vmatmul.mubr.bf16.gmra.mxu1 %v3347_v18  ;;  %v1076_v54 = vpop.f32.mrf.mxu0  ;;  %v12385_v30 = vpop.f32.mrf.mxu1  ;;  %v9971_v42 = vld [vmem:[%s15121_s1 + $0x8a4] ss:$8 sps:$4 sm:$0xff]  }
 0x141   : > { %v12361_v56 = vadd.f32 %v12286_v19, %v1076_v54  ;;  %4044 = vperm.xlu1 %9518, %v260_v35   ;;  %v9962_v19 = vld [vmem:[%s15121_s1 + $0x8d4] ss:$8 sps:$4 sm:$0xff]  }
 0x142   : > { %v1078_v41 = vpop.f32.mrf.mxu0  ;;  %v9974_v35 = vld [vmem:[%s15121_s1 + $0x894] ss:$8 sps:$4 sm:$0xff]  }
 0x143   : > { %3877 = vmatpush1.bf16.msra.mxu0 %v9947_v48  ;;  %v12372_v33 = vadd.f32 %v1331_v26, %v1078_v41  ;;  %v9963_v48 = vld [vmem:[%s15121_s1 + $0x8c0] ss:$8 sps:$4 sm:$0xff]  }
 0x144   : > { %3878 = vmatprep.subr.bf16.mxu0 %v9954_v9  ;;  %v12377_v38 = vpop.f32.mrf.mxu0  ;;  %v9968_v9 = vld [vmem:[%s15121_s1 + $0x8b4] ss:$8 sps:$4 sm:$0xff]  }
 0x146   : > { %3182 = vmatmul.mubr.bf16.gmra.mxu0 %v2936_v3  ;;  %v1347_v40 = vpop.f32.mrf.mxu1 }
 0x147   : > { %3879 = vmatpush2.bf16.msra.mxu0 %v9952_v2  ;;  %3894 = vmatprep.mubr.bf16.mxu0 %v3675_v49 }
 0x148   : > { %3880 = vmatprep.subr.bf16.mxu0 %v9959_v12  ;;  %v1349_v3 = vpop.f32.mrf.mxu1 }
 0x14a   : > { %v1084_v26 = vpop.f32.mrf.mxu0 }
 0x14b   : > { %3881 = vmatpush2.bf16.msra.mxu0 %v9957_v0  ;;  %v12387_v25 = vadd.f32 %v1337_v55, %v1084_v26  ;;  %v9966_v55 = vld [vmem:[%s15121_s1 + $0x8b0] ss:$8 sps:$4 sm:$0xff]   ;;  %v9977_v26 = vld [vmem:[%s15121_s1 + $0x884] ss:$8 sps:$4 sm:$0xff]  }
 0x14c   : > { %3882 = vmatprep.subr.bf16.mxu0 %v9962_v19  ;;  %v1086_v18 = vpop.f32.mrf.mxu0  ;;  %v1351_v19 = vpop.f32.mrf.mxu1 }
 0x14d   : > { %v12395_v21 = vadd.f32 %v1339_v53, %v1086_v18  ;;  %v9969_v53 = vld [vmem:[%s15121_s1 + $0x8a0] ss:$8 sps:$4 sm:$0xff]  }
 0x14e   : > { %v1088_v29 = vpop.f32.mrf.mxu0  ;;  %v9975_v18 = vld [vmem:[%s15121_s1 + $0x880] ss:$8 sps:$4 sm:$0xff]  }
 0x14f   : > { %3883 = vmatpush2.bf16.msra.mxu0 %v9960_v31  ;;  %v12397_v36 = vadd.f32 %v1341_v60, %v1088_v29  ;;  %v9972_v31 = vld [vmem:[%s15121_s1 + $0x890] ss:$8 sps:$4 sm:$0xff]  }
 0x150   : > { %3884 = vmatprep.subr.bf16.mxu0 %v9965_v7  ;;  %v12402_v2 = vpop.f32.mrf.mxu0  ;;  %v8808_v7 = vcombine.low %v12302_v39, %v12322_v46 }
 0x152   : > { %v1094_v12 = vpop.f32.mrf.mxu0 }
 0x153   : > { %3885 = vmatpush2.bf16.msra.mxu0 %v9963_v48  ;;  %v12407_v54 = vadd.f32 %v1347_v40, %v1094_v12  ;;  %v12427_v48 = vpop.f32.mrf.mxu1  ;;  %v10453_v40 = vld [vmem:[#allocation2 + $0xc] ss:$48 sps:$4 sm:$0xff]  }
 0x154   : > { %3886 = vmatprep.subr.bf16.mxu0 %v9968_v9  ;;  %v1096_v49 = vpop.f32.mrf.mxu0  ;;  %v3670_v9 = vrot.slane %v8808_v7, 3 }
 0x155   : > { %v12415_v0 = vadd.f32 %v1349_v3, %v1096_v49 }
 0x156   : > { %v1098_v41 = vpop.f32.mrf.mxu0  ;;  %v3672_v39 = vsel %vm15178_vm11, %v3670_v9, %v3671_v6 }
 0x157   : > { %3887 = vmatpush2.bf16.msra.mxu0 %v9966_v55  ;;  %v12417_v60 = vadd.f32 %v1351_v19, %v1098_v41  ;;  %v3678_v55 = vrot.slane %v10453_v40, 3 }
 0x158   : > { %3888 = vmatprep.subr.bf16.mxu0 %v9971_v42  ;;  %v12435_v46 = vpop.f32.mrf.mxu0 }
 0x159   : > { %v3679_v3 = vsel %vm15178_vm11, %v3674_v20, %v3678_v55 }
 0x15b   : > { %3889 = vmatpush2.bf16.msra.mxu0 %v9969_v53 }
 0x15c   : > { %3890 = vmatprep.subr.bf16.mxu0 %v9974_v35 }
 0x15f   : > { %3891 = vmatpush2.bf16.msra.mxu0 %v9972_v31  ;;  %v2006_v29 = vpop.f32.mrf.mxu1 }
 0x160   : > { %3892 = vmatprep.subr.bf16.mxu0 %v9977_v26 }
 0x161   : > { %v2008_v42 = vpop.f32.mrf.mxu1 }
 0x163   : > { %3893 = vmatpush2.bf16.msra.mxu0 %v9975_v18  ;;  %v2010_v12 = vpop.f32.mrf.mxu1 }
 0x165   : > { %v12440_v49 = vpop.f32.mrf.mxu1 }
 0x166   : > { %v1622_v53 = vpop.f32.mrf.mxu0  ;;  %3895 = vmatmul.mubr.bf16.vlgmr.msra.gmra.mxu0 %v3672_v39 }
 0x167   : > { %v1671_v35 = vadd.f32 %v1622_v53, %v12226_v17  ;;  %3904 = vmatprep.mubr.bf16.mxu0 %v3679_v3  ;;  %v3683_v17 = vsel %vm15178_vm11, %v3678_v55, %v3682_v45 }
 0x168   : > { %v1624_v41 = vpop.f32.mrf.mxu0  ;;  %v2016_v19 = vpop.f32.mrf.mxu1 }
 0x169   : > { %v1672_v6 = vadd.f32 %v1624_v41, %v12230_v13  ;;  %v12445_v31 = vadd.f32 %v2006_v29, %v1671_v35 }
 0x16a   : > { %v1626_v7 = vpop.f32.mrf.mxu0  ;;  %v2018_v26 = vpop.f32.mrf.mxu1 }
 0x16b   : > { %v1673_v44 = vadd.f32 %v1626_v7, %v12242_v43  ;;  %v12448_v20 = vadd.f32 %v2008_v42, %v1672_v6  ;;  %v3686_v43 = vrot.slane %v12184_v16, 3 }
 0x16c   : > { %v12450_v18 = vpop.f32.mrf.mxu0  ;;  %v2020_v9 = vpop.f32.mrf.mxu1 }
 0x16d   : > { %v12453_v40 = vadd.f32 %v2010_v12, %v1673_v44 }
 0x16e   : > { %v1632_v39 = vpop.f32.mrf.mxu0  ;;  %3905 = vmatmul.mubr.bf16.gmra.mxu0 %v11984_v27  ;;  %v12456_v8 = vpop.f32.mrf.mxu1 }
 0x16f   : > { %v1675_v13 = vadd.f32 %v1632_v39, %v12273_v52  ;;  %3914 = vmatprep.mubr.bf16.mxu0 %v3683_v17  ;;  %v3687_v52 = vsel %vm15178_vm11, %v3682_v45, %v3686_v43 }
 0x170   : > { %v1634_v29 = vpop.f32.mrf.mxu0  ;;  %v2026_v3 = vpop.f32.mrf.mxu1 }
 0x171   : > { %v1676_v42 = vadd.f32 %v1634_v29, %v12282_v15  ;;  %v12461_v53 = vadd.f32 %v2016_v19, %v1675_v13 }
 0x172   : > { %v1636_v35 = vpop.f32.mrf.mxu0  ;;  %v2028_v55 = vpop.f32.mrf.mxu1 }
 0x173   : > { %v1677_v12 = vadd.f32 %v1636_v35, %v12298_v5  ;;  %v12464_v41 = vadd.f32 %v2018_v26, %v1676_v42  ;;  %v3690_v5 = vrot.slane %v12224_v32, 3 }
 0x174   : > { %v12466_v27 = vpop.f32.mrf.mxu0  ;;  %v2030_v6 = vpop.f32.mrf.mxu1 }
 0x175   : > { %v2061_v7 = vadd.f32 %v2020_v9, %v1677_v12  ;;  %v3691_v35 = vsel %vm15178_vm11, %v3686_v43, %v3690_v5  ;;  %vm13269_vm11 = vmor %vm15384_vm5, %vm4289_vm12 }
 0x176   : > { %v1642_v44 = vpop.f32.mrf.mxu0  ;;  %3915 = vmatmul.mubr.bf16.gmra.mxu0 %v12026_v37  ;;  %v12470_v16 = vpop.f32.mrf.mxu1 }
 0x177   : > { %v1679_v15 = vadd.f32 %v1642_v44, %v12354_v11  ;;  %3924 = vmatprep.mubr.bf16.mxu0 %v3687_v52 }
 0x178   : > { %v1644_v19 = vpop.f32.mrf.mxu0  ;;  %v2036_v17 = vpop.f32.mrf.mxu1 }
 0x179   : > { %v1680_v26 = vadd.f32 %v1644_v19, %v12361_v56  ;;  %v2063_v39 = vadd.f32 %v2026_v3, %v1679_v15 }
 0x17a   : > { %v1646_v13 = vpop.f32.mrf.mxu0  ;;  %v2038_v29 = vpop.f32.mrf.mxu1 }
 0x17b   : > { %v1681_v45 = vadd.f32 %v1646_v13, %v12372_v33  ;;  %v2064_v9 = vadd.f32 %v2028_v55, %v1680_v26 }
 0x17c   : > { %v12476_v42 = vpop.f32.mrf.mxu0  ;;  %v2040_v37 = vpop.f32.mrf.mxu1 }
 0x17d   : > { %v2065_v12 = vadd.f32 %v2030_v6, %v1681_v45 }
 0x17e   : > { %v1652_v11 = vpop.f32.mrf.mxu0  ;;  %3925 = vmatmul.mubr.bf16.gmra.mxu0 %v12060_v63  ;;  %v12480_v52 = vpop.f32.mrf.mxu1 }
 0x17f   : > { %v1683_v32 = vadd.f32 %v1652_v11, %v12387_v25  ;;  %3934 = vmatprep.mubr.bf16.mxu0 %v3691_v35 }
 0x180   : > { %v1654_v56 = vpop.f32.mrf.mxu0  ;;  %v2046_v55 = vpop.f32.mrf.mxu1 }
 0x181   : > { %v1684_v3 = vadd.f32 %v1654_v56, %v12395_v21  ;;  %v2067_v44 = vadd.f32 %v2036_v17, %v1683_v32 }
 0x182   : > { %v1656_v33 = vpop.f32.mrf.mxu0  ;;  %v2048_v63 = vpop.f32.mrf.mxu1 }
 0x183   : > { %v1685_v15 = vadd.f32 %v1656_v33, %v12397_v36  ;;  %v2068_v19 = vadd.f32 %v2038_v29, %v1684_v3 }
 0x184   : > { %v12485_v26 = vpop.f32.mrf.mxu0  ;;  %v2050_v17 = vpop.f32.mrf.mxu1 }
 0x185   : > { %v2069_v43 = vadd.f32 %v2040_v37, %v1685_v15 }
 0x186   : > { %v1662_v6 = vpop.f32.mrf.mxu0  ;;  %3935 = vmatmul.mubr.bf16.gmra.mxu0 %v12102_v22  ;;  %v12499_v3 = vpop.f32.mrf.mxu1 }
 0x187   : > { %v1687_v5 = vadd.f32 %v1662_v6, %v12407_v54 }
 0x188   : > { %v1664_v25 = vpop.f32.mrf.mxu0 }
 0x189   : > { %v1688_v13 = vadd.f32 %v1664_v25, %v12415_v0  ;;  %v2071_v45 = vadd.f32 %v2046_v55, %v1687_v5 }
 0x18a   : > { %v1666_v21 = vpop.f32.mrf.mxu0 }
 0x18b   : > { %v1689_v35 = vadd.f32 %v1666_v21, %v12417_v60  ;;  %v2072_v11 = vadd.f32 %v2048_v63, %v1688_v13 }
 0x18c   : > { %v12491_v29 = vpop.f32.mrf.mxu0 }
 0x18d   : > { %v2073_v36 = vadd.f32 %v2050_v17, %v1689_v35 }
 0x1a0   : > { %v12506_v60 = vpop.f32.mrf.mxu1 }
 0x1a2   : > { %v12511_v6 = vpop.f32.mrf.mxu1 }
 0x1a6   : > { %v2424_v32 = vpop.f32.mrf.mxu0 }
 0x1a7   : > { %v12494_v37 = vadd.f32 %v2424_v32, %v12445_v31 }
 0x1a8   : > { %v2426_v22 = vpop.f32.mrf.mxu0 }
 0x1a9   : > { %v12497_v56 = vadd.f32 %v2426_v22, %v12448_v20 }
 0x1aa   : > { %v2428_v54 = vpop.f32.mrf.mxu0 }
 0x1ab   : > { %v12502_v0 = vadd.f32 %v2428_v54, %v12453_v40  ;;  %v12520_v40 = vpop.f32.mrf.mxu1 }
 0x1ac   : > { %v12504_v33 = vpop.f32.mrf.mxu0 }
 0x1ad   : > { %v12524_v35 = vpop.f32.mrf.mxu1 }
 0x1ae   : > { %v2434_v55 = vpop.f32.mrf.mxu0 }
 0x1af   : > { %v12509_v15 = vadd.f32 %v2434_v55, %v12461_v53  ;;  %v12532_v54 = vpop.f32.mrf.mxu1 }
 0x1b0   : > { %v2436_v31 = vpop.f32.mrf.mxu0 }
 0x1b1   : > { %v12514_v20 = vadd.f32 %v2436_v31, %v12464_v41 }
 0x1b2   : > { %v2438_v63 = vpop.f32.mrf.mxu0 }
 0x1b3   : > { %v12516_v5 = vadd.f32 %v2438_v63, %v2061_v7  ;;  %v12536_v63 = vpop.f32.mrf.mxu1 }
 0x1b4   : > { %v12518_v25 = vpop.f32.mrf.mxu0 }
 0x1b6   : > { %v2444_v13 = vpop.f32.mrf.mxu0 }
 0x1b7   : > { %v12522_v21 = vadd.f32 %v2444_v13, %v2063_v39 }
 0x1b8   : > { %v2446_v17 = vpop.f32.mrf.mxu0 }
 0x1b9   : > { %v12526_v53 = vadd.f32 %v2446_v17, %v2064_v9  ;;  %v12544_v17 = vpop.f32.mrf.mxu1 }
 0x1ba   : > { %v2448_v32 = vpop.f32.mrf.mxu0 }
 0x1bb   : > { %v12528_v22 = vadd.f32 %v2448_v32, %v2065_v12  ;;  %v12548_v34 = vpop.f32.mrf.mxu1 }
 0x1bc   : > { %v12530_v41 = vpop.f32.mrf.mxu0 }
 0x1be   : > { %v2454_v7 = vpop.f32.mrf.mxu0 }
 0x1bf   : > { %v12534_v55 = vadd.f32 %v2454_v7, %v2067_v44 }
 0x1c0   : > { %v2456_v31 = vpop.f32.mrf.mxu0 }
 0x1c1   : > { %v12538_v39 = vadd.f32 %v2456_v31, %v2068_v19  ;;  %v12554_v19 = vpop.f32.mrf.mxu1 }
 0x1c2   : > { %v2458_v13 = vpop.f32.mrf.mxu0 }
 0x1c3   : > { %v12540_v1 = vadd.f32 %v2458_v13, %v2069_v43  ;;  %v12556_v31 = vpop.f32.mrf.mxu1 }
 0x1c4   : > { %v12542_v9 = vpop.f32.mrf.mxu0 }
 0x1c5   : > { %v12558_v43 = vpop.f32.mrf.mxu1 }
 0x1c6   : > { %v2464_v12 = vpop.f32.mrf.mxu0 }
 0x1c7   : > { %v12546_v32 = vadd.f32 %v2464_v12, %v2071_v45  ;;  %v12560_v13 = vpop.f32.mrf.mxu1 }
 0x1c8   : > { %v2466_v59 = vpop.f32.mrf.mxu0 }
 0x1c9   : > { %15315 = vst [vmem:[#allocation17_spill] sm:$0xff] %v12546_v32  ;;  %v12550_v44 = vadd.f32 %v2466_v59, %v2072_v11  ;;  %v12562_v23 = vpop.f32.mrf.mxu1 }
 0x1ca   : > { %v2468_v7 = vpop.f32.mrf.mxu0 }
 0x1cb   : > { %15316 = vst [vmem:[#allocation18_spill] sm:$0xff] %v12550_v44  ;;  %v12552_v57 = vadd.f32 %v2468_v7, %v2073_v36  ;;  %v12564_v45 = vpop.f32.mrf.mxu1  ;;  %v9978_v44 = vld [vmem:[%s15123_s3 + $0x70] ss:$8 sps:$4 sm:$0xff]  }
 0x1cc   : > { %v12566_v12 = vpop.f32.mrf.mxu0 }
 0x1cd   : > { %15317 = vst [vmem:[#allocation19_spill] sm:$0xff] %v12552_v57  ;;  %15318 = vst [vmem:[#allocation20_spill] sm:$0xff] %v12566_v12  ;;  %v12568_v47 = vpop.f32.mrf.mxu1  ;;  %v9980_v12 = vld [vmem:[%s15123_s3 + $0x74] ss:$8 sps:$4 sm:$0xff]  }
 0x1ce   : > { %5159 = vmatprep.subr.bf16.mxu0 %v9980_v12  ;;  %v9986_v12 = vld [vmem:[%s15123_s3 + $0x174] ss:$8 sps:$4 sm:$0xff]  }
 0x1cf   : > { %v12574_v36 = vpop.f32.mrf.mxu1  ;;  %5160 = vmatpush1.bf16.msra.mxu0 %v9978_v44  ;;  %v9984_v44 = vld [vmem:[%s15123_s3 + $0x170] ss:$8 sps:$4 sm:$0xff]   ;;  %4906 = vmatprep.subr.bf16.mxu1 %v9986_v12  ;;  %v9995_v12 = vld [vmem:[%s15123_s3 + $0x44] ss:$8 sps:$4 sm:$0xff]  }
 0x1d0   : > { %15319 = vst [vmem:[#allocation21_spill] sm:$0xff] %v12574_v36  ;;  %4907 = vmatpush1.bf16.msra.mxu1 %v9984_v44 }
 0x1d1   : > { %v12580_v10 = vpop.f32.mrf.mxu1 }
 0x1d2   : > { %15321 = vst [vmem:[#allocation23_spill] sm:$0xff] %v12580_v10  ;;  %v3967_v10 = vlaneseq }
 0x1d3   : > { %v12586_v4 = vpop.f32.mrf.mxu1 }
 0x1d4   : > { %15324 = vst [vmem:[#allocation26_spill] sm:$0xff] %v12586_v4 }
 0x1e6   : > { %v12570_v59 = vpop.f32.mrf.mxu0 }
 0x1e8   : > { %v12572_v11 = vpop.f32.mrf.mxu0 }
 0x1ea   : > { %v12576_v7 = vpop.f32.mrf.mxu0 }
 0x1ec   : > { %v12578_v14 = vpop.f32.mrf.mxu0 }
 0x1ed   : > { %15320 = vst [vmem:[#allocation22_spill] sm:$0xff] %v12578_v14  ;;  %v12598_v14 = vpop.f32.mrf.mxu1 }
 0x1ee   : > { %v12582_v62 = vpop.f32.mrf.mxu0  ;;  %15327 = vst [vmem:[#allocation29_spill] sm:$0xff] %v12598_v14 }
 0x1ef   : > { %15322 = vst [vmem:[#allocation24_spill] sm:$0xff] %v12582_v62  ;;  %v12608_v4 = vpop.f32.mrf.mxu1 }
 0x1f0   : > { %v12584_v51 = vpop.f32.mrf.mxu0  ;;  %15329 = vst [vmem:[#allocation31_spill] sm:$0xff] %v12608_v4  ;;  %v9992_v4 = vld [vmem:[%s15123_s3 + $0x164] ss:$8 sps:$4 sm:$0xff]  }
 0x1f1   : > { %15323 = vst [vmem:[#allocation25_spill] sm:$0xff] %v12584_v51  ;;  %v9983_v51 = vld [vmem:[%s15123_s3 + $0x64] ss:$8 sps:$4 sm:$0xff]   ;;  %v12619_v14 = vpop.f32.mrf.mxu1  ;;  %4908 = vmatprep.subr.bf16.mxu1 %v9992_v4  ;;  %v10001_v4 = vld [vmem:[%s15123_s3 + $0x34] ss:$8 sps:$4 sm:$0xff]  }
 0x1f2   : > { %v12588_v57 = vpop.f32.mrf.mxu0  ;;  %5161 = vmatprep.subr.bf16.mxu0 %v9983_v51  ;;  %15330 = vst [vmem:[#allocation32_spill] sm:$0xff] %v12619_v14  ;;  %v9987_v51 = vld [vmem:[%s15123_s3 + $0x50] ss:$8 sps:$4 sm:$0xff]  }
 0x1f3   : > { %15325 = vst [vmem:[#allocation27_spill] sm:$0xff] %v12588_v57  ;;  %v9981_v57 = vld [vmem:[%s15123_s3 + $0x60] ss:$8 sps:$4 sm:$0xff]   ;;  %v12635_v14 = vpop.f32.mrf.mxu1 }
 0x1f4   : > { %v12596_v32 = vpop.f32.mrf.mxu0  ;;  %5162 = vmatpush1.bf16.msra.mxu0 %v9981_v57  ;;  %15332 = vst [vmem:[#allocation34_spill] sm:$0xff] %v12635_v14 }
 0x1f5   : > { %15326 = vst [vmem:[#allocation28_spill] sm:$0xff] %v12596_v32  ;;  %v9989_v32 = vld [vmem:[%s15123_s3 + $0x54] ss:$8 sps:$4 sm:$0xff]   ;;  %v12651_v14 = vpop.f32.mrf.mxu1 }
 0x1f6   : > { %v12606_v62 = vpop.f32.mrf.mxu0  ;;  %5163 = vmatprep.subr.bf16.mxu0 %v9989_v32  ;;  %v9993_v32 = vld [vmem:[%s15123_s3 + $0x40] ss:$8 sps:$4 sm:$0xff]   ;;  %15334 = vst [vmem:[#allocation36_spill] sm:$0xff] %v12651_v14 }
 0x1f7   : > { %15328 = vst [vmem:[#allocation30_spill] sm:$0xff] %v12606_v62  ;;  %v9990_v62 = vld [vmem:[%s15123_s3 + $0x160] ss:$8 sps:$4 sm:$0xff]   ;;  %v12667_v14 = vpop.f32.mrf.mxu1 }
 0x1f8   : > { %v12624_v57 = vpop.f32.mrf.mxu0  ;;  %5164 = vmatpush1.bf16.msra.mxu0 %v9987_v51  ;;  %4909 = vmatpush1.bf16.msra.mxu1 %v9990_v62  ;;  %v9998_v51 = vld [vmem:[%s15123_s3 + $0x154] ss:$8 sps:$4 sm:$0xff]   ;;  %v9999_v62 = vld [vmem:[%s15123_s3 + $0x30] ss:$8 sps:$4 sm:$0xff]   ;;  %15336 = vst [vmem:[#allocation38_spill] sm:$0xff] %v12667_v14 }
 0x1f9   : > { %15331 = vst [vmem:[#allocation33_spill] sm:$0xff] %v12624_v57  ;;  %5165 = vmatprep.subr.bf16.mxu0 %v9995_v12  ;;  %v9996_v57 = vld [vmem:[%s15123_s3 + $0x150] ss:$8 sps:$4 sm:$0xff]   ;;  %4910 = vmatprep.subr.bf16.mxu1 %v9998_v51  ;;  %v10007_v51 = vld [vmem:[%s15123_s3 + $0x24] ss:$8 sps:$4 sm:$0xff]   ;;  %v12683_v14 = vpop.f32.mrf.mxu1 }
 0x1fa   : > { %v12640_v44 = vpop.f32.mrf.mxu0  ;;  %15338 = vst [vmem:[#allocation40_spill] sm:$0xff] %v12683_v14 }
 0x1fb   : > { %15333 = vst [vmem:[#allocation35_spill] sm:$0xff] %v12640_v44  ;;  %v10002_v44 = vld [vmem:[%s15123_s3 + $0x140] ss:$8 sps:$4 sm:$0xff]   ;;  %v12699_v14 = vpop.f32.mrf.mxu1 }
 0x1fc   : > { %5166 = vmatpush1.bf16.msra.mxu0 %v9993_v32  ;;  %v12656_v12 = vpop.f32.mrf.mxu0  ;;  %4911 = vmatpush1.bf16.msra.mxu1 %v9996_v57  ;;  %v10004_v32 = vld [vmem:[%s15123_s3 + $0x144] ss:$8 sps:$4 sm:$0xff]   ;;  %v10005_v57 = vld [vmem:[%s15123_s3 + $0x20] ss:$8 sps:$4 sm:$0xff]   ;;  %15340 = vst [vmem:[#allocation42_spill] sm:$0xff] %v12699_v14 }
 0x1fd   : > { %15335 = vst [vmem:[#allocation37_spill] sm:$0xff] %v12656_v12  ;;  %5167 = vmatprep.subr.bf16.mxu0 %v10001_v4  ;;  %4912 = vmatprep.subr.bf16.mxu1 %v10004_v32  ;;  %v10008_v12 = vld [vmem:[%s15123_s3 + $0x130] ss:$8 sps:$4 sm:$0xff]   ;;  %v10013_v32 = vld [vmem:[%s15123_s3 + $0x14] ss:$8 sps:$4 sm:$0xff]   ;;  %v12715_v14 = vpop.f32.mrf.mxu1 }
 0x1fe   : > { %v12672_v4 = vpop.f32.mrf.mxu0  ;;  %15342 = vst [vmem:[#allocation44_spill] sm:$0xff] %v12715_v14  ;;  %v1324_v14 = vadd.f32 %v12254_v58, %v12335_v50  ;;  %v10029_v58 = vld [vmem:[%s15123_s3 + $0xe0] ss:$8 sps:$4 sm:$0xff]   ;;  %v1344_v50 = vadd.f32 %v12385_v30, %v12402_v2  ;;  %v10037_v30 = vld [vmem:[%s15123_s3 + $0xd4] ss:$8 sps:$4 sm:$0xff]  }
 0x1ff   : > { %15337 = vst [vmem:[#allocation39_spill] sm:$0xff] %v12672_v4  ;;  %v10014_v4 = vld [vmem:[%s15123_s3 + $0x120] ss:$8 sps:$4 sm:$0xff]  }
 0x200   : > { %5168 = vmatpush1.bf16.msra.mxu0 %v9999_v62  ;;  %4913 = vmatpush1.bf16.msra.mxu1 %v10002_v44  ;;  %v10010_v62 = vld [vmem:[%s15123_s3 + $0x134] ss:$8 sps:$4 sm:$0xff]   ;;  %v10011_v44 = vld [vmem:[%s15123_s3 + $0x10] ss:$8 sps:$4 sm:$0xff]  }
 0x201   : > { %5169 = vmatprep.subr.bf16.mxu0 %v10007_v51  ;;  %4914 = vmatprep.subr.bf16.mxu1 %v10010_v62  ;;  %v12688_v51 = vpop.f32.mrf.mxu0  ;;  %v10019_v62 = vld [vmem:[%s15123_s3 + $0x4] ss:$8 sps:$4 sm:$0xff]  }
 0x202   : > { %15339 = vst [vmem:[#allocation41_spill] sm:$0xff] %v12688_v51  ;;  %v10020_v51 = vld [vmem:[%s15123_s3 + $0x110] ss:$8 sps:$4 sm:$0xff]  }
 0x204   : > { %5170 = vmatpush1.bf16.msra.mxu0 %v10005_v57  ;;  %4915 = vmatpush1.bf16.msra.mxu1 %v10008_v12  ;;  %v10016_v57 = vld [vmem:[%s15123_s3 + $0x124] ss:$8 sps:$4 sm:$0xff]   ;;  %v10017_v12 = vld [vmem:[%s15123_s3] ss:$8 sps:$4 sm:$0xff]  }
 0x205   : > { %5171 = vmatprep.subr.bf16.mxu0 %v10013_v32  ;;  %4916 = vmatprep.subr.bf16.mxu1 %v10016_v57  ;;  %v12704_v32 = vpop.f32.mrf.mxu0  ;;  %v10025_v57 = vld [vmem:[%s15123_s3 + $0xf4] ss:$8 sps:$4 sm:$0xff]  }
 0x206   : > { %15341 = vst [vmem:[#allocation43_spill] sm:$0xff] %v12704_v32  ;;  %v10028_v32 = vld [vmem:[%s15123_s3 + $0x104] ss:$8 sps:$4 sm:$0xff]  }
 0x208   : > { %5172 = vmatpush1.bf16.msra.mxu0 %v10011_v44  ;;  %4917 = vmatpush1.bf16.msra.mxu1 %v10014_v4  ;;  %v10022_v44 = vld [vmem:[%s15123_s3 + $0x114] ss:$8 sps:$4 sm:$0xff]   ;;  %v10023_v4 = vld [vmem:[%s15123_s3 + $0xf0] ss:$8 sps:$4 sm:$0xff]  }
 0x209   : > { %5173 = vmatprep.subr.bf16.mxu0 %v10019_v62  ;;  %4918 = vmatprep.subr.bf16.mxu1 %v10022_v44  ;;  %v12720_v62 = vpop.f32.mrf.mxu0  ;;  %v10026_v44 = vld [vmem:[%s15123_s3 + $0x100] ss:$8 sps:$4 sm:$0xff]  }
 0x20a   : > { %15343 = vst [vmem:[#allocation45_spill] sm:$0xff] %v12720_v62  ;;  %v1678_v62 = vadd.f32 %v12466_v27, %v1324_v14  ;;  %v10032_v14 = vld [vmem:[%s15123_s3 + $0x1f0] ss:$8 sps:$4 sm:$0xff]  }
 0x20b   : > { %v12748_v36 = vpop.f32.mrf.mxu0 }
 0x20c   : > { %5174 = vmatpush1.bf16.msra.mxu0 %v10017_v12  ;;  %4919 = vmatpush1.bf16.msra.mxu1 %v10020_v51  ;;  %v1314_v12 = vadd.f32 %v12215_v24, %v12259_v61  ;;  %v10031_v51 = vld [vmem:[%s15123_s3 + $0xe4] ss:$8 sps:$4 sm:$0xff]   ;;  %v12738_v61 = vpop.f32.mrf.mxu1 }
 0x20d   : > { %5175 = vmatprep.subr.bf16.mxu0 %v10025_v57  ;;  %v1334_v57 = vadd.f32 %v12320_v28, %v12377_v38  ;;  %4920 = vmatprep.subr.bf16.mxu1 %v10028_v32  ;;  %v1354_v28 = vadd.f32 %v12427_v48, %v12435_v46  ;;  %v10034_v38 = vld [vmem:[%s15123_s3 + $0x1f4] ss:$8 sps:$4 sm:$0xff]   ;;  %v12772_v32 = vpop.f32.mrf.mxu0 }
 0x20e   : > { %v1674_v24 = vadd.f32 %v12450_v18, %v1314_v12  ;;  %v1686_v18 = vadd.f32 %v12485_v26, %v1344_v50  ;;  %v12765_v46 = vpop.f32.mrf.mxu1  ;;  %v2062_v26 = vadd.f32 %v12456_v8, %v1678_v62  ;;  %v3965_v12 = vld [vmem:[%s15122_s2] sm:$0x3] }
 0x20f   : > { %v1690_v48 = vadd.f32 %v12491_v29, %v1354_v28  ;;  %v2809_v28 = vadd.f32 %v12511_v6, %v12497_v56  ;;  %v2813_v6 = vadd.f32 %v12536_v63, %v12514_v20  ;;  %v2818_v20 = vadd.f32 %v12558_v43, %v12528_v22  ;;  %v10052_v43 = vld [vmem:[%s15123_s3 + $0x1c4] ss:$8 sps:$4 sm:$0xff]  }
 0x210   : > { %5176 = vmatpush2.bf16.msra.mxu0 %v10023_v4  ;;  %v12740_v4 = vshrl.u32 %v3967_v10, 7  ;;  %4921 = vmatpush1.bf16.msra.mxu1 %v10026_v44  ;;  %v1682_v10 = vadd.f32 %v12476_v42, %v1334_v57  ;;  %v2058_v2 = vadd.f32 %v12440_v49, %v1674_v24  ;;  %v10035_v42 = vld [vmem:[%s15123_s3 + $0xd0] ss:$8 sps:$4 sm:$0xff]   ;;  %v2070_v8 = vadd.f32 %v12480_v52, %v1686_v18  ;;  %v10038_v57 = vld [vmem:[%s15123_s3 + $0x1e0] ss:$8 sps:$4 sm:$0xff]   ;;  %v12795_v50 = vpop.f32.mrf.mxu1 }
 0x211   : > { %5177 = vmatprep.subr.bf16.mxu0 %v10031_v51  ;;  %4922 = vmatprep.subr.bf16.mxu1 %v10034_v38  ;;  %v10040_v51 = vld [vmem:[%s15123_s3 + $0x1e4] ss:$8 sps:$4 sm:$0xff]   ;;  %v2480_v62 = vadd.f32 %v12518_v25, %v2062_v26  ;;  %v10041_v25 = vld [vmem:[%s15123_s3 + $0xc0] ss:$8 sps:$4 sm:$0xff]  }
 0x212   : > { %15344 = vst [vmem:[#allocation46_spill] sm:$0xff] %v12740_v4  ;;  %v15180_v27 = vsub.s32 0, %v12740_v4  ;;  %v15179_v49 = vsub.s32 1, %v12740_v4  ;;  %v2066_v29 = vadd.f32 %v12470_v16, %v1682_v10  ;;  %v2476_v44 = vadd.f32 %v12504_v33, %v2058_v2  ;;  %v10043_v24 = vld [vmem:[%s15123_s3 + $0xc4] ss:$8 sps:$4 sm:$0xff]   ;;  %v12841_v63 = vpop.f32.mrf.mxu1 }
 0x213   : > { %v2074_v16 = vadd.f32 %v12499_v3, %v1690_v48  ;;  %v2808_v33 = vadd.f32 %v12506_v60, %v12494_v37  ;;  %v2810_v3 = vadd.f32 %v12520_v40, %v12502_v0  ;;  %v12808_v37 = vpop.f32.mrf.mxu0  ;;  %v2812_v10 = vadd.f32 %v12532_v54, %v12509_v15  ;;  %v10046_v0 = vld [vmem:[%s15123_s3 + $0x1d4] ss:$8 sps:$4 sm:$0xff]   ;;  %v10044_v54 = vld [vmem:[%s15123_s3 + $0x1d0] ss:$8 sps:$4 sm:$0xff]   ;;  %v15350_v2 = vld [vmem:[#allocation26_spill] sm:$0xff] }
 0x214   : > { %5178 = vmatpush2.bf16.msra.mxu0 %v10029_v58  ;;  %4923 = vmatpush2.bf16.msra.mxu1 %v10032_v14  ;;  %v2484_v58 = vadd.f32 %v12530_v41, %v2066_v29  ;;  %v12799_v52 = vrot.slane %v3965_v12, %v15180_v27  ;;  %v12812_v60 = vrot.slane %v3965_v12, %v15179_v49  ;;  %v10053_v14 = vld [vmem:[%s15123_s3 + $0xa0] ss:$8 sps:$4 sm:$0xff]   ;;  %v15352_v12 = vld [vmem:[#allocation19_spill] sm:$0xff] }
 0x215   : > { %5179 = vmatprep.subr.bf16.mxu0 %v10037_v30  ;;  %4924 = vmatprep.subr.bf16.mxu1 %v10040_v51  ;;  %v2811_v41 = vadd.f32 %v12524_v35, %v2476_v44  ;;  %v2488_v38 = vadd.f32 %v12542_v9, %v2070_v8  ;;  %v3192_v56 = vadd.f32 %v12570_v59, %v2808_v33  ;;  %v10049_v9 = vld [vmem:[%s15123_s3 + $0xb4] ss:$8 sps:$4 sm:$0xff]   ;;  %v10055_v30 = vld [vmem:[%s15123_s3 + $0xa4] ss:$8 sps:$4 sm:$0xff]  }
 0x216   : > { %v2814_v40 = vadd.f32 %v12544_v17, %v12516_v5  ;;  %v2815_v35 = vadd.f32 %v12548_v34, %v2480_v62  ;;  %v2816_v15 = vadd.f32 %v12554_v19, %v12522_v21  ;;  %v2817_v59 = vadd.f32 %v12556_v31, %v12526_v53  ;;  %v10047_v21 = vld [vmem:[%s15123_s3 + $0xb0] ss:$8 sps:$4 sm:$0xff]   ;;  %v12853_v19 = vpop.f32.mrf.mxu0  ;;  %v10050_v31 = vld [vmem:[%s15123_s3 + $0x1c0] ss:$8 sps:$4 sm:$0xff]  }
 0x217   : > { %v2819_v5 = vadd.f32 %v12560_v13, %v2484_v58  ;;  %v3193_v34 = vadd.f32 %v12572_v11, %v2809_v28  ;;  %v2820_v17 = vadd.f32 %v12562_v23, %v12534_v55  ;;  %v12850_v53 = vadd.f32 %v12564_v45, %v12538_v39  ;;  %v15345_v55 = vld [vmem:[#allocation21_spill] sm:$0xff]  ;;  %v15347_v45 = vld [vmem:[#allocation23_spill] sm:$0xff]  ;;  %v15354_v51 = vld [vmem:[#allocation22_spill] sm:$0xff] }
 0x218   : > { %5180 = vmatpush2.bf16.msra.mxu0 %v10035_v42  ;;  %4925 = vmatpush2.bf16.msra.mxu1 %v10038_v57  ;;  %v3194_v22 = vadd.f32 %v12576_v7, %v2810_v3  ;;  %v12863_v23 = vadd.f32 %v12568_v47, %v12540_v1  ;;  %v12866_v39 = vadd.f32 %v15345_v55, %v2488_v38  ;;  %v15346_v13 = vld [vmem:[#allocation17_spill] sm:$0xff]  ;;  %v15348_v7 = vld [vmem:[#allocation32_spill] sm:$0xff]  ;;  %v15349_v1 = vld [vmem:[#allocation18_spill] sm:$0xff]  ;;  %v3587_v38 = vpop.f32.mrf.mxu1 }
 0x219   : > { %5181 = vmatprep.subr.bf16.mxu0 %v10043_v24  ;;  %4926 = vmatprep.subr.bf16.mxu1 %v10046_v0  ;;  %v12870_v11 = vadd.f32 %v15347_v45, %v15346_v13  ;;  %v3610_v18 = vadd.f32 %v15348_v7, %v3192_v56  ;;  %v10058_v47 = vld [vmem:[%s15123_s3 + $0x1b4] ss:$8 sps:$4 sm:$0xff]   ;;  %v12884_v48 = vadd.f32 %v15350_v2, %v15349_v1  ;;  %v15353_v29 = vld [vmem:[#allocation29_spill] sm:$0xff]  ;;  %v15355_v24 = vld [vmem:[#allocation34_spill] sm:$0xff]  ;;  %v12898_v56 = vpop.permute.xlu0 %3999 }
 0x21a   : > { %v15351_v42 = vld [vmem:[#allocation20_spill] sm:$0xff]  ;;  %v12889_v44 = vadd.f32 %v15353_v29, %v15352_v12  ;;  %v3195_v8 = vadd.f32 %v15354_v51, %v2811_v41  ;;  %v3611_v33 = vadd.f32 %v15355_v24, %v3193_v34  ;;  %v15357_v28 = vld [vmem:[#allocation25_spill] sm:$0xff]  ;;  %15358 = vst [vmem:[#allocation21_spill] sm:$0xff] %v12898_v56  ;;  %v15360_v41 = vld [vmem:[#allocation27_spill] sm:$0xff] }
 0x21b   : > { %v2492_v26 = vadd.f32 %v15351_v42, %v2074_v16  ;;  %v10061_v57 = vld [vmem:[%s15123_s3 + $0x94] ss:$8 sps:$4 sm:$0xff]   ;;  %v3197_v3 = vadd.f32 %v15357_v28, %v2813_v6  ;;  %v15362_v55 = vld [vmem:[#allocation30_spill] sm:$0xff]  ;;  %v15363_v6 = vld [vmem:[#allocation33_spill] sm:$0xff] }
 0x21c   : > { %5182 = vmatpush2.bf16.msra.mxu0 %v10041_v25  ;;  %4927 = vmatpush2.bf16.msra.mxu1 %v10044_v54  ;;  %v15356_v58 = vld [vmem:[#allocation24_spill] sm:$0xff]  ;;  %v3200_v13 = vadd.f32 %v15362_v55, %v2816_v15  ;;  %v3201_v34 = vadd.f32 %v15363_v6, %v2817_v59  ;;  %v15364_v7 = vld [vmem:[#allocation35_spill] sm:$0xff]  ;;  %v15366_v15 = vld [vmem:[#allocation38_spill] sm:$0xff] }
 0x21d   : > { %5183 = vmatprep.subr.bf16.mxu0 %v10049_v9  ;;  %4928 = vmatprep.subr.bf16.mxu1 %v10052_v43  ;;  %v3196_v25 = vadd.f32 %v15356_v58, %v2812_v10  ;;  %v15359_v0 = vld [vmem:[#allocation36_spill] sm:$0xff]  ;;  %v3198_v9 = vadd.f32 %v15360_v41, %v2814_v40  ;;  %v15369_v12 = vld [vmem:[#allocation42_spill] sm:$0xff]  ;;  %v15370_v51 = vld [vmem:[#allocation39_spill] sm:$0xff] }
 0x21e   : > { %v3612_v54 = vadd.f32 %v15359_v0, %v3194_v22  ;;  %v10056_v10 = vld [vmem:[%s15123_s3 + $0x1b0] ss:$8 sps:$4 sm:$0xff]   ;;  %v3615_v29 = vadd.f32 %v15369_v12, %v3197_v3  ;;  %v12932_v58 = vadd.f32 %v12765_v46, %v3200_v13  ;;  %v12949_v0 = vpop.permute.xlu0 %4004 }
 0x21f   : > { %v10059_v40 = vld [vmem:[%s15123_s3 + $0x90] ss:$8 sps:$4 sm:$0xff]   ;;  %15372 = vst [vmem:[#allocation17_spill] sm:$0xff] %v12949_v0 }
 0x220   : > { %5184 = vmatpush2.bf16.msra.mxu0 %v10047_v21  ;;  %v15361_v21 = vld [vmem:[#allocation28_spill] sm:$0xff]  ;;  %4929 = vmatpush2.bf16.msra.mxu1 %v10050_v31  ;;  %v3613_v31 = vadd.f32 %v15366_v15, %v3195_v8  ;;  %v3204_v8 = vadd.f32 %v15370_v51, %v2820_v17  ;;  %v12941_v17 = vadd.f32 %v12795_v50, %v3201_v34  ;;  %v12986_v15 = vpop.permute.xlu1 %4009 }
 0x221   : > { %5185 = vmatprep.subr.bf16.mxu0 %v10055_v30  ;;  %v3199_v43 = vadd.f32 %v15361_v21, %v2815_v35  ;;  %4930 = vmatprep.subr.bf16.mxu1 %v10058_v47  ;;  %v15365_v35 = vld [vmem:[#allocation31_spill] sm:$0xff]  ;;  %v15367_v30 = vld [vmem:[#allocation37_spill] sm:$0xff]  ;;  %v15368_v47 = vld [vmem:[#allocation40_spill] sm:$0xff]  ;;  %15375 = vst [vmem:[#allocation23_spill] sm:$0xff] %v12986_v15 }
 0x222   : > { %v12913_v22 = vadd.f32 %v15365_v35, %v2492_v26  ;;  %v3203_v2 = vadd.f32 %v15367_v30, %v2819_v5  ;;  %v3614_v26 = vadd.f32 %v15368_v47, %v3196_v25  ;;  %v3591_v5 = vpop.f32.mrf.mxu1  ;;  %v15371_v24 = vld [vmem:[#allocation44_spill] sm:$0xff]  ;;  %v10062_v25 = vld [vmem:[%s15123_s3 + $0x1a0] ss:$8 sps:$4 sm:$0xff]  }
 0x223   : > { %v12963_v55 = vadd.f32 %v3591_v5, %v3204_v8 }
 0x224   : > { %5186 = vmatpush2.bf16.msra.mxu0 %v10053_v14  ;;  %v10067_v14 = vld [vmem:[%s15123_s3 + $0x84] ss:$8 sps:$4 sm:$0xff]   ;;  %4931 = vmatpush2.bf16.msra.mxu1 %v10056_v10  ;;  %v12954_v41 = vadd.f32 %v3587_v38, %v3203_v2  ;;  %v3593_v13 = vpop.f32.mrf.mxu1  ;;  %v15374_v10 = vld [vmem:[#allocation43_spill] sm:$0xff] }
 0x225   : > { %5187 = vmatprep.subr.bf16.mxu0 %v10061_v57  ;;  %v3617_v57 = vadd.f32 %v12738_v61, %v3199_v43  ;;  %v10070_v43 = vld [vmem:[%s15123_s3 + $0x194] ss:$8 sps:$4 sm:$0xff]   ;;  %v3206_v6 = vadd.f32 %v15374_v10, %v12863_v23 }
 0x226   : > { %v3896_v62 = vpop.f32.mrf.mxu0  ;;  %v3595_v8 = vpop.f32.mrf.mxu1 }
 0x227   : > { %v3945_v16 = vadd.f32 %v3896_v62, %v3610_v18  ;;  %v3202_v18 = vadd.f32 %v15364_v7, %v2818_v20  ;;  %v10064_v20 = vld [vmem:[%s15123_s3 + $0x1a4] ss:$8 sps:$4 sm:$0xff]  }
 0x228   : > { %v3898_v45 = vpop.f32.mrf.mxu0  ;;  %5188 = vmatpush2.bf16.msra.mxu0 %v10059_v40  ;;  %4932 = vmatprep.subr.bf16.mxu1 %v10064_v20  ;;  %v10068_v40 = vld [vmem:[%s15123_s3 + $0x190] ss:$8 sps:$4 sm:$0xff]  }
 0x229   : > { %v3946_v1 = vadd.f32 %v3898_v45, %v3611_v33  ;;  %v12918_v42 = vadd.f32 %v12799_v52, %v3945_v16  ;;  %v3616_v33 = vadd.f32 %v15371_v24, %v3198_v9  ;;  %v12944_v3 = vadd.f32 %v12841_v63, %v3202_v18  ;;  %v15373_v9 = vld [vmem:[#allocation41_spill] sm:$0xff]  ;;  %5189 = vmatprep.subr.bf16.mxu0 %v10067_v14 }
 0x22a   : > { %v3900_v59 = vpop.f32.mrf.mxu0  ;;  %v3205_v50 = vadd.f32 %v15373_v9, %v12850_v53  ;;  %4933 = vmatpush2.bf16.msra.mxu1 %v10062_v25 }
 0x22b   : > { %v3947_v62 = vadd.f32 %v3900_v59, %v3612_v54  ;;  %v12935_v28 = vadd.f32 %v12812_v60, %v3946_v1  ;;  %v10065_v54 = vld [vmem:[%s15123_s3 + $0x80] ss:$8 sps:$4 sm:$0xff]   ;;  %v4097_v63 = vmul.f32 %v12918_v42, %v12918_v42  ;;  %v4047_v18 = vmul.f32 %v12898_v56, %v12918_v42  ;;  %4934 = vmatprep.subr.bf16.mxu1 %v10070_v43 }
 0x22c   : > { %v3902_v16 = vpop.f32.mrf.mxu0  ;;  %5190 = vmatpush2.bf16.msra.mxu0 %v10065_v54  ;;  %v12990_v2 = vadd.f32 %v3593_v13, %v3205_v50 }
 0x22d   : > { %v12947_v61 = vadd.f32 %v12799_v52, %v3947_v62  ;;  %v3948_v46 = vadd.f32 %v3902_v16, %v3613_v31  ;;  %v4098_v34 = vmul.f32 %v12935_v28, %v12935_v28  ;;  %v4117_v14 = vmul.f32 %v4097_v63, %v12898_v56 }
 0x22e   : > { %v3906_v21 = vpop.f32.mrf.mxu0  ;;  %4935 = vmatpush2.bf16.msra.mxu1 %v10068_v40  ;;  %v15377_v40 = vld [vmem:[#allocation45_spill] sm:$0xff] }
 0x22f   : > { %v4099_v38 = vmul.f32 %v12947_v61, %v12947_v61  ;;  %v12968_v45 = vadd.f32 %v12812_v60, %v3948_v46  ;;  %v3949_v53 = vadd.f32 %v3906_v21, %v3614_v26  ;;  %v4049_v1 = vmul.f32 %v12949_v0, %v12947_v61 }
 0x230   : > { %v3908_v7 = vpop.f32.mrf.mxu0  ;;  %v4118_v5 = vmul.f32 %v4098_v34, %v12898_v56 }
 0x231   : > { %v4100_v35 = vmul.f32 %v12968_v45, %v12968_v45  ;;  %v12984_v23 = vadd.f32 %v12799_v52, %v3949_v53  ;;  %v3950_v31 = vadd.f32 %v3908_v7, %v3615_v29  ;;  %v4050_v30 = vmul.f32 %v12949_v0, %v12968_v45  ;;  %v10074_v53 = vld [vmem:[%s15123_s3 + $0x180] ss:$8 sps:$4 sm:$0xff]  }
 0x232   : > { %v3910_v59 = vpop.f32.mrf.mxu0  ;;  %v4067_v20 = vadd.f32 %v4049_v1, %v4047_v18  ;;  %v4119_v47 = vmul.f32 %v4099_v38, %v12949_v0  ;;  %v4048_v29 = vmul.f32 %v12898_v56, %v12935_v28  ;;  %v10073_v38 = vld [vmem:[%s15123_s3 + $0x374] ss:$8 sps:$4 sm:$0xff]   ;;  %v10076_v1 = vld [vmem:[%s15123_s3 + $0x184] ss:$8 sps:$4 sm:$0xff]   ;;  %v10178_v56 = vld [vmem:[%s15123_s3 + $0x280] ss:$8 sps:$4 sm:$0xff]  }
 0x233   : > { %v4101_v26 = vmul.f32 %v12984_v23, %v12984_v23  ;;  %v12997_v12 = vadd.f32 %v12812_v60, %v3950_v31  ;;  %v4120_v51 = vmul.f32 %v4100_v35, %v12949_v0  ;;  %v3951_v62 = vadd.f32 %v3910_v59, %v3616_v33  ;;  %v3597_v31 = vpop.f32.mrf.mxu1  ;;  %5857 = vmatprep.subr.bf16.mxu0 %v10073_v38 }
 0x234   : > { %v3912_v24 = vpop.f32.mrf.mxu0  ;;  %v4051_v16 = vmul.f32 %v12986_v15, %v12984_v23  ;;  %v4137_v25 = vadd.f32 %v4119_v47, %v4117_v14  ;;  %v4082_v54 = vadd.f32 %v4050_v30, %v4048_v29  ;;  %v3207_v35 = vadd.f32 %v15377_v40, %v12866_v39  ;;  %4936 = vmatprep.subr.bf16.mxu1 %v10076_v1  ;;  %v13040_v39 = vpop.permute.xlu0 %4019 }
 0x235   : > { %v4052_v46 = vmul.f32 %v12986_v15, %v12997_v12  ;;  %v4102_v9 = vmul.f32 %v12997_v12, %v12997_v12  ;;  %v3952_v50 = vadd.f32 %v3912_v24, %v3617_v57  ;;  %v4152_v63 = vadd.f32 %v4120_v51, %v4118_v5  ;;  %v13020_v57 = vpop.permute.xlu1 %4014  ;;  %15378 = vst [vmem:[#allocation18_spill] sm:$0xff] %v13040_v39 }
 0x236   : > { %v13010_v21 = vadd.f32 %v12799_v52, %v3951_v62  ;;  %v3916_v43 = vpop.f32.mrf.mxu0  ;;  %v4068_v33 = vadd.f32 %v4067_v20, %v4051_v16  ;;  %v4121_v13 = vmul.f32 %v4101_v26, %v12986_v15  ;;  %15376 = vst [vmem:[#allocation32_spill] sm:$0xff] %v13020_v57  ;;  %v3624_v47 = vadd.f32 %v3595_v8, %v3206_v6 }
 0x237   : > { %v4083_v10 = vadd.f32 %v4082_v54, %v4052_v46  ;;  %v4122_v34 = vmul.f32 %v4102_v9, %v12986_v15  ;;  %v13023_v7 = vadd.f32 %v12812_v60, %v3952_v50  ;;  %v3953_v18 = vadd.f32 %v3916_v43, %v12932_v58  ;;  %4937 = vmatpush2.bf16.msra.mxu1 %v10074_v53  ;;  %v10082_v54 = vld [vmem:[%s15123_s3 + $0x274] ss:$8 sps:$4 sm:$0xff]   ;;  %v3601_v50 = vpop.f32.mrf.mxu1 }
 0x238   : > { %v4103_v30 = vmul.f32 %v13010_v21, %v13010_v21  ;;  %v4053_v59 = vmul.f32 %v13020_v57, %v13010_v21  ;;  %v4138_v20 = vadd.f32 %v4137_v25, %v4121_v13  ;;  %v3918_v14 = vpop.f32.mrf.mxu0  ;;  %v3208_v6 = vadd.f32 %v12748_v36, %v12870_v11  ;;  %5473 = vmatprep.subr.bf16.mxu1 %v10082_v54 }
 0x239   : > { %v4153_v26 = vadd.f32 %v4152_v63, %v4122_v34  ;;  %v4104_v58 = vmul.f32 %v13023_v7, %v13023_v7  ;;  %v13038_v29 = vadd.f32 %v12799_v52, %v3953_v18  ;;  %v4054_v51 = vmul.f32 %v13020_v57, %v13023_v7 }
 0x23a   : > { %v4069_v5 = vadd.f32 %v4068_v33, %v4053_v59  ;;  %v4123_v62 = vmul.f32 %v4103_v30, %v13020_v57  ;;  %v3954_v24 = vadd.f32 %v3918_v14, %v12941_v17  ;;  %v3920_v16 = vpop.f32.mrf.mxu0  ;;  %v3625_v9 = vadd.f32 %v3597_v31, %v3207_v35 }
 0x23b   : > { %v4124_v8 = vmul.f32 %v4104_v58, %v13020_v57  ;;  %v4055_v25 = vmul.f32 %v13040_v39, %v13038_v29  ;;  %v4105_v46 = vmul.f32 %v13038_v29, %v13038_v29  ;;  %v3955_v36 = vadd.f32 %v3920_v16, %v12944_v3 }
 0x23c   : > { %v4139_v17 = vadd.f32 %v4138_v20, %v4123_v62  ;;  %v13057_v63 = vadd.f32 %v12812_v60, %v3954_v24  ;;  %v3922_v11 = vpop.f32.mrf.mxu0  ;;  %v3209_v43 = vadd.f32 %v12772_v32, %v12884_v48  ;;  %v4084_v53 = vadd.f32 %v4083_v10, %v4054_v51  ;;  %v13071_v32 = vpop.permute.xlu1 %4024 }
 0x23d   : > { %v4070_v33 = vadd.f32 %v4069_v5, %v4055_v25  ;;  %v4125_v13 = vmul.f32 %v4105_v46, %v13040_v39  ;;  %v3956_v38 = vadd.f32 %v3922_v11, %v12954_v41  ;;  %v13069_v1 = vadd.f32 %v12799_v52, %v3955_v36  ;;  %15379 = vst [vmem:[#allocation26_spill] sm:$0xff] %v13071_v32  ;;  %v3603_v10 = vpop.f32.mrf.mxu1  ;;  %v13088_v5 = vpop.permute.xlu0 %4029 }
 0x23e   : > { %v4056_v34 = vmul.f32 %v13040_v39, %v13057_v63  ;;  %v4106_v18 = vmul.f32 %v13057_v63, %v13057_v63  ;;  %v3926_v3 = vpop.f32.mrf.mxu0  ;;  %v4154_v40 = vadd.f32 %v4153_v26, %v4124_v8  ;;  %v3626_v26 = vadd.f32 %v3601_v50, %v3208_v6  ;;  %15380 = vst [vmem:[#allocation20_spill] sm:$0xff] %v13088_v5 }
 0x23f   : > { %v4140_v35 = vadd.f32 %v4139_v17, %v4125_v13  ;;  %v13074_v48 = vadd.f32 %v12812_v60, %v3956_v38  ;;  %v3957_v41 = vadd.f32 %v3926_v3, %v12963_v55  ;;  %v4057_v59 = vmul.f32 %v13071_v32, %v13069_v1  ;;  %v3605_v17 = vpop.f32.mrf.mxu1 }
 0x240   : > { %v4085_v31 = vadd.f32 %v4084_v53, %v4056_v34  ;;  %v4126_v30 = vmul.f32 %v4106_v18, %v13040_v39  ;;  %v4107_v20 = vmul.f32 %v13069_v1, %v13069_v1  ;;  %v3928_v14 = vpop.f32.mrf.mxu0  ;;  %v3210_v6 = vadd.f32 %v12808_v37, %v12889_v44 }
 0x241   : > { %v4108_v58 = vmul.f32 %v13074_v48, %v13074_v48  ;;  %v13085_v51 = vadd.f32 %v12799_v52, %v3957_v41  ;;  %v3958_v55 = vadd.f32 %v3928_v14, %v12990_v2  ;;  %v4071_v24 = vadd.f32 %v4070_v33, %v4057_v59 }
 0x242   : > { %v4155_v62 = vadd.f32 %v4154_v40, %v4126_v30  ;;  %v4127_v16 = vmul.f32 %v4107_v20, %v13071_v32  ;;  %v4058_v8 = vmul.f32 %v13071_v32, %v13074_v48  ;;  %v3930_v25 = vpop.f32.mrf.mxu0  ;;  %v3627_v50 = vadd.f32 %v3603_v10, %v3209_v43 }
 0x243   : > { %v4128_v46 = vmul.f32 %v4108_v58, %v13071_v32  ;;  %v4059_v54 = vmul.f32 %v13088_v5, %v13085_v51  ;;  %v4109_v2 = vmul.f32 %v13085_v51, %v13085_v51  ;;  %v13101_v11 = vadd.f32 %v12812_v60, %v3958_v55 }
 0x244   : > { %v4141_v36 = vadd.f32 %v4140_v35, %v4127_v16  ;;  %v3959_v33 = vadd.f32 %v3930_v25, %v3624_v47  ;;  %v3932_v13 = vpop.f32.mrf.mxu0  ;;  %v3211_v38 = vadd.f32 %v12853_v19, %v12913_v22  ;;  %v4086_v34 = vadd.f32 %v4085_v31, %v4058_v8  ;;  %v13113_v47 = vpop.permute.xlu1 %4034 }
 0x245   : > { %v4072_v37 = vadd.f32 %v4071_v24, %v4059_v54  ;;  %v4129_v44 = vmul.f32 %v4109_v2, %v13088_v5  ;;  %v3960_v53 = vadd.f32 %v3932_v13, %v3625_v9  ;;  %v4060_v18 = vmul.f32 %v13088_v5, %v13101_v11  ;;  %15381 = vst [vmem:[#allocation19_spill] sm:$0xff] %v13113_v47  ;;  %v3607_v9 = vpop.f32.mrf.mxu1 }
 0x246   : > { %v4110_v43 = vmul.f32 %v13101_v11, %v13101_v11  ;;  %v13111_v3 = vadd.f32 %v12799_v52, %v3959_v33  ;;  %v3936_v40 = vpop.f32.mrf.mxu0  ;;  %v4156_v35 = vadd.f32 %v4155_v62, %v4128_v46  ;;  %v3628_v14 = vadd.f32 %v3605_v17, %v3210_v6 }
 0x247   : > { %v4142_v41 = vadd.f32 %v4141_v36, %v4129_v44  ;;  %v13116_v19 = vadd.f32 %v12812_v60, %v3960_v53  ;;  %v3961_v22 = vadd.f32 %v3936_v40, %v3626_v26  ;;  %v4087_v10 = vadd.f32 %v4086_v34, %v4060_v18  ;;  %v13128_v26 = vpop.permute.xlu0 %4039 }
 0x248   : > { %v4130_v31 = vmul.f32 %v4110_v43, %v13088_v5  ;;  %v4061_v30 = vmul.f32 %v13113_v47, %v13111_v3  ;;  %v4111_v59 = vmul.f32 %v13111_v3, %v13111_v3  ;;  %v3938_v20 = vpop.f32.mrf.mxu0  ;;  %15382 = vst [vmem:[#allocation29_spill] sm:$0xff] %v13128_v26  ;;  %v3629_v54 = vadd.f32 %v3607_v9, %v3211_v38  ;;  %v13149_v40 = vpop.permute.xlu1 %4044 }
 0x249   : > { %v4112_v58 = vmul.f32 %v13116_v19, %v13116_v19  ;;  %v13126_v55 = vadd.f32 %v12799_v52, %v3961_v22  ;;  %v3962_v62 = vadd.f32 %v3938_v20, %v3627_v50  ;;  %v4062_v25 = vmul.f32 %v13113_v47, %v13116_v19  ;;  %15383 = vst [vmem:[#allocation22_spill] sm:$0xff] %v13149_v40 }
 0x24a   : > { %v4157_v24 = vadd.f32 %v4156_v35, %v4130_v31  ;;  %v4073_v16 = vadd.f32 %v4072_v37, %v4061_v30  ;;  %v4131_v8 = vmul.f32 %v4111_v59, %v13113_v47  ;;  %v3940_v46 = vpop.f32.mrf.mxu0 }
 0x24b   : > { %v4132_v6 = vmul.f32 %v4112_v58, %v13113_v47  ;;  %v4063_v2 = vmul.f32 %v13128_v26, %v13126_v55  ;;  %v4113_v17 = vmul.f32 %v13126_v55, %v13126_v55  ;;  %v13139_v36 = vadd.f32 %v12812_v60, %v3962_v62 }
 0x24c   : > { %v4143_v50 = vadd.f32 %v4142_v41, %v4131_v8  ;;  %v3963_v33 = vadd.f32 %v3940_v46, %v3628_v14  ;;  %v3942_v13 = vpop.f32.mrf.mxu0  ;;  %v4088_v34 = vadd.f32 %v4087_v10, %v4062_v25 }
 0x24d   : > { %v4074_v37 = vadd.f32 %v4073_v16, %v4063_v2  ;;  %v4133_v44 = vmul.f32 %v4113_v17, %v13128_v26  ;;  %v3964_v53 = vadd.f32 %v3942_v13, %v3629_v54  ;;  %v4064_v38 = vmul.f32 %v13128_v26, %v13139_v36 }
 0x24e   : > { %v4114_v18 = vmul.f32 %v13139_v36, %v13139_v36  ;;  %v13147_v43 = vadd.f32 %v12799_v52, %v3963_v33  ;;  %v4158_v35 = vadd.f32 %v4157_v24, %v4132_v6 }
 0x24f   : > { %v4144_v41 = vadd.f32 %v4143_v50, %v4133_v44  ;;  %v13152_v22 = vadd.f32 %v12812_v60, %v3964_v53  ;;  %v4089_v9 = vadd.f32 %v4088_v34, %v4064_v38 }
 0x250   : > { %v4134_v31 = vmul.f32 %v4114_v18, %v13128_v26  ;;  %v4065_v10 = vmul.f32 %v13149_v40, %v13147_v43  ;;  %v4115_v30 = vmul.f32 %v13147_v43, %v13147_v43 }
 0x251   : > { %v4066_v52 = vmul.f32 %v13149_v40, %v13152_v22  ;;  %v4116_v59 = vmul.f32 %v13152_v22, %v13152_v22 }
 0x252   : > { %v4159_v20 = vadd.f32 %v4158_v35, %v4134_v31  ;;  %v4075_v14 = vadd.f32 %v4074_v37, %v4065_v10  ;;  %v4135_v60 = vmul.f32 %v4115_v30, %v13149_v40 }
 0x253   : > { %v4090_v58 = vadd.f32 %v4089_v9, %v4066_v52  ;;  %v4136_v62 = vmul.f32 %v4116_v59, %v13149_v40 }
 0x254   : > { %v4076_v24 = vrot.slane %v4075_v14, 4  ;;  %v4145_v16 = vadd.f32 %v4144_v41, %v4135_v60 }
 0x255   : > { %v4091_v8 = vrot.slane %v4090_v58, 4  ;;  %v4160_v25 = vadd.f32 %v4159_v20, %v4136_v62 }
 0x256   : > { %v4077_v46 = vadd.f32 %v4076_v24, %v4075_v14  ;;  %v4146_v54 = vrot.slane %v4145_v16, 4 }
 0x257   : > { %v4092_v6 = vadd.f32 %v4091_v8, %v4090_v58  ;;  %v4161_v2 = vrot.slane %v4160_v25, 4 }
 0x258   : > { %v4078_v17 = vrot.slane %v4077_v46, 2  ;;  %v4147_v50 = vadd.f32 %v4146_v54, %v4145_v16 }
 0x259   : > { %v4093_v33 = vrot.slane %v4092_v6, 2  ;;  %v4162_v13 = vadd.f32 %v4161_v2, %v4160_v25 }
 0x25a   : > { %v4079_v44 = vadd.f32 %v4078_v17, %v4077_v46  ;;  %v4148_v53 = vrot.slane %v4147_v50, 2 }
 0x25b   : > { %v4094_v37 = vadd.f32 %v4093_v33, %v4092_v6  ;;  %v4163_v34 = vrot.slane %v4162_v13, 2 }
 0x25c   : > { %v4080_v38 = vrot.slane %v4079_v44, 1  ;;  %v4149_v18 = vadd.f32 %v4148_v53, %v4147_v50 }
 0x25d   : > { %v4095_v35 = vrot.slane %v4094_v37, 1  ;;  %v4164_v9 = vadd.f32 %v4163_v34, %v4162_v13 }
 0x25e   : > { %v4081_v31 = vadd.f32 %v4080_v38, %v4079_v44  ;;  %v4150_v41 = vrot.slane %v4149_v18, 1 }
 0x25f   : > { %v4096_v10 = vadd.f32 %v4095_v35, %v4094_v37  ;;  %v4165_v30 = vrot.slane %v4164_v9, 1 }
 0x260   : > { %v4151_v52 = vadd.f32 %v4150_v41, %v4149_v18  ;;  %v13165_v59 = vmul.f32 0.015625, %v4081_v31 }
 0x261   : > { %v4166_v20 = vadd.f32 %v4165_v30, %v4164_v9  ;;  %v13167_v14 = vmul.f32 0.015625, %v4096_v10 }
 0x262   : > { %v4169_v60 = vmul.f32 0.015625, %v4151_v52  ;;  %v4171_v58 = vmul.f32 %v13165_v59, %v13165_v59  ;;  %v4177_v62 = vsub.f32 %v12947_v61, %v13165_v59  ;;  %v4183_v24 = vsub.f32 %v13038_v29, %v13165_v59 }
 0x263   : > { %v4193_v16 = vsub.f32 %v13147_v43, %v13165_v59  ;;  %v4170_v8 = vmul.f32 0.015625, %v4166_v20  ;;  %v4172_v25 = vmul.f32 %v13167_v14, %v13167_v14  ;;  %v4179_v54 = vsub.f32 %v12984_v23, %v13165_v59 }
 0x264   : > { %v4173_v46 = vsub.f32 %v4169_v60, %v4171_v58  ;;  %v4180_v6 = vsub.f32 %v12997_v12, %v13167_v14  ;;  %v4184_v61 = vsub.f32 %v13057_v63, %v13167_v14  ;;  %v4185_v29 = vsub.f32 %v13069_v1, %v13165_v59 }
 0x265   : > { %v4174_v2 = vsub.f32 %v4170_v8, %v4172_v25  ;;  %v4187_v43 = vsub.f32 %v13085_v51, %v13165_v59  ;;  %v4188_v50 = vsub.f32 %v13101_v11, %v13167_v14  ;;  %v4189_v23 = vsub.f32 %v13111_v3, %v13165_v59 }
 0x266   : > { %v4195_v17 = vadd.f32 1e-05, %v4173_v46  ;;  %v4191_v12 = vsub.f32 %v13126_v55, %v13165_v59  ;;  %v4192_v63 = vsub.f32 %v13139_v36, %v13167_v14  ;;  %v4175_v1 = vsub.f32 %v12918_v42, %v13165_v59 }
 0x267   : > { %v4196_v33 = vadd.f32 1e-05, %v4174_v2  ;;  %v4176_v51 = vsub.f32 %v12935_v28, %v13167_v14  ;;  %v4181_v11 = vsub.f32 %v13010_v21, %v13165_v59  ;;  %v4182_v3 = vsub.f32 %v13023_v7, %v13167_v14 }
 0x268   : > { %10442 = vrsqrt.f32 %v4195_v17  ;;  %v4178_v55 = vsub.f32 %v12968_v45, %v13167_v14  ;;  %v4186_v36 = vsub.f32 %v13074_v48, %v13167_v14  ;;  %v4190_v44 = vsub.f32 %v13116_v19, %v13167_v14 }
 0x269   : > { %10444 = vrsqrt.f32 %v4196_v33  ;;  %v4194_v53 = vsub.f32 %v13152_v22, %v13167_v14 }
 0x275   : > { %v13205_v13 = vpop.eup %10442 }
 0x276   : > { %v13215_v37 = vpop.eup %10444  ;;  %v4217_v34 = vmul.f32 %v13205_v13, %v4193_v16  ;;  %v4201_v38 = vmul.f32 %v13205_v13, %v4177_v62  ;;  %v4203_v18 = vmul.f32 %v13205_v13, %v4179_v54  ;;  %v4207_v35 = vmul.f32 %v13205_v13, %v4183_v24 }
 0x277   : > { %v4202_v45 = vmul.f32 %v13215_v37, %v4178_v55  ;;  %v4204_v48 = vmul.f32 %v13215_v37, %v4180_v6  ;;  %v4208_v9 = vmul.f32 %v13215_v37, %v4184_v61  ;;  %v4209_v19 = vmul.f32 %v13205_v13, %v4185_v29 }
 0x278   : > { %v4237_v31 = vmax.f32 %v4217_v34, 0.0  ;;  %v4210_v22 = vmul.f32 %v13215_v37, %v4186_v36  ;;  %v4211_v41 = vmul.f32 %v13205_v13, %v4187_v43  ;;  %v4212_v10 = vmul.f32 %v13215_v37, %v4188_v50 }
 0x279   : > { %v4213_v30 = vmul.f32 %v13205_v13, %v4189_v23  ;;  %v4214_v52 = vmul.f32 %v13215_v37, %v4190_v44  ;;  %v4215_v20 = vmul.f32 %v13205_v13, %v4191_v12  ;;  %v4216_v60 = vmul.f32 %v13215_v37, %v4192_v63 }
 0x27a   : > { %v4218_v58 = vmul.f32 %v13215_v37, %v4194_v53  ;;  %v4221_v62 = vmax.f32 %v4201_v38, 0.0  ;;  %v4222_v24 = vmax.f32 %v4202_v45, 0.0  ;;  %v4223_v16 = vmax.f32 %v4203_v18, 0.0 }
 0x27b   : > { %v4224_v8 = vmax.f32 %v4204_v48, 0.0  ;;  %v4227_v25 = vmax.f32 %v4207_v35, 0.0  ;;  %v4228_v46 = vmax.f32 %v4208_v9, 0.0  ;;  %v4229_v54 = vmax.f32 %v4209_v19, 0.0 }
 0x27c   : > { %v4230_v6 = vmax.f32 %v4210_v22, 0.0  ;;  %v4231_v61 = vmax.f32 %v4211_v41, 0.0  ;;  %v4232_v2 = vmax.f32 %v4212_v10, 0.0  ;;  %v4233_v29 = vmax.f32 %v4213_v30, 0.0 }
 0x27d   : > { %v4234_v43 = vmax.f32 %v4214_v52, 0.0  ;;  %v4235_v17 = vmax.f32 %v4215_v20, 0.0  ;;  %v4236_v50 = vmax.f32 %v4216_v60, 0.0  ;;  %v4238_v23 = vmax.f32 %v4218_v58, 0.0 }
 0x27e   : > { %v13233_v12 = vpack.c.bf16 %v4222_v24, %v4221_v62  ;;  %v13235_v63 = vpack.c.bf16 %v4224_v8, %v4223_v16  ;;  %v13237_v33 = vpack.c.bf16 %v4228_v46, %v4227_v25  ;;  %v13239_v55 = vpack.c.bf16 %v4230_v6, %v4229_v54 }
 0x27f   : > { %v9470_v36 = vpack.c.bf16 %v4232_v2, %v4231_v61  ;;  %v13241_v44 = vpack.c.bf16 %v4234_v43, %v4233_v29  ;;  %v13243_v53 = vpack.c.bf16 %v4236_v50, %v4235_v17  ;;  %v13245_v34 = vpack.c.bf16 %v4238_v23, %v4237_v31 }
 0x280   : > { %v4301_v38 = vshrl.u32 %v13233_v12, 16  ;;  %v4304_v18 = vshll.u32 %v13233_v12, 16  ;;  %v4311_v35 = vshrl.u32 %v13235_v63, 16  ;;  %v4314_v45 = vshll.u32 %v13235_v63, 16 }
 0x281   : > { %v4331_v48 = vshrl.u32 %v13237_v33, 16  ;;  %v4334_v9 = vshll.u32 %v13237_v33, 16  ;;  %v4341_v19 = vshrl.u32 %v13239_v55, 16  ;;  %v4344_v22 = vshll.u32 %v13239_v55, 16 }
 0x282   : > { %v4303_v31 = vrot.slane %v4301_v38, 6  ;;  %v4306_v41 = vrot.slane %v4304_v18, 7  ;;  %v4313_v10 = vrot.slane %v4311_v35, 6  ;;  %v4316_v30 = vrot.slane %v4314_v45, 7 }
 0x283   : > { %v4333_v52 = vrot.slane %v4331_v48, 6  ;;  %v4336_v20 = vrot.slane %v4334_v9, 7  ;;  %v4343_v60 = vrot.slane %v4341_v19, 6  ;;  %v4346_v58 = vrot.slane %v4344_v22, 7 }
 0x284   : > { %v13263_v62 = vor.u32 %v4306_v41, %v4303_v31  ;;  %v13265_v24 = vor.u32 %v4316_v30, %v4313_v10  ;;  %v4351_v16 = vshrl.u32 %v9470_v36, 16  ;;  %v4354_v8 = vshll.u32 %v9470_v36, 16 }
 0x285   : > { %v13273_v46 = vor.u32 %v4336_v20, %v4333_v52  ;;  %v4347_v54 = vor.u32 %v4346_v58, %v4343_v60  ;;  %v4361_v6 = vshrl.u32 %v13241_v44, 16  ;;  %v4364_v61 = vshll.u32 %v13241_v44, 16 }
 0x286   : > { %v4309_v2 = vrot.slane %v13263_v62, 4  ;;  %v4353_v29 = vrot.slane %v4351_v16, 6  ;;  %v4356_v43 = vrot.slane %v4354_v8, 7  ;;  %v4371_v17 = vshrl.u32 %v13243_v53, 16 }
 0x287   : > { %v4339_v50 = vrot.slane %v13273_v46, 4  ;;  %v4349_v23 = vrot.slane %v4347_v54, 4  ;;  %v4363_v63 = vrot.slane %v4361_v6, 6  ;;  %v4366_v36 = vrot.slane %v4364_v61, 7 }
 0x288   : > { %v4318_v18 = vsel %vm13269_vm11, %v4309_v2, %v13265_v24  ;;  %v4357_v48 = vor.u32 %v4356_v43, %v4353_v29  ;;  %v4373_v31 = vrot.slane %v4371_v17, 6  ;;  %v4374_v44 = vshll.u32 %v13243_v53, 16 }
 0x289   : > { %v4348_v41 = vsel %vm13269_vm11, %v4339_v50, %v4347_v54  ;;  %v4367_v10 = vor.u32 %v4366_v36, %v4363_v63  ;;  %v4381_v30 = vshrl.u32 %v13245_v34, 16  ;;  %v4384_v52 = vshll.u32 %v13245_v34, 16  ;;  %4404 = vst [vmem:[#allocation2 + $0x18] sm:$0xff] %v4318_v18 }
 0x28a   : > { %v4358_v20 = vsel %vm13269_vm11, %v4349_v23, %v4357_v48  ;;  %v4359_v60 = vrot.slane %v4357_v48, 4  ;;  %v4376_v58 = vrot.slane %v4374_v44, 7  ;;  %4407 = vst [vmem:[#allocation2 + $0x8] sm:$0xff] %v4348_v41  ;;  %v4431_v63 = vrot.slane %v4314_v45, 6  ;;  %v4412_v48 = vld [vmem:[#allocation2] sm:$0x33] }
 0x28b   : > { %v4369_v8 = vrot.slane %v4367_v10, 4  ;;  %v4383_v2 = vrot.slane %v4381_v30, 6  ;;  %v4386_v29 = vrot.slane %v4384_v52, 7  ;;  %4408 = vst [vmem:[#allocation2 + $0x38] sm:$0xff] %v4358_v20  ;;  %v4469_v36 = vrot.slane %v4351_v16, 7 }
 0x28c   : > { %v4368_v54 = vsel %vm13269_vm11, %v4359_v60, %v4367_v10  ;;  %v4377_v43 = vor.u32 %v4376_v58, %v4373_v31  ;;  %v4474_v41 = vrot.slane %v4364_v61, 6  ;;  %v4199_v30 = vmul.f32 %v13205_v13, %v4175_v1 }
 0x28d   : > { %v4387_v50 = vor.u32 %v4386_v29, %v4383_v2  ;;  %4409 = vst [vmem:[#allocation2 + $0x28] sm:$0xff] %v4368_v54  ;;  %v4200_v31 = vmul.f32 %v13215_v37, %v4176_v51  ;;  %v4436_v45 = vrot.slane %v4311_v35, 7  ;;  %v4205_v16 = vmul.f32 %v13205_v13, %v4181_v11 }
 0x28e   : > { %v4378_v23 = vsel %vm13269_vm11, %v4369_v8, %v4377_v43  ;;  %v4379_v18 = vrot.slane %v4377_v43, 4  ;;  %v4479_v42 = vrot.slane %v4361_v6, 7  ;;  %v4219_v60 = vmax.f32 %v4199_v30, 0.0 }
 0x28f   : > { %v4389_v20 = vrot.slane %v4387_v50, 4  ;;  %4410 = vst [vmem:[#allocation2 + $0x48] sm:$0xff] %v4378_v23  ;;  %v4206_v28 = vmul.f32 %v13215_v37, %v4182_v3  ;;  %v4220_v59 = vmax.f32 %v4200_v31, 0.0  ;;  %v4225_v2 = vmax.f32 %v4205_v16, 0.0 }
 0x290   : > { %v4388_v61 = vsel %vm13269_vm11, %v4379_v18, %v4387_v50  ;;  %v4433_v10 = vld [vmem:[#allocation2 + $0x18] sm:$0x44]  ;;  %v4438_v1 = vld [vmem:[#allocation2 + $0x18] sm:$0x88]  ;;  %v8854_v14 = vrot.slane %v4334_v9, 10  ;;  %v4458_v3 = vrot.slane %v4341_v19, 7 }
 0x291   : > { %4411 = vst [vmem:[#allocation2 + $0x10] sm:$0xff] %v4388_v61  ;;  %v4413_v35 = vsel %vm10816_vm15, %v4389_v20, %v4412_v48  ;;  %v4434_v21 = vsel %vm15290_vm13, %v4431_v63, %v4433_v10  ;;  %v4439_v13 = vsel %vm15291_vm6, %v4436_v45, %v4438_v1  ;;  %v4455_v8 = vld [vmem:[#allocation2 + $0x8] sm:$0x11]  ;;  %v4460_v6 = vld [vmem:[#allocation2 + $0x8] sm:$0x22]  ;;  %v4226_v7 = vmax.f32 %v4206_v28, 0.0 }
 0x292   : > { %4414 = vst [vmem:[#allocation2] sm:$0x33] %v4413_v35  ;;  %4435 = vst [vmem:[#allocation2 + $0x18] sm:$0x44] %v4434_v21  ;;  %v4484_v37 = vrot.slane %v4374_v44, 6  ;;  %v13326_v29 = vpack.c.bf16 %v4220_v59, %v4219_v60  ;;  %v8855_v54 = vrot.slane %v4344_v22, 10  ;;  %v4456_v30 = vsel %vm11130_vm0, %v8854_v14, %v4455_v8 }
 0x293   : > { %4440 = vst [vmem:[#allocation2 + $0x18] sm:$0x88] %v4439_v13  ;;  %v4466_v43 = vld [vmem:[#allocation2 + $0x38] sm:$0x22]  ;;  %v4471_v50 = vld [vmem:[#allocation2 + $0x38] sm:$0x44]  ;;  %v13330_v18 = vpack.c.bf16 %v4226_v7, %v4225_v2  ;;  %v4461_v9 = vsel %vm15284_vm14, %v4458_v3, %v4460_v6 }
 0x294   : > { %v4476_v63 = vld [vmem:[#allocation2 + $0x28] sm:$0x44]  ;;  %v4481_v23 = vld [vmem:[#allocation2 + $0x28] sm:$0x88]  ;;  %v4472_v19 = vsel %vm15288_vm3, %v4469_v36, %v4471_v50  ;;  %v4292_v22 = vshrl.u32 %v13326_v29, 16  ;;  %v4295_v31 = vshll.u32 %v13326_v29, 16 }
 0x295   : > { %v4477_v44 = vsel %vm15290_vm13, %v4474_v41, %v4476_v63  ;;  %v4482_v55 = vsel %vm15291_vm6, %v4479_v42, %v4481_v23  ;;  %4457 = vst [vmem:[#allocation2 + $0x8] sm:$0x11] %v4456_v30  ;;  %4462 = vst [vmem:[#allocation2 + $0x8] sm:$0x22] %v4461_v9  ;;  %v4321_v16 = vshrl.u32 %v13330_v18, 16  ;;  %v4324_v36 = vshll.u32 %v13330_v18, 16 }
 0x296   : > { %4473 = vst [vmem:[#allocation2 + $0x38] sm:$0x44] %v4472_v19  ;;  %4483 = vst [vmem:[#allocation2 + $0x28] sm:$0x88] %v4482_v55  ;;  %v4486_v45 = vld [vmem:[#allocation2 + $0x48] sm:$0x88]  ;;  %v4467_v41 = vsel %vm15287_vm7, %v8855_v54, %v4466_v43 }
 0x297   : > { %4478 = vst [vmem:[#allocation2 + $0x28] sm:$0x44] %v4477_v44  ;;  %v4487_v42 = vsel %vm10960_vm2, %v4484_v37, %v4486_v45  ;;  %v8856_v60 = vrot.slane %v4371_v17, 11  ;;  %v4294_v1 = vrot.slane %v4292_v22, 6  ;;  %v4297_v28 = vrot.slane %v4295_v31, 7 }
 0x298   : > { %4468 = vst [vmem:[#allocation2 + $0x38] sm:$0x22] %v4467_v41  ;;  %4488 = vst [vmem:[#allocation2 + $0x48] sm:$0x88] %v4487_v42  ;;  %v4492_v51 = vld [vmem:[#allocation2 + $0x10] sm:$0x11] }
 0x299   : > { %v8857_v35 = vrot.slane %v4384_v52, 10  ;;  %v4319_v58 = vrot.slane %v13265_v24, 4  ;;  %v4323_v21 = vrot.slane %v4321_v16, 6  ;;  %v4326_v59 = vrot.slane %v4324_v36, 7  ;;  %v4498_v8 = vld [vmem:[#allocation2] sm:$0x11] }
 0x29a   : > { %v4493_v13 = vsel %vm11043_vm4, %v8856_v60, %v4492_v51  ;;  %v4298_v6 = vor.u32 %v4297_v28, %v4294_v1  ;;  %v13357_v2 = vld [vmem:[#allocation2 + $0x18] sm:$0x77]  ;;  %v10454_v52 = vld [vmem:[#allocation2 + $0x60] sm:$0xee]  ;;  %v4415_v55 = vrot.slane %v4292_v22, 7  ;;  %v4441_v45 = vrot.slane %v4324_v36, 6 }
 0x29b   : > { %4494 = vst [vmem:[#allocation2 + $0x10] sm:$0x11] %v4493_v13  ;;  %v4499_v53 = vsel %vm11130_vm0, %v8857_v35, %v4498_v8  ;;  %v4507_v17 = vrot.slane %v13357_v2, 6  ;;  %v4327_v7 = vor.u32 %v4326_v59, %v4323_v21  ;;  %v4426_v42 = vrot.slane %v4301_v38, 7 }
 0x29c   : > { %4500 = vst [vmem:[#allocation2] sm:$0x11] %v4499_v53  ;;  %v4299_v34 = vrot.slane %v4298_v6, 4  ;;  %v4401_v14 = vsel %vm10795_vm10, %v4298_v6, %v10454_v52  ;;  %v13374_v48 = vld [vmem:[#allocation2 + $0x8] sm:$0xff]  ;;  %v8853_v35 = vrot.slane %v4321_v16, 11  ;;  %v13407_v6 = vld [vmem:[#allocation2 + $0x18] sm:$0xff] }
 0x29d   : > { %4402 = vst [vmem:[#allocation2 + $0x60] sm:$0xee] %v4401_v14  ;;  %v4509_v3 = vrot.slane %v4507_v17, 4  ;;  %v4328_v37 = vsel %vm13269_vm11, %v4319_v58, %v4327_v7  ;;  %v4329_v29 = vrot.slane %v4327_v7, 4  ;;  %v4514_v54 = vld [vmem:[#allocation2 + $0x28] sm:$0x88] }
 0x29e   : > { %v4308_v43 = vsel %vm13269_vm11, %v4299_v34, %v13263_v62  ;;  %4405 = vst [vmem:[#allocation2 + $0x50] sm:$0xff] %v4328_v37  ;;  %v8859_v50 = vrot.slane %v4514_v54, 10  ;;  %v4535_v41 = vld [vmem:[#allocation2 + $0x28] sm:$0xff]  ;;  %vm15398_vm10 = vsmask.f32 7424 }
 0x29f   : > { %4403 = vst [vmem:[#allocation2 + $0x58] sm:$0xff] %v4308_v43  ;;  %4513 = vst [vmem:[#allocation2 + $0x60] sm:$0x11] %v4509_v3  ;;  %v4338_v63 = vsel %vm13269_vm11, %v4329_v29, %v13273_v46  ;;  %v4515_v23 = vld [vmem:[#allocation2 + $0x48] sm:$0xff]  ;;  %v4534_v30 = vld [vmem:[#allocation2 + $0x38] sm:$0xff]  ;;  %v8852_v46 = vrot.slane %v4295_v31, 10 }
 0x2a0   : > { %4406 = vst [vmem:[#allocation2 + $0x20] sm:$0xff] %v4338_v63  ;;  %v4520_v18 = vrot.slane %v4515_v23, 6  ;;  %v13383_v1 = vcombine.high %v13374_v48, %v4534_v30  ;;  %v13388_v12 = vcombine.low %v13374_v48, %v4534_v30  ;;  %v13394_v58 = vcombine.high %v4535_v41, %v4515_v23  ;;  %vm15399_vm15 = vmmov %vm15398_vm10 }
 0x2a1   : > { %v13398_v21 = vcombine.low %v4535_v41, %v4515_v23  ;;  %v13418_v52 = vcombine.high %v4534_v30, %v4535_v41 }
 0x2a2   : > { %v4521_v19 = vsel %vm15306_vm1, %v8859_v50, %v4520_v18  ;;  %v4522_v44 = vrot.slane %v4520_v18, 4  ;;  %v4569_v28 = vld [vmem:[#allocation2 + $0x10] sm:$0x11]  ;;  %v5293_v20 = vrot.slane %v13383_v1, 1  ;;  %v5291_v59 = vrot.slane %v13388_v12, 1 }
 0x2a3   : > { %4525 = vst [vmem:[#allocation2] sm:$0xee] %v4521_v19  ;;  %v13400_v16 = vcombine.high %v4569_v28, %v4569_v28  ;;  %v5297_v61 = vrot.slane %v13394_v58, 1  ;;  %v5295_v13 = vrot.slane %v13398_v21, 1  ;;  %v4700_v11 = vshll.u32 %v13383_v1, 16 }
 0x2a4   : > { %v4417_v62 = vld [vmem:[#allocation2 + $0x60] sm:$0x22]  ;;  %4526 = vst [vmem:[#allocation2 + $0x30] sm:$0x33] %v4522_v44  ;;  %v4692_v53 = vshll.u32 %v13388_v12, 16  ;;  %v4712_v29 = vshrl.u32 %v13383_v1, 16  ;;  %v13435_v50 = vcombine.low %v4534_v30, %v4535_v41 }
 0x2a5   : > { %v4418_v25 = vsel %vm15284_vm14, %v4415_v55, %v4417_v62  ;;  %v4443_v60 = vld [vmem:[#allocation2 + $0x50] sm:$0x88]  ;;  %v5301_v8 = vrot.slane %v13400_v16, 1  ;;  %v13414_v7 = vsel %vm1395_vm8, %v5293_v20, %v5297_v61  ;;  %v13425_v24 = vsel %vm1395_vm8, %v5291_v59, %v5295_v13 }
 0x2a6   : > { %4419 = vst [vmem:[#allocation2 + $0x60] sm:$0x22] %v4418_v25  ;;  %v4428_v51 = vld [vmem:[#allocation2 + $0x58] sm:$0x44]  ;;  %v4423_v22 = vld [vmem:[#allocation2 + $0x58] sm:$0x22]  ;;  %v4444_v36 = vsel %vm10960_vm2, %v4441_v45, %v4443_v60 }
 0x2a7   : > { %v4429_v38 = vsel %vm15288_vm3, %v4426_v42, %v4428_v51  ;;  %v4424_v33 = vsel %vm15287_vm7, %v8852_v46, %v4423_v22  ;;  %4445 = vst [vmem:[#allocation2 + $0x50] sm:$0x88] %v4444_v36  ;;  %v4449_v31 = vld [vmem:[#allocation2 + $0x20] sm:$0x11]  ;;  %v13428_v14 = vsel %vm1395_vm8, %v5297_v61, %v5301_v8  ;;  %v4716_v54 = vshll.u32 %v13394_v58, 16 }
 0x2a8   : > { %4430 = vst [vmem:[#allocation2 + $0x58] sm:$0x44] %v4429_v38  ;;  %4425 = vst [vmem:[#allocation2 + $0x58] sm:$0x22] %v4424_v33  ;;  %v4450_v10 = vsel %vm11043_vm4, %v8853_v35, %v4449_v31  ;;  %v4704_v43 = vshrl.u32 %v13388_v12, 16  ;;  %v4708_v55 = vshll.u32 %v13398_v21, 16  ;;  %v13483_v31 = vcombine.low %v4569_v28, %v4569_v28 }
 0x2a9   : > { %4451 = vst [vmem:[#allocation2 + $0x20] sm:$0x11] %v4450_v10  ;;  %v13458_v45 = vrot.slane %v4700_v11, 1  ;;  %v13460_v41 = vrot.slane %v4692_v53, 1  ;;  %v10071_v36 = vld [vmem:[%s15123_s3 + $0x370] ss:$8 sps:$4 sm:$0xff]   ;;  %vm15400_vm4 = vmmov %vm15398_vm10 }
 0x2aa   : > { %v13475_v35 = vrot.slane %v4716_v54, 1  ;;  %v13481_v33 = vrot.slane %v4708_v55, 1  ;;  %v10077_v28 = vld [vmem:[%s15123_s3 + $0x360] ss:$8 sps:$4 sm:$0xff]   ;;  %vm15401_vm2 = vmmov %vm15400_vm4  ;;  %vm15405_vm3 = vsmask.f32 6400 }
 0x2ab   : > { %v4714_v8 = vor.u32 %v4712_v29, %v13458_v45  ;;  %v13487_v11 = vor.u32 %v4704_v43, %v13460_v41  ;;  %v10085_v43 = vld [vmem:[%s15123_s3 + $0x354] ss:$8 sps:$4 sm:$0xff]   ;;  %vm15402_vm0 = vmmov %vm15401_vm2  ;;  %v6064_v57 = vshll.u32 %v13418_v52, 16 }
 0x2ac   : > { %vm15403_vm14 = vmmov %vm15402_vm0 }
 0x2ad   : > { %v13437_v23 = vld [vmem:[#allocation2 + $0x60] sm:$0xff]  ;;  %v13502_v27 = vsel %vm15398_vm10, %v4714_v8, %v13475_v35  ;;  %vm15404_vm7 = vmmov %vm15402_vm0  ;;  %v6066_v0 = vrot.slane %v6064_v57, 2  ;;  %v6052_v57 = vshrl.u32 %v13435_v50, 16 }
 0x2ae   : > { %v13416_v34 = vld [vmem:[#allocation2 + $0x50] sm:$0xff]  ;;  %vm15407_vm13 = vmmov %vm15405_vm3 }
 0x2af   : > { %v4501_v3 = vld [vmem:[#allocation2 + $0x58] sm:$0xcc]  ;;  %vm15408_vm6 = vmmov %vm15405_vm3 }
 0x2b0   : > { %v13430_v37 = vld [vmem:[#allocation2 + $0x58] sm:$0xff]  ;;  %v8858_v63 = vrot.slane %v4501_v3, 10  ;;  %v13447_v44 = vld [vmem:[#allocation2 + $0x20] sm:$0xff]  ;;  %vm15414_vm12 = vmmov %vm15402_vm0 }
 0x2b1   : > { %v13441_v18 = vcombine.low %v13430_v37, %v13407_v6  ;;  %v13445_v19 = vcombine.high %v13430_v37, %v13407_v6  ;;  %v13452_v62 = vcombine.high %v13416_v34, %v13447_v44  ;;  %v13456_v30 = vcombine.low %v13416_v34, %v13447_v44  ;;  %vm15415_vm5 = vmmov %vm15402_vm0 }
 0x2b2   : > { %v4508_v42 = vsel %vm15306_vm1, %v8858_v63, %v4507_v17  ;;  %v10079_v17 = vld [vmem:[%s15123_s3 + $0x364] ss:$8 sps:$4 sm:$0xff]   ;;  %v13540_v60 = vcombine.low %v13447_v44, %v13374_v48  ;;  %vm15411_vm1 = vmmov %vm15405_vm3 }
 0x2b3   : > { %v4668_v25 = vshll.u32 %v13445_v19, 16  ;;  %v4656_v46 = vshll.u32 %v13441_v18, 16  ;;  %4512 = vst [vmem:[#allocation2 + $0x40] sm:$0xff] %v4508_v42  ;;  %v8892_v51 = vcombine.low %v4508_v42, %v13437_v23  ;;  %v8893_v22 = vcombine.high %v4508_v42, %v13437_v23  ;;  %vm15412_vm11 = vmmov %vm15411_vm1 }
 0x2b4   : > { %v4684_v2 = vshll.u32 %v13452_v62, 16  ;;  %v4676_v38 = vshll.u32 %v13456_v30, 16  ;;  %v4680_v3 = vshrl.u32 %v13445_v19, 16  ;;  %vm15416_vm10 = vmmov %vm15411_vm1 }
 0x2b5   : > { %v4670_v9 = vrot.slane %v4668_v25, 1  ;;  %v4651_v10 = vshll.u32 %v8892_v51, 16  ;;  %v4663_v61 = vshll.u32 %v8893_v22, 16  ;;  %5191 = vmatprep.mubr.bf16.mxu0 %v8893_v22  ;;  %v4658_v53 = vrot.slane %v4656_v46, 1 }
 0x2b6   : > { %5192 = vmatmul.mubr.bf16.vlgmr.msra.gmra.mxu0 %v8892_v51  ;;  %v4686_v54 = vrot.slane %v4684_v2, 1  ;;  %v4649_v42 = vshrl.u32 %v8892_v51, 16  ;;  %v4661_v29 = vshrl.u32 %v8893_v22, 16  ;;  %v4672_v2 = vshrl.u32 %v13441_v18, 16 }
 0x2b7   : > { %v4653_v55 = vrot.slane %v4651_v10, 1  ;;  %5858 = vmatpush1.bf16.msra.mxu0 %v10071_v36  ;;  %5201 = vmatprep.mubr.bf16.mxu0 %v13445_v19  ;;  %v4665_v25 = vrot.slane %v4663_v61, 1  ;;  %v4682_v46 = vor.u32 %v4680_v3, %v4670_v9  ;;  %v4678_v49 = vrot.slane %v4676_v38, 1 }
 0x2b8   : > { %5859 = vmatprep.subr.bf16.mxu0 %v10079_v17  ;;  %v4696_v51 = vshrl.u32 %v13452_v62, 16  ;;  %v15181_v22 = vrot.slane %v13435_v50, 1  ;;  %v10080_v17 = vld [vmem:[%s15123_s3 + $0x270] ss:$8 sps:$4 sm:$0xff]   ;;  %v4674_v61 = vor.u32 %v4672_v2, %v4658_v53  ;;  %v4688_v3 = vshrl.u32 %v13456_v30, 16 }
 0x2b9   : > { %v4666_v36 = vor.u32 %v4665_v25, %v4661_v29  ;;  %v4654_v10 = vor.u32 %v4653_v55, %v4649_v42  ;;  %v13511_v38 = vcombine.low %v13407_v6, %v13416_v34  ;;  %v10089_v55 = vld [vmem:[%s15123_s3 + $0x264] ss:$8 sps:$4 sm:$0xff]   ;;  %v13522_v2 = vcombine.high %v13407_v6, %v13416_v34 }
 0x2ba   : > { %v4698_v63 = vor.u32 %v4696_v51, %v4686_v54  ;;  %v13513_v29 = vld [vmem:[#allocation2 + $0x40] sm:$0xee] }
 0x2bb   : > { %5860 = vmatpush1.bf16.msra.mxu0 %v10077_v28  ;;  %v4671_v8 = vsel %vm15399_vm15, %v4666_v36, %v4670_v9  ;;  %v4659_v42 = vsel %vm15400_vm4, %v4654_v10, %v4658_v53  ;;  %v5576_v25 = vld [vmem:[#allocation2 + $0x60] sm:$0xee]  ;;  %v9000_v51 = vcombine.low %v13513_v29, %v13437_v23  ;;  %v10083_v28 = vld [vmem:[%s15123_s3 + $0x350] ss:$8 sps:$4 sm:$0xff]   ;;  %v4687_v9 = vsel %vm15401_vm2, %v4682_v46, %v4686_v54  ;;  %vm15417_vm15 = vmmov %vm15411_vm1 }
 0x2bc   : > { %4938 = vmatprep.mubr.bf16.mxu1 %v4671_v8  ;;  %5861 = vmatprep.subr.bf16.mxu0 %v10085_v43  ;;  %v4690_v53 = vor.u32 %v4688_v3, %v4678_v49  ;;  %v13531_v36 = vcombine.low %v5576_v25, %v13430_v37  ;;  %v5282_v10 = vrot.slane %v13441_v18, 1  ;;  %v10092_v6 = vld [vmem:[%s15123_s3 + $0x344] ss:$8 sps:$4 sm:$0xff]   ;;  %v15183_v8 = vrot.slane %v13452_v62, 1  ;;  %v10087_v43 = vld [vmem:[%s15123_s3 + $0x260] ss:$8 sps:$4 sm:$0xff]   ;;  %vm15418_vm4 = vmmov %vm15411_vm1 }
 0x2bd   : > { %4939 = vmatmul.mubr.bf16.vlgmr.msra.gmra.mxu1 %v4659_v42  ;;  %v5281_v34 = vrot.slane %v9000_v51, 1  ;;  %v5287_v54 = vrot.slane %v13456_v30, 1  ;;  %v4679_v46 = vsel %vm15402_vm0, %v4674_v61, %v4678_v49  ;;  %v4703_v3 = vsel %vm15403_vm14, %v4698_v63, %v13458_v45  ;;  %vm15419_vm2 = vmmov %vm15402_vm0 }
 0x2be   : > { %5474 = vmatpush1.bf16.msra.mxu1 %v10080_v17  ;;  %4948 = vmatprep.mubr.bf16.mxu1 %v4687_v9  ;;  %v13550_v42 = vcombine.high %v5576_v25, %v13430_v37  ;;  %v5299_v51 = vrot.slane %v13483_v31, 1  ;;  %v10095_v17 = vld [vmem:[%s15123_s3 + $0x254] ss:$8 sps:$4 sm:$0xff]   ;;  %v13559_v9 = vcombine.high %v13447_v44, %v13374_v48  ;;  %v15182_v45 = vrot.slane %v13540_v60, 1 }
 0x2bf   : > { %5202 = vmatmul.mubr.bf16.gmra.mxu0 %v13441_v18  ;;  %5475 = vmatprep.subr.bf16.mxu1 %v10089_v55  ;;  %v13562_v49 = vsel %vm1395_vm8, %v5281_v34, %v5282_v10  ;;  %v13566_v63 = vsel %vm1395_vm8, %v5282_v10, %v5287_v54  ;;  %v10090_v18 = vld [vmem:[%s15123_s3 + $0x340] ss:$8 sps:$4 sm:$0xff]   ;;  %v13574_v61 = vsel %vm15404_vm7, %v4690_v53, %v13460_v41  ;;  %v10099_v41 = vld [vmem:[%s15123_s3 + $0x334] ss:$8 sps:$4 sm:$0xff]   ;;  %v6421_v53 = vrot.slane %v13522_v2, 2 }
 0x2c0   : > { %5862 = vmatpush1.bf16.msra.mxu0 %v10083_v28  ;;  %5211 = vmatprep.mubr.bf16.mxu0 %v13452_v62  ;;  %v13581_v48 = vsel %vm1395_vm8, %v15183_v8, %v5293_v20  ;;  %v13586_v44 = vsel %vm1395_vm8, %v5287_v54, %v5291_v59  ;;  %v6378_v55 = vld [vmem:[#allocation2 + $0x60] sm:$0xcc]  ;;  %v13597_v20 = vsel %vm1395_vm8, %v15182_v45, %v15181_v22  ;;  %v10093_v10 = vld [vmem:[%s15123_s3 + $0x250] ss:$8 sps:$4 sm:$0xff]   ;;  %v6017_v34 = vshrl.u32 %v13550_v42, 16 }
 0x2c1   : > { %5863 = vmatprep.subr.bf16.mxu0 %v10092_v6  ;;  %v9208_v28 = vcombine.low %v6378_v55, %v13430_v37  ;;  %v9209_v59 = vcombine.high %v6378_v55, %v13430_v37  ;;  %v13608_v6 = vsel %vm1395_vm8, %v5295_v13, %v5299_v51  ;;  %v6020_v54 = vshll.u32 %v13550_v42, 16  ;;  %v10103_v37 = vld [vmem:[%s15123_s3 + $0x244] ss:$8 sps:$4 sm:$0xff]   ;;  %v10097_v13 = vld [vmem:[%s15123_s3 + $0x330] ss:$8 sps:$4 sm:$0xff]  }
 0x2c2   : > { %5476 = vmatpush1.bf16.msra.mxu1 %v10087_v43  ;;  %v6025_v22 = vshrl.u32 %v13522_v2, 16  ;;  %v6028_v45 = vshll.u32 %v13522_v2, 16  ;;  %v6418_v8 = vrot.slane %v13511_v38, 2  ;;  %v6019_v51 = vrot.slane %v6017_v34, 1 }
 0x2c3   : > { %5477 = vmatprep.subr.bf16.mxu1 %v10095_v17  ;;  %v6417_v43 = vrot.slane %v9208_v28, 2  ;;  %v6420_v55 = vrot.slane %v9209_v59, 2  ;;  %v6022_v25 = vrot.slane %v6020_v54, 2  ;;  %v6425_v17 = vrot.slane %v13559_v9, 2  ;;  %v10106_v28 = vld [vmem:[%s15123_s3 + $0x324] ss:$8 sps:$4 sm:$0xff]  }
 0x2c4   : > { %5864 = vmatpush1.bf16.msra.mxu0 %v10090_v18  ;;  %v6027_v40 = vrot.slane %v6025_v22, 1  ;;  %v6030_v26 = vrot.slane %v6028_v45, 2  ;;  %v6000_v47 = vshrl.u32 %v13531_v36, 16  ;;  %v10101_v22 = vld [vmem:[%s15123_s3 + $0x240] ss:$8 sps:$4 sm:$0xff]   ;;  %v6003_v45 = vshll.u32 %v13531_v36, 16 }
 0x2c5   : > { %4949 = vmatmul.mubr.bf16.gmra.mxu1 %v4679_v46  ;;  %5865 = vmatprep.subr.bf16.mxu0 %v10099_v41  ;;  %v13626_v59 = vsel %vm2532_vm9, %v6420_v55, %v6421_v53  ;;  %v13629_v18 = vsel %vm2532_vm9, %v6417_v43, %v6418_v8  ;;  %v10104_v46 = vld [vmem:[%s15123_s3 + $0x320] ss:$8 sps:$4 sm:$0xff]   ;;  %v6023_v41 = vor.u32 %v6022_v25, %v6019_v51  ;;  %v6008_v54 = vshrl.u32 %v13511_v38, 16 }
 0x2c6   : > { %5478 = vmatpush1.bf16.msra.mxu1 %v10093_v10  ;;  %4958 = vmatprep.mubr.bf16.mxu1 %v4703_v3  ;;  %v13639_v34 = vsel %vm2532_vm9, %v6421_v53, %v6425_v17  ;;  %v10109_v3 = vld [vmem:[%s15123_s3 + $0x234] ss:$8 sps:$4 sm:$0xff]   ;;  %v6031_v10 = vor.u32 %v6030_v26, %v6027_v40  ;;  %v6002_v43 = vrot.slane %v6000_v47, 1  ;;  %v6011_v55 = vshll.u32 %v13511_v38, 16 }
 0x2c7   : > { %5212 = vmatmul.mubr.bf16.gmra.mxu0 %v13456_v30  ;;  %5479 = vmatprep.subr.bf16.mxu1 %v10103_v37  ;;  %v6043_v25 = vshrl.u32 %v13559_v9, 16  ;;  %v13650_v53 = vld [vmem:[#allocation2 + $0x4c] ss:$-56 sps:$4 sm:$0xff]   ;;  %v6005_v51 = vrot.slane %v6003_v45, 2  ;;  %v6010_v5 = vrot.slane %v6008_v54, 1  ;;  %v6046_v30 = vshll.u32 %v13559_v9, 16 }
 0x2c8   : > { %5866 = vmatpush1.bf16.msra.mxu0 %v10097_v13  ;;  %5221 = vmatprep.mubr.bf16.mxu0 %v13383_v1  ;;  %v6423_v37 = vrot.slane %v13540_v60, 2  ;;  %v10113_v47 = vld [vmem:[%s15123_s3 + $0x314] ss:$8 sps:$4 sm:$0xff]   ;;  %v13658_v26 = vsel %vm15405_vm3, %v6023_v41, %v6031_v10  ;;  %v6013_v40 = vrot.slane %v6011_v55, 2  ;;  %v15406_v1 = vrot.slane %v13418_v52, 2 }
 0x2c9   : > { %5867 = vmatprep.subr.bf16.mxu0 %v10106_v28  ;;  %v6045_v13 = vrot.slane %v6043_v25, 1  ;;  %v10107_v45 = vld [vmem:[%s15123_s3 + $0x230] ss:$8 sps:$4 sm:$0xff]   ;;  %v6006_v54 = vor.u32 %v6005_v51, %v6002_v43  ;;  %v6048_v39 = vrot.slane %v6046_v30, 2  ;;  %v6034_v55 = vshrl.u32 %v13540_v60, 16 }
 0x2ca   : > { %v13663_v32 = vsel %vm2532_vm9, %v6425_v17, %v15406_v1  ;;  %5480 = vmatpush1.bf16.msra.mxu1 %v10101_v22  ;;  %v10111_v28 = vld [vmem:[%s15123_s3 + $0x310] ss:$8 sps:$4 sm:$0xff]   ;;  %v13672_v41 = vsel %vm2532_vm9, %v6418_v8, %v6423_v37  ;;  %v10116_v17 = vld [vmem:[%s15123_s3 + $0x224] ss:$8 sps:$4 sm:$0xff]   ;;  %v6014_v22 = vor.u32 %v6013_v40, %v6010_v5  ;;  %v6037_v25 = vshll.u32 %v13540_v60, 16 }
 0x2cb   : > { %5481 = vmatprep.subr.bf16.mxu1 %v10109_v3  ;;  %v6061_v1 = vshrl.u32 %v13418_v52, 16  ;;  %v13681_v43 = vld [vmem:[#allocation2 + $0x48] ss:$-56 sps:$4 sm:$0xff]   ;;  %v6049_v51 = vor.u32 %v6048_v39, %v6045_v13  ;;  %v6036_v8 = vrot.slane %v6034_v55, 1  ;;  %v6427_v30 = vrot.slane %v13435_v50, 2 }
 0x2cc   : > { %5868 = vmatpush1.bf16.msra.mxu0 %v10104_v46  ;;  %v15202_v3 = vrot.slane %v13650_v53, 2  ;;  %v10119_v5 = vld [vmem:[%s15123_s3 + $0x304] ss:$8 sps:$4 sm:$0xff]   ;;  %v13690_v40 = vsel %vm15407_vm13, %v6006_v54, %v6014_v22  ;;  %v6039_v15 = vrot.slane %v6037_v25, 2  ;;  %v10114_v39 = vld [vmem:[%s15123_s3 + $0x220] ss:$8 sps:$4 sm:$0xff]  }
 0x2cd   : > { %4959 = vmatmul.mubr.bf16.gmra.mxu1 %v13574_v61  ;;  %5869 = vmatprep.subr.bf16.mxu0 %v10113_v47  ;;  %v6063_v46 = vrot.slane %v6061_v1, 1  ;;  %v13697_v61 = vsel %vm15408_vm6, %v6031_v10, %v6049_v51  ;;  %v13700_v47 = vsel %vm2532_vm9, %v6423_v37, %v6427_v30  ;;  %v15409_v13 = vrot.slane %v13418_v52, 2  ;;  %v10117_v25 = vld [vmem:[%s15123_s3 + $0x300] ss:$8 sps:$4 sm:$0xff]  }
 0x2ce   : > { %5482 = vmatpush1.bf16.msra.mxu1 %v10107_v45  ;;  %4968 = vmatprep.mubr.bf16.mxu1 %v13502_v27  ;;  %v10122_v27 = vld [vmem:[%s15123_s3 + $0x214] ss:$8 sps:$4 sm:$0xff]   ;;  %v6040_v10 = vor.u32 %v6039_v15, %v6036_v8  ;;  %v6055_v37 = vshll.u32 %v13435_v50, 16  ;;  %v6079_v55 = vshrl.u32 %v13650_v53, 16  ;;  %v6054_v1 = vrot.slane %v6052_v57, 1 }
 0x2cf   : > { %v13707_v54 = vsel %vm2532_vm9, %v15409_v13, %v15202_v3  ;;  %5222 = vmatmul.mubr.bf16.gmra.mxu0 %v13388_v12  ;;  %5483 = vmatprep.subr.bf16.mxu1 %v10116_v17  ;;  %v6067_v45 = vor.u32 %v6066_v0, %v6063_v46  ;;  %v15410_v12 = vshrl.u32 %v13394_v58, 16  ;;  %v6082_v13 = vshll.u32 %v13650_v53, 16  ;;  %v10125_v15 = vld [vmem:[%s15123_s3 + $0x3f4] ss:$8 sps:$4 sm:$0xff]  }
 0x2d0   : > { %5870 = vmatpush1.bf16.msra.mxu0 %v10111_v28  ;;  %5231 = vmatprep.mubr.bf16.mxu0 %v13394_v58  ;;  %v15203_v0 = vrot.slane %v13681_v43, 2  ;;  %v13729_v28 = vsel %vm15411_vm1, %v6014_v22, %v6040_v10  ;;  %v6057_v46 = vrot.slane %v6055_v37, 2  ;;  %v6081_v3 = vrot.slane %v6079_v55, 1  ;;  %v10120_v58 = vld [vmem:[%s15123_s3 + $0x210] ss:$8 sps:$4 sm:$0xff]  }
 0x2d1   : > { %v4730_v17 = vor.u32 %v15410_v12, %v13475_v35  ;;  %5871 = vmatprep.subr.bf16.mxu0 %v10119_v5  ;;  %v13732_v8 = vsel %vm15412_vm11, %v6049_v51, %v6067_v45  ;;  %v15413_v35 = vshll.u32 %v13400_v16, 16  ;;  %v15205_v57 = vrot.slane %v13522_v2, 1 }
 0x2d2   : > { %5484 = vmatpush1.bf16.msra.mxu1 %v10114_v39  ;;  %v6084_v12 = vrot.slane %v6082_v13, 2  ;;  %v13743_v22 = vsel %vm2532_vm9, %v6427_v30, %v15203_v0  ;;  %v5668_v51 = vrot.slane %v13550_v42, 1  ;;  %v10131_v39 = vld [vmem:[%s15123_s3 + $0x204] ss:$8 sps:$4 sm:$0xff]   ;;  %v6058_v37 = vor.u32 %v6057_v46, %v6054_v1  ;;  %v10123_v30 = vld [vmem:[%s15123_s3 + $0x3f0] ss:$8 sps:$4 sm:$0xff]  }
 0x2d3   : > { %v4734_v5 = vrot.slane %v15413_v35, 1  ;;  %5485 = vmatprep.subr.bf16.mxu1 %v10122_v27  ;;  %v6070_v55 = vshrl.u32 %v13681_v43, 16  ;;  %v6073_v16 = vshll.u32 %v13681_v43, 16  ;;  %v4711_v13 = vsel %vm15414_vm12, %v13487_v11, %v13481_v33  ;;  %v10134_v1 = vld [vmem:[%s15123_s3 + $0x3e4] ss:$8 sps:$4 sm:$0xff]  }
 0x2d4   : > { %5872 = vmatpush1.bf16.msra.mxu0 %v10117_v25  ;;  %v13758_v27 = vor.u32 %v6084_v12, %v6081_v3  ;;  %v9001_v25 = vcombine.high %v13513_v29, %v13437_v23  ;;  %v13766_v46 = vsel %vm15416_vm10, %v6040_v10, %v6058_v37  ;;  %v10129_v3 = vld [vmem:[%s15123_s3 + $0x200] ss:$8 sps:$4 sm:$0xff]   ;;  %v5670_v23 = vsel %vm1395_vm8, %v5668_v51, %v15205_v57  ;;  %v10137_v29 = vld [vmem:[%s15123_s3 + $0x2f4] ss:$8 sps:$4 sm:$0xff]   ;;  %v10135_v51 = vld [vmem:[%s15123_s3 + $0x2f0] ss:$8 sps:$4 sm:$0xff]  }
 0x2d5   : > { %v4735_v42 = vsel %vm15415_vm5, %v4730_v17, %v4734_v5  ;;  %4969 = vmatmul.mubr.bf16.gmra.mxu1 %v4711_v13  ;;  %5873 = vmatprep.subr.bf16.mxu0 %v10125_v15  ;;  %v6072_v11 = vrot.slane %v6070_v55, 1  ;;  %v6075_v35 = vrot.slane %v6073_v16, 2  ;;  %v4720_v17 = vshrl.u32 %v13398_v21, 16  ;;  %v10180_v0 = vld [vmem:[%s15123_s3 + $0x284] ss:$8 sps:$4 sm:$0xff]  }
 0x2d6   : > { %5486 = vmatpush1.bf16.msra.mxu1 %v10120_v58  ;;  %4978 = vmatprep.mubr.bf16.mxu1 %v4735_v42  ;;  %v4724_v15 = vshll.u32 %v13483_v31, 16  ;;  %v13775_v5 = vsel %vm15417_vm15, %v6067_v45, %v13758_v27  ;;  %v10132_v31 = vld [vmem:[%s15123_s3 + $0x3e0] ss:$8 sps:$4 sm:$0xff]   ;;  %v5284_v58 = vrot.slane %v9001_v25, 1  ;;  %v15204_v55 = vrot.slane %v13445_v19, 1  ;;  %vm15444_vm15 = vmmov %vm15418_vm4 }
 0x2d7   : > { %5232 = vmatmul.mubr.bf16.gmra.mxu0 %v13398_v21  ;;  %5487 = vmatprep.subr.bf16.mxu1 %v10131_v39  ;;  %v13784_v10 = vor.u32 %v6075_v35, %v6072_v11  ;;  %v4722_v45 = vor.u32 %v4720_v17, %v13481_v33  ;;  %v10141_v21 = vld [vmem:[%s15123_s3 + $0x3d4] ss:$8 sps:$4 sm:$0xff]   ;;  %v10144_v33 = vld [vmem:[%s15123_s3 + $0x2e4] ss:$8 sps:$4 sm:$0xff]   ;;  %v10142_v42 = vld [vmem:[%s15123_s3 + $0x2e0] ss:$8 sps:$4 sm:$0xff]  }
 0x2d8   : > { %5874 = vmatpush2.bf16.msra.mxu0 %v10123_v30  ;;  %5889 = vmatprep.mubr.bf16.mxu0 %v5670_v23  ;;  %v4726_v39 = vrot.slane %v4724_v15, 1  ;;  %v5286_v13 = vsel %vm1395_vm8, %v5284_v58, %v15204_v55  ;;  %v10147_v30 = vld [vmem:[%s15123_s3 + $0x3c4] ss:$8 sps:$4 sm:$0xff]   ;;  %v10145_v25 = vld [vmem:[%s15123_s3 + $0x3c0] ss:$8 sps:$4 sm:$0xff]   ;;  %vm15423_vm0 = vcmask 1044480  }
 0x2d9   : > { %5875 = vmatprep.subr.bf16.mxu0 %v10134_v1  ;;  %v13795_v12 = vsel %vm15418_vm4, %v6058_v37, %v13784_v10  ;;  %v10139_v37 = vld [vmem:[%s15123_s3 + $0x3d0] ss:$8 sps:$4 sm:$0xff]   ;;  %v10150_v1 = vld [vmem:[%s15123_s3 + $0x2d4] ss:$8 sps:$4 sm:$0xff]   ;;  %v10159_v15 = vld [vmem:[%s15123_s3 + $0x3a4] ss:$8 sps:$4 sm:$0xff]  }
 0x2da   : > { %5488 = vmatpush1.bf16.msra.mxu1 %v10129_v3  ;;  %v4727_v16 = vsel %vm15419_vm2, %v4722_v45, %v4726_v39  ;;  %v10153_v11 = vld [vmem:[%s15123_s3 + $0x3b4] ss:$8 sps:$4 sm:$0xff]   ;;  %v10148_v35 = vld [vmem:[%s15123_s3 + $0x2d0] ss:$8 sps:$4 sm:$0xff]   ;;  %v10156_v3 = vld [vmem:[%s15123_s3 + $0x2c4] ss:$8 sps:$4 sm:$0xff]  }
 0x2db   : > { %5489 = vmatprep.subr.bf16.mxu1 %v10137_v29  ;;  %v10151_v17 = vld [vmem:[%s15123_s3 + $0x3b0] ss:$8 sps:$4 sm:$0xff]   ;;  %v10154_v23 = vld [vmem:[%s15123_s3 + $0x2c0] ss:$8 sps:$4 sm:$0xff]   ;;  %v10162_v29 = vld [vmem:[%s15123_s3 + $0x2b4] ss:$8 sps:$4 sm:$0xff]  }
 0x2dc   : > { %5876 = vmatpush2.bf16.msra.mxu0 %v10132_v31  ;;  %v10157_v31 = vld [vmem:[%s15123_s3 + $0x3a0] ss:$8 sps:$4 sm:$0xff]   ;;  %v10165_v45 = vld [vmem:[%s15123_s3 + $0x394] ss:$8 sps:$4 sm:$0xff]   ;;  %v10168_v58 = vld [vmem:[%s15123_s3 + $0x2a4] ss:$8 sps:$4 sm:$0xff]  }
 0x2dd   : > { %4979 = vmatmul.mubr.bf16.gmra.mxu1 %v4727_v16  ;;  %5877 = vmatprep.subr.bf16.mxu0 %v10141_v21  ;;  %v10160_v21 = vld [vmem:[%s15123_s3 + $0x2b0] ss:$8 sps:$4 sm:$0xff]   ;;  %vm15424_vm14 = vmmov %vm15423_vm0  ;;  %vm15443_vm10 = vsmask.f32 5376 }
 0x2de   : > { %5490 = vmatpush2.bf16.msra.mxu1 %v10135_v51  ;;  %5505 = vmatprep.mubr.bf16.mxu1 %v5286_v13  ;;  %v13856_v51 = vld [vmem:[#allocation2 + $0x18] sm:$0xff]  ;;  %v6718_v13 = vld [vmem:[#allocation2 + $0x28] sm:$0xff]  ;;  %v13901_v55 = vld [vmem:[#allocation2 + $0x10] ss:$-16 sps:$4 sm:$0xff]  }
 0x2df   : > { %5491 = vmatprep.subr.bf16.mxu1 %v10144_v33  ;;  %v10163_v39 = vld [vmem:[%s15123_s3 + $0x390] ss:$8 sps:$4 sm:$0xff]   ;;  %v10171_v33 = vld [vmem:[%s15123_s3 + $0x384] ss:$8 sps:$4 sm:$0xff]   ;;  %vm15427_vm7 = vmmov %vm15423_vm0 }
 0x2e0   : > { %5878 = vmatpush2.bf16.msra.mxu0 %v10139_v37  ;;  %v7514_v16 = vld [vmem:[#allocation2 + $0x58] sm:$0x88]  ;;  %v10166_v37 = vld [vmem:[%s15123_s3 + $0x2a0] ss:$8 sps:$4 sm:$0xff]   ;;  %vm15428_vm3 = vmmov %vm15423_vm0 }
 0x2e1   : > { %5879 = vmatprep.subr.bf16.mxu0 %v10147_v30  ;;  %v6719_v30 = vld [vmem:[#allocation2 + $0x48] sm:$0xff]  ;;  %vm15429_vm13 = vmmov %vm15423_vm0 }
 0x2e2   : > { %5492 = vmatpush2.bf16.msra.mxu1 %v10142_v42  ;;  %v9416_v42 = vcombine.low %v7514_v16, %v13856_v51  ;;  %vm15430_vm6 = vmmov %vm15423_vm0 }
 0x2e3   : > { %5493 = vmatprep.subr.bf16.mxu1 %v10150_v1  ;;  %v10169_v1 = vld [vmem:[%s15123_s3 + $0x380] ss:$8 sps:$4 sm:$0xff]   ;;  %vm15431_vm1 = vmmov %vm15423_vm0 }
 0x2e4   : > { %5880 = vmatpush2.bf16.msra.mxu0 %v10145_v25  ;;  %v10174_v25 = vld [vmem:[%s15123_s3 + $0x294] ss:$8 sps:$4 sm:$0xff]   ;;  %vm15432_vm11 = vmmov %vm15423_vm0 }
 0x2e5   : > { %5881 = vmatprep.subr.bf16.mxu0 %v10153_v11  ;;  %v10177_v11 = vld [vmem:[%s15123_s3 + $0x574] ss:$8 sps:$4 sm:$0xff]   ;;  %vm15433_vm12 = vmmov %vm15423_vm0 }
 0x2e6   : > { %5494 = vmatpush2.bf16.msra.mxu1 %v10148_v35  ;;  %v9417_v35 = vcombine.high %v7514_v16, %v13856_v51  ;;  %v7553_v16 = vrot.slane %v9416_v42, 3  ;;  %vm15434_vm5 = vmmov %vm15423_vm0 }
 0x2e7   : > { %5495 = vmatprep.subr.bf16.mxu1 %v10156_v3  ;;  %v5665_v3 = vrot.slane %v13531_v36, 1  ;;  %v13893_v36 = vcombine.low %v6718_v13, %v6719_v30 }
 0x2e8   : > { %5882 = vmatpush2.bf16.msra.mxu0 %v10151_v17  ;;  %v15206_v17 = vrot.slane %v13511_v38, 1  ;;  %v7556_v57 = vrot.slane %v9417_v35, 3 }
 0x2e9   : > { %5883 = vmatprep.subr.bf16.mxu0 %v10159_v15  ;;  %v13880_v15 = vld [vmem:[#allocation2 + $0x50] ss:$-48 sps:$4 sm:$0xff]  }
 0x2ea   : > { %5496 = vmatpush2.bf16.msra.mxu1 %v10154_v23  ;;  %15420 = vst [vmem:[#allocation34_spill] sm:$0xff] %v13880_v15  ;;  %v13882_v23 = vld [vmem:[#allocation2 + $0x54] ss:$-48 sps:$4 sm:$0xff]   ;;  %v7554_v42 = vrot.slane %v13880_v15, 3 }
 0x2eb   : > { %5497 = vmatprep.subr.bf16.mxu1 %v10162_v29  ;;  %v13884_v29 = vld [vmem:[#allocation2 + $0xc] ss:$48 sps:$4 sm:$0xff]  }
 0x2ec   : > { %5884 = vmatpush2.bf16.msra.mxu0 %v10157_v31  ;;  %v13886_v31 = vld [vmem:[#allocation2 + $0x8] ss:$48 sps:$4 sm:$0xff]   ;;  %v7561_v35 = vrot.slane %v13884_v29, 3 }
 0x2ed   : > { %5885 = vmatprep.subr.bf16.mxu0 %v10165_v45  ;;  %15421 = vst [vmem:[#allocation24_spill] sm:$0xff] %v13886_v31  ;;  %v13888_v45 = vcombine.high %v6718_v13, %v6719_v30  ;;  %v10175_v13 = vld [vmem:[%s15123_s3 + $0x570] ss:$8 sps:$4 sm:$0xff]  }
 0x2ee   : > { %5498 = vmatpush2.bf16.msra.mxu1 %v10160_v21  ;;  %v7096_v21 = vld [vmem:[#allocation2 + $0x30] sm:$0x77] }
 0x2ef   : > { %5499 = vmatprep.subr.bf16.mxu1 %v10168_v58  ;;  %15422 = vst [vmem:[#allocation25_spill] sm:$0xff] %v13888_v45  ;;  %v10172_v58 = vld [vmem:[%s15123_s3 + $0x290] ss:$8 sps:$4 sm:$0xff]   ;;  %v13909_v30 = vcombine.high %v7096_v21, %v7096_v21 }
 0x2f0   : > { %5886 = vmatpush2.bf16.msra.mxu0 %v10163_v39  ;;  %v13895_v39 = vld [vmem:[#allocation2 + $0x14] ss:$-16 sps:$4 sm:$0xff]  }
 0x2f1   : > { %5887 = vmatprep.subr.bf16.mxu0 %v10171_v33  ;;  %v5673_v33 = vrot.slane %v13559_v9, 1  ;;  %v7557_v9 = vrot.slane %v13882_v23, 3  ;;  %v7569_v15 = vrot.slane %v13895_v39, 3 }
 0x2f2   : > { %5500 = vmatpush2.bf16.msra.mxu1 %v10166_v37  ;;  %v5667_v37 = vsel %vm1395_vm8, %v5665_v3, %v15206_v17  ;;  %v7559_v3 = vrot.slane %v13886_v31, 3  ;;  %v7565_v17 = vrot.slane %v13888_v45, 3  ;;  %v15426_v31 = vrot.slane %v13522_v2, 1  ;;  %v10181_v2 = vld [vmem:[%s15123_s3 + $0x560] ss:$8 sps:$4 sm:$0xff]  }
 0x2f3   : > { %5501 = vmatprep.subr.bf16.mxu1 %v10174_v25  ;;  %v10183_v25 = vld [vmem:[%s15123_s3 + $0x564] ss:$8 sps:$4 sm:$0xff]   ;;  %v13925_v4 = vsel %vm15423_vm0, %v7556_v57, %v7557_v9  ;;  %v13939_v57 = vsel %vm15427_vm7, %v7557_v9, %v7561_v35  ;;  %v7573_v9 = vrot.slane %v13909_v30, 3 }
 0x2f4   : > { %5888 = vmatpush2.bf16.msra.mxu0 %v10169_v1  ;;  %v13916_v1 = vcombine.low %v7096_v21, %v7096_v21  ;;  %v7563_v21 = vrot.slane %v13893_v36, 3  ;;  %v5674_v45 = vsel %vm1395_vm8, %v15426_v31, %v5673_v33 }
 0x2f5   : > { %6609 = vmatprep.subr.bf16.mxu0 %v10177_v11  ;;  %v13928_v11 = vsel %vm15424_vm14, %v7553_v16, %v7554_v42  ;;  %v13942_v16 = vsel %vm15428_vm3, %v7554_v42, %v7559_v3 }
 0x2f6   : > { %5502 = vmatpush2.bf16.msra.mxu1 %v10172_v58  ;;  %15425 = vst [vmem:[#allocation36_spill] sm:$0xff] %v13928_v11  ;;  %v10186_v58 = vld [vmem:[%s15123_s3 + $0x474] ss:$8 sps:$4 sm:$0xff]   ;;  %v7567_v11 = vrot.slane %v13901_v55, 3  ;;  %v13952_v31 = vsel %vm15430_vm6, %v7559_v3, %v7563_v21  ;;  %v7571_v42 = vrot.slane %v13916_v1, 3 }
 0x2f7   : > { %5890 = vmatmul.mubr.bf16.vlgmr.msra.gmra.mxu0 %v5667_v37  ;;  %5503 = vmatprep.subr.bf16.mxu1 %v10180_v0  ;;  %v13949_v0 = vsel %vm15429_vm13, %v7561_v35, %v7565_v17  ;;  %v13955_v37 = vsel %vm15431_vm1, %v7565_v17, %v7569_v15  ;;  %v10184_v35 = vld [vmem:[%s15123_s3 + $0x470] ss:$8 sps:$4 sm:$0xff]   ;;  %v13969_v17 = vsel %vm15433_vm12, %v7569_v15, %v7573_v9  ;;  %v10193_v3 = vld [vmem:[%s15123_s3 + $0x464] ss:$8 sps:$4 sm:$0xff]   ;;  %v15435_v15 = vrot.slane %v13452_v62, 1 }
 0x2f8   : > { %5899 = vmatprep.mubr.bf16.mxu0 %v5674_v45  ;;  %6610 = vmatpush1.bf16.msra.mxu0 %v10175_v13  ;;  %v10189_v45 = vld [vmem:[%s15123_s3 + $0x554] ss:$8 sps:$4 sm:$0xff]   ;;  %v13962_v13 = vsel %vm15432_vm11, %v7563_v21, %v7567_v11  ;;  %v13976_v21 = vsel %vm15434_vm5, %v7567_v11, %v7571_v42  ;;  %v10196_v9 = vld [vmem:[%s15123_s3 + $0x544] ss:$8 sps:$4 sm:$0xff]   ;;  %v15437_v11 = vrot.slane %v13540_v60, 1  ;;  %vm15499_vm11 = vcmask 1043456  }
 0x2f9   : > { %6611 = vmatprep.subr.bf16.mxu0 %v10183_v25  ;;  %v5677_v25 = vrot.slane %v13418_v52, 1  ;;  %v10191_v62 = vld [vmem:[%s15123_s3 + $0x460] ss:$8 sps:$4 sm:$0xff]   ;;  %vm15500_vm12 = vcmask 1041408   ;;  %vm15501_vm5 = vmmov %vm15499_vm11 }
 0x2fa   : > { %5504 = vmatpush2.bf16.msra.mxu1 %v10178_v56  ;;  %v10187_v56 = vld [vmem:[%s15123_s3 + $0x550] ss:$8 sps:$4 sm:$0xff]   ;;  %v10194_v60 = vld [vmem:[%s15123_s3 + $0x540] ss:$8 sps:$4 sm:$0xff]  }
 0x2fb   : > { %6275 = vmatprep.subr.bf16.mxu1 %v10186_v58  ;;  %v15436_v58 = vrot.slane %v13445_v19, 1  ;;  %v5678_v19 = vsel %vm1395_vm8, %v5673_v33, %v5677_v25  ;;  %v10197_v33 = vld [vmem:[%s15123_s3 + $0x450] ss:$8 sps:$4 sm:$0xff]  }
 0x2fc   : > { %6612 = vmatpush1.bf16.msra.mxu0 %v10181_v2  ;;  %v15438_v2 = vrot.slane %v13511_v38, 1  ;;  %v10203_v38 = vld [vmem:[%s15123_s3 + $0x534] ss:$8 sps:$4 sm:$0xff]  }
 0x2fd   : > { %5506 = vmatmul.mubr.bf16.vlgmr.msra.gmra.mxu1 %v13562_v49  ;;  %v5290_v52 = vsel %vm1395_vm8, %v15436_v58, %v15435_v15  ;;  %6613 = vmatprep.subr.bf16.mxu0 %v10189_v45  ;;  %v10199_v49 = vld [vmem:[%s15123_s3 + $0x454] ss:$8 sps:$4 sm:$0xff]   ;;  %v5681_v45 = vrot.slane %v13650_v53, 1  ;;  %v10211_v15 = vld [vmem:[%s15123_s3 + $0x524] ss:$8 sps:$4 sm:$0xff]  }
 0x2fe   : > { %5515 = vmatprep.mubr.bf16.mxu1 %v5290_v52  ;;  %v5672_v42 = vsel %vm1395_vm8, %v15438_v2, %v15437_v11  ;;  %6276 = vmatpush1.bf16.msra.mxu1 %v10184_v35  ;;  %v10208_v35 = vld [vmem:[%s15123_s3 + $0x444] ss:$8 sps:$4 sm:$0xff]   ;;  %v10206_v58 = vld [vmem:[%s15123_s3 + $0x440] ss:$8 sps:$4 sm:$0xff]   ;;  %v10218_v11 = vld [vmem:[%s15123_s3 + $0x514] ss:$8 sps:$4 sm:$0xff]  }
 0x2ff   : > { %5900 = vmatmul.mubr.bf16.gmra.mxu0 %v5672_v42  ;;  %6277 = vmatprep.subr.bf16.mxu1 %v10193_v3  ;;  %v10201_v3 = vld [vmem:[%s15123_s3 + $0x530] ss:$8 sps:$4 sm:$0xff]   ;;  %v5682_v52 = vsel %vm1395_vm8, %v5677_v25, %v5681_v45  ;;  %v5679_v25 = vrot.slane %v13681_v43, 1  ;;  %v10222_v42 = vld [vmem:[%s15123_s3 + $0x424] ss:$8 sps:$4 sm:$0xff]  }
 0x300   : > { %5909 = vmatprep.mubr.bf16.mxu0 %v5678_v19  ;;  %6614 = vmatpush1.bf16.msra.mxu0 %v10187_v56  ;;  %v5586_v56 = vld [vmem:[#allocation2] sm:$0x11] }
 0x301   : > { %6615 = vmatprep.subr.bf16.mxu0 %v10196_v9  ;;  %v9077_v9 = vcombine.high %v5586_v56, %v5586_v56  ;;  %v10225_v19 = vld [vmem:[%s15123_s3 + $0x504] ss:$8 sps:$4 sm:$0xff]  }
 0x302   : > { %6278 = vmatpush1.bf16.msra.mxu1 %v10191_v62  ;;  %v10216_v62 = vld [vmem:[%s15123_s3 + $0x510] ss:$8 sps:$4 sm:$0xff]  }
 0x303   : > { %6279 = vmatprep.subr.bf16.mxu1 %v10199_v49  ;;  %v5685_v2 = vrot.slane %v9077_v9, 1  ;;  %v15439_v49 = vrot.slane %v13435_v50, 1  ;;  %v10232_v50 = vld [vmem:[%s15123_s3 + $0x5f4] ss:$8 sps:$4 sm:$0xff]  }
 0x304   : > { %6616 = vmatpush1.bf16.msra.mxu0 %v10194_v60  ;;  %v10246_v9 = vld [vmem:[%s15123_s3 + $0x5d4] ss:$8 sps:$4 sm:$0xff]  }
 0x305   : > { %5516 = vmatmul.mubr.bf16.gmra.mxu1 %v13566_v63  ;;  %6617 = vmatprep.subr.bf16.mxu0 %v10203_v38  ;;  %v10214_v63 = vld [vmem:[%s15123_s3 + $0x434] ss:$8 sps:$4 sm:$0xff]   ;;  %v5680_v60 = vsel %vm1395_vm8, %v15439_v49, %v5679_v25  ;;  %v10220_v38 = vld [vmem:[%s15123_s3 + $0x420] ss:$8 sps:$4 sm:$0xff]   ;;  %v10264_v49 = vld [vmem:[%s15123_s3 + $0x5a4] ss:$8 sps:$4 sm:$0xff]  }
 0x306   : > { %5525 = vmatprep.mubr.bf16.mxu1 %v13581_v48  ;;  %6280 = vmatpush1.bf16.msra.mxu1 %v10197_v33  ;;  %v10209_v48 = vld [vmem:[%s15123_s3 + $0x520] ss:$8 sps:$4 sm:$0xff]   ;;  %v9076_v33 = vcombine.low %v5586_v56, %v5586_v56  ;;  %v10237_v56 = vld [vmem:[%s15123_s3 + $0x404] ss:$8 sps:$4 sm:$0xff]  }
 0x307   : > { %5910 = vmatmul.mubr.bf16.gmra.mxu0 %v13597_v20  ;;  %6281 = vmatprep.subr.bf16.mxu1 %v10208_v35  ;;  %v10212_v20 = vld [vmem:[%s15123_s3 + $0x430] ss:$8 sps:$4 sm:$0xff]   ;;  %v10228_v35 = vld [vmem:[%s15123_s3 + $0x414] ss:$8 sps:$4 sm:$0xff]  }
 0x308   : > { %5919 = vmatprep.mubr.bf16.mxu0 %v5682_v52  ;;  %6618 = vmatpush1.bf16.msra.mxu0 %v10201_v3  ;;  %v5683_v3 = vrot.slane %v9076_v33, 1  ;;  %v10262_v33 = vld [vmem:[%s15123_s3 + $0x5a0] ss:$8 sps:$4 sm:$0xff]  }
 0x309   : > { %6619 = vmatprep.subr.bf16.mxu0 %v10211_v15  ;;  %v10230_v15 = vld [vmem:[%s15123_s3 + $0x5f0] ss:$8 sps:$4 sm:$0xff]  }
 0x30a   : > { %6282 = vmatpush1.bf16.msra.mxu1 %v10206_v58  ;;  %v10240_v58 = vld [vmem:[%s15123_s3 + $0x5e4] ss:$8 sps:$4 sm:$0xff]   ;;  %v5684_v52 = vsel %vm1395_vm8, %v5679_v25, %v5683_v3  ;;  %v10247_v25 = vld [vmem:[%s15123_s3 + $0x4e0] ss:$8 sps:$4 sm:$0xff]  }
 0x30b   : > { %6283 = vmatprep.subr.bf16.mxu1 %v10214_v63  ;;  %v10235_v63 = vld [vmem:[%s15123_s3 + $0x400] ss:$8 sps:$4 sm:$0xff]  }
 0x30c   : > { %6620 = vmatpush1.bf16.msra.mxu0 %v10209_v48  ;;  %v10241_v48 = vld [vmem:[%s15123_s3 + $0x4f0] ss:$8 sps:$4 sm:$0xff]   ;;  %v10271_v3 = vld [vmem:[%s15123_s3 + $0x4a0] ss:$8 sps:$4 sm:$0xff]  }
 0x30d   : > { %5526 = vmatmul.mubr.bf16.gmra.mxu1 %v13586_v44  ;;  %6621 = vmatprep.subr.bf16.mxu0 %v10218_v11  ;;  %v5686_v44 = vsel %vm1395_vm8, %v5681_v45, %v5685_v2  ;;  %v10226_v45 = vld [vmem:[%s15123_s3 + $0x410] ss:$8 sps:$4 sm:$0xff]   ;;  %v10249_v11 = vld [vmem:[%s15123_s3 + $0x4e4] ss:$8 sps:$4 sm:$0xff]   ;;  %v10255_v2 = vld [vmem:[%s15123_s3 + $0x4d4] ss:$8 sps:$4 sm:$0xff]  }
 0x30e   : > { %5535 = vmatprep.mubr.bf16.mxu1 %v13414_v7  ;;  %6284 = vmatpush1.bf16.msra.mxu1 %v10212_v20  ;;  %v10223_v7 = vld [vmem:[%s15123_s3 + $0x500] ss:$8 sps:$4 sm:$0xff]   ;;  %v10252_v20 = vld [vmem:[%s15123_s3 + $0x5c4] ss:$8 sps:$4 sm:$0xff]   ;;  %vm15441_vm8 = vmmov %vm15418_vm4 }
 0x30f   : > { %5920 = vmatmul.mubr.bf16.gmra.mxu0 %v5680_v60  ;;  %6285 = vmatprep.subr.bf16.mxu1 %v10222_v42  ;;  %v10258_v42 = vld [vmem:[%s15123_s3 + $0x5b4] ss:$8 sps:$4 sm:$0xff]   ;;  %v10259_v60 = vld [vmem:[%s15123_s3 + $0x4c0] ss:$8 sps:$4 sm:$0xff]   ;;  %vm15448_vm4 = vmmov %vm15443_vm10 }
 0x310   : > { %5929 = vmatprep.mubr.bf16.mxu0 %v5686_v44  ;;  %6622 = vmatpush1.bf16.msra.mxu0 %v10216_v62  ;;  %v10261_v62 = vld [vmem:[%s15123_s3 + $0x4c4] ss:$8 sps:$4 sm:$0xff]   ;;  %v10270_v44 = vld [vmem:[%s15123_s3 + $0x594] ss:$8 sps:$4 sm:$0xff]   ;;  %vm15449_vm2 = vmmov %vm15448_vm4 }
 0x311   : > { %6623 = vmatprep.subr.bf16.mxu0 %v10225_v19  ;;  %v10256_v19 = vld [vmem:[%s15123_s3 + $0x5b0] ss:$8 sps:$4 sm:$0xff]   ;;  %vm15450_vm0 = vmmov %vm15449_vm2 }
 0x312   : > { %6286 = vmatpush1.bf16.msra.mxu1 %v10220_v38  ;;  %v10267_v38 = vld [vmem:[%s15123_s3 + $0x4b4] ss:$8 sps:$4 sm:$0xff]   ;;  %vm15451_vm14 = vmmov %vm15450_vm0 }
 0x313   : > { %6287 = vmatprep.subr.bf16.mxu1 %v10228_v35  ;;  %v10265_v35 = vld [vmem:[%s15123_s3 + $0x4b0] ss:$8 sps:$4 sm:$0xff]   ;;  %vm15452_vm7 = vmmov %vm15450_vm0 }
 0x314   : > { %6624 = vmatpush1.bf16.msra.mxu0 %v10223_v7  ;;  %v10273_v7 = vld [vmem:[%s15123_s3 + $0x4a4] ss:$8 sps:$4 sm:$0xff]   ;;  %vm15453_vm3 = vmmov %vm15450_vm0 }
 0x315   : > { %5536 = vmatmul.mubr.bf16.gmra.mxu1 %v13425_v24  ;;  %6625 = vmatprep.subr.bf16.mxu0 %v10232_v50  ;;  %v10243_v24 = vld [vmem:[%s15123_s3 + $0x4f4] ss:$8 sps:$4 sm:$0xff]   ;;  %v10268_v50 = vld [vmem:[%s15123_s3 + $0x590] ss:$8 sps:$4 sm:$0xff]   ;;  %vm15454_vm13 = vmmov %vm15450_vm0 }
 0x316   : > { %5545 = vmatprep.mubr.bf16.mxu1 %v13428_v14  ;;  %6288 = vmatpush1.bf16.msra.mxu1 %v10226_v45  ;;  %v10238_v14 = vld [vmem:[%s15123_s3 + $0x5e0] ss:$8 sps:$4 sm:$0xff]   ;;  %v10276_v45 = vld [vmem:[%s15123_s3 + $0x584] ss:$8 sps:$4 sm:$0xff]   ;;  %vm15455_vm6 = vmmov %vm15450_vm0 }
 0x317   : > { %5930 = vmatmul.mubr.bf16.gmra.mxu0 %v5684_v52  ;;  %6289 = vmatprep.subr.bf16.mxu1 %v10237_v56  ;;  %v10279_v56 = vld [vmem:[%s15123_s3 + $0x494] ss:$8 sps:$4 sm:$0xff]   ;;  %v10277_v52 = vld [vmem:[%s15123_s3 + $0x490] ss:$8 sps:$4 sm:$0xff]   ;;  %vm15456_vm1 = vmmov %vm15450_vm0 }
 0x318   : > { %6626 = vmatpush2.bf16.msra.mxu0 %v10230_v15  ;;  %6641 = vmatprep.mubr.bf16.mxu0 %v13626_v59  ;;  %v10244_v59 = vld [vmem:[%s15123_s3 + $0x5d0] ss:$8 sps:$4 sm:$0xff]   ;;  %v10274_v15 = vld [vmem:[%s15123_s3 + $0x580] ss:$8 sps:$4 sm:$0xff]  }
 0x319   : > { %6627 = vmatprep.subr.bf16.mxu0 %v10240_v58  ;;  %v10282_v58 = vld [vmem:[%s15123_s3 + $0x774] ss:$8 sps:$4 sm:$0xff]  }
 0x31a   : > { %6290 = vmatpush1.bf16.msra.mxu1 %v10235_v63  ;;  %v10285_v63 = vld [vmem:[%s15123_s3 + $0x484] ss:$8 sps:$4 sm:$0xff]  }
 0x31b   : > { %6291 = vmatprep.subr.bf16.mxu1 %v10243_v24  ;;  %v10280_v24 = vld [vmem:[%s15123_s3 + $0x770] ss:$8 sps:$4 sm:$0xff]  }
 0x31c   : > { %6628 = vmatpush2.bf16.msra.mxu0 %v10238_v14  ;;  %v10288_v14 = vld [vmem:[%s15123_s3 + $0x764] ss:$8 sps:$4 sm:$0xff]  }
 0x31d   : > { %5546 = vmatmul.mubr.bf16.gmra.mxu1 %v13608_v6  ;;  %6629 = vmatprep.subr.bf16.mxu0 %v10246_v9  ;;  %v10250_v6 = vld [vmem:[%s15123_s3 + $0x5c0] ss:$8 sps:$4 sm:$0xff]  }
 0x31e   : > { %6292 = vmatpush2.bf16.msra.mxu1 %v10241_v48  ;;  %6307 = vmatprep.mubr.bf16.mxu1 %v13658_v26  ;;  %v10253_v26 = vld [vmem:[%s15123_s3 + $0x4d0] ss:$8 sps:$4 sm:$0xff]   ;;  %v10283_v9 = vld [vmem:[%s15123_s3 + $0x480] ss:$8 sps:$4 sm:$0xff]   ;;  %v10291_v48 = vld [vmem:[%s15123_s3 + $0x674] ss:$8 sps:$4 sm:$0xff]  }
 0x31f   : > { %6293 = vmatprep.subr.bf16.mxu1 %v10249_v11  ;;  %v10286_v11 = vld [vmem:[%s15123_s3 + $0x760] ss:$8 sps:$4 sm:$0xff]  }
 0x320   : > { %6630 = vmatpush2.bf16.msra.mxu0 %v10244_v59  ;;  %v10294_v59 = vld [vmem:[%s15123_s3 + $0x754] ss:$8 sps:$4 sm:$0xff]  }
 0x321   : > { %6631 = vmatprep.subr.bf16.mxu0 %v10252_v20  ;;  %v10292_v20 = vld [vmem:[%s15123_s3 + $0x750] ss:$8 sps:$4 sm:$0xff]  }
 0x322   : > { %6294 = vmatpush2.bf16.msra.mxu1 %v10247_v25  ;;  %v10300_v25 = vld [vmem:[%s15123_s3 + $0x744] ss:$8 sps:$4 sm:$0xff]  }
 0x323   : > { %6295 = vmatprep.subr.bf16.mxu1 %v10255_v2  ;;  %v10295_v2 = vld [vmem:[%s15123_s3 + $0x660] ss:$8 sps:$4 sm:$0xff]  }
 0x324   : > { %6632 = vmatpush2.bf16.msra.mxu0 %v10250_v6  ;;  %v10303_v6 = vld [vmem:[%s15123_s3 + $0x654] ss:$8 sps:$4 sm:$0xff]  }
 0x325   : > { %6633 = vmatprep.subr.bf16.mxu0 %v10258_v42  ;;  %v5960_v42 = vld [vmem:[#allocation2] sm:$0x33] }
 0x326   : > { %6296 = vmatpush2.bf16.msra.mxu1 %v10253_v26  ;;  %v10304_v26 = vld [vmem:[%s15123_s3 + $0x730] ss:$8 sps:$4 sm:$0xff]  }
 0x327   : > { %6297 = vmatprep.subr.bf16.mxu1 %v10261_v62  ;;  %v14233_v62 = vld [vmem:[#allocation2 + $0x58] sm:$0xcc] }
 0x328   : > { %6634 = vmatpush2.bf16.msra.mxu0 %v10256_v19  ;;  %v10312_v19 = vld [vmem:[%s15123_s3 + $0x724] ss:$8 sps:$4 sm:$0xff]  }
 0x329   : > { %6635 = vmatprep.subr.bf16.mxu0 %v10264_v49  ;;  %v9143_v49 = vcombine.high %v5960_v42, %v5960_v42 }
 0x32a   : > { %6298 = vmatpush2.bf16.msra.mxu1 %v10259_v60  ;;  %v10307_v60 = vld [vmem:[%s15123_s3 + $0x640] ss:$8 sps:$4 sm:$0xff]  }
 0x32b   : > { %6299 = vmatprep.subr.bf16.mxu1 %v10267_v38  ;;  %v14249_v38 = vcombine.high %v14233_v62, %v13856_v51 }
 0x32c   : > { %6636 = vmatpush2.bf16.msra.mxu0 %v10262_v33  ;;  %v6097_v33 = vshrl.u32 %v9143_v49, 16 }
 0x32d   : > { %6637 = vmatprep.subr.bf16.mxu0 %v10270_v44  ;;  %v6100_v44 = vshll.u32 %v9143_v49, 16 }
 0x32e   : > { %6300 = vmatpush2.bf16.msra.mxu1 %v10265_v35  ;;  %v10313_v35 = vld [vmem:[%s15123_s3 + $0x630] ss:$8 sps:$4 sm:$0xff]  }
 0x32f   : > { %6301 = vmatprep.subr.bf16.mxu1 %v10273_v7  ;;  %v6437_v7 = vrot.slane %v9143_v49, 2  ;;  %v10341_v49 = vld [vmem:[%s15123_s3 + $0x7e4] ss:$8 sps:$4 sm:$0xff]  }
 0x330   : > { %6638 = vmatpush2.bf16.msra.mxu0 %v10268_v50  ;;  %v7153_v50 = vshrl.u32 %v14249_v38, 16 }
 0x331   : > { %6639 = vmatprep.subr.bf16.mxu0 %v10276_v45  ;;  %v7156_v45 = vshll.u32 %v14249_v38, 16 }
 0x332   : > { %6302 = vmatpush2.bf16.msra.mxu1 %v10271_v3  ;;  %v7161_v3 = vshrl.u32 %v13882_v23, 16 }
 0x333   : > { %6303 = vmatprep.subr.bf16.mxu1 %v10279_v56  ;;  %v7164_v56 = vshll.u32 %v13882_v23, 16 }
 0x334   : > { %6640 = vmatpush2.bf16.msra.mxu0 %v10274_v15  ;;  %v10316_v15 = vld [vmem:[%s15123_s3 + $0x710] ss:$8 sps:$4 sm:$0xff]  }
 0x335   : > { %7411 = vmatprep.subr.bf16.mxu0 %v10282_v58  ;;  %v9142_v58 = vcombine.low %v5960_v42, %v5960_v42  ;;  %v10330_v42 = vld [vmem:[%s15123_s3 + $0x7f0] ss:$8 sps:$4 sm:$0xff]  }
 0x336   : > { %6304 = vmatpush2.bf16.msra.mxu1 %v10277_v52  ;;  %v10325_v52 = vld [vmem:[%s15123_s3 + $0x704] ss:$8 sps:$4 sm:$0xff]  }
 0x337   : > { %6642 = vmatmul.mubr.bf16.vlgmr.msra.gmra.mxu0 %v13629_v18  ;;  %6305 = vmatprep.subr.bf16.mxu1 %v10285_v63  ;;  %v10289_v18 = vld [vmem:[%s15123_s3 + $0x670] ss:$8 sps:$4 sm:$0xff]   ;;  %v6099_v63 = vrot.slane %v6097_v33, 1  ;;  %v6804_v33 = vrot.slane %v14249_v38, 2 }
 0x338   : > { %6651 = vmatprep.mubr.bf16.mxu0 %v13639_v34  ;;  %7412 = vmatpush1.bf16.msra.mxu0 %v10280_v24  ;;  %v10297_v34 = vld [vmem:[%s15123_s3 + $0x664] ss:$8 sps:$4 sm:$0xff]   ;;  %v6102_v24 = vrot.slane %v6100_v44, 2  ;;  %v6805_v44 = vrot.slane %v13882_v23, 2  ;;  %v10395_v23 = vld [vmem:[%s15123_s3 + $0x854] ss:$8 sps:$4 sm:$0xff]  }
 0x339   : > { %7413 = vmatprep.subr.bf16.mxu0 %v10288_v14  ;;  %v15440_v14 = vrot.slane %v13650_v53, 2  ;;  %v10323_v53 = vld [vmem:[%s15123_s3 + $0x700] ss:$8 sps:$4 sm:$0xff]  }
 0x33a   : > { %6306 = vmatpush2.bf16.msra.mxu1 %v10283_v9 }
 0x33b   : > { %6993 = vmatprep.subr.bf16.mxu1 %v10291_v48  ;;  %v6438_v9 = vsel %vm2532_vm9, %v15440_v14, %v6437_v7  ;;  %v10320_v48 = vld [vmem:[%s15123_s3 + $0x620] ss:$8 sps:$4 sm:$0xff]   ;;  %v10342_v7 = vld [vmem:[%s15123_s3 + $0x6f0] ss:$8 sps:$4 sm:$0xff]   ;;  %v10365_v14 = vld [vmem:[%s15123_s3 + $0x7a4] ss:$8 sps:$4 sm:$0xff]  }
 0x33c   : > { %7414 = vmatpush1.bf16.msra.mxu0 %v10286_v11  ;;  %v7155_v11 = vrot.slane %v7153_v50, 2  ;;  %v10345_v50 = vld [vmem:[%s15123_s3 + $0x7d0] ss:$8 sps:$4 sm:$0xff]  }
 0x33d   : > { %6308 = vmatmul.mubr.bf16.vlgmr.msra.gmra.mxu1 %v13690_v40  ;;  %7415 = vmatprep.subr.bf16.mxu0 %v10294_v59  ;;  %v10298_v40 = vld [vmem:[%s15123_s3 + $0x740] ss:$8 sps:$4 sm:$0xff]   ;;  %v7158_v59 = vrot.slane %v7156_v45, 3  ;;  %v6806_v45 = vsel %vm2532_vm9, %v6804_v33, %v6805_v44 }
 0x33e   : > { %6317 = vmatprep.mubr.bf16.mxu1 %v13697_v61  ;;  %6994 = vmatpush1.bf16.msra.mxu1 %v10289_v18  ;;  %v10306_v61 = vld [vmem:[%s15123_s3 + $0x734] ss:$8 sps:$4 sm:$0xff]   ;;  %v7163_v18 = vrot.slane %v7161_v3, 2  ;;  %v10353_v3 = vld [vmem:[%s15123_s3 + $0x7c4] ss:$8 sps:$4 sm:$0xff]  }
 0x33f   : > { %6652 = vmatmul.mubr.bf16.gmra.mxu0 %v13672_v41  ;;  %6995 = vmatprep.subr.bf16.mxu1 %v10297_v34  ;;  %v10301_v41 = vld [vmem:[%s15123_s3 + $0x650] ss:$8 sps:$4 sm:$0xff]   ;;  %v6088_v34 = vshrl.u32 %v9142_v58, 16 }
 0x340   : > { %6661 = vmatprep.mubr.bf16.mxu0 %v13663_v32  ;;  %7416 = vmatpush1.bf16.msra.mxu0 %v10292_v20  ;;  %v10309_v32 = vld [vmem:[%s15123_s3 + $0x644] ss:$8 sps:$4 sm:$0xff]   ;;  %v6091_v20 = vshll.u32 %v9142_v58, 16 }
 0x341   : > { %7417 = vmatprep.subr.bf16.mxu0 %v10300_v25  ;;  %v6103_v25 = vor.u32 %v6102_v24, %v6099_v63  ;;  %v10362_v63 = vld [vmem:[%s15123_s3 + $0x6c4] ss:$8 sps:$4 sm:$0xff]   ;;  %v10357_v24 = vld [vmem:[%s15123_s3 + $0x7b0] ss:$8 sps:$4 sm:$0xff]  }
 0x342   : > { %6996 = vmatpush1.bf16.msra.mxu1 %v10295_v2  ;;  %v10326_v2 = vld [vmem:[%s15123_s3 + $0x610] ss:$8 sps:$4 sm:$0xff]  }
 0x343   : > { %6997 = vmatprep.subr.bf16.mxu1 %v10303_v6  ;;  %v6435_v6 = vrot.slane %v9142_v58, 2  ;;  %v10359_v58 = vld [vmem:[%s15123_s3 + $0x7b4] ss:$8 sps:$4 sm:$0xff]  }
 0x344   : > { %7418 = vmatpush1.bf16.msra.mxu0 %v10298_v40  ;;  %v7159_v40 = vor.u32 %v7158_v59, %v7155_v11  ;;  %v10363_v11 = vld [vmem:[%s15123_s3 + $0x7a0] ss:$8 sps:$4 sm:$0xff]  }
 0x345   : > { %6318 = vmatmul.mubr.bf16.gmra.mxu1 %v13729_v28  ;;  %7419 = vmatprep.subr.bf16.mxu0 %v10306_v61  ;;  %v10315_v28 = vld [vmem:[%s15123_s3 + $0x634] ss:$8 sps:$4 sm:$0xff]  }
 0x346   : > { %6327 = vmatprep.mubr.bf16.mxu1 %v13732_v8  ;;  %6998 = vmatpush1.bf16.msra.mxu1 %v10301_v41  ;;  %v10310_v8 = vld [vmem:[%s15123_s3 + $0x720] ss:$8 sps:$4 sm:$0xff]   ;;  %v10338_v41 = vld [vmem:[%s15123_s3 + $0x604] ss:$8 sps:$4 sm:$0xff]  }
 0x347   : > { %6662 = vmatmul.mubr.bf16.gmra.mxu0 %v13700_v47  ;;  %6999 = vmatprep.subr.bf16.mxu1 %v10309_v32  ;;  %v10318_v47 = vld [vmem:[%s15123_s3 + $0x714] ss:$8 sps:$4 sm:$0xff]   ;;  %v6090_v32 = vrot.slane %v6088_v34, 1 }
 0x348   : > { %6671 = vmatprep.mubr.bf16.mxu0 %v13707_v54  ;;  %7420 = vmatpush1.bf16.msra.mxu0 %v10304_v26  ;;  %v10322_v54 = vld [vmem:[%s15123_s3 + $0x624] ss:$8 sps:$4 sm:$0xff]   ;;  %v6093_v26 = vrot.slane %v6091_v20, 2 }
 0x349   : > { %7421 = vmatprep.subr.bf16.mxu0 %v10312_v19  ;;  %v6104_v19 = vsel %vm15441_vm8, %v13758_v27, %v6103_v25  ;;  %v10344_v27 = vld [vmem:[%s15123_s3 + $0x6f4] ss:$8 sps:$4 sm:$0xff]   ;;  %v10374_v20 = vld [vmem:[%s15123_s3 + $0x6a4] ss:$8 sps:$4 sm:$0xff]   ;;  %v7179_v25 = vshrl.u32 %v13884_v29, 16  ;;  %vm15502_vm8 = vmmov %vm15500_vm12 }
 0x34a   : > { %7000 = vmatpush1.bf16.msra.mxu1 %v10307_v60  ;;  %v15442_v60 = vrot.slane %v13681_v43, 2  ;;  %v10339_v43 = vld [vmem:[%s15123_s3 + $0x7e0] ss:$8 sps:$4 sm:$0xff]  }
 0x34b   : > { %7001 = vmatprep.subr.bf16.mxu1 %v10315_v28 }
 0x34c   : > { %7422 = vmatpush1.bf16.msra.mxu0 %v10310_v8  ;;  %v6436_v28 = vsel %vm2532_vm9, %v15442_v60, %v6435_v6  ;;  %v10336_v8 = vld [vmem:[%s15123_s3 + $0x600] ss:$8 sps:$4 sm:$0xff]   ;;  %v10377_v6 = vld [vmem:[%s15123_s3 + $0x784] ss:$8 sps:$4 sm:$0xff]  }
 0x34d   : > { %6328 = vmatmul.mubr.bf16.gmra.mxu1 %v13766_v46  ;;  %7423 = vmatprep.subr.bf16.mxu0 %v10318_v47  ;;  %v10328_v46 = vld [vmem:[%s15123_s3 + $0x614] ss:$8 sps:$4 sm:$0xff]   ;;  %v6094_v47 = vor.u32 %v6093_v26, %v6090_v32 }
 0x34e   : > { %6337 = vmatprep.mubr.bf16.mxu1 %v13775_v5  ;;  %7002 = vmatpush1.bf16.msra.mxu1 %v10313_v35  ;;  %v7166_v5 = vrot.slane %v7164_v56, 3  ;;  %v10347_v35 = vld [vmem:[%s15123_s3 + $0x7d4] ss:$8 sps:$4 sm:$0xff]  }
 0x34f   : > { %6672 = vmatmul.mubr.bf16.gmra.mxu0 %v13743_v22  ;;  %7003 = vmatprep.subr.bf16.mxu1 %v10322_v54  ;;  %v10332_v22 = vld [vmem:[%s15123_s3 + $0x7f4] ss:$8 sps:$4 sm:$0xff]   ;;  %v10350_v54 = vld [vmem:[%s15123_s3 + $0x6e4] ss:$8 sps:$4 sm:$0xff]   ;;  %v6095_v38 = vsel %vm15444_vm15, %v13784_v10, %v6094_v47  ;;  %v10348_v10 = vld [vmem:[%s15123_s3 + $0x6e0] ss:$8 sps:$4 sm:$0xff]  }
 0x350   : > { %6681 = vmatprep.mubr.bf16.mxu0 %v6438_v9  ;;  %7424 = vmatpush1.bf16.msra.mxu0 %v10316_v15  ;;  %v14295_v61 = vor.u32 %v7166_v5, %v7163_v18  ;;  %v10356_v56 = vld [vmem:[%s15123_s3 + $0x6d4] ss:$8 sps:$4 sm:$0xff]   ;;  %v10351_v15 = vld [vmem:[%s15123_s3 + $0x7c0] ss:$8 sps:$4 sm:$0xff]   ;;  %v14371_v9 = vcombine.low %v14233_v62, %v13856_v51  ;;  %v10366_v62 = vld [vmem:[%s15123_s3 + $0x6b0] ss:$8 sps:$4 sm:$0xff]  }
 0x351   : > { %7425 = vmatprep.subr.bf16.mxu0 %v10325_v52  ;;  %v10354_v52 = vld [vmem:[%s15123_s3 + $0x6d0] ss:$8 sps:$4 sm:$0xff]   ;;  %v10371_v51 = vld [vmem:[%s15123_s3 + $0x794] ss:$8 sps:$4 sm:$0xff]   ;;  %v15445_v5 = vld [vmem:[#allocation34_spill] sm:$0xff] }
 0x352   : > { %7004 = vmatpush1.bf16.msra.mxu1 %v10320_v48  ;;  %v10360_v48 = vld [vmem:[%s15123_s3 + $0x6c0] ss:$8 sps:$4 sm:$0xff]   ;;  %v7136_v59 = vshrl.u32 %v14371_v9, 16  ;;  %v7139_v18 = vshll.u32 %v14371_v9, 16  ;;  %v7147_v34 = vshll.u32 %v15445_v5, 16  ;;  %vm15504_vm15 = vmmov %vm15502_vm8 }
 0x353   : > { %7005 = vmatprep.subr.bf16.mxu1 %v10328_v46  ;;  %v10368_v46 = vld [vmem:[%s15123_s3 + $0x6b4] ss:$8 sps:$4 sm:$0xff]  }
 0x354   : > { %7426 = vmatpush1.bf16.msra.mxu0 %v10323_v53  ;;  %v7144_v53 = vshrl.u32 %v15445_v5, 16  ;;  %v7149_v26 = vrot.slane %v7147_v34, 3 }
 0x355   : > { %6338 = vmatmul.mubr.bf16.gmra.mxu1 %v13795_v12  ;;  %7427 = vmatprep.subr.bf16.mxu0 %v10332_v22  ;;  %v7168_v12 = vsel %vm15443_vm10, %v7159_v40, %v14295_v61  ;;  %v7182_v22 = vshll.u32 %v13884_v29, 16  ;;  %v10372_v40 = vld [vmem:[%s15123_s3 + $0x6a0] ss:$8 sps:$4 sm:$0xff]   ;;  %vm15503_vm10 = vmmov %vm15501_vm5 }
 0x356   : > { %6347 = vmatprep.mubr.bf16.mxu1 %v6104_v19  ;;  %7006 = vmatpush1.bf16.msra.mxu1 %v10326_v2  ;;  %v10369_v2 = vld [vmem:[%s15123_s3 + $0x790] ss:$8 sps:$4 sm:$0xff]   ;;  %v7146_v32 = vrot.slane %v7144_v53, 2  ;;  %v10380_v19 = vld [vmem:[%s15123_s3 + $0x694] ss:$8 sps:$4 sm:$0xff]  }
 0x357   : > { %6682 = vmatmul.mubr.bf16.gmra.mxu0 %v6436_v28  ;;  %7007 = vmatprep.subr.bf16.mxu1 %v10338_v41  ;;  %v7138_v41 = vrot.slane %v7136_v59, 2  ;;  %v7184_v60 = vrot.slane %v7182_v22, 3  ;;  %v10375_v28 = vld [vmem:[%s15123_s3 + $0x780] ss:$8 sps:$4 sm:$0xff]   ;;  %v7188_v59 = vshrl.u32 %v13893_v36, 16 }
 0x358   : > { %7428 = vmatpush2.bf16.msra.mxu0 %v10330_v42  ;;  %7443 = vmatprep.mubr.bf16.mxu0 %v7168_v12  ;;  %v7141_v42 = vrot.slane %v7139_v18, 3  ;;  %v7191_v18 = vshll.u32 %v13893_v36, 16 }
 0x359   : > { %7429 = vmatprep.subr.bf16.mxu0 %v10341_v49  ;;  %v7181_v49 = vrot.slane %v7179_v25, 2 }
 0x35a   : > { %7008 = vmatpush1.bf16.msra.mxu1 %v10336_v8  ;;  %v10378_v8 = vld [vmem:[%s15123_s3 + $0x690] ss:$8 sps:$4 sm:$0xff]   ;;  %v7142_v12 = vor.u32 %v7141_v42, %v7138_v41  ;;  %v7190_v41 = vrot.slane %v7188_v59, 2  ;;  %v7193_v42 = vrot.slane %v7191_v18, 3 }
 0x35b   : > { %7009 = vmatprep.subr.bf16.mxu1 %v10344_v27  ;;  %v7150_v27 = vor.u32 %v7149_v26, %v7146_v32 }
 0x35c   : > { %7430 = vmatpush2.bf16.msra.mxu0 %v10339_v43  ;;  %v15446_v43 = vld [vmem:[#allocation24_spill] sm:$0xff] }
 0x35d   : > { %6348 = vmatmul.mubr.bf16.gmra.mxu1 %v6095_v38  ;;  %7431 = vmatprep.subr.bf16.mxu0 %v10347_v35  ;;  %v7170_v47 = vshrl.u32 %v15446_v43, 16  ;;  %v7173_v33 = vshll.u32 %v15446_v43, 16  ;;  %v7185_v35 = vor.u32 %v7184_v60, %v7181_v49 }
 0x35e   : > { %7010 = vmatpush2.bf16.msra.mxu1 %v10342_v7  ;;  %7025 = vmatprep.mubr.bf16.mxu1 %v6806_v45  ;;  %v10385_v7 = vld [vmem:[%s15123_s3 + $0x684] ss:$8 sps:$4 sm:$0xff]   ;;  %v7151_v45 = vsel %vm15448_vm4, %v7142_v12, %v7150_v27  ;;  %vm15505_vm4 = vmmov %vm15501_vm5 }
 0x35f   : > { %7011 = vmatprep.subr.bf16.mxu1 %v10350_v54  ;;  %v15447_v54 = vld [vmem:[#allocation25_spill] sm:$0xff] }
 0x360   : > { %7432 = vmatpush2.bf16.msra.mxu0 %v10345_v50  ;;  %v7197_v38 = vshrl.u32 %v15447_v54, 16  ;;  %v7200_v50 = vshll.u32 %v15447_v54, 16 }
 0x361   : > { %7433 = vmatprep.subr.bf16.mxu0 %v10353_v3 }
 0x362   : > { %7012 = vmatpush2.bf16.msra.mxu1 %v10348_v10  ;;  %v10383_v10 = vld [vmem:[%s15123_s3 + $0x680] ss:$8 sps:$4 sm:$0xff]  }
 0x363   : > { %7013 = vmatprep.subr.bf16.mxu1 %v10356_v56  ;;  %v7172_v56 = vrot.slane %v7170_v47, 2 }
 0x364   : > { %7434 = vmatpush2.bf16.msra.mxu0 %v10351_v15  ;;  %v7175_v15 = vrot.slane %v7173_v33, 3  ;;  %v10393_v33 = vld [vmem:[%s15123_s3 + $0x850] ss:$8 sps:$4 sm:$0xff]  }
 0x365   : > { %7435 = vmatprep.subr.bf16.mxu0 %v10359_v58  ;;  %v7186_v58 = vsel %vm15449_vm2, %v14295_v61, %v7185_v35  ;;  %v10386_v61 = vld [vmem:[%s15123_s3 + $0x870] ss:$8 sps:$4 sm:$0xff]  }
 0x366   : > { %7014 = vmatpush2.bf16.msra.mxu1 %v10354_v52  ;;  %v10388_v52 = vld [vmem:[%s15123_s3 + $0x874] ss:$8 sps:$4 sm:$0xff]  }
 0x367   : > { %7015 = vmatprep.subr.bf16.mxu1 %v10362_v63  ;;  %v7199_v63 = vrot.slane %v7197_v38, 2  ;;  %v7209_v38 = vshll.u32 %v13901_v55, 16 }
 0x368   : > { %7436 = vmatpush2.bf16.msra.mxu0 %v10357_v24  ;;  %v7202_v24 = vrot.slane %v7200_v50, 3 }
 0x369   : > { %7437 = vmatprep.subr.bf16.mxu0 %v10365_v14 }
 0x36a   : > { %7016 = vmatpush2.bf16.msra.mxu1 %v10360_v48  ;;  %v6801_v48 = vrot.slane %v14371_v9, 2  ;;  %v7203_v53 = vor.u32 %v7202_v24, %v7199_v63  ;;  %v10392_v9 = vld [vmem:[%s15123_s3 + $0x864] ss:$8 sps:$4 sm:$0xff]  }
 0x36b   : > { %7017 = vmatprep.subr.bf16.mxu1 %v10368_v46  ;;  %v6802_v46 = vrot.slane %v15445_v5, 2  ;;  %v7215_v5 = vshrl.u32 %v13895_v39, 16 }
 0x36c   : > { %7438 = vmatpush2.bf16.msra.mxu0 %v10363_v11  ;;  %v6809_v11 = vrot.slane %v13884_v29, 2  ;;  %v7218_v29 = vshll.u32 %v13895_v39, 16  ;;  %v7204_v26 = vsel %vm15451_vm14, %v7185_v35, %v7203_v53  ;;  %v7194_v35 = vor.u32 %v7193_v42, %v7190_v41 }
 0x36d   : > { %7439 = vmatprep.subr.bf16.mxu0 %v10371_v51 }
 0x36e   : > { %7018 = vmatpush2.bf16.msra.mxu1 %v10366_v62  ;;  %v7176_v62 = vor.u32 %v7175_v15, %v7172_v56  ;;  %v6810_v22 = vsel %vm2532_vm9, %v6805_v44, %v6809_v11  ;;  %v7217_v44 = vrot.slane %v7215_v5, 2  ;;  %v7220_v49 = vrot.slane %v7218_v29, 3 }
 0x36f   : > { %7019 = vmatprep.subr.bf16.mxu1 %v10374_v20  ;;  %v6803_v20 = vsel %vm2532_vm9, %v6801_v48, %v6802_v46  ;;  %v7211_v48 = vrot.slane %v7209_v38, 3 }
 0x370   : > { %7440 = vmatpush2.bf16.msra.mxu0 %v10369_v2  ;;  %v7195_v24 = vsel %vm15452_vm7, %v7176_v62, %v7194_v35 }
 0x371   : > { %7441 = vmatprep.subr.bf16.mxu0 %v10377_v6  ;;  %v7177_v6 = vsel %vm15450_vm0, %v7150_v27, %v7176_v62  ;;  %v6813_v27 = vrot.slane %v15447_v54, 2  ;;  %v10400_v54 = vld [vmem:[%s15123_s3 + $0x844] ss:$8 sps:$4 sm:$0xff]  }
 0x372   : > { %7020 = vmatpush2.bf16.msra.mxu1 %v10372_v40  ;;  %v10390_v40 = vld [vmem:[%s15123_s3 + $0x860] ss:$8 sps:$4 sm:$0xff]  }
 0x373   : > { %7021 = vmatprep.subr.bf16.mxu1 %v10380_v19 }
 0x374   : > { %7442 = vmatpush2.bf16.msra.mxu0 %v10375_v28  ;;  %v6807_v28 = vrot.slane %v15446_v43, 2  ;;  %v7221_v43 = vor.u32 %v7220_v49, %v7217_v44 }
 0x376   : > { %7022 = vmatpush2.bf16.msra.mxu1 %v10378_v8  ;;  %v5193_v3 = vpop.f32.mrf.mxu0  ;;  %v6808_v15 = vsel %vm2532_vm9, %v6802_v46, %v6807_v28  ;;  %v7222_v46 = vsel %vm15453_vm3, %v7203_v53, %v7221_v43  ;;  %v10401_v53 = vld [vmem:[%s15123_s3 + $0x830] ss:$8 sps:$4 sm:$0xff]  }
 0x377   : > { %7444 = vmatmul.mubr.bf16.vlgmr.msra.gmra.mxu0 %v7151_v45  ;;  %7023 = vmatprep.subr.bf16.mxu1 %v10385_v7  ;;  %v7206_v7 = vshrl.u32 %v13901_v55, 16  ;;  %v6814_v55 = vsel %vm2532_vm9, %v6809_v11, %v6813_v27  ;;  %v10403_v11 = vld [vmem:[%s15123_s3 + $0x834] ss:$8 sps:$4 sm:$0xff]  }
 0x378   : > { %7453 = vmatprep.mubr.bf16.mxu0 %v7186_v58  ;;  %v5195_v14 = vpop.f32.mrf.mxu0 }
 0x37a   : > { %7024 = vmatpush2.bf16.msra.mxu1 %v10383_v10  ;;  %v5197_v51 = vpop.f32.mrf.mxu0  ;;  %v7236_v10 = vshll.u32 %v13909_v30, 16 }
 0x37b   : > { %7745 = vmatprep.subr.bf16.mxu1 %v10388_v52 }
 0x37c   : > { %v5199_v34 = vpop.f32.mrf.mxu0  ;;  %v7238_v18 = vrot.slane %v7236_v10, 3 }
 0x37d   : > { %7026 = vmatmul.mubr.bf16.vlgmr.msra.gmra.mxu1 %v6803_v20  ;;  %v4940_v25 = vpop.f32.mrf.mxu1 }
 0x37e   : > { %v14448_v2 = vadd.f32 %v5193_v3, %v4940_v25  ;;  %7035 = vmatprep.mubr.bf16.mxu1 %v6810_v22  ;;  %7746 = vmatpush1.bf16.msra.mxu1 %v10386_v61  ;;  %v7233_v3 = vshrl.u32 %v13909_v30, 16  ;;  %v7208_v30 = vrot.slane %v7206_v7, 2  ;;  %v6722_v22 = vld [vmem:[#allocation2 + $0x30] sm:$0x33] }
 0x37f   : > { %7454 = vmatmul.mubr.bf16.gmra.mxu0 %v7177_v6  ;;  %v5203_v32 = vpop.f32.mrf.mxu0  ;;  %v4942_v19 = vpop.f32.mrf.mxu1  ;;  %7747 = vmatprep.subr.bf16.mxu1 %v10392_v9  ;;  %v6811_v9 = vrot.slane %v13893_v36, 2  ;;  %v7224_v6 = vshrl.u32 %v13916_v1, 16  ;;  %v9285_v49 = vcombine.high %v6722_v22, %v6722_v22 }
 0x380   : > { %7463 = vmatprep.mubr.bf16.mxu0 %v7204_v26  ;;  %v14458_v60 = vadd.f32 %v5195_v14, %v4942_v19  ;;  %v10398_v14 = vld [vmem:[%s15123_s3 + $0x840] ss:$8 sps:$4 sm:$0xff]   ;;  %v7235_v59 = vrot.slane %v7233_v3, 2  ;;  %v7212_v25 = vor.u32 %v7211_v48, %v7208_v30 }
 0x381   : > { %v5205_v8 = vpop.f32.mrf.mxu0  ;;  %v4944_v12 = vpop.f32.mrf.mxu1  ;;  %v6812_v26 = vsel %vm2532_vm9, %v6807_v28, %v6811_v9 }
 0x382   : > { %v14462_v47 = vadd.f32 %v5197_v51, %v4944_v12  ;;  %7748 = vmatpush1.bf16.msra.mxu1 %v10390_v40  ;;  %v7227_v40 = vshll.u32 %v13916_v1, 16  ;;  %v7239_v36 = vor.u32 %v7238_v18, %v7235_v59  ;;  %v7213_v1 = vsel %vm15454_vm13, %v7194_v35, %v7212_v25  ;;  %v10406_v12 = vld [vmem:[%s15123_s3 + $0x820] ss:$8 sps:$4 sm:$0xff]  }
 0x383   : > { %v5207_v50 = vpop.f32.mrf.mxu0  ;;  %v4946_v45 = vpop.f32.mrf.mxu1  ;;  %7749 = vmatprep.subr.bf16.mxu1 %v10395_v23  ;;  %v10455_v35 = vld [vmem:[#allocation2 + $0x10] ss:$-16 sps:$4 sm:$0xff]  }
 0x384   : > { %v14474_v56 = vadd.f32 %v5199_v34, %v4946_v45  ;;  %v6817_v34 = vrot.slane %v13895_v39, 2  ;;  %v10408_v39 = vld [vmem:[%s15123_s3 + $0x824] ss:$8 sps:$4 sm:$0xff]   ;;  %v7229_v7 = vrot.slane %v7227_v40, 3  ;;  %v7240_v38 = vsel %vm15455_vm6, %v7221_v43, %v7239_v36  ;;  %v10409_v43 = vld [vmem:[%s15123_s3 + $0x810] ss:$8 sps:$4 sm:$0xff]  }
 0x385   : > { %v5209_v58 = vpop.f32.mrf.mxu0  ;;  %7036 = vmatmul.mubr.bf16.gmra.mxu1 %v6808_v15  ;;  %v4950_v52 = vpop.f32.mrf.mxu1  ;;  %v6821_v15 = vrot.slane %v9285_v49, 2  ;;  %v10423_v36 = vld [vmem:[%s15123_s3 + $0x8e4] ss:$8 sps:$4 sm:$0xff]  }
 0x386   : > { %v14478_v63 = vadd.f32 %v5203_v32, %v4950_v52  ;;  %7045 = vmatprep.mubr.bf16.mxu1 %v6814_v55  ;;  %7750 = vmatpush1.bf16.msra.mxu1 %v10393_v33  ;;  %v6818_v44 = vsel %vm2532_vm9, %v6813_v27, %v6817_v34  ;;  %v7226_v33 = vrot.slane %v7224_v6, 2  ;;  %v10411_v27 = vld [vmem:[%s15123_s3 + $0x814] ss:$8 sps:$4 sm:$0xff]  }
 0x387   : > { %7464 = vmatmul.mubr.bf16.gmra.mxu0 %v7195_v24  ;;  %v5213_v51 = vpop.f32.mrf.mxu0  ;;  %v4952_v61 = vpop.f32.mrf.mxu1  ;;  %7751 = vmatprep.subr.bf16.mxu1 %v10400_v54  ;;  %v6815_v54 = vrot.slane %v10455_v35, 2 }
 0x388   : > { %7473 = vmatprep.mubr.bf16.mxu0 %v7222_v46  ;;  %v14488_v62 = vadd.f32 %v5205_v8, %v4952_v61  ;;  %v7230_v52 = vor.u32 %v7229_v7, %v7226_v33 }
 0x389   : > { %v5215_v5 = vpop.f32.mrf.mxu0  ;;  %v4954_v29 = vpop.f32.mrf.mxu1  ;;  %v6816_v48 = vsel %vm2532_vm9, %v6811_v9, %v6815_v54  ;;  %v10420_v9 = vld [vmem:[%s15123_s3 + $0x8f4] ss:$8 sps:$4 sm:$0xff]  }
 0x38a   : > { %v14492_v20 = vadd.f32 %v5207_v50, %v4954_v29  ;;  %7752 = vmatpush1.bf16.msra.mxu1 %v10398_v14  ;;  %v10416_v14 = vld [vmem:[%s15123_s3 + $0x804] ss:$8 sps:$4 sm:$0xff]   ;;  %v7231_v18 = vsel %vm15456_vm1, %v7212_v25, %v7230_v52  ;;  %v10418_v25 = vld [vmem:[%s15123_s3 + $0x8f0] ss:$8 sps:$4 sm:$0xff]   ;;  %v10438_v52 = vld [vmem:[%s15123_s3 + $0x894] ss:$8 sps:$4 sm:$0xff]  }
 0x38b   : > { %v5217_v41 = vpop.f32.mrf.mxu0  ;;  %v4956_v42 = vpop.f32.mrf.mxu1  ;;  %7753 = vmatprep.subr.bf16.mxu1 %v10403_v11  ;;  %v6822_v11 = vsel %vm2532_vm9, %v6817_v34, %v6821_v15  ;;  %v10435_v15 = vld [vmem:[%s15123_s3 + $0x8a4] ss:$8 sps:$4 sm:$0xff]  }
 0x38c   : > { %v14502_v32 = vadd.f32 %v5209_v58, %v4956_v42 }
 0x38d   : > { %v5219_v19 = vpop.f32.mrf.mxu0  ;;  %7046 = vmatmul.mubr.bf16.gmra.mxu1 %v6812_v26  ;;  %v4960_v23 = vpop.f32.mrf.mxu1 }
 0x38e   : > { %v14506_v8 = vadd.f32 %v5213_v51, %v4960_v23  ;;  %7055 = vmatprep.mubr.bf16.mxu1 %v6818_v44  ;;  %7754 = vmatpush1.bf16.msra.mxu1 %v10401_v53  ;;  %v9284_v51 = vcombine.low %v6722_v22, %v6722_v22  ;;  %v10421_v44 = vld [vmem:[%s15123_s3 + $0x8e0] ss:$8 sps:$4 sm:$0xff]  }
 0x38f   : > { %7474 = vmatmul.mubr.bf16.gmra.mxu0 %v7213_v1  ;;  %v5223_v28 = vpop.f32.mrf.mxu0  ;;  %v4962_v50 = vpop.f32.mrf.mxu1  ;;  %7755 = vmatprep.subr.bf16.mxu1 %v10408_v39 }
 0x390   : > { %7483 = vmatprep.mubr.bf16.mxu0 %v7240_v38  ;;  %v14516_v45 = vadd.f32 %v5215_v5, %v4962_v50  ;;  %v10414_v5 = vld [vmem:[%s15123_s3 + $0x800] ss:$8 sps:$4 sm:$0xff]   ;;  %v6819_v34 = vrot.slane %v9284_v51, 2 }
 0x391   : > { %v5225_v3 = vpop.f32.mrf.mxu0  ;;  %v4964_v10 = vpop.f32.mrf.mxu1 }
 0x392   : > { %v14518_v58 = vadd.f32 %v5217_v41, %v4964_v10  ;;  %7756 = vmatpush1.bf16.msra.mxu1 %v10406_v12  ;;  %v6820_v26 = vsel %vm2532_vm9, %v6815_v54, %v6819_v34  ;;  %v10426_v12 = vld [vmem:[%s15123_s3 + $0x8d4] ss:$8 sps:$4 sm:$0xff]   ;;  %v10427_v54 = vld [vmem:[%s15123_s3 + $0x8c0] ss:$8 sps:$4 sm:$0xff]   ;;  %v10430_v10 = vld [vmem:[%s15123_s3 + $0x8b0] ss:$8 sps:$4 sm:$0xff]  }
 0x393   : > { %v5227_v55 = vpop.f32.mrf.mxu0  ;;  %v4966_v24 = vpop.f32.mrf.mxu1  ;;  %7757 = vmatprep.subr.bf16.mxu1 %v10411_v27  ;;  %v10429_v27 = vld [vmem:[%s15123_s3 + $0x8c4] ss:$8 sps:$4 sm:$0xff]  }
 0x394   : > { %v14526_v30 = vadd.f32 %v5219_v19, %v4966_v24  ;;  %v10441_v24 = vld [vmem:[%s15123_s3 + $0x884] ss:$8 sps:$4 sm:$0xff]  }
 0x395   : > { %v5229_v46 = vpop.f32.mrf.mxu0  ;;  %7056 = vmatmul.mubr.bf16.gmra.mxu1 %v6816_v48  ;;  %v4970_v61 = vpop.f32.mrf.mxu1 }
 0x396   : > { %v14530_v59 = vadd.f32 %v5223_v28, %v4970_v61  ;;  %7065 = vmatprep.mubr.bf16.mxu1 %v6822_v11  ;;  %7758 = vmatpush1.bf16.msra.mxu1 %v10409_v43  ;;  %v10433_v43 = vld [vmem:[%s15123_s3 + $0x8a0] ss:$8 sps:$4 sm:$0xff]  }
 0x397   : > { %7484 = vmatmul.mubr.bf16.gmra.mxu0 %v7231_v18  ;;  %v5233_v29 = vpop.f32.mrf.mxu0  ;;  %v4972_v53 = vpop.f32.mrf.mxu1  ;;  %7759 = vmatprep.subr.bf16.mxu1 %v10416_v14  ;;  %v10439_v14 = vld [vmem:[%s15123_s3 + $0x880] ss:$8 sps:$4 sm:$0xff]   ;;  %v15457_v18 = vld [vmem:[#allocation36_spill] sm:$0xff] }
 0x398   : > { %v14539_v22 = vadd.f32 %v5225_v3, %v4972_v53  ;;  %v10432_v3 = vld [vmem:[%s15123_s3 + $0x8b4] ss:$8 sps:$4 sm:$0xff]  }
 0x399   : > { %v4974_v6 = vpop.f32.mrf.mxu1  ;;  %v5235_v41 = vpop.f32.mrf.mxu0 }
 0x39a   : > { %v14541_v40 = vadd.f32 %v5227_v55, %v4974_v6  ;;  %7760 = vmatpush1.bf16.msra.mxu1 %v10414_v5  ;;  %v10436_v55 = vld [vmem:[%s15123_s3 + $0x890] ss:$8 sps:$4 sm:$0xff]  }
 0x39b   : > { %v4976_v42 = vpop.f32.mrf.mxu1  ;;  %7761 = vmatprep.subr.bf16.mxu1 %v10420_v9  ;;  %v5237_v49 = vpop.f32.mrf.mxu0 }
 0x39c   : > { %v14549_v39 = vadd.f32 %v5229_v46, %v4976_v42 }
 0x39d   : > { %7066 = vmatmul.mubr.bf16.gmra.mxu1 %v6820_v26  ;;  %v4980_v19 = vpop.f32.mrf.mxu1  ;;  %v5239_v38 = vpop.f32.mrf.mxu0 }
 0x39e   : > { %v14552_v23 = vadd.f32 %v5233_v29, %v4980_v19  ;;  %7762 = vmatpush2.bf16.msra.mxu1 %v10418_v25  ;;  %7777 = vmatprep.mubr.bf16.mxu1 %v13925_v4  ;;  %v10424_v4 = vld [vmem:[%s15123_s3 + $0x8d0] ss:$8 sps:$4 sm:$0xff]  }
 0x39f   : > { %v4982_v1 = vpop.f32.mrf.mxu1  ;;  %7763 = vmatprep.subr.bf16.mxu1 %v10423_v36 }
 0x3a0   : > { %v14561_v33 = vadd.f32 %v5235_v41, %v4982_v1 }
 0x3a1   : > { %v4984_v7 = vpop.f32.mrf.mxu1 }
 0x3a2   : > { %v14563_v28 = vadd.f32 %v5237_v49, %v4984_v7  ;;  %7764 = vmatpush2.bf16.msra.mxu1 %v10421_v44 }
 0x3a3   : > { %v4986_v50 = vpop.f32.mrf.mxu1  ;;  %7765 = vmatprep.subr.bf16.mxu1 %v10426_v12 }
 0x3a4   : > { %v14571_v35 = vadd.f32 %v5239_v38, %v4986_v50 }
 0x3a6   : > { %7766 = vmatpush2.bf16.msra.mxu1 %v10424_v4 }
 0x3a7   : > { %7767 = vmatprep.subr.bf16.mxu1 %v10429_v27 }
 0x3aa   : > { %7768 = vmatpush2.bf16.msra.mxu1 %v10427_v54 }
 0x3ab   : > { %7769 = vmatprep.subr.bf16.mxu1 %v10432_v3 }
 0x3ae   : > { %7770 = vmatpush2.bf16.msra.mxu1 %v10430_v10 }
 0x3af   : > { %7771 = vmatprep.subr.bf16.mxu1 %v10435_v15 }
 0x3b2   : > { %7772 = vmatpush2.bf16.msra.mxu1 %v10433_v43 }
 0x3b3   : > { %7773 = vmatprep.subr.bf16.mxu1 %v10438_v52 }
 0x3b6   : > { %7774 = vmatpush2.bf16.msra.mxu1 %v10436_v55 }
 0x3b7   : > { %v5891_v48 = vpop.f32.mrf.mxu0  ;;  %7775 = vmatprep.subr.bf16.mxu1 %v10441_v24 }
 0x3b9   : > { %v5893_v51 = vpop.f32.mrf.mxu0 }
 0x3ba   : > { %7776 = vmatpush2.bf16.msra.mxu1 %v10439_v14 }
 0x3bb   : > { %v5895_v46 = vpop.f32.mrf.mxu0 }
 0x3bd   : > { %v5897_v61 = vpop.f32.mrf.mxu0  ;;  %v5507_v11 = vpop.f32.mrf.mxu1  ;;  %7778 = vmatmul.mubr.bf16.vlgmr.msra.gmra.mxu1 %v15457_v18 }
 0x3be   : > { %v5556_v5 = vadd.f32 %v5507_v11, %v14448_v2  ;;  %7787 = vmatprep.mubr.bf16.mxu1 %v13939_v57 }
 0x3bf   : > { %v5901_v29 = vpop.f32.mrf.mxu0  ;;  %v5509_v53 = vpop.f32.mrf.mxu1 }
 0x3c0   : > { %v5557_v9 = vadd.f32 %v5509_v53, %v14458_v60  ;;  %v14604_v34 = vadd.f32 %v5891_v48, %v5556_v5 }
 0x3c1   : > { %v5903_v6 = vpop.f32.mrf.mxu0  ;;  %v5511_v25 = vpop.f32.mrf.mxu1 }
 0x3c2   : > { %v5558_v41 = vadd.f32 %v5511_v25, %v14462_v47  ;;  %v14607_v42 = vadd.f32 %v5893_v51, %v5557_v9 }
 0x3c3   : > { %v5905_v36 = vpop.f32.mrf.mxu0  ;;  %v5513_v26 = vpop.f32.mrf.mxu1 }
 0x3c4   : > { %v5559_v19 = vadd.f32 %v5513_v26, %v14474_v56  ;;  %v14610_v44 = vadd.f32 %v5895_v46, %v5558_v41 }
 0x3c5   : > { %v5907_v2 = vpop.f32.mrf.mxu0  ;;  %v5517_v57 = vpop.f32.mrf.mxu1  ;;  %7788 = vmatmul.mubr.bf16.gmra.mxu1 %v13942_v16 }
 0x3c6   : > { %v5560_v60 = vadd.f32 %v5517_v57, %v14478_v63  ;;  %7797 = vmatprep.mubr.bf16.mxu1 %v13949_v0  ;;  %v14615_v49 = vadd.f32 %v5897_v61, %v5559_v19 }
 0x3c7   : > { %v5911_v1 = vpop.f32.mrf.mxu0  ;;  %v5519_v47 = vpop.f32.mrf.mxu1 }
 0x3c8   : > { %v5561_v12 = vadd.f32 %v5519_v47, %v14488_v62  ;;  %v14618_v7 = vadd.f32 %v5901_v29, %v5560_v60 }
 0x3c9   : > { %v5913_v4 = vpop.f32.mrf.mxu0  ;;  %v5521_v56 = vpop.f32.mrf.mxu1 }
 0x3ca   : > { %v5562_v38 = vadd.f32 %v5521_v56, %v14492_v20  ;;  %v14621_v50 = vadd.f32 %v5903_v6, %v5561_v12 }
 0x3cb   : > { %v5915_v27 = vpop.f32.mrf.mxu0  ;;  %v5523_v16 = vpop.f32.mrf.mxu1 }
 0x3cc   : > { %v5563_v63 = vadd.f32 %v5523_v16, %v14502_v32  ;;  %v14624_v54 = vadd.f32 %v5905_v36, %v5562_v38 }
 0x3cd   : > { %v5917_v0 = vpop.f32.mrf.mxu0  ;;  %v5527_v3 = vpop.f32.mrf.mxu1  ;;  %7798 = vmatmul.mubr.bf16.gmra.mxu1 %v13952_v31 }
 0x3ce   : > { %v5564_v62 = vadd.f32 %v5527_v3, %v14506_v8  ;;  %7807 = vmatprep.mubr.bf16.mxu1 %v13955_v37  ;;  %v14629_v10 = vadd.f32 %v5907_v2, %v5563_v63 }
 0x3cf   : > { %v5921_v15 = vpop.f32.mrf.mxu0  ;;  %v5529_v20 = vpop.f32.mrf.mxu1 }
 0x3d0   : > { %v5565_v43 = vadd.f32 %v5529_v20, %v14516_v45  ;;  %v5948_v52 = vadd.f32 %v5911_v1, %v5564_v62 }
 0x3d1   : > { %v5923_v55 = vpop.f32.mrf.mxu0  ;;  %v5531_v24 = vpop.f32.mrf.mxu1 }
 0x3d2   : > { %v5566_v32 = vadd.f32 %v5531_v24, %v14518_v58  ;;  %v5949_v14 = vadd.f32 %v5913_v4, %v5565_v43 }
 0x3d3   : > { %v5925_v48 = vpop.f32.mrf.mxu0  ;;  %v5533_v51 = vpop.f32.mrf.mxu1 }
 0x3d4   : > { %v5567_v31 = vadd.f32 %v5533_v51, %v14526_v30  ;;  %v5950_v46 = vadd.f32 %v5915_v27, %v5566_v32 }
 0x3d5   : > { %v5927_v8 = vpop.f32.mrf.mxu0  ;;  %v5537_v61 = vpop.f32.mrf.mxu1  ;;  %7808 = vmatmul.mubr.bf16.gmra.mxu1 %v13962_v13 }
 0x3d6   : > { %v5568_v37 = vadd.f32 %v5537_v61, %v14530_v59  ;;  %7817 = vmatprep.mubr.bf16.mxu1 %v13969_v17  ;;  %v5951_v45 = vadd.f32 %v5917_v0, %v5567_v31 }
 0x3d7   : > { %v5539_v11 = vpop.f32.mrf.mxu1  ;;  %v5931_v58 = vpop.f32.mrf.mxu0 }
 0x3d8   : > { %v5569_v18 = vadd.f32 %v5539_v11, %v14539_v22  ;;  %v5952_v5 = vadd.f32 %v5921_v15, %v5568_v37 }
 0x3d9   : > { %v5541_v29 = vpop.f32.mrf.mxu1  ;;  %v5933_v41 = vpop.f32.mrf.mxu0 }
 0x3da   : > { %v5570_v53 = vadd.f32 %v5541_v29, %v14541_v40  ;;  %v5953_v9 = vadd.f32 %v5923_v55, %v5569_v18 }
 0x3db   : > { %v5543_v30 = vpop.f32.mrf.mxu1  ;;  %v5935_v19 = vpop.f32.mrf.mxu0 }
 0x3dc   : > { %v5571_v6 = vadd.f32 %v5543_v30, %v14549_v39  ;;  %v5954_v25 = vadd.f32 %v5925_v48, %v5570_v53 }
 0x3dd   : > { %v5547_v13 = vpop.f32.mrf.mxu1  ;;  %7818 = vmatmul.mubr.bf16.gmra.mxu1 %v13976_v21  ;;  %v5937_v47 = vpop.f32.mrf.mxu0 }
 0x3de   : > { %v5572_v17 = vadd.f32 %v5547_v13, %v14552_v23  ;;  %v5955_v59 = vadd.f32 %v5927_v8, %v5571_v6 }
 0x3df   : > { %v5549_v36 = vpop.f32.mrf.mxu1 }
 0x3e0   : > { %v5573_v22 = vadd.f32 %v5549_v36, %v14561_v33  ;;  %v5956_v26 = vadd.f32 %v5931_v58, %v5572_v17 }
 0x3e1   : > { %v5551_v2 = vpop.f32.mrf.mxu1 }
 0x3e2   : > { %v5574_v40 = vadd.f32 %v5551_v2, %v14563_v28  ;;  %v5957_v57 = vadd.f32 %v5933_v41, %v5573_v22 }
 0x3e3   : > { %v5553_v60 = vpop.f32.mrf.mxu1 }
 0x3e4   : > { %v5575_v39 = vadd.f32 %v5553_v60, %v14571_v35  ;;  %v5958_v1 = vadd.f32 %v5935_v19, %v5574_v40 }
 0x3e6   : > { %v5959_v12 = vadd.f32 %v5937_v47, %v5575_v39 }
 0x3f7   : > { %v14660_v0 = vpop.f32.mrf.mxu0 }
 0x3f9   : > { %v14668_v62 = vpop.f32.mrf.mxu0 }
 0x3fb   : > { %v14675_v43 = vpop.f32.mrf.mxu0 }
 0x3fd   : > { %v6309_v4 = vpop.f32.mrf.mxu1 }
 0x3fe   : > { %v14646_v21 = vadd.f32 %v6309_v4, %v14604_v34 }
 0x3ff   : > { %v6311_v23 = vpop.f32.mrf.mxu1 }
 0x400   : > { %v14649_v56 = vadd.f32 %v6311_v23, %v14607_v42 }
 0x401   : > { %v6313_v33 = vpop.f32.mrf.mxu1 }
 0x402   : > { %v14652_v38 = vadd.f32 %v6313_v33, %v14610_v44 }
 0x403   : > { %v6315_v28 = vpop.f32.mrf.mxu1 }
 0x404   : > { %v14655_v27 = vadd.f32 %v6315_v28, %v14615_v49 }
 0x405   : > { %v6319_v35 = vpop.f32.mrf.mxu1 }
 0x406   : > { %v14658_v16 = vadd.f32 %v6319_v35, %v14618_v7 }
 0x407   : > { %v6321_v63 = vpop.f32.mrf.mxu1 }
 0x408   : > { %v14663_v34 = vadd.f32 %v6321_v63, %v14621_v50 }
 0x409   : > { %v6323_v42 = vpop.f32.mrf.mxu1 }
 0x40a   : > { %v14666_v3 = vadd.f32 %v6323_v42, %v14624_v54  ;;  %v14681_v54 = vpop.f32.mrf.mxu0 }
 0x40b   : > { %v6325_v44 = vpop.f32.mrf.mxu1 }
 0x40c   : > { %v14671_v49 = vadd.f32 %v6325_v44, %v14629_v10  ;;  %v14687_v8 = vpop.f32.mrf.mxu0 }
 0x40d   : > { %v6329_v15 = vpop.f32.mrf.mxu1 }
 0x40e   : > { %v14673_v20 = vadd.f32 %v6329_v15, %v5948_v52  ;;  %v6655_v11 = vpop.f32.mrf.mxu0 }
 0x40f   : > { %v6331_v7 = vpop.f32.mrf.mxu1 }
 0x410   : > { %v14677_v55 = vadd.f32 %v6331_v7, %v5949_v14  ;;  %v6657_v29 = vpop.f32.mrf.mxu0 }
 0x411   : > { %v6333_v50 = vpop.f32.mrf.mxu1 }
 0x412   : > { %v14679_v24 = vadd.f32 %v6333_v50, %v5950_v46 }
 0x413   : > { %v6335_v32 = vpop.f32.mrf.mxu1 }
 0x414   : > { %v14683_v48 = vadd.f32 %v6335_v32, %v5951_v45 }
 0x415   : > { %v6339_v51 = vpop.f32.mrf.mxu1 }
 0x416   : > { %v14685_v31 = vadd.f32 %v6339_v51, %v5952_v5 }
 0x417   : > { %v6341_v10 = vpop.f32.mrf.mxu1 }
 0x418   : > { %v14689_v52 = vadd.f32 %v6341_v10, %v5953_v9  ;;  %v6659_v9 = vpop.f32.mrf.mxu0 }
 0x419   : > { %v6343_v61 = vpop.f32.mrf.mxu1 }
 0x41a   : > { %v14691_v37 = vadd.f32 %v6343_v61, %v5954_v25  ;;  %v6663_v25 = vpop.f32.mrf.mxu0 }
 0x41b   : > { %v6345_v14 = vpop.f32.mrf.mxu1 }
 0x41c   : > { %15458 = vst [vmem:[#allocation27_spill] sm:$0xff] %v14691_v37  ;;  %v14693_v46 = vadd.f32 %v6345_v14, %v5955_v59  ;;  %v6665_v13 = vpop.f32.mrf.mxu0  ;;  %v6695_v37 = vadd.f32 %v14681_v54, %v14655_v27 }
 0x41d   : > { %v6349_v18 = vpop.f32.mrf.mxu1 }
 0x41e   : > { %15459 = vst [vmem:[#allocation28_spill] sm:$0xff] %v14693_v46  ;;  %v14695_v58 = vadd.f32 %v6349_v18, %v5956_v26  ;;  %v6667_v17 = vpop.f32.mrf.mxu0 }
 0x41f   : > { %v6351_v45 = vpop.f32.mrf.mxu1  ;;  %v6702_v27 = vadd.f32 %v6667_v17, %v14679_v24 }
 0x420   : > { %15460 = vst [vmem:[#allocation30_spill] sm:$0xff] %v14695_v58  ;;  %v14697_v53 = vadd.f32 %v6351_v45, %v5957_v57  ;;  %v6669_v36 = vpop.f32.mrf.mxu0 }
 0x421   : > { %v6353_v5 = vpop.f32.mrf.mxu1 }
 0x422   : > { %15461 = vst [vmem:[#allocation33_spill] sm:$0xff] %v14697_v53  ;;  %v14699_v30 = vadd.f32 %v6353_v5, %v5958_v1  ;;  %v6673_v59 = vpop.f32.mrf.mxu0  ;;  %v15472_v53 = vld [vmem:[#allocation46_spill] sm:$0xff] }
 0x423   : > { %v6355_v6 = vpop.f32.mrf.mxu1  ;;  %v15473_v58 = vsub.s32 0, %v15472_v53 }
 0x424   : > { %15462 = vst [vmem:[#allocation35_spill] sm:$0xff] %v14699_v30  ;;  %v14701_v41 = vadd.f32 %v6355_v6, %v5959_v12  ;;  %v6675_v22 = vpop.f32.mrf.mxu0 }
 0x426   : > { %15463 = vst [vmem:[#allocation31_spill] sm:$0xff] %v14701_v41  ;;  %v6677_v2 = vpop.f32.mrf.mxu0 }
 0x428   : > { %v6679_v57 = vpop.f32.mrf.mxu0 }
 0x42a   : > { %v6683_v1 = vpop.f32.mrf.mxu0 }
 0x42c   : > { %v6685_v33 = vpop.f32.mrf.mxu0 }
 0x42e   : > { %v14703_v28 = vpop.f32.mrf.mxu0 }
 0x42f   : > { %15464 = vst [vmem:[#allocation38_spill] sm:$0xff] %v14703_v28  ;;  %v7848_v28 = vld [vmem:[%s15124_s4] sm:$0x3] }
 0x430   : > { %v14705_v63 = vpop.f32.mrf.mxu0 }
 0x431   : > { %15465 = vst [vmem:[#allocation37_spill] sm:$0xff] %v14705_v63 }
 0x437   : > { %v7445_v42 = vpop.f32.mrf.mxu0 }
 0x439   : > { %v7447_v15 = vpop.f32.mrf.mxu0 }
 0x43b   : > { %v7449_v50 = vpop.f32.mrf.mxu0 }
 0x43d   : > { %v7027_v19 = vpop.f32.mrf.mxu1  ;;  %v7451_v51 = vpop.f32.mrf.mxu0 }
 0x43f   : > { %v7029_v26 = vpop.f32.mrf.mxu1  ;;  %v7455_v61 = vpop.f32.mrf.mxu0 }
 0x441   : > { %v7031_v40 = vpop.f32.mrf.mxu1  ;;  %v7457_v18 = vpop.f32.mrf.mxu0 }
 0x443   : > { %v7033_v60 = vpop.f32.mrf.mxu1  ;;  %v7459_v5 = vpop.f32.mrf.mxu0 }
 0x444   : > { %v7079_v24 = vadd.f32 %v7033_v60, %v6695_v37  ;;  %v15479_v37 = vld [vmem:[#allocation35_spill] sm:$0xff]  ;;  %v15480_v60 = vld [vmem:[#allocation38_spill] sm:$0xff] }
 0x445   : > { %v7037_v39 = vpop.f32.mrf.mxu1  ;;  %v7461_v63 = vpop.f32.mrf.mxu0 }
 0x447   : > { %v7039_v47 = vpop.f32.mrf.mxu1 }
 0x449   : > { %v7041_v4 = vpop.f32.mrf.mxu1 }
 0x44b   : > { %v7043_v23 = vpop.f32.mrf.mxu1 }
 0x44d   : > { %v7047_v12 = vpop.f32.mrf.mxu1 }
 0x44f   : > { %v7049_v35 = vpop.f32.mrf.mxu1 }
 0x451   : > { %v7051_v44 = vpop.f32.mrf.mxu1 }
 0x453   : > { %v7053_v7 = vpop.f32.mrf.mxu1 }
 0x455   : > { %v14707_v32 = vpop.f32.mrf.mxu1 }
 0x456   : > { %15466 = vst [vmem:[#allocation40_spill] sm:$0xff] %v14707_v32  ;;  %v6692_v32 = vadd.f32 %v14660_v0, %v14646_v21  ;;  %v15474_v21 = vsub.s32 1, %v15472_v53  ;;  %v6703_v53 = vadd.f32 %v6669_v36, %v14683_v48 }
 0x457   : > { %v14709_v10 = vpop.f32.mrf.mxu1 }
 0x458   : > { %15467 = vst [vmem:[#allocation42_spill] sm:$0xff] %v14709_v10  ;;  %v7465_v10 = vpop.f32.mrf.mxu0  ;;  %v14738_v0 = vrot.slane %v7848_v28, %v15474_v21 }
 0x459   : > { %v14711_v14 = vpop.f32.mrf.mxu1 }
 0x45a   : > { %15468 = vst [vmem:[#allocation39_spill] sm:$0xff] %v14711_v14  ;;  %v6693_v14 = vadd.f32 %v14668_v62, %v14649_v56  ;;  %v6696_v56 = vadd.f32 %v14687_v8, %v14658_v16  ;;  %v6697_v62 = vadd.f32 %v6655_v11, %v14663_v34  ;;  %v6704_v16 = vadd.f32 %v6673_v59, %v14685_v31  ;;  %v15475_v11 = vld [vmem:[#allocation27_spill] sm:$0xff]  ;;  %v15478_v59 = vld [vmem:[#allocation33_spill] sm:$0xff] }
 0x45b   : > { %v14713_v45 = vpop.f32.mrf.mxu1  ;;  %v6705_v34 = vadd.f32 %v6675_v22, %v14689_v52  ;;  %v14761_v52 = vadd.f32 %v6685_v33, %v15478_v59 }
 0x45c   : > { %15469 = vst [vmem:[#allocation44_spill] sm:$0xff] %v14713_v45  ;;  %v7076_v45 = vadd.f32 %v7027_v19, %v6692_v32  ;;  %v7077_v46 = vadd.f32 %v7029_v26, %v6693_v14  ;;  %v7467_v19 = vpop.f32.mrf.mxu0  ;;  %v6699_v26 = vadd.f32 %v6659_v9, %v14671_v49  ;;  %v15477_v9 = vld [vmem:[#allocation30_spill] sm:$0xff] }
 0x45d   : > { %v14715_v6 = vpop.f32.mrf.mxu1 }
 0x45e   : > { %15470 = vst [vmem:[#allocation41_spill] sm:$0xff] %v14715_v6  ;;  %v14730_v6 = vrot.slane %v7848_v28, %v15473_v58  ;;  %v6698_v58 = vadd.f32 %v6657_v29, %v14666_v3  ;;  %v7494_v8 = vadd.f32 %v7445_v42, %v7076_v45  ;;  %v6706_v3 = vadd.f32 %v6677_v2, %v15475_v11  ;;  %v15476_v29 = vld [vmem:[#allocation28_spill] sm:$0xff]  ;;  %v7469_v17 = vpop.f32.mrf.mxu0 }
 0x45f   : > { %v14717_v41 = vpop.f32.mrf.mxu1  ;;  %v14755_v49 = vadd.f32 %v6679_v57, %v15476_v29  ;;  %v7083_v31 = vadd.f32 %v7043_v23, %v6699_v26  ;;  %v7086_v42 = vadd.f32 %v7051_v44, %v6702_v27  ;;  %v15483_v45 = vld [vmem:[#allocation40_spill] sm:$0xff]  ;;  %v15486_v29 = vld [vmem:[#allocation17_spill] sm:$0xff] }
 0x460   : > { %15471 = vst [vmem:[#allocation43_spill] sm:$0xff] %v14717_v41  ;;  %v6694_v41 = vadd.f32 %v14675_v43, %v14652_v38  ;;  %v6700_v38 = vadd.f32 %v6663_v25, %v14673_v20  ;;  %v6701_v43 = vadd.f32 %v6665_v13, %v14677_v55  ;;  %v14758_v20 = vadd.f32 %v6683_v1, %v15477_v9 }
 0x461   : > { %v14726_v30 = vpop.f32.mrf.mxu1  ;;  %v7080_v25 = vadd.f32 %v7037_v39, %v6696_v56  ;;  %v7081_v13 = vadd.f32 %v7039_v47, %v6697_v62  ;;  %v7082_v36 = vadd.f32 %v7041_v4, %v6698_v58  ;;  %v14768_v39 = vadd.f32 %v15480_v60, %v15479_v37  ;;  %v15481_v47 = vld [vmem:[#allocation31_spill] sm:$0xff]  ;;  %v15482_v4 = vld [vmem:[#allocation37_spill] sm:$0xff] }
 0x462   : > { %v7078_v32 = vadd.f32 %v7031_v40, %v6694_v41  ;;  %v7495_v41 = vadd.f32 %v7447_v15, %v7077_v46  ;;  %v7084_v40 = vadd.f32 %v7047_v12, %v6700_v38  ;;  %v7085_v57 = vadd.f32 %v7049_v35, %v6701_v43  ;;  %v7471_v15 = vpop.f32.mrf.mxu0  ;;  %v15484_v43 = vld [vmem:[#allocation42_spill] sm:$0xff] }
 0x463   : > { %v14748_v54 = vpop.f32.mrf.mxu1  ;;  %v7087_v46 = vadd.f32 %v7053_v7, %v6703_v53  ;;  %v14772_v23 = vadd.f32 %v15482_v4, %v15481_v47  ;;  %v7498_v12 = vadd.f32 %v7455_v61, %v7080_v25  ;;  %v7499_v35 = vadd.f32 %v7457_v18, %v7081_v13 }
 0x464   : > { %v7496_v2 = vadd.f32 %v7449_v50, %v7078_v32  ;;  %v7497_v50 = vadd.f32 %v7451_v51, %v7079_v24  ;;  %v7088_v21 = vadd.f32 %v15483_v45, %v6704_v16  ;;  %v7500_v62 = vadd.f32 %v7459_v5, %v7082_v36  ;;  %v7475_v16 = vpop.f32.mrf.mxu0 }
 0x465   : > { %v7501_v26 = vadd.f32 %v7461_v63, %v7083_v31  ;;  %v7502_v32 = vadd.f32 %v7465_v10, %v7084_v40  ;;  %v7503_v38 = vadd.f32 %v7467_v19, %v7085_v57  ;;  %v7089_v51 = vadd.f32 %v15484_v43, %v6705_v34 }
 0x466   : > { %v14784_v27 = vadd.f32 %v7469_v17, %v7086_v42  ;;  %v14786_v53 = vadd.f32 %v7471_v15, %v7087_v46  ;;  %v7477_v40 = vpop.f32.mrf.mxu0 }
 0x468   : > { %v7479_v43 = vpop.f32.mrf.mxu0 }
 0x47d   : > { %v7779_v55 = vpop.f32.mrf.mxu1 }
 0x47e   : > { %v7828_v48 = vadd.f32 %v7779_v55, %v7494_v8  ;;  %v15485_v8 = vld [vmem:[#allocation21_spill] sm:$0xff] }
 0x47f   : > { %v7781_v22 = vpop.f32.mrf.mxu1 }
 0x480   : > { %v14764_v28 = vadd.f32 %v14730_v6, %v7828_v48  ;;  %v7829_v1 = vadd.f32 %v7781_v22, %v7495_v41  ;;  %v14800_v41 = vadd.f32 %v7475_v16, %v7088_v21  ;;  %v15487_v48 = vld [vmem:[#allocation39_spill] sm:$0xff] }
 0x481   : > { %v7783_v33 = vpop.f32.mrf.mxu1  ;;  %v7090_v36 = vadd.f32 %v15487_v48, %v6706_v3  ;;  %v7481_v48 = vpop.f32.mrf.mxu0 }
 0x482   : > { %v7830_v14 = vadd.f32 %v7783_v33, %v7496_v2  ;;  %v7930_v44 = vmul.f32 %v14764_v28, %v14764_v28  ;;  %v14778_v7 = vadd.f32 %v14738_v0, %v7829_v1  ;;  %v7880_v11 = vmul.f32 %v14764_v28, %v15485_v8  ;;  %v15488_v1 = vld [vmem:[#allocation23_spill] sm:$0xff] }
 0x483   : > { %v7785_v56 = vpop.f32.mrf.mxu1 }
 0x484   : > { %v14781_v58 = vadd.f32 %v14730_v6, %v7830_v14  ;;  %v7831_v61 = vadd.f32 %v7785_v56, %v7497_v50  ;;  %v7950_v19 = vmul.f32 %v7930_v44, %v15485_v8  ;;  %v7931_v34 = vmul.f32 %v14778_v7, %v14778_v7 }
 0x485   : > { %v7789_v18 = vpop.f32.mrf.mxu1  ;;  %v7881_v31 = vmul.f32 %v14778_v7, %v15485_v8  ;;  %v7507_v56 = vadd.f32 %v7477_v40, %v7089_v51 }
 0x486   : > { %v7882_v5 = vmul.f32 %v14781_v58, %v15486_v29  ;;  %v7932_v63 = vmul.f32 %v14781_v58, %v14781_v58  ;;  %v7832_v10 = vadd.f32 %v7789_v18, %v7498_v12  ;;  %v14798_v9 = vadd.f32 %v14738_v0, %v7831_v61 }
 0x487   : > { %v7791_v55 = vpop.f32.mrf.mxu1  ;;  %v7951_v37 = vmul.f32 %v7931_v34, %v15485_v8  ;;  %v15489_v8 = vld [vmem:[#allocation44_spill] sm:$0xff] }
 0x488   : > { %v7900_v24 = vadd.f32 %v7882_v5, %v7880_v11  ;;  %v7952_v25 = vmul.f32 %v7932_v63, %v15486_v29  ;;  %v14804_v13 = vadd.f32 %v14730_v6, %v7832_v10  ;;  %v7833_v17 = vadd.f32 %v7791_v55, %v7499_v35 }
 0x489   : > { %v7883_v59 = vmul.f32 %v14798_v9, %v15486_v29  ;;  %v7933_v22 = vmul.f32 %v14798_v9, %v14798_v9  ;;  %v7793_v2 = vpop.f32.mrf.mxu1  ;;  %v7091_v11 = vadd.f32 %v15489_v8, %v14755_v49  ;;  %v7508_v55 = vadd.f32 %v7479_v43, %v7090_v36  ;;  %v15493_v43 = vld [vmem:[#allocation43_spill] sm:$0xff] }
 0x48a   : > { %v7970_v57 = vadd.f32 %v7952_v25, %v7950_v19  ;;  %v7884_v42 = vmul.f32 %v14804_v13, %v15488_v1  ;;  %v7934_v46 = vmul.f32 %v14804_v13, %v14804_v13  ;;  %v14818_v3 = vadd.f32 %v14738_v0, %v7833_v17 }
 0x48b   : > { %v7915_v60 = vadd.f32 %v7883_v59, %v7881_v31  ;;  %v7953_v47 = vmul.f32 %v7933_v22, %v15486_v29  ;;  %v7834_v4 = vadd.f32 %v7793_v2, %v7500_v62  ;;  %v7795_v33 = vpop.f32.mrf.mxu1  ;;  %v15490_v29 = vld [vmem:[#allocation32_spill] sm:$0xff]  ;;  %v15491_v31 = vld [vmem:[#allocation18_spill] sm:$0xff]  ;;  %v15492_v2 = vld [vmem:[#allocation41_spill] sm:$0xff] }
 0x48c   : > { %v7901_v15 = vadd.f32 %v7900_v24, %v7884_v42  ;;  %v7954_v14 = vmul.f32 %v7934_v46, %v15488_v1  ;;  %v7885_v50 = vmul.f32 %v14818_v3, %v15488_v1  ;;  %v7935_v12 = vmul.f32 %v14818_v3, %v14818_v3 }
 0x48d   : > { %v7985_v35 = vadd.f32 %v7953_v47, %v7951_v37  ;;  %v14828_v45 = vadd.f32 %v14730_v6, %v7834_v4  ;;  %v7835_v21 = vadd.f32 %v7795_v33, %v7501_v26  ;;  %v7799_v44 = vpop.f32.mrf.mxu1  ;;  %v7092_v40 = vadd.f32 %v15492_v2, %v14758_v20 }
 0x48e   : > { %v7971_v61 = vadd.f32 %v7970_v57, %v7954_v14  ;;  %v7916_v62 = vadd.f32 %v7915_v60, %v7885_v50  ;;  %v7955_v18 = vmul.f32 %v7935_v12, %v15488_v1  ;;  %v7836_v16 = vadd.f32 %v7799_v44, %v7502_v32  ;;  %v7485_v50 = vpop.f32.mrf.mxu0 }
 0x48f   : > { %v7886_v5 = vmul.f32 %v14828_v45, %v15490_v29  ;;  %v7936_v63 = vmul.f32 %v14828_v45, %v14828_v45  ;;  %v14838_v10 = vadd.f32 %v14738_v0, %v7835_v21  ;;  %v7801_v26 = vpop.f32.mrf.mxu1  ;;  %v7509_v14 = vadd.f32 %v7481_v48, %v7091_v11 }
 0x490   : > { %v7986_v51 = vadd.f32 %v7985_v35, %v7955_v18  ;;  %v14841_v19 = vadd.f32 %v14730_v6, %v7836_v16  ;;  %v7837_v34 = vadd.f32 %v7801_v26, %v7503_v38  ;;  %v7094_v48 = vadd.f32 %v14726_v30, %v14768_v39 }
 0x491   : > { %v7902_v32 = vadd.f32 %v7901_v15, %v7886_v5  ;;  %v7956_v24 = vmul.f32 %v7936_v63, %v15490_v29  ;;  %v7887_v49 = vmul.f32 %v14838_v10, %v15490_v29  ;;  %v7937_v25 = vmul.f32 %v14838_v10, %v14838_v10  ;;  %v7803_v17 = vpop.f32.mrf.mxu1 }
 0x492   : > { %v7888_v59 = vmul.f32 %v14841_v19, %v15491_v31  ;;  %v7938_v22 = vmul.f32 %v14841_v19, %v14841_v19  ;;  %v14853_v38 = vadd.f32 %v14738_v0, %v7837_v34  ;;  %v7838_v36 = vadd.f32 %v7803_v17, %v14784_v27 }
 0x493   : > { %v7972_v57 = vadd.f32 %v7971_v61, %v7956_v24  ;;  %v7917_v1 = vadd.f32 %v7916_v62, %v7887_v49  ;;  %v7957_v42 = vmul.f32 %v7937_v25, %v15490_v29  ;;  %v7805_v46 = vpop.f32.mrf.mxu1  ;;  %v7093_v61 = vadd.f32 %v15493_v43, %v14761_v52  ;;  %v15494_v62 = vld [vmem:[#allocation26_spill] sm:$0xff]  ;;  %v15495_v24 = vld [vmem:[#allocation20_spill] sm:$0xff] }
 0x494   : > { %v7903_v37 = vadd.f32 %v7902_v32, %v7888_v59  ;;  %v7958_v60 = vmul.f32 %v7938_v22, %v15491_v31  ;;  %v7889_v47 = vmul.f32 %v14853_v38, %v15491_v31  ;;  %v7939_v4 = vmul.f32 %v14853_v38, %v14853_v38  ;;  %v7487_v32 = vpop.f32.mrf.mxu0 }
 0x495   : > { %v7987_v33 = vadd.f32 %v7986_v51, %v7957_v42  ;;  %v14865_v27 = vadd.f32 %v14730_v6, %v7838_v36  ;;  %v7839_v20 = vadd.f32 %v7805_v46, %v14786_v53  ;;  %v7809_v15 = vpop.f32.mrf.mxu1  ;;  %v7510_v63 = vadd.f32 %v7485_v50, %v7092_v40 }
 0x496   : > { %v7973_v12 = vadd.f32 %v7972_v57, %v7958_v60  ;;  %v7918_v35 = vadd.f32 %v7917_v1, %v7889_v47  ;;  %v7959_v21 = vmul.f32 %v7939_v4, %v15491_v31  ;;  %v7840_v44 = vadd.f32 %v7809_v15, %v14800_v41  ;;  %v15496_v15 = vld [vmem:[#allocation19_spill] sm:$0xff] }
 0x497   : > { %v7890_v18 = vmul.f32 %v14865_v27, %v15494_v62  ;;  %v7940_v16 = vmul.f32 %v14865_v27, %v14865_v27  ;;  %v14877_v53 = vadd.f32 %v14738_v0, %v7839_v20  ;;  %v7811_v8 = vpop.f32.mrf.mxu1  ;;  %v7511_v39 = vadd.f32 %v7487_v32, %v7093_v61 }
 0x498   : > { %v7988_v11 = vadd.f32 %v7987_v33, %v7959_v21  ;;  %v14880_v29 = vadd.f32 %v14730_v6, %v7840_v44  ;;  %v7841_v5 = vadd.f32 %v7811_v8, %v7507_v56  ;;  %v7095_v20 = vadd.f32 %v14748_v54, %v14772_v23 }
 0x499   : > { %v7904_v41 = vadd.f32 %v7903_v37, %v7890_v18  ;;  %v7960_v26 = vmul.f32 %v7940_v16, %v15494_v62  ;;  %v7891_v52 = vmul.f32 %v14877_v53, %v15494_v62  ;;  %v7941_v51 = vmul.f32 %v14877_v53, %v14877_v53  ;;  %v7813_v34 = vpop.f32.mrf.mxu1  ;;  %v7489_v37 = vpop.f32.mrf.mxu0 }
 0x49a   : > { %v7892_v49 = vmul.f32 %v14880_v29, %v15495_v24  ;;  %v7942_v25 = vmul.f32 %v14880_v29, %v14880_v29  ;;  %v14892_v56 = vadd.f32 %v14738_v0, %v7841_v5  ;;  %v7842_v17 = vadd.f32 %v7813_v34, %v7508_v55 }
 0x49b   : > { %v7974_v31 = vadd.f32 %v7973_v12, %v7960_v26  ;;  %v7919_v59 = vadd.f32 %v7918_v35, %v7891_v52  ;;  %v7961_v22 = vmul.f32 %v7941_v51, %v15494_v62  ;;  %v7815_v36 = vpop.f32.mrf.mxu1  ;;  %v7512_v61 = vadd.f32 %v7489_v37, %v7094_v48  ;;  %v7491_v8 = vpop.f32.mrf.mxu0 }
 0x49c   : > { %v7905_v2 = vadd.f32 %v7904_v41, %v7892_v49  ;;  %v7962_v40 = vmul.f32 %v7942_v25, %v15495_v24  ;;  %v7893_v57 = vmul.f32 %v14892_v56, %v15495_v24  ;;  %v7943_v1 = vmul.f32 %v14892_v56, %v14892_v56 }
 0x49d   : > { %v7989_v42 = vadd.f32 %v7988_v11, %v7961_v22  ;;  %v14903_v55 = vadd.f32 %v14730_v6, %v7842_v17  ;;  %v7843_v46 = vadd.f32 %v7815_v36, %v7509_v14  ;;  %v7819_v30 = vpop.f32.mrf.mxu1  ;;  %v15497_v11 = vld [vmem:[#allocation29_spill] sm:$0xff]  ;;  %v7513_v32 = vadd.f32 %v7491_v8, %v7095_v20 }
 0x49e   : > { %v7975_v60 = vadd.f32 %v7974_v31, %v7962_v40  ;;  %v7920_v47 = vadd.f32 %v7919_v59, %v7893_v57  ;;  %v7963_v4 = vmul.f32 %v7943_v1, %v15495_v24  ;;  %v7844_v33 = vadd.f32 %v7819_v30, %v7510_v63  ;;  %v15498_v57 = vld [vmem:[#allocation22_spill] sm:$0xff] }
 0x49f   : > { %v7894_v50 = vmul.f32 %v14903_v55, %v15496_v15  ;;  %v7944_v12 = vmul.f32 %v14903_v55, %v14903_v55  ;;  %v14913_v35 = vadd.f32 %v14738_v0, %v7843_v46  ;;  %v7821_v14 = vpop.f32.mrf.mxu1 }
 0x4a0   : > { %v7990_v21 = vadd.f32 %v7989_v42, %v7963_v4  ;;  %v14916_v44 = vadd.f32 %v14730_v6, %v7844_v33  ;;  %v7845_v43 = vadd.f32 %v7821_v14, %v7511_v39 }
 0x4a1   : > { %v7906_v62 = vadd.f32 %v7905_v2, %v7894_v50  ;;  %v7964_v18 = vmul.f32 %v7944_v12, %v15496_v15  ;;  %v7895_v54 = vmul.f32 %v14913_v35, %v15496_v15  ;;  %v7945_v23 = vmul.f32 %v14913_v35, %v14913_v35  ;;  %v7823_v16 = vpop.f32.mrf.mxu1 }
 0x4a2   : > { %v7896_v5 = vmul.f32 %v14916_v44, %v15497_v11  ;;  %v7946_v63 = vmul.f32 %v14916_v44, %v14916_v44  ;;  %v14928_v41 = vadd.f32 %v14738_v0, %v7845_v43  ;;  %v7846_v26 = vadd.f32 %v7823_v16, %v7512_v61 }
 0x4a3   : > { %v7976_v52 = vadd.f32 %v7975_v60, %v7964_v18  ;;  %v7921_v51 = vadd.f32 %v7920_v47, %v7895_v54  ;;  %v7965_v34 = vmul.f32 %v7945_v23, %v15496_v15  ;;  %v7825_v24 = vpop.f32.mrf.mxu1 }
 0x4a4   : > { %v7907_v49 = vadd.f32 %v7906_v62, %v7896_v5  ;;  %v7966_v25 = vmul.f32 %v7946_v63, %v15497_v11  ;;  %v7897_v17 = vmul.f32 %v14928_v41, %v15497_v11  ;;  %v7947_v48 = vmul.f32 %v14928_v41, %v14928_v41 }
 0x4a5   : > { %v7991_v31 = vadd.f32 %v7990_v21, %v7965_v34  ;;  %v14937_v59 = vadd.f32 %v14730_v6, %v7846_v26  ;;  %v7847_v22 = vadd.f32 %v7825_v24, %v7513_v32 }
 0x4a6   : > { %v7977_v36 = vadd.f32 %v7976_v52, %v7966_v25  ;;  %v7922_v2 = vadd.f32 %v7921_v51, %v7897_v17  ;;  %v7967_v40 = vmul.f32 %v7947_v48, %v15497_v11 }
 0x4a7   : > { %v7898_v1 = vmul.f32 %v14937_v59, %v15498_v57  ;;  %v7948_v42 = vmul.f32 %v14937_v59, %v14937_v59  ;;  %v14945_v46 = vadd.f32 %v14738_v0, %v7847_v22 }
 0x4a8   : > { %v7992_v30 = vadd.f32 %v7991_v31, %v7967_v40 }
 0x4a9   : > { %v7908_v39 = vadd.f32 %v7907_v49, %v7898_v1  ;;  %v7968_v37 = vmul.f32 %v7948_v42, %v15498_v57  ;;  %v7899_v6 = vmul.f32 %v14945_v46, %v15498_v57  ;;  %v7949_v60 = vmul.f32 %v14945_v46, %v14945_v46 }
 0x4ab   : > { %v7909_v47 = vrot.slane %v7908_v39, 4  ;;  %v7978_v4 = vadd.f32 %v7977_v36, %v7968_v37  ;;  %v7923_v33 = vadd.f32 %v7922_v2, %v7899_v6  ;;  %v7969_v20 = vmul.f32 %v7949_v60, %v15498_v57 }
 0x4ad   : > { %v7910_v15 = vadd.f32 %v7909_v47, %v7908_v39  ;;  %v7979_v50 = vrot.slane %v7978_v4, 4  ;;  %v7924_v12 = vrot.slane %v7923_v33, 4  ;;  %v7993_v0 = vadd.f32 %v7992_v30, %v7969_v20 }
 0x4af   : > { %v7911_v14 = vrot.slane %v7910_v15, 2  ;;  %v7980_v21 = vadd.f32 %v7979_v50, %v7978_v4  ;;  %v7925_v43 = vadd.f32 %v7924_v12, %v7923_v33  ;;  %v7994_v61 = vrot.slane %v7993_v0, 4 }
 0x4b1   : > { %v7912_v62 = vadd.f32 %v7911_v14, %v7910_v15  ;;  %v7981_v18 = vrot.slane %v7980_v21, 2  ;;  %v7926_v54 = vrot.slane %v7925_v43, 2  ;;  %v7995_v23 = vadd.f32 %v7994_v61, %v7993_v0 }
 0x4b3   : > { %v7913_v16 = vrot.slane %v7912_v62, 1  ;;  %v7982_v8 = vadd.f32 %v7981_v18, %v7980_v21  ;;  %v7927_v11 = vadd.f32 %v7926_v54, %v7925_v43  ;;  %v7996_v5 = vrot.slane %v7995_v23, 2 }
 0x4b5   : > { %v7914_v63 = vadd.f32 %v7913_v16, %v7912_v62  ;;  %v7983_v26 = vrot.slane %v7982_v8, 1  ;;  %v7928_v52 = vrot.slane %v7927_v11, 1  ;;  %v7997_v51 = vadd.f32 %v7996_v5, %v7995_v23 }
 0x4b7   : > { %v7984_v34 = vadd.f32 %v7983_v26, %v7982_v8  ;;  %v8000_v32 = vmul.f32 0.015625, %v7914_v63  ;;  %v7929_v24 = vadd.f32 %v7928_v52, %v7927_v11  ;;  %v7998_v49 = vrot.slane %v7997_v51, 1 }
 0x4b9   : > { %v8002_v25 = vmul.f32 0.015625, %v7984_v34  ;;  %v8004_v17 = vmul.f32 %v8000_v32, %v8000_v32  ;;  %v8008_v48 = vsub.f32 %v14764_v28, %v8000_v32  ;;  %v8010_v31 = vsub.f32 %v14781_v58, %v8000_v32 }
 0x4ba   : > { %v8012_v22 = vsub.f32 %v14804_v13, %v8000_v32  ;;  %v8014_v36 = vsub.f32 %v14828_v45, %v8000_v32  ;;  %v8016_v2 = vsub.f32 %v14841_v19, %v8000_v32  ;;  %v8018_v40 = vsub.f32 %v14865_v27, %v8000_v32 }
 0x4bb   : > { %v8006_v57 = vsub.f32 %v8002_v25, %v8004_v17  ;;  %v8020_v1 = vsub.f32 %v14880_v29, %v8000_v32  ;;  %v8022_v42 = vsub.f32 %v14903_v55, %v8000_v32  ;;  %v8024_v30 = vsub.f32 %v14916_v44, %v8000_v32 }
 0x4bc   : > { %v8026_v39 = vsub.f32 %v14937_v59, %v8000_v32  ;;  %v7999_v28 = vadd.f32 %v7998_v49, %v7997_v51  ;;  %v14963_v37 = vmul.f32 0.015625, %v7929_v24 }
 0x4bd   : > { %v8028_v58 = vadd.f32 1e-05, %v8006_v57 }
 0x4be   : > { %v8003_v13 = vmul.f32 0.015625, %v7999_v28  ;;  %v8005_v45 = vmul.f32 %v14963_v37, %v14963_v37  ;;  %v8009_v19 = vsub.f32 %v14778_v7, %v14963_v37  ;;  %v8011_v27 = vsub.f32 %v14798_v9, %v14963_v37  ;;  %v10460_v28 = vld [vmem:[%s10761_s14 + $0x40] sm:$0xff] }
 0x4bf   : > { %10446 = vrsqrt.f32 %v8028_v58  ;;  %v8013_v29 = vsub.f32 %v14818_v3, %v14963_v37  ;;  %v8015_v55 = vsub.f32 %v14838_v10, %v14963_v37  ;;  %v8017_v44 = vsub.f32 %v14853_v38, %v14963_v37 }
 0x4c0   : > { %v8007_v59 = vsub.f32 %v8003_v13, %v8005_v45  ;;  %v8019_v6 = vsub.f32 %v14877_v53, %v14963_v37  ;;  %v8021_v60 = vsub.f32 %v14892_v56, %v14963_v37  ;;  %v8023_v47 = vsub.f32 %v14913_v35, %v14963_v37  ;;  %v10461_v45 = vld [vmem:[%s10761_s14 + $0x50] sm:$0xff] }
 0x4c1   : > { %v8025_v4 = vsub.f32 %v14928_v41, %v14963_v37  ;;  %v8027_v33 = vsub.f32 %v14945_v46, %v14963_v37 }
 0x4c2   : > { %v8029_v20 = vadd.f32 1e-05, %v8007_v59 }
 0x4c4   : > { %10448 = vrsqrt.f32 %v8029_v20  ;;  %v10462_v20 = vld [vmem:[%s10761_s14 + $0x60] sm:$0xff] }
 0x4cc   : > { %v10447_v15 = vpop.eup %10446 }
 0x4cd   : > { %v8032_v50 = vmul.f32 %v10447_v15, %v8008_v48  ;;  %v8034_v12 = vmul.f32 %v10447_v15, %v8010_v31  ;;  %v8036_v0 = vmul.f32 %v10447_v15, %v8012_v22  ;;  %v8038_v14 = vmul.f32 %v10447_v15, %v8014_v36  ;;  %v10456_v22 = vld [vmem:[%s10761_s14] sm:$0xff] }
 0x4ce   : > { %v8040_v21 = vmul.f32 %v10447_v15, %v8016_v2  ;;  %v8042_v43 = vmul.f32 %v10447_v15, %v8018_v40  ;;  %v8044_v61 = vmul.f32 %v10447_v15, %v8020_v1  ;;  %v8046_v62 = vmul.f32 %v10447_v15, %v8022_v42  ;;  %v10457_v2 = vld [vmem:[%s10761_s14 + $0x10] sm:$0xff]  ;;  %v10458_v1 = vld [vmem:[%s10761_s14 + $0x20] sm:$0xff] }
 0x4cf   : > { %v8048_v18 = vmul.f32 %v10447_v15, %v8024_v30  ;;  %v8050_v54 = vmul.f32 %v10447_v15, %v8026_v39  ;;  %v8057_v23 = vrot.slane %v8034_v12, 2  ;;  %v8058_v16 = vrot.slane %v8036_v0, 2  ;;  %v10459_v30 = vld [vmem:[%s10761_s14 + $0x30] sm:$0xff] }
 0x4d0   : > { %v8068_v8 = vrot.slane %v8036_v0, 4  ;;  %v8069_v11 = vrot.slane %v8038_v14, 4  ;;  %v8079_v5 = vrot.slane %v8038_v14, 6  ;;  %v8080_v63 = vrot.slane %v8040_v21, 6  ;;  %v10463_v12 = vld [vmem:[%s10761_s14 + $0x70] sm:$0xff] }
 0x4d1   : > { %v8059_v26 = vsel %vm2532_vm9, %v8057_v23, %v8058_v16  ;;  %v8091_v52 = vrot.slane %v8044_v61, 2  ;;  %v8092_v51 = vrot.slane %v8046_v62, 2  ;;  %v8101_v34 = vrot.slane %v8046_v62, 4  ;;  %v10449_v32 = vpop.eup %10448  ;;  %v10464_v62 = vld [vmem:[%s10761_s14 + $0x8] sm:$0xff] }
 0x4d2   : > { %v8070_v24 = vsel %vm15499_vm11, %v8068_v8, %v8069_v11  ;;  %v8081_v49 = vsel %vm15500_vm12, %v8079_v5, %v8080_v63  ;;  %v8102_v25 = vrot.slane %v8048_v18, 4  ;;  %v8111_v17 = vrot.slane %v8048_v18, 6  ;;  %v10466_v8 = vld [vmem:[%s10761_s14 + $0x28] sm:$0xff]  ;;  %v10467_v5 = vld [vmem:[%s10761_s14 + $0x38] sm:$0xff] }
 0x4d3   : > { %v8093_v48 = vsel %vm2532_vm9, %v8091_v52, %v8092_v51  ;;  %v8112_v31 = vrot.slane %v8050_v54, 6  ;;  %v8119_v36 = vadd.f32 %v10456_v22, %v8032_v50  ;;  %v8121_v40 = vadd.f32 %v10457_v2, %v8059_v26  ;;  %v10465_v54 = vld [vmem:[%s10761_s14 + $0x18] sm:$0xff]  ;;  %v10468_v26 = vld [vmem:[%s10761_s14 + $0x48] sm:$0xff] }
 0x4d4   : > { %v8103_v57 = vsel %vm15501_vm5, %v8101_v34, %v8102_v25  ;;  %v8123_v42 = vadd.f32 %v10458_v1, %v8070_v24  ;;  %v8125_v39 = vadd.f32 %v10459_v30, %v8081_v49  ;;  %v8127_v58 = vadd.f32 %v10460_v28, %v8042_v43  ;;  %v10469_v34 = vld [vmem:[%s10761_s14 + $0x58] sm:$0xff]  ;;  %v10470_v24 = vld [vmem:[%s10761_s14 + $0x68] sm:$0xff] }
 0x4d5   : > { %v8113_v13 = vsel %vm15502_vm8, %v8111_v17, %v8112_v31  ;;  %v8129_v59 = vadd.f32 %v10461_v45, %v8093_v48  ;;  %v8131_v15 = vadd.f32 %v10462_v20, %v8103_v57  ;;  %8135 = vst [vmem:[%s15006_s9] sm:$0xff] %v8119_v36  ;;  %8137 = vst [vmem:[%s15006_s9 + $0x10] sm:$0xff] %v8121_v40  ;;  %v10471_v25 = vld [vmem:[%s10761_s14 + $0x78] sm:$0xff]  ;;  %s10478_s14 = scalar_lea.vmem %s10477_s18, 4096 }
 0x4d6   : > { %v8033_v50 = vmul.f32 %v10449_v32, %v8009_v19  ;;  %v8133_v0 = vadd.f32 %v10463_v12, %v8113_v13  ;;  %8139 = vst [vmem:[%s15006_s9 + $0x20] sm:$0xff] %v8123_v42  ;;  %8141 = vst [vmem:[%s15006_s9 + $0x30] sm:$0xff] %v8125_v39  ;;  %v8035_v14 = vmul.f32 %v10449_v32, %v8011_v27  ;;  %p10480_p1 = scmp.lt.s32.totalorder %s10478_s14, %s10472_s16 }
 0x4d7   : > { %8143 = vst [vmem:[%s15006_s9 + $0x40] sm:$0xff] %v8127_v58  ;;  %v8037_v21 = vmul.f32 %v10449_v32, %v8013_v29  ;;  %v8039_v43 = vmul.f32 %v10449_v32, %v8015_v55  ;;  %8145 = vst [vmem:[%s15006_s9 + $0x50] sm:$0xff] %v8129_v59  ;;  %v8041_v7 = vmul.f32 %v10449_v32, %v8017_v44 }
 0x4d8   : > { %8147 = vst [vmem:[%s15006_s9 + $0x60] sm:$0xff] %v8131_v15  ;;  %v8043_v19 = vmul.f32 %v10449_v32, %v8019_v6  ;;  %v8045_v9 = vmul.f32 %v10449_v32, %v8021_v60  ;;  %v8047_v3 = vmul.f32 %v10449_v32, %v8023_v47  ;;  %8149 = vst [vmem:[%s15006_s9 + $0x70] sm:$0xff] %v8133_v0  ;;  %v8060_v53 = vrot.slane %v8035_v14, 2  ;;  %p10481_p2 = por %p10480_p1, %p10479_p0 }
 0x4d9   : > { %v8049_v10 = vmul.f32 %v10449_v32, %v8025_v4  ;;  %v8051_v38 = vmul.f32 %v10449_v32, %v8027_v33  ;;  %v8061_v27 = vrot.slane %v8037_v21, 2  ;;  %v8071_v29 = vrot.slane %v8037_v21, 4 }
 0x4da   : > { %v8072_v56 = vrot.slane %v8039_v43, 4  ;;  %v8082_v55 = vrot.slane %v8039_v43, 6  ;;  %v8083_v35 = vrot.slane %v8041_v7, 6  ;;  %v8094_v6 = vrot.slane %v8045_v9, 2  ;;  %p10482_p3 = pnand %p10481_p2, %p10475_p13 }
 0x4db   : > { %v8062_v44 = vsel %vm2532_vm9, %v8060_v53, %v8061_v27  ;;  %v8095_v41 = vrot.slane %v8047_v3, 2  ;;  %v8104_v60 = vrot.slane %v8047_v3, 4  ;;  %v8105_v47 = vrot.slane %v8049_v10, 4 }
 0x4dc   : > { %v8073_v46 = vsel %vm15503_vm10, %v8071_v29, %v8072_v56  ;;  %v8084_v37 = vsel %vm15504_vm15, %v8082_v55, %v8083_v35  ;;  %v8114_v4 = vrot.slane %v8049_v10, 6  ;;  %v8115_v61 = vrot.slane %v8051_v38, 6 }
 0x4dd   : > { %v8096_v33 = vsel %vm2532_vm9, %v8094_v6, %v8095_v41  ;;  %v8120_v18 = vadd.f32 %v10464_v62, %v8033_v50  ;;  %v8122_v23 = vadd.f32 %v10465_v54, %v8062_v44  ;;  %v8106_v16 = vsel %vm15505_vm4, %v8104_v60, %v8105_v47  ;;  %vm15506_vm9 = vmmov %vm15502_vm8 }
 0x4de   : > { %v8124_v11 = vadd.f32 %v10466_v8, %v8073_v46  ;;  %v8126_v63 = vadd.f32 %v10467_v5, %v8084_v37  ;;  %v8128_v52 = vadd.f32 %v10468_v26, %v8043_v19  ;;  %v8116_v51 = vsel %vm15506_vm9, %v8114_v4, %v8115_v61 }
 0x4df   : > { %v8130_v32 = vadd.f32 %v10469_v34, %v8096_v33  ;;  %v8132_v49 = vadd.f32 %v10470_v24, %v8106_v16  ;;  %8136 = vst [vmem:[%s15006_s9 + $0x8] sm:$0xff] %v8120_v18  ;;  %8138 = vst [vmem:[%s15006_s9 + $0x18] sm:$0xff] %v8122_v23  ;;  %v8134_v17 = vadd.f32 %v10471_v25, %v8116_v51 }
 0x4e0   : > { %8140 = vst [vmem:[%s15006_s9 + $0x28] sm:$0xff] %v8124_v11  ;;  %8142 = vst [vmem:[%s15006_s9 + $0x38] sm:$0xff] %v8126_v63 }
 0x4e1   : > { %8144 = vst [vmem:[%s15006_s9 + $0x48] sm:$0xff] %v8128_v52  ;;  %8146 = vst [vmem:[%s15006_s9 + $0x58] sm:$0xff] %v8130_v32 }
 0x4e2   : > { %8148 = vst [vmem:[%s15006_s9 + $0x68] sm:$0xff] %v8132_v49  ;;  %8150 = vst [vmem:[%s15006_s9 + $0x78] sm:$0xff] %v8134_v17 }
 0x4e3   : > { %10485 = shalt.err (!%p10482_p3)
}
 0x4e4   : > { %s10486_s19 = scalar_lea.hbm %s15067_s10, 2048  ;;  %s10490_s28 = scalar_lea.hbm %s15126_s6, 4096 }
 0x4e5   : > { %p10487_p4 = scmp.ne.s32.totalorder %s15067_s10, %s10486_s19  ;;  %p10491_p9 = scmp.lt.s32.totalorder %s15067_s10, %s15126_s6 }
 0x4e6   : > { %p10492_p10 = scmp.lt.s32.totalorder %s10490_s28, %s10486_s19 }
 0x4e7   : > { %p10488_p7 = pnand %p10487_p4, %p10611_p5 }
 0x4e8   : > { %p10493_p11 = por %p10492_p10, %p10491_p9 }
 0x4e9   : > { %p10489_p8 = pneg %p10488_p7 }
 0x4eb   : > { %p10494_p12 = pnand %p10493_p11, %p10489_p8 }
 0x4ed   : > { %10497 = shalt.err (!%p10494_p12)
}
 0x4ee   : > { %s10536_s11 = smov 256   ;;  %s10537_s25 = smov 16  }
 0x4ef   : > { %9475 = dma.vmem_to_hbm [thread:$0]  (%p10611_p5), %s15069_s12, 2048, %s15067_s10, %s15080_s15, %s10536_s11, %s10536_s11, %s10537_s25  }
 0x4f0 PF: > { %p9481_p13 = scmp.ge.s32.totalorder %s10532_s24, 2  ;;  %s8180_s13 = sand.u32 1, %s10520_s21  }
 0x4f1   : > { %s8181_s16 = scalar_lea.sflag [#allocation4], %s8180_s13 }
 0x4f2   : > { %p9478_p0 = pnand %p9481_p13, %p10615_p6 }
 0x4f4   : > { %p9479_p1 = pneg %p9478_p0 }
 0x4f6   : > { %10515 = dma.done.wait (%p9479_p1), %s8181_s16, 2048  }
 0x4f7   : > { %10517 = vsyncadd (%p9479_p1), %s8181_s16, 4294965248  ;;  %p16_p2 = scmp.ge.s32.totalorder %s10598_s27, 4   ;;  %s15507_s21 = smov %s10524_s22 }
 0x4f8   : > { %s15508_s22 = smov %s10528_s23  ;;  %s15509_s23 = smov %s10609_s30 }
 0x4f9   : > { %s15510_s24 = smov %s10598_s27  ;;  %18 = sbr.rel (!%p16_p2) target bundleno = 3 (0x3), region = 95 }
 0x4fe   :  { %8186 = vsyncpa [#allocation4], 1 }
 0x4ff   :  { %8188 = vsyncpa [#allocation4 + $0x1], 1 }

</bundles_post_ra>
